<compile_context>
chip_gen: v7x
topology: tpu7x:2x2x1
jax: 0.10.0
libtpu: 0.0.40
codegen_flags: <defaults>
</compile_context>

<pallas_src>
import functools

import jax
import jax.numpy as jnp
import numpy as np
from jax.experimental import pallas as pl
from jax.experimental.pallas import tpu as pltpu

BN_EPS = 1e-3


def _round_up(x, m):
    return (x + m - 1) // m * m


def _pad2(a, rows, cols):
    pr, pc = rows - a.shape[0], cols - a.shape[1]
    if pr == 0 and pc == 0:
        return a
    return jnp.pad(a, ((0, pr), (0, pc)))


@functools.lru_cache(maxsize=1)
def _num_tensorcores_per_chip():
    """Best-effort megacore detection (v4 / v5p / v7x expose 2 TCs per device)."""
    try:
        kind = jax.devices()[0].device_kind.lower()
    except Exception:  # pragma: no cover
        return 1
    if any(tag in kind for tag in ("v4", "v5p", "v7", "7x")):
        return 2
    return 1


# ----------------------------------------------------------------------------
# Pallas kernels: matmul with fused bias + ReLU epilogue (BN scale pre-folded
# into the weight columns). bf16 operands, f32 MXU accumulation.
# ----------------------------------------------------------------------------
def _mm_bias_relu_kernel(cols_ref, w_ref, bias_ref, o_ref):
    # Single-K-step specialisation: compute, add bias, relu, store once.
    acc = jnp.dot(cols_ref[...], w_ref[...], preferred_element_type=jnp.float32)
    o_ref[...] = jnp.maximum(acc + bias_ref[...], 0.0).astype(o_ref.dtype)


def _mm_bias_relu_kernel_ksplit(cols_ref, w_ref, bias_ref, o_ref, acc_ref):
    # Fallback for K > 4096: f32 VMEM accumulator, epilogue on the last K step.
    k = pl.program_id(3)

    @pl.when(k == 0)
    def _():
        acc_ref[...] = jnp.zeros_like(acc_ref)

    acc_ref[...] += jnp.dot(cols_ref[...], w_ref[...],
                            preferred_element_type=jnp.float32)

    @pl.when(k == pl.num_programs(3) - 1)
    def _():
        o_ref[...] = jnp.maximum(acc_ref[...] + bias_ref[...],
                                 0.0).astype(o_ref.dtype)


# ----------------------------------------------------------------------------
# Tiling plans.
# ----------------------------------------------------------------------------
def _plan_m(m):
    mp = _round_up(m, 8)
    if mp <= 512:
        return mp, mp                       # one M block
    mp = _round_up(m, 128)
    for tm in (512, 384, 256, 128):
        if mp % tm == 0:
            return mp, tm
    return mp, 128


def _plan_n(cout, groups, m_blocks, multi_core):
    np_ = _round_up(cout, 128)
    tn = 128
    for cand in range(min(np_, 1536), 127, -128):   # largest lane-aligned tile
        if np_ % cand == 0:
            tn = cand
            break
    # On 2-TC chips only, make sure a call has >= 2 parallel blocks to shard.
    if multi_core and groups * m_blocks * (np_ // tn) < 2 and cout > 128:
        np_ = _round_up(cout, 256)
        tn = np_ // 2
    return np_, tn


# ----------------------------------------------------------------------------
# Grouped matmul wrapper: out[:, g*Cout:(g+1)*Cout] = relu(cols_g @ w_g + b_g).
# All groups share M, K and Cout. Returns [M, G*Cout] in `out_dtype`.
# ----------------------------------------------------------------------------
def grouped_matmul_bias_relu(cols_list, w_list, bias_list, out_dtype=jnp.float32):
    g = len(cols_list)
    m, k = cols_list[0].shape
    cout = w_list[0].shape[1]

    multi_core = _num_tensorcores_per_chip() >= 2
    mp, tm = _plan_m(m)
    np_, tn = _plan_n(cout, g, mp // tm, multi_core)

    if k <= 4096:
        kp, tk = k, k                      # single reduction step, no K padding
    else:
        tk = 2048
        kp = _round_up(k, tk)

    cols = jnp.stack([_pad2(c.astype(jnp.bfloat16), mp, kp) for c in cols_list])
    w = jnp.stack([_pad2(wg.astype(jnp.bfloat16), kp, np_) for wg in w_list])
    bias = jnp.stack(
        [jnp.pad(b, (0, np_ - b.shape[0]))[None, :] for b in bias_list]
    ).astype(jnp.float32)

    nj = np_ // tn
    vmem_limit = (32 if multi_core else 64) * 1024 * 1024

    if kp == tk:
        grid = (g, mp // tm, nj)
        in_specs = [
            pl.BlockSpec((None, tm, tk), lambda gi, i, j: (gi, i, 0)),
            pl.BlockSpec((None, tk, tn), lambda gi, i, j: (gi, 0, j)),
            pl.BlockSpec((None, 1, tn), lambda gi, i, j: (gi, 0, j)),
        ]
        out_spec = pl.BlockSpec((tm, tn), lambda gi, i, j: (i, gi * nj + j))
        kernel = _mm_bias_relu_kernel
        scratch = []
        sem = ("parallel", "parallel", "parallel")
    else:
        grid = (g, mp // tm, nj, kp // tk)
        in_specs = [
            pl.BlockSpec((None, tm, tk), lambda gi, i, j, kk: (gi, i, kk)),
            pl.BlockSpec((None, tk, tn), lambda gi, i, j, kk: (gi, kk, j)),
            pl.BlockSpec((None, 1, tn), lambda gi, i, j, kk: (gi, 0, j)),
        ]
        out_spec = pl.BlockSpec((tm, tn), lambda gi, i, j, kk: (i, gi * nj + j))
        kernel = _mm_bias_relu_kernel_ksplit
        scratch = [pltpu.VMEM((tm, tn), jnp.float32)]
        sem = ("parallel", "parallel", "parallel", "arbitrary")

    out = pl.pallas_call(
        kernel,
        out_shape=jax.ShapeDtypeStruct((mp, g * np_), out_dtype),
        grid_spec=pltpu.PrefetchScalarGridSpec(
            num_scalar_prefetch=0,
            grid=grid,
            in_specs=in_specs,
            out_specs=out_spec,
            scratch_shapes=scratch,
        ),
        compiler_params=pltpu.CompilerParams(
            dimension_semantics=sem,
            vmem_limit_bytes=vmem_limit,
        ),
    )(cols, w, bias)

    if mp == m and np_ == cout:
        return out
    if np_ == cout:
        return out[:m]
    if g == 1:
        return out[:m, :cout]
    return jnp.concatenate(
        [out[:m, i * np_: i * np_ + cout] for i in range(g)], axis=-1)


# ----------------------------------------------------------------------------
# im2col (runs in bf16 — cast activations before calling) and BN folding.
# ----------------------------------------------------------------------------
def _im2col(x_nhwc, kh, kw, ph, pw):
    n, h, w, c = x_nhwc.shape
    xp = jnp.pad(x_nhwc, ((0, 0), (ph, ph), (pw, pw), (0, 0)))
    taps = [xp[:, i:i + h, j:j + w, :] for i in range(kh) for j in range(kw)]
    return jnp.concatenate(taps, axis=-1).reshape(n * h * w, kh * kw * c)


def _bn_fold(p):
    """Fold BN scale into the flattened weight; return (w_eff [K,Cout], bias)."""
    scale = p["gamma"] * jax.lax.rsqrt(p["var"] + BN_EPS)
    bias = p["beta"] - p["mean"] * scale
    w_flat = p["w"].reshape(-1, p["w"].shape[-1]) * scale[None, :]
    return w_flat, bias


# ----------------------------------------------------------------------------
# InceptionE forward (NCHW in / NCHW out, like the PyTorch module).
# ----------------------------------------------------------------------------
def inception_e(x_nchw, params):
    x = jnp.transpose(x_nchw, (0, 2, 3, 1))                    # -> NHWC f32
    n, h, w, c = x.shape
    m = n * h * w

    # 3x3/stride-1 avg pool, count_include_pad (matches F.avg_pool2d default).
    pooled = jax.lax.reduce_window(
        x, 0.0, jax.lax.add, (1, 3, 3, 1), (1, 1, 1, 1),
        [(0, 0), (1, 1), (1, 1), (0, 0)]) / 9.0

    # --- call 1: fused 1x1 stem (320|384|448) + pool-branch 1x1 (192) --------
    # cols = [x | avgpool(x)] with a block-diagonal weight; K=2*C_in is tiny so
    # the extra MACs are negligible and it removes a whole pallas_call.
    x_flat = x.reshape(m, c).astype(jnp.bfloat16)
    p_flat = pooled.reshape(m, c).astype(jnp.bfloat16)
    cols_stem = jnp.concatenate([x_flat, p_flat], axis=-1)      # [M, 2C] bf16

    w1, bb1 = _bn_fold(params["branch1x1"])
    w2, bb2 = _bn_fold(params["branch3x3_1"])
    w3, bb3 = _bn_fold(params["branch3x3dbl_1"])
    wp, bbp = _bn_fold(params["branch_pool"])
    w_top = jnp.concatenate([w1, w2, w3, jnp.zeros((c, 192), jnp.float32)], axis=1)
    w_bot = jnp.concatenate([jnp.zeros((c, 1152), jnp.float32), wp], axis=1)
    w_stem = jnp.concatenate([w_top, w_bot], axis=0)            # [2C, 1344]
    bias_stem = jnp.concatenate([bb1, bb2, bb3, bbp])           # [1344]

    stem = grouped_matmul_bias_relu([cols_stem], [w_stem], [bias_stem],
                                    out_dtype=jnp.float32)      # [M, 1344] f32
    b1 = stem[:, :320]                                          # final (f32)
    b3 = stem[:, 320:704].astype(jnp.bfloat16).reshape(n, h, w, 384)
    bd = stem[:, 704:1152].astype(jnp.bfloat16).reshape(n, h, w, 448)
    bp = stem[:, 1152:1344]                                     # final (f32)

    # --- call 2: branch3x3dbl_2 (3x3, 448->384); bf16 intermediate output ----
    cols_d2 = _im2col(bd, 3, 3, 1, 1)                           # [M, 4032] bf16
    wd2, bd2b = _bn_fold(params["branch3x3dbl_2"])
    d2 = grouped_matmul_bias_relu([cols_d2], [wd2], [bd2b],
                                  out_dtype=jnp.bfloat16)       # [M, 384] bf16
    d2 = d2.reshape(n, h, w, 384)

    # --- call 3: the four (1x3)/(3x1) convs as one G=4 grouped matmul --------
    # Group order matches the final concat order: 3x3_2a | 3x3_2b | dbl_3a | dbl_3b.
    cols = [
        _im2col(b3, 1, 3, 0, 1),
        _im2col(b3, 3, 1, 1, 0),
        _im2col(d2, 1, 3, 0, 1),
        _im2col(d2, 3, 1, 1, 0),
    ]
    folded = [_bn_fold(params[k]) for k in
              ("branch3x3_2a", "branch3x3_2b", "branch3x3dbl_3a", "branch3x3dbl_3b")]
    ws = [f[0] for f in folded]
    bs = [f[1] for f in folded]
    mid = grouped_matmul_bias_relu(cols, ws, bs,
                                   out_dtype=jnp.float32)       # [M, 1536] f32

    out = jnp.concatenate([b1, mid, bp], axis=-1)               # [M, 2048]
    out = out.reshape(n, h, w, 2048)
    return jnp.transpose(out, (0, 3, 1, 2))                     # -> NCHW


# ----------------------------------------------------------------------------
# References.
#  _ref_inception_e(use_bf16=True): matches the kernel path's bf16-operand /
#  f32-accumulate precision (tight check of fusion / BN-fold / concat logic).
#  _ref_inception_e(use_bf16=False): pure f32 semantic reference (loose check).
# ----------------------------------------------------------------------------
def _ref_conv_block(x_nhwc, p, ph, pw, use_bf16):
    scale = p["gamma"] * jax.lax.rsqrt(p["var"] + BN_EPS)
    bias = p["beta"] - p["mean"] * scale
    w_eff = p["w"] * scale[None, None, None, :]
    lhs, rhs = x_nhwc, w_eff
    if use_bf16:
        lhs, rhs = lhs.astype(jnp.bfloat16), rhs.astype(jnp.bfloat16)
    y = jax.lax.conv_general_dilated(
        lhs, rhs, (1, 1), [(ph, ph), (pw, pw)],
        dimension_numbers=("NHWC", "HWIO", "NHWC"),
        preferred_element_type=jnp.float32)
    return jnp.maximum(y + bias, 0.0)


def _ref_inception_e(x_nchw, params, use_bf16):
    cb = functools.partial(_ref_conv_block, use_bf16=use_bf16)
    x = jnp.transpose(x_nchw, (0, 2, 3, 1))
    b1 = cb(x, params["branch1x1"], 0, 0)
    b3 = cb(x, params["branch3x3_1"], 0, 0)
    b3 = jnp.concatenate([cb(b3, params["branch3x3_2a"], 0, 1),
                          cb(b3, params["branch3x3_2b"], 1, 0)], axis=-1)
    bd = cb(x, params["branch3x3dbl_1"], 0, 0)
    bd = cb(bd, params["branch3x3dbl_2"], 1, 1)
    bd = jnp.concatenate([cb(bd, params["branch3x3dbl_3a"], 0, 1),
                          cb(bd, params["branch3x3dbl_3b"], 1, 0)], axis=-1)
    pooled = jax.lax.reduce_window(
        x, 0.0, jax.lax.add, (1, 3, 3, 1), (1, 1, 1, 1),
        [(0, 0), (1, 1), (1, 1), (0, 0)]) / 9.0
    bp = cb(pooled, params["branch_pool"], 0, 0)
    out = jnp.concatenate([b1, b3, bd, bp], axis=-1)
    return jnp.transpose(out, (0, 3, 1, 2))


# ----------------------------------------------------------------------------
# Deterministic parameter init (shapes from InceptionE.__init__).
# ----------------------------------------------------------------------------
def _init_block(key, cin, cout, kh, kw):
    kws, kg, kb, km, kv = jax.random.split(key, 5)
    return dict(
        w=0.05 * jax.random.normal(kws, (kh, kw, cin, cout), jnp.float32),
        gamma=1.0 + 0.1 * jax.random.normal(kg, (cout,), jnp.float32),
        beta=0.1 * jax.random.normal(kb, (cout,), jnp.float32),
        mean=0.1 * jax.random.normal(km, (cout,), jnp.float32),
        var=jnp.abs(jax.random.normal(kv, (cout,), jnp.float32)) + 0.5,
        kh=kh, kw=kw,
    )


def init_inception_e_params(key, in_channels):
    keys = jax.random.split(key, 9)
    return {
        "branch1x1":       _init_block(keys[0], in_channels, 320, 1, 1),
        "branch3x3_1":     _init_block(keys[1], in_channels, 384, 1, 1),
        "branch3x3_2a":    _init_block(keys[2], 384, 384, 1, 3),
        "branch3x3_2b":    _init_block(keys[3], 384, 384, 3, 1),
        "branch3x3dbl_1":  _init_block(keys[4], in_channels, 448, 1, 1),
        "branch3x3dbl_2":  _init_block(keys[5], 448, 384, 3, 3),
        "branch3x3dbl_3a": _init_block(keys[6], 384, 384, 1, 3),
        "branch3x3dbl_3b": _init_block(keys[7], 384, 384, 3, 1),
        "branch_pool":     _init_block(keys[8], in_channels, 192, 1, 1),
    }


if __name__ == "__main__":
    N, C_IN, H, W = 2, 32, 8, 8

    root = jax.random.PRNGKey(0)
    k_x, k_p = jax.random.split(root)
    x = jax.random.normal(k_x, (N, C_IN, H, W), jnp.float32)  # NCHW like torch
    params = init_inception_e_params(k_p, C_IN)

    fwd = jax.jit(functools.partial(inception_e, params=params))
    out = jax.block_until_ready(fwd(x))
    assert out.shape == (N, 2048, H, W), out.shape

    out_np = np.asarray(out)

    # Tight check vs a reference with matching bf16-operand precision.
    ref_bf16 = np.asarray(
        jax.block_until_ready(_ref_inception_e(x, params, use_bf16=True)))
    np.testing.assert_allclose(out_np, ref_bf16, rtol=1e-2, atol=1e-2)

    # Loose sanity check vs the pure-f32 reference (bf16 matmul error bound).
    ref_f32 = np.asarray(
        jax.block_until_ready(_ref_inception_e(x, params, use_bf16=False)))
    rel_l2 = np.linalg.norm(out_np - ref_f32) / max(np.linalg.norm(ref_f32), 1e-6)
    assert rel_l2 < 0.1, f"relative L2 error vs f32 reference too large: {rel_l2}"

    print("KERNEL_OK")
</pallas_src>

<mosaic_0001>
module attributes {stable_mosaic.version = 11 : i64} {
  func.func @_mm_bias_relu_kernel(%arg0: i32, %arg1: i32, %arg2: i32, %arg3: memref<1x128x64xbf16, #tpu.memory_space<vmem>>, %arg4: memref<1x64x1408xbf16, #tpu.memory_space<vmem>>, %arg5: memref<1x1x1408xf32, #tpu.memory_space<vmem>>, %arg6: memref<128x1408xf32, #tpu.memory_space<vmem>>) attributes {dimension_semantics = [#tpu.dimension_semantics<parallel>, #tpu.dimension_semantics<parallel>, #tpu.dimension_semantics<parallel>], iteration_bounds = array<i64: 1, 1, 1>, scalar_prefetch = 0 : i64, scratch_operands = 0 : i64, tpu.core_type = #tpu.core_type<tc>, window_params = [{transform_indices = @transform_0, window_bounds = array<i64: 1, 128, 64>}, {transform_indices = @transform_1, window_bounds = array<i64: 1, 64, 1408>}, {transform_indices = @transform_2, window_bounds = array<i64: 1, 1, 1408>}, {transform_indices = @transform_3, window_bounds = array<i64: 128, 1408>}]} {
    %c0 = arith.constant 0 : index
    %c0_0 = arith.constant 0 : index
    %c0_1 = arith.constant 0 : index
    %0 = vector.load %arg3[%c0, %c0_0, %c0_1] : memref<1x128x64xbf16, #tpu.memory_space<vmem>>, vector<1x128x64xbf16>
    %1 = vector.shape_cast %0 : vector<1x128x64xbf16> to vector<128x64xbf16>
    %c0_2 = arith.constant 0 : index
    %c0_3 = arith.constant 0 : index
    %c0_4 = arith.constant 0 : index
    %2 = vector.load %arg4[%c0_2, %c0_3, %c0_4] : memref<1x64x1408xbf16, #tpu.memory_space<vmem>>, vector<1x64x1408xbf16>
    %3 = vector.shape_cast %2 : vector<1x64x1408xbf16> to vector<64x1408xbf16>
    %cst = arith.constant dense<0.000000e+00> : vector<128x1408xf32>
    %4 = tpu.matmul %1, %3, %cst {dimension_numbers = #tpu.dot_dimension_numbers<[1], [0], [0], [1], [0, 0, 1, 1], [], []>} : vector<128x64xbf16>, vector<64x1408xbf16>, vector<128x1408xf32> -> vector<128x1408xf32>
    %c0_5 = arith.constant 0 : index
    %c0_6 = arith.constant 0 : index
    %c0_7 = arith.constant 0 : index
    %5 = vector.load %arg5[%c0_5, %c0_6, %c0_7] : memref<1x1x1408xf32, #tpu.memory_space<vmem>>, vector<1x1x1408xf32>
    %6 = vector.shape_cast %5 : vector<1x1x1408xf32> to vector<1x1408xf32>
    %7 = vector.broadcast %6 : vector<1x1408xf32> to vector<128x1408xf32>
    %8 = arith.addf %4, %7 : vector<128x1408xf32>
    %cst_8 = arith.constant 0.000000e+00 : f32
    %9 = vector.broadcast %cst_8 : f32 to vector<128x1408xf32>
    %10 = arith.maximumf %8, %9 : vector<128x1408xf32>
    %c0_9 = arith.constant 0 : index
    %c0_10 = arith.constant 0 : index
    %11 = vector.load %arg6[%c0_9, %c0_10] : memref<128x1408xf32, #tpu.memory_space<vmem>>, vector<128x1408xf32>
    tpu.vector_store %arg6[%c0_9, %c0_10], %10 {strides = array<i32>} : memref<128x1408xf32, #tpu.memory_space<vmem>>, vector<128x1408xf32>,
    return
  }
  func.func @transform_0(%arg0: i32, %arg1: i32, %arg2: i32) -> (i32, i32, i32) {
    %c0_i32 = arith.constant 0 : i32
    %c0_i32_0 = arith.constant 0 : i32
    return %arg0, %arg1, %c0_i32 : i32, i32, i32
  }
  func.func @transform_1(%arg0: i32, %arg1: i32, %arg2: i32) -> (i32, i32, i32) {
    %c0_i32 = arith.constant 0 : i32
    %c0_i32_0 = arith.constant 0 : i32
    return %arg0, %c0_i32, %arg2 : i32, i32, i32
  }
  func.func @transform_2(%arg0: i32, %arg1: i32, %arg2: i32) -> (i32, i32, i32) {
    %c0_i32 = arith.constant 0 : i32
    %c0_i32_0 = arith.constant 0 : i32
    return %arg0, %c0_i32, %arg2 : i32, i32, i32
  }
  func.func @transform_3(%arg0: i32, %arg1: i32, %arg2: i32) -> (i32, i32) {
    %c1_i32 = arith.constant 1 : i32
    %0 = arith.muli %arg0, %c1_i32 : i32
    %1 = arith.addi %0, %arg2 : i32
    %c0_i32 = arith.constant 0 : i32
    return %arg1, %1 : i32, i32
  }
}

module attributes {stable_mosaic.version = 11 : i64} {
  func.func @_mm_bias_relu_kernel(%arg0: i32, %arg1: i32, %arg2: i32, %arg3: memref<1x128x4032xbf16, #tpu.memory_space<vmem>>, %arg4: memref<1x4032x384xbf16, #tpu.memory_space<vmem>>, %arg5: memref<1x1x384xf32, #tpu.memory_space<vmem>>, %arg6: memref<128x384xbf16, #tpu.memory_space<vmem>>) attributes {dimension_semantics = [#tpu.dimension_semantics<parallel>, #tpu.dimension_semantics<parallel>, #tpu.dimension_semantics<parallel>], iteration_bounds = array<i64: 1, 1, 1>, scalar_prefetch = 0 : i64, scratch_operands = 0 : i64, tpu.core_type = #tpu.core_type<tc>, window_params = [{transform_indices = @transform_0, window_bounds = array<i64: 1, 128, 4032>}, {transform_indices = @transform_1, window_bounds = array<i64: 1, 4032, 384>}, {transform_indices = @transform_2, window_bounds = array<i64: 1, 1, 384>}, {transform_indices = @transform_3, window_bounds = array<i64: 128, 384>}]} {
    %c0 = arith.constant 0 : index
    %c0_0 = arith.constant 0 : index
    %c0_1 = arith.constant 0 : index
    %0 = vector.load %arg3[%c0, %c0_0, %c0_1] : memref<1x128x4032xbf16, #tpu.memory_space<vmem>>, vector<1x128x4032xbf16>
    %1 = vector.shape_cast %0 : vector<1x128x4032xbf16> to vector<128x4032xbf16>
    %c0_2 = arith.constant 0 : index
    %c0_3 = arith.constant 0 : index
    %c0_4 = arith.constant 0 : index
    %2 = vector.load %arg4[%c0_2, %c0_3, %c0_4] : memref<1x4032x384xbf16, #tpu.memory_space<vmem>>, vector<1x4032x384xbf16>
    %3 = vector.shape_cast %2 : vector<1x4032x384xbf16> to vector<4032x384xbf16>
    %cst = arith.constant dense<0.000000e+00> : vector<128x384xf32>
    %4 = tpu.matmul %1, %3, %cst {dimension_numbers = #tpu.dot_dimension_numbers<[1], [0], [0], [1], [0, 0, 1, 1], [], []>} : vector<128x4032xbf16>, vector<4032x384xbf16>, vector<128x384xf32> -> vector<128x384xf32>
    %c0_5 = arith.constant 0 : index
    %c0_6 = arith.constant 0 : index
    %c0_7 = arith.constant 0 : index
    %5 = vector.load %arg5[%c0_5, %c0_6, %c0_7] : memref<1x1x384xf32, #tpu.memory_space<vmem>>, vector<1x1x384xf32>
    %6 = vector.shape_cast %5 : vector<1x1x384xf32> to vector<1x384xf32>
    %7 = vector.broadcast %6 : vector<1x384xf32> to vector<128x384xf32>
    %8 = arith.addf %4, %7 : vector<128x384xf32>
    %cst_8 = arith.constant 0.000000e+00 : f32
    %9 = vector.broadcast %cst_8 : f32 to vector<128x384xf32>
    %10 = arith.maximumf %8, %9 : vector<128x384xf32>
    %11 = arith.truncf %10 : vector<128x384xf32> to vector<128x384xbf16>
    %c0_9 = arith.constant 0 : index
    %c0_10 = arith.constant 0 : index
    %12 = vector.load %arg6[%c0_9, %c0_10] : memref<128x384xbf16, #tpu.memory_space<vmem>>, vector<128x384xbf16>
    tpu.vector_store %arg6[%c0_9, %c0_10], %11 {strides = array<i32>} : memref<128x384xbf16, #tpu.memory_space<vmem>>, vector<128x384xbf16>,
    return
  }
  func.func @transform_0(%arg0: i32, %arg1: i32, %arg2: i32) -> (i32, i32, i32) {
    %c0_i32 = arith.constant 0 : i32
    %c0_i32_0 = arith.constant 0 : i32
    return %arg0, %arg1, %c0_i32 : i32, i32, i32
  }
  func.func @transform_1(%arg0: i32, %arg1: i32, %arg2: i32) -> (i32, i32, i32) {
    %c0_i32 = arith.constant 0 : i32
    %c0_i32_0 = arith.constant 0 : i32
    return %arg0, %c0_i32, %arg2 : i32, i32, i32
  }
  func.func @transform_2(%arg0: i32, %arg1: i32, %arg2: i32) -> (i32, i32, i32) {
    %c0_i32 = arith.constant 0 : i32
    %c0_i32_0 = arith.constant 0 : i32
    return %arg0, %c0_i32, %arg2 : i32, i32, i32
  }
  func.func @transform_3(%arg0: i32, %arg1: i32, %arg2: i32) -> (i32, i32) {
    %c1_i32 = arith.constant 1 : i32
    %0 = arith.muli %arg0, %c1_i32 : i32
    %1 = arith.addi %0, %arg2 : i32
    %c0_i32 = arith.constant 0 : i32
    return %arg1, %1 : i32, i32
  }
}

module attributes {stable_mosaic.version = 11 : i64} {
  func.func @_mm_bias_relu_kernel(%arg0: i32, %arg1: i32, %arg2: i32, %arg3: memref<1x128x1152xbf16, #tpu.memory_space<vmem>>, %arg4: memref<1x1152x384xbf16, #tpu.memory_space<vmem>>, %arg5: memref<1x1x384xf32, #tpu.memory_space<vmem>>, %arg6: memref<128x384xf32, #tpu.memory_space<vmem>>) attributes {dimension_semantics = [#tpu.dimension_semantics<parallel>, #tpu.dimension_semantics<parallel>, #tpu.dimension_semantics<parallel>], iteration_bounds = array<i64: 4, 1, 1>, scalar_prefetch = 0 : i64, scratch_operands = 0 : i64, tpu.core_type = #tpu.core_type<tc>, window_params = [{transform_indices = @transform_0, window_bounds = array<i64: 1, 128, 1152>}, {transform_indices = @transform_1, window_bounds = array<i64: 1, 1152, 384>}, {transform_indices = @transform_2, window_bounds = array<i64: 1, 1, 384>}, {transform_indices = @transform_3, window_bounds = array<i64: 128, 384>}]} {
    %c0 = arith.constant 0 : index
    %c0_0 = arith.constant 0 : index
    %c0_1 = arith.constant 0 : index
    %0 = vector.load %arg3[%c0, %c0_0, %c0_1] : memref<1x128x1152xbf16, #tpu.memory_space<vmem>>, vector<1x128x1152xbf16>
    %1 = vector.shape_cast %0 : vector<1x128x1152xbf16> to vector<128x1152xbf16>
    %c0_2 = arith.constant 0 : index
    %c0_3 = arith.constant 0 : index
    %c0_4 = arith.constant 0 : index
    %2 = vector.load %arg4[%c0_2, %c0_3, %c0_4] : memref<1x1152x384xbf16, #tpu.memory_space<vmem>>, vector<1x1152x384xbf16>
    %3 = vector.shape_cast %2 : vector<1x1152x384xbf16> to vector<1152x384xbf16>
    %cst = arith.constant dense<0.000000e+00> : vector<128x384xf32>
    %4 = tpu.matmul %1, %3, %cst {dimension_numbers = #tpu.dot_dimension_numbers<[1], [0], [0], [1], [0, 0, 1, 1], [], []>} : vector<128x1152xbf16>, vector<1152x384xbf16>, vector<128x384xf32> -> vector<128x384xf32>
    %c0_5 = arith.constant 0 : index
    %c0_6 = arith.constant 0 : index
    %c0_7 = arith.constant 0 : index
    %5 = vector.load %arg5[%c0_5, %c0_6, %c0_7] : memref<1x1x384xf32, #tpu.memory_space<vmem>>, vector<1x1x384xf32>
    %6 = vector.shape_cast %5 : vector<1x1x384xf32> to vector<1x384xf32>
    %7 = vector.broadcast %6 : vector<1x384xf32> to vector<128x384xf32>
    %8 = arith.addf %4, %7 : vector<128x384xf32>
    %cst_8 = arith.constant 0.000000e+00 : f32
    %9 = vector.broadcast %cst_8 : f32 to vector<128x384xf32>
    %10 = arith.maximumf %8, %9 : vector<128x384xf32>
    %c0_9 = arith.constant 0 : index
    %c0_10 = arith.constant 0 : index
    %11 = vector.load %arg6[%c0_9, %c0_10] : memref<128x384xf32, #tpu.memory_space<vmem>>, vector<128x384xf32>
    tpu.vector_store %arg6[%c0_9, %c0_10], %10 {strides = array<i32>} : memref<128x384xf32, #tpu.memory_space<vmem>>, vector<128x384xf32>,
    return
  }
  func.func @transform_0(%arg0: i32, %arg1: i32, %arg2: i32) -> (i32, i32, i32) {
    %c0_i32 = arith.constant 0 : i32
    %c0_i32_0 = arith.constant 0 : i32
    return %arg0, %arg1, %c0_i32 : i32, i32, i32
  }
  func.func @transform_1(%arg0: i32, %arg1: i32, %arg2: i32) -> (i32, i32, i32) {
    %c0_i32 = arith.constant 0 : i32
    %c0_i32_0 = arith.constant 0 : i32
    return %arg0, %c0_i32, %arg2 : i32, i32, i32
  }
  func.func @transform_2(%arg0: i32, %arg1: i32, %arg2: i32) -> (i32, i32, i32) {
    %c0_i32 = arith.constant 0 : i32
    %c0_i32_0 = arith.constant 0 : i32
    return %arg0, %c0_i32, %arg2 : i32, i32, i32
  }
  func.func @transform_3(%arg0: i32, %arg1: i32, %arg2: i32) -> (i32, i32) {
    %c1_i32 = arith.constant 1 : i32
    %0 = arith.muli %arg0, %c1_i32 : i32
    %1 = arith.addi %0, %arg2 : i32
    %c0_i32 = arith.constant 0 : i32
    return %arg1, %1 : i32, i32
  }
}

</mosaic_0001>

<bundles_post_ra>
// kernel: inception_e.3
= control target key start
LH: loop header
LB: loop body
LE: loop exit
PB: predicated region body
PF: predicated region fallthrough
CT: control target
= control target key end

     0   :  { %8 = vsyncpa [#allocation3], 0  ;;  %s2292_s0 = inlined_call_operand.hbm [shape: bf16[1,128,64], index: 0, kind: input, shape index: {}]   ;;  %s2293_s1 = inlined_call_operand.hbm [shape: bf16[1,64,1408], index: 1, kind: input, shape index: {}]   ;;  %s2294_s2 = inlined_call_operand.hbm [shape: f32[1,1,1408], index: 2, kind: input, shape index: {}]   ;;  %s2295_s3 = inlined_call_operand.hbm [shape: f32[128,1408], index: 3, kind: output, shape index: {}]  }
   0x1   :  { %9 = vsyncpa [#allocation6], 0 }
   0x2   :  { %10 = vsyncpa [#allocation4], 0  ;;  %s1826_s12 = smov [#allocation5]   ;;  %s1732_s16 = scalar_lea.hbm %s2293_s1, 5632 }
   0x3   :  { %s28_s13 = sshll.u32 %s1826_s12, 4  ;;  %p1733_p0 = scmp.ne.s32.totalorder %s2293_s1, %s1732_s16  ;;  %s29_s13 = int_to_ptr.vmem [resolvable:$true] %s28_s13 }
   0x4   :  { %p1736_p1 = scmp.lt.u32.totalorder %s1732_s16, %s2293_s1 }
   0x6   :  { %p1738_p2 = pnand %p1736_p1, %p1733_p0 }
   0x8   :  { %1741 = shalt.err (!%p1738_p2)
}
   0x9   :  { %s1742_s21 = scalar_lea.vmem %s29_s13, 5632  ;;  %p1747_p4 = scmp.lt.s32.totalorder %s29_s13, %s29_s13 }
   0xa   :  { %p1743_p3 = scmp.ne.s32.totalorder %s29_s13, %s1742_s21  ;;  %p1748_p5 = scmp.lt.s32.totalorder %s1742_s21, %s1742_s21 }
   0xc   :  { %p1749_p6 = por %p1748_p5, %p1747_p4 }
   0xe   :  { %p1750_p7 = pnand %p1749_p6, %p1743_p3 }
  0x10   :  { %1753 = shalt.err (!%p1750_p7)
}
  0x11   :  { %s1827_s22 = smov 704   ;;  %s1828_s23 = smov 44  }
  0x12   :  { %34 = dma.hbm_to_vmem [thread:$0]  %s2293_s1, 5632, %s29_s13, [#allocation6], %s1827_s22, %s1827_s22, %s1828_s23  }
  0x13   :  { %s1829_s26 = smov [#allocation2]   ;;  %s1754_s30 = scalar_lea.hbm %s2292_s0, 1024 }
  0x14   :  { %s16_s27 = sshll.u32 %s1829_s26, 4  ;;  %p1755_p8 = scmp.ne.s32.totalorder %s2292_s0, %s1754_s30  ;;  %s17_s27 = int_to_ptr.vmem [resolvable:$true] %s16_s27 }
  0x15   :  { %p1758_p9 = scmp.lt.u32.totalorder %s1754_s30, %s2292_s0 }
  0x17   :  { %p1760_p10 = pnand %p1758_p9, %p1755_p8 }
  0x19   :  { %1763 = shalt.err (!%p1760_p10)
}
  0x1a   :  { %s1764_s8 = scalar_lea.vmem %s17_s27, 1024  ;;  %p1769_p12 = scmp.lt.s32.totalorder %s17_s27, %s17_s27 }
  0x1b   :  { %p1765_p11 = scmp.ne.s32.totalorder %s17_s27, %s1764_s8  ;;  %p1770_p13 = scmp.lt.s32.totalorder %s1764_s8, %s1764_s8 }
  0x1d   :  { %p1771_p0 = por %p1770_p13, %p1769_p12 }
  0x1f   :  { %p1772_p1 = pnand %p1771_p0, %p1765_p11 }
  0x21   :  { %1775 = shalt.err (!%p1772_p1)
}
  0x22   :  { %s1830_s1 = smov 64   ;;  %s1831_s9 = smov 4  }
  0x23   :  { %22 = dma.hbm_to_vmem [thread:$0]  %s2292_s0, 1024, %s17_s27, [#allocation3], %s1830_s1, %s1830_s1, %s1831_s9  }
  0x24   :  { %s1832_s12 = smov [#allocation7]   ;;  %s1776_s16 = scalar_lea.hbm %s2294_s2, 176 }
  0x25   :  { %s41_s13 = sshll.u32 %s1832_s12, 4  ;;  %p1777_p2 = scmp.ne.s32.totalorder %s2294_s2, %s1776_s16  ;;  %s42_s13 = int_to_ptr.vmem [resolvable:$true] %s41_s13 }
  0x26   :  { %p1780_p3 = scmp.lt.u32.totalorder %s1776_s16, %s2294_s2 }
  0x28   :  { %p1782_p4 = pnand %p1780_p3, %p1777_p2 }
  0x2a   :  { %1785 = shalt.err (!%p1782_p4)
}
  0x2b   :  { %s1786_s21 = scalar_lea.vmem %s42_s13, 176  ;;  %s1790_s0 = scalar_lea.vmem %s42_s13, 192 }
  0x2c   :  { %p1787_p5 = scmp.ne.s32.totalorder %s42_s13, %s1786_s21  ;;  %p1791_p6 = scmp.lt.s32.totalorder %s42_s13, %s42_s13 }
  0x2d   :  { %p1792_p7 = scmp.lt.s32.totalorder %s1790_s0, %s1786_s21 }
  0x2f   :  { %p1793_p8 = por %p1792_p7, %p1791_p6 }
  0x31   :  { %p1794_p9 = pnand %p1793_p8, %p1787_p5 }
  0x33   :  { %1797 = shalt.err (!%p1794_p9)
}
  0x34   :  { %44 = dma.hbm_to_vmem [thread:$0]  %s2294_s2, 176, %s42_s13, [#allocation6]  }
  0x35   :  { %1820 = dma.done.wait [#allocation3], 1024  }
  0x36   :  { %1821 = vsyncadd [#allocation3], 4294966272 }
  0x37   :  { %1822 = dma.done.wait [#allocation6], 5808  }
  0x38   :  { %1823 = vsyncadd [#allocation6], 4294961488  ;;  %v1833_v0 = vmov 0   ;;  %v1660_v1 = vld [vmem:[#allocation5 + $0x4] ss:$44 sps:$4 sm:$0xff]   ;;  %vm444_vm0 = vcmask 523264   ;;  %v125_v53 = vlaneseq }
  0x39   :  { %501 = vmatprep.mubr.bf16.mxu0 %v1833_v0  ;;  %561 = vmatprep.mubr.bf16.mxu1 %v1833_v0  ;;  %v1662_v2 = vld [vmem:[#allocation5] ss:$44 sps:$4 sm:$0xff]   ;;  %v1663_v3 = vld [vmem:[#allocation5 + $0x5c] ss:$44 sps:$4 sm:$0xff]   ;;  %v1665_v4 = vld [vmem:[#allocation5 + $0x58] ss:$44 sps:$4 sm:$0xff]  }
  0x3a   :  { %469 = vmatprep.subr.bf16.mxu0 %v1660_v1  ;;  %1641 = vmatprep.subr.bf16.mxu1 %v1660_v1  ;;  %v1666_v5 = vld [vmem:[#allocation5 + $0xb4] ss:$44 sps:$4 sm:$0xff]   ;;  %v1668_v6 = vld [vmem:[#allocation5 + $0xb0] ss:$44 sps:$4 sm:$0xff]   ;;  %v1669_v7 = vld [vmem:[#allocation5 + $0x10c] ss:$44 sps:$4 sm:$0xff]  }
  0x3b   :  { %470 = vmatpush1.bf16.msra.mxu0 %v1662_v2  ;;  %1645 = vmatpush1.bf16.msra.mxu1 %v1662_v2  ;;  %v1671_v8 = vld [vmem:[#allocation5 + $0x108] ss:$44 sps:$4 sm:$0xff]   ;;  %v1676_v9 = vld [vmem:[#allocation5 + $0xc] ss:$44 sps:$4 sm:$0xff]   ;;  %v1895_v11 = vld [vmem:[#allocation2] sm:$0xff]   ;;  %v2045_v54 = vshrl.u32 %v125_v53, 7 }
  0x3c   :  { %471 = vmatprep.subr.bf16.mxu0 %v1663_v3  ;;  %1642 = vmatprep.subr.bf16.mxu1 %v1663_v3  ;;  %v1679_v10 = vld [vmem:[#allocation5 + $0x14] ss:$44 sps:$4 sm:$0xff]   ;;  %v1677_v14 = vld [vmem:[#allocation5 + $0x10] ss:$44 sps:$4 sm:$0xff]   ;;  %v1693_v16 = vld [vmem:[#allocation5 + $0x6c] ss:$44 sps:$4 sm:$0xff]  }
  0x3d   :  { %v1897_v12 = vld [vmem:[#allocation2 + $0x30] sm:$0xff]   ;;  %v1680_v17 = vld [vmem:[#allocation5 + $0x60] ss:$44 sps:$4 sm:$0xff]   ;;  %v1687_v19 = vld [vmem:[#allocation5 + $0xbc] ss:$44 sps:$4 sm:$0xff]   ;;  %v127_v55 = vsub.s32 0, %v2045_v54 }
  0x3e   :  { %v1674_v13 = vld [vmem:[#allocation5 + $0x8] ss:$44 sps:$4 sm:$0xff]   ;;  %v1682_v15 = vld [vmem:[#allocation5 + $0x64] ss:$44 sps:$4 sm:$0xff]   ;;  %v1907_v22 = vld [vmem:[#allocation2 + $0x38] sm:$0xff]   ;;  %v131_v57 = vsub.s32 1, %v2045_v54 }
  0x3f   :  { %472 = vmatpush1.bf16.msra.mxu0 %v1665_v4  ;;  %1646 = vmatpush1.bf16.msra.mxu1 %v1665_v4  ;;  %v1691_v18 = vld [vmem:[#allocation5 + $0x68] ss:$44 sps:$4 sm:$0xff]   ;;  %v1701_v21 = vld [vmem:[#allocation5 + $0xc4] ss:$44 sps:$4 sm:$0xff]   ;;  %v1699_v25 = vld [vmem:[#allocation5 + $0xc0] ss:$44 sps:$4 sm:$0xff]  }
  0x40   :  { %473 = vmatprep.subr.bf16.mxu0 %v1666_v5  ;;  %1643 = vmatprep.subr.bf16.mxu1 %v1666_v5  ;;  %v1905_v20 = vld [vmem:[#allocation2 + $0x8] sm:$0xff]   ;;  %v1685_v23 = vld [vmem:[#allocation5 + $0xb8] ss:$44 sps:$4 sm:$0xff]   ;;  %v1690_v24 = vld [vmem:[#allocation5 + $0x114] ss:$44 sps:$4 sm:$0xff]   ;;  %s1834_s2 = smov [#allocation8]  }
  0x41   :  { %v1708_v26 = vld [vmem:[#allocation5 + $0x11c] ss:$44 sps:$4 sm:$0xff]   ;;  %v1706_v29 = vld [vmem:[#allocation5 + $0x118] ss:$44 sps:$4 sm:$0xff]   ;;  %v1915_v30 = vld [vmem:[#allocation2 + $0x10] sm:$0xff]   ;;  %s1492_s24 = sshll.u32 %s1834_s2, 4  ;;  %s1493_s24 = int_to_ptr.vmem [resolvable:$true] %s1492_s24 }
  0x42   :  { %v1688_v27 = vld [vmem:[#allocation5 + $0x110] ss:$44 sps:$4 sm:$0xff]   ;;  %v1695_v31 = vld [vmem:[#allocation5 + $0x18] ss:$44 sps:$4 sm:$0xff]   ;;  %v1705_v32 = vld [vmem:[#allocation5 + $0x74] ss:$44 sps:$4 sm:$0xff]   ;;  %p1803_p11 = scmp.lt.s32.totalorder %s1493_s24, %s1493_s24 }
  0x43   :  { %474 = vmatpush1.bf16.msra.mxu0 %v1668_v6  ;;  %1647 = vmatpush1.bf16.msra.mxu1 %v1668_v6  ;;  %v1697_v28 = vld [vmem:[#allocation5 + $0x1c] ss:$44 sps:$4 sm:$0xff]   ;;  %v1715_v33 = vld [vmem:[#allocation5 + $0x24] ss:$44 sps:$4 sm:$0xff]   ;;  %v1712_v35 = vld [vmem:[#allocation5 + $0xcc] ss:$44 sps:$4 sm:$0xff]  }
  0x44   :  { %475 = vmatprep.subr.bf16.mxu0 %v1669_v7  ;;  %1644 = vmatprep.subr.bf16.mxu1 %v1669_v7  ;;  %v1703_v34 = vld [vmem:[#allocation5 + $0x70] ss:$44 sps:$4 sm:$0xff]   ;;  %v1710_v37 = vld [vmem:[#allocation5 + $0xc8] ss:$44 sps:$4 sm:$0xff]   ;;  %v1716_v39 = vld [vmem:[#allocation5 + $0x120] ss:$44 sps:$4 sm:$0xff]  }
  0x45   :  { %v1923_v36 = vld [vmem:[#allocation2 + $0x18] sm:$0xff]   ;;  %v1718_v38 = vld [vmem:[#allocation5 + $0x124] ss:$44 sps:$4 sm:$0xff]   ;;  %v1725_v40 = vld [vmem:[#allocation5 + $0x28] ss:$44 sps:$4 sm:$0xff]   ;;  %s1798_s25 = scalar_lea.vmem %s1493_s24, 22528 }
  0x46   :  { %v1931_v41 = vld [vmem:[#allocation2 + $0x20] sm:$0xff]   ;;  %v1939_v42 = vld [vmem:[#allocation2 + $0x28] sm:$0xff]   ;;  %v1722_v47 = vld [vmem:[#allocation5 + $0xd0] ss:$44 sps:$4 sm:$0xff]   ;;  %p1799_p10 = scmp.ne.s32.totalorder %s1493_s24, %s1798_s25  ;;  %p1804_p12 = scmp.lt.s32.totalorder %s1798_s25, %s1798_s25 }
  0x47   :  { %476 = vmatpush1.bf16.msra.mxu0 %v1671_v8  ;;  %1648 = vmatpush1.bf16.msra.mxu1 %v1671_v8  ;;  %v1713_v43 = vld [vmem:[#allocation5 + $0x20] ss:$44 sps:$4 sm:$0xff]   ;;  %v1721_v44 = vld [vmem:[#allocation5 + $0x7c] ss:$44 sps:$4 sm:$0xff]   ;;  %v1719_v45 = vld [vmem:[#allocation5 + $0x78] ss:$44 sps:$4 sm:$0xff]  }
  0x48   :  { %582 = vmatprep.subr.bf16.mxu1 %v1676_v9  ;;  %695 = vmatprep.subr.bf16.mxu0 %v1679_v10  ;;  %v1724_v46 = vld [vmem:[#allocation5 + $0xd4] ss:$44 sps:$4 sm:$0xff]   ;;  %v1728_v48 = vld [vmem:[#allocation5 + $0x12c] ss:$44 sps:$4 sm:$0xff]   ;;  %v1731_v52 = vld [vmem:[#allocation5 + $0x130] ss:$44 sps:$4 sm:$0xff]   ;;  %p1805_p13 = por %p1804_p12, %p1803_p11 }
  0x49   :  { %v1726_v49 = vld [vmem:[#allocation5 + $0x128] ss:$44 sps:$4 sm:$0xff]   ;;  %v1729_v50 = vld [vmem:[#allocation5 + $0x80] ss:$44 sps:$4 sm:$0xff]   ;;  %v1730_v51 = vld [vmem:[#allocation5 + $0xd8] ss:$44 sps:$4 sm:$0xff]  }
  0x4a   :  { %1557 = vmatmul.mubr.msk.bf16.vlgmr.msra.gmra.mrb[0].mxu0 %vm444_vm0, %v1895_v11  ;;  %1563 = vmatmul.mubr.msk.bf16.vlgmr.msra.gmra.mrb[0].mxu1 %vm444_vm0, %v1897_v12  ;;  %v2048_v56 = vld [vmem:[#allocation7] sm:$0xff]  ;;  %p1806_p0 = pnand %p1805_p13, %p1799_p10 }
  0x4b   :  { %583 = vmatpush1.bf16.msra.mxu1 %v1674_v13  ;;  %696 = vmatpush1.bf16.msra.mxu0 %v1677_v14  ;;  %v2054_v58 = vrot.slane %v2048_v56, %v127_v55  ;;  %v2059_v59 = vrot.slane %v2048_v56, %v131_v57 }
  0x4c   :  { %584 = vmatprep.subr.bf16.mxu1 %v1682_v15  ;;  %511 = vmatprep.mubr.bf16.mxu0 %v1833_v0 }
  0x4d   :  { %571 = vmatprep.mubr.bf16.mxu1 %v1833_v0  ;;  %697 = vmatprep.subr.bf16.mxu0 %v1693_v16 }
  0x4f   :  { %585 = vmatpush1.bf16.msra.mxu1 %v1680_v17  ;;  %698 = vmatpush1.bf16.msra.mxu0 %v1691_v18 }
  0x50   :  { %586 = vmatprep.subr.bf16.mxu1 %v1687_v19  ;;  %699 = vmatprep.subr.bf16.mxu0 %v1701_v21 }
  0x52   :  { %1558 = vmatmul.mubr.msk.bf16.gmra.mrb[4].mxu0 %vm444_vm0, %v1905_v20  ;;  %1564 = vmatmul.mubr.msk.bf16.gmra.mrb[4].mxu1 %vm444_vm0, %v1907_v22 }
  0x53   :  { %587 = vmatpush1.bf16.msra.mxu1 %v1685_v23  ;;  %521 = vmatprep.mubr.bf16.mxu0 %v1833_v0 }
  0x54   :  { %588 = vmatprep.subr.bf16.mxu1 %v1690_v24  ;;  %614 = vmatprep.mubr.bf16.mxu1 %v1833_v0 }
  0x55   :  { %700 = vmatpush1.bf16.msra.mxu0 %v1699_v25 }
  0x56   :  { %701 = vmatprep.subr.bf16.mxu0 %v1708_v26  ;;  %v135_v26 = vsub.s32 2, %v2045_v54 }
  0x57   :  { %589 = vmatpush1.bf16.msra.mxu1 %v1688_v27 }
  0x58   :  { %808 = vmatprep.subr.bf16.mxu1 %v1697_v28 }
  0x59   :  { %702 = vmatpush1.bf16.msra.mxu0 %v1706_v29 }
  0x5a   :  { %1559 = vmatmul.mubr.msk.bf16.gmra.mrb[8].mxu0 %vm444_vm0, %v1915_v30  ;;  %1565 = vmatmul.mubr.msk.bf16.vlgmr.msra.gmra.mrb[8].mxu1 %vm444_vm0, %v1895_v11 }
  0x5b   :  { %809 = vmatpush1.bf16.msra.mxu1 %v1695_v31  ;;  %531 = vmatprep.mubr.bf16.mxu0 %v1833_v0  ;;  %v139_v31 = vsub.s32 3, %v2045_v54 }
  0x5c   :  { %624 = vmatprep.mubr.bf16.mxu1 %v1833_v0  ;;  %810 = vmatprep.subr.bf16.mxu1 %v1705_v32 }
  0x5d   :  { %921 = vmatprep.subr.bf16.mxu0 %v1715_v33 }
  0x5f   :  { %811 = vmatpush1.bf16.msra.mxu1 %v1703_v34 }
  0x60   :  { %812 = vmatprep.subr.bf16.mxu1 %v1712_v35 }
  0x62   :  { %1560 = vmatmul.mubr.msk.bf16.gmra.mrb[12].mxu0 %vm444_vm0, %v1923_v36  ;;  %1566 = vmatmul.mubr.msk.bf16.gmra.mrb[12].mxu1 %vm444_vm0, %v1905_v20 }
  0x63   :  { %541 = vmatprep.mubr.bf16.mxu0 %v1833_v0  ;;  %634 = vmatprep.mubr.bf16.mxu1 %v1833_v0 }
  0x64   :  { %813 = vmatpush1.bf16.msra.mxu1 %v1710_v37 }
  0x65   :  { %814 = vmatprep.subr.bf16.mxu1 %v1718_v38 }
  0x68   :  { %815 = vmatpush1.bf16.msra.mxu1 %v1716_v39 }
  0x69   :  { %1617 = vmatprep.subr.bf16.mxu1 %v1725_v40 }
  0x6a   :  { %1561 = vmatmul.mubr.msk.bf16.gmra.mrb[16].mxu0 %vm444_vm0, %v1931_v41  ;;  %1567 = vmatmul.mubr.msk.bf16.gmra.mrb[16].mxu1 %vm444_vm0, %v1915_v30 }
  0x6b   :  { %551 = vmatprep.mubr.bf16.mxu0 %v1833_v0  ;;  %644 = vmatprep.mubr.bf16.mxu1 %v1833_v0 }
  0x72   :  { %1562 = vmatmul.mubr.msk.bf16.gmra.mrb[20].mxu0 %vm444_vm0, %v1939_v42  ;;  %1568 = vmatmul.mubr.msk.bf16.gmra.mrb[20].mxu1 %vm444_vm0, %v1923_v36 }
  0x73   :  { %654 = vmatprep.mubr.bf16.mxu1 %v1833_v0  ;;  %727 = vmatprep.mubr.bf16.mxu0 %v1833_v0 }
  0x7a   :  { %1569 = vmatmul.mubr.msk.bf16.gmra.mrb[24].mxu1 %vm444_vm0, %v1931_v41  ;;  %1573 = vmatmul.mubr.msk.bf16.vlgmr.msra.gmra.mrb[24].mxu0 %vm444_vm0, %v1895_v11 }
  0x7b   :  { %922 = vmatpush1.bf16.msra.mxu0 %v1713_v43  ;;  %664 = vmatprep.mubr.bf16.mxu1 %v1833_v0 }
  0x7c   :  { %737 = vmatprep.mubr.bf16.mxu0 %v1833_v0  ;;  %923 = vmatprep.subr.bf16.mxu0 %v1721_v44  ;;  %v2082_v44 = vrot.slane %v2048_v56, %v135_v26 }
  0x7f   :  { %924 = vmatpush1.bf16.msra.mxu0 %v1719_v45 }
  0x80   :  { %925 = vmatprep.subr.bf16.mxu0 %v1724_v46 }
  0x82   :  { %1570 = vmatmul.mubr.msk.bf16.gmra.mrb[28].mxu1 %vm444_vm0, %v1939_v42  ;;  %1574 = vmatmul.mubr.msk.bf16.gmra.mrb[28].mxu0 %vm444_vm0, %v1905_v20 }
  0x83   :  { %674 = vmatprep.mubr.bf16.mxu1 %v1833_v0  ;;  %747 = vmatprep.mubr.bf16.mxu0 %v1833_v0 }
  0x84   :  { %926 = vmatpush1.bf16.msra.mxu0 %v1722_v47  ;;  %v2085_v47 = vrot.slane %v2048_v56, %v139_v31 }
  0x85   :  { %927 = vmatprep.subr.bf16.mxu0 %v1728_v48 }
  0x88   :  { %928 = vmatpush1.bf16.msra.mxu0 %v1726_v49 }
  0x8a   :  { %1571 = vmatmul.mubr.msk.bf16.gmra.mrb[32].mxu1 %vm444_vm0, %v1897_v12  ;;  %1575 = vmatmul.mubr.msk.bf16.gmra.mrb[32].mxu0 %vm444_vm0, %v1915_v30 }
  0x8b   :  { %684 = vmatprep.mubr.bf16.mxu1 %v1833_v0  ;;  %757 = vmatprep.mubr.bf16.mxu0 %v1833_v0 }
  0x92   :  { %1572 = vmatmul.mubr.msk.bf16.gmra.mrb[36].mxu1 %vm444_vm0, %v1907_v22  ;;  %1576 = vmatmul.mubr.msk.bf16.gmra.mrb[36].mxu0 %vm444_vm0, %v1923_v36 }
  0x93   :  { %767 = vmatprep.mubr.bf16.mxu0 %v1833_v0  ;;  %840 = vmatprep.mubr.bf16.mxu1 %v1833_v0 }
  0x9a   :  { %1577 = vmatmul.mubr.msk.bf16.gmra.mrb[40].mxu0 %vm444_vm0, %v1931_v41  ;;  %1581 = vmatmul.mubr.msk.bf16.vlgmr.msra.gmra.mrb[40].mxu1 %vm444_vm0, %v1895_v11 }
  0x9b   :  { %1618 = vmatpush3.bf16.msra.mxu1 %v1725_v40  ;;  %777 = vmatprep.mubr.bf16.mxu0 %v1833_v0 }
  0x9c   :  { %850 = vmatprep.mubr.bf16.mxu1 %v1833_v0  ;;  %1619 = vmatprep.subr.bf16.mxu1 %v1729_v50 }
  0x9f   :  { %1620 = vmatpush3.bf16.msra.mxu1 %v1729_v50 }
  0xa0   :  { %1621 = vmatprep.subr.bf16.mxu1 %v1730_v51 }
  0xa2   :  { %1578 = vmatmul.mubr.msk.bf16.gmra.mrb[44].mxu0 %vm444_vm0, %v1939_v42  ;;  %1582 = vmatmul.mubr.msk.bf16.gmra.mrb[44].mxu1 %vm444_vm0, %v1905_v20 }
  0xa3   :  { %787 = vmatprep.mubr.bf16.mxu0 %v1833_v0  ;;  %860 = vmatprep.mubr.bf16.mxu1 %v1833_v0 }
  0xa4   :  { %1622 = vmatpush3.bf16.msra.mxu1 %v1730_v51 }
  0xa5   :  { %1623 = vmatprep.subr.bf16.mxu1 %v1731_v52 }
  0xa8   :  { %1624 = vmatpush3.bf16.msra.mxu1 %v1731_v52 }
  0xaa   :  { %1579 = vmatmul.mubr.msk.bf16.gmra.mrb[48].mxu0 %vm444_vm0, %v1897_v12  ;;  %1583 = vmatmul.mubr.msk.bf16.gmra.mrb[48].mxu1 %vm444_vm0, %v1915_v30 }
  0xab   :  { %797 = vmatprep.mubr.bf16.mxu0 %v1833_v0  ;;  %870 = vmatprep.mubr.bf16.mxu1 %v1833_v0 }
  0xb2   :  { %1580 = vmatmul.mubr.msk.bf16.gmra.mrb[52].mxu0 %vm444_vm0, %v1907_v22  ;;  %1584 = vmatmul.mubr.msk.bf16.gmra.mrb[52].mxu1 %vm444_vm0, %v1923_v36 }
  0xb3   :  { %880 = vmatprep.mubr.bf16.mxu1 %v1833_v0  ;;  %953 = vmatprep.mubr.bf16.mxu0 %v1833_v0 }
  0xba   :  { %1585 = vmatmul.mubr.msk.bf16.gmra.mrb[56].mxu1 %vm444_vm0, %v1931_v41  ;;  %1589 = vmatmul.mubr.msk.bf16.vlgmr.msra.gmra.mrb[56].mxu0 %vm444_vm0, %v1895_v11 }
  0xbb   :  { %890 = vmatprep.mubr.bf16.mxu1 %v1833_v0  ;;  %963 = vmatprep.mubr.bf16.mxu0 %v1833_v0 }
  0xc2   :  { %1586 = vmatmul.mubr.msk.bf16.gmra.mrb[60].mxu1 %vm444_vm0, %v1939_v42  ;;  %1590 = vmatmul.mubr.msk.bf16.gmra.mrb[60].mxu0 %vm444_vm0, %v1905_v20 }
  0xc3   :  { %900 = vmatprep.mubr.bf16.mxu1 %v1833_v0  ;;  %973 = vmatprep.mubr.bf16.mxu0 %v1833_v0 }
  0xca   :  { %1587 = vmatmul.mubr.msk.bf16.gmra.mrb[64].mxu1 %vm444_vm0, %v1897_v12  ;;  %1591 = vmatmul.mubr.msk.bf16.gmra.mrb[64].mxu0 %vm444_vm0, %v1915_v30 }
  0xcb   :  { %910 = vmatprep.mubr.bf16.mxu1 %v1833_v0  ;;  %983 = vmatprep.mubr.bf16.mxu0 %v1833_v0 }
  0xd2   :  { %1588 = vmatmul.mubr.msk.bf16.gmra.mrb[68].mxu1 %vm444_vm0, %v1907_v22  ;;  %1592 = vmatmul.mubr.msk.bf16.gmra.mrb[68].mxu0 %vm444_vm0, %v1923_v36 }
  0xd3   :  { %993 = vmatprep.mubr.bf16.mxu0 %v1833_v0  ;;  %1625 = vmatprep.mubr.msk.bf16.mxu1 %vm444_vm0, %v1895_v11 }
  0xda   :  { %1593 = vmatmul.mubr.msk.bf16.gmra.mrb[72].mxu0 %vm444_vm0, %v1931_v41  ;;  %1626 = vmatmul.mubr.msk.bf16.vlgmr.msra.gmra.mrb[72].mxu1 %vm444_vm0, %v1905_v20 }
  0xdb   :  { %1003 = vmatprep.mubr.bf16.mxu0 %v1833_v0  ;;  %1629 = vmatprep.mubr.msk.bf16.mxu1 %vm444_vm0, %v1915_v30 }
  0xe2   :  { %1594 = vmatmul.mubr.msk.bf16.gmra.mrb[76].mxu0 %vm444_vm0, %v1939_v42  ;;  %1630 = vmatmul.mubr.msk.bf16.gmra.mrb[76].mxu1 %vm444_vm0, %v1923_v36 }
  0xe3   :  { %1013 = vmatprep.mubr.bf16.mxu0 %v1833_v0  ;;  %1633 = vmatprep.mubr.msk.bf16.mxu1 %vm444_vm0, %v1931_v41 }
  0xea   :  { %1595 = vmatmul.mubr.msk.bf16.gmra.mrb[80].mxu0 %vm444_vm0, %v1897_v12  ;;  %1634 = vmatmul.mubr.msk.bf16.gmra.mrb[80].mxu1 %vm444_vm0, %v1939_v42 }
  0xeb   :  { %1023 = vmatprep.mubr.bf16.mxu0 %v1833_v0  ;;  %1637 = vmatprep.mubr.msk.bf16.mxu1 %vm444_vm0, %v1897_v12 }
  0xf2   :  { %1596 = vmatmul.mubr.msk.bf16.gmra.mrb[84].mxu0 %vm444_vm0, %v1907_v22  ;;  %1638 = vmatmul.mubr.msk.bf16.gmra.mrb[84].mxu1 %vm444_vm0, %v1907_v22 }
 0x11d   :  { %v503_v60 = vpop.f32.mrb[0].mxu0  ;;  %v563_v61 = vpop.f32.mrb[0].mxu1 }
 0x11e   :  { %v504_v62 = vadd.f32 %v503_v60, %v2054_v58  ;;  %v564_v63 = vadd.f32 %v563_v61, %v2054_v58  ;;  %v505_v0 = vpop.f32.mrb[1].mxu0  ;;  %v565_v1 = vpop.f32.mrb[1].mxu1 }
 0x11f   :  { %v506_v2 = vadd.f32 %v505_v0, %v2059_v59  ;;  %v566_v3 = vadd.f32 %v565_v1, %v2059_v59  ;;  %v507_v4 = vpop.f32.mrb[2].mxu0  ;;  %v567_v5 = vpop.f32.mrb[2].mxu1 }
 0x120   :  { %v1131_v6 = vmax.f32 %v504_v62, 0.0  ;;  %v1263_v7 = vmax.f32 %v564_v63, 0.0  ;;  %v508_v8 = vadd.f32 %v507_v4, %v2054_v58  ;;  %v568_v9 = vadd.f32 %v567_v5, %v2054_v58  ;;  %v509_v10 = vpop.f32.mrb[3].mxu0  ;;  %v569_v11 = vpop.f32.mrb[3].mxu1 }
 0x121   :  { %v1132_v12 = vmax.f32 %v506_v2, 0.0  ;;  %v1264_v13 = vmax.f32 %v566_v3, 0.0  ;;  %v510_v14 = vadd.f32 %v509_v10, %v2059_v59  ;;  %v570_v15 = vadd.f32 %v569_v11, %v2059_v59 }
 0x122   :  { %1307 = vst [vmem:[#allocation8] sm:$0xff] %v1131_v6  ;;  %1439 = vst [vmem:[#allocation8 + $0x420] sm:$0xff] %v1263_v7  ;;  %v1142_v16 = vmax.f32 %v508_v8, 0.0  ;;  %v1274_v17 = vmax.f32 %v568_v9, 0.0 }
 0x123   :  { %1308 = vst [vmem:[#allocation8 + $0x8] sm:$0xff] %v1132_v12  ;;  %1440 = vst [vmem:[#allocation8 + $0x428] sm:$0xff] %v1264_v13  ;;  %v1143_v18 = vmax.f32 %v510_v14, 0.0  ;;  %v1275_v19 = vmax.f32 %v570_v15, 0.0 }
 0x124   :  { %1318 = vst [vmem:[#allocation8 + $0x58] sm:$0xff] %v1142_v16  ;;  %1450 = vst [vmem:[#allocation8 + $0x478] sm:$0xff] %v1274_v17 }
 0x125   :  { %1319 = vst [vmem:[#allocation8 + $0x60] sm:$0xff] %v1143_v18  ;;  %1451 = vst [vmem:[#allocation8 + $0x480] sm:$0xff] %v1275_v19  ;;  %v513_v20 = vpop.f32.mrb[4].mxu0  ;;  %v573_v21 = vpop.f32.mrb[4].mxu1 }
 0x126   :  { %v514_v22 = vadd.f32 %v513_v20, %v2054_v58  ;;  %v574_v23 = vadd.f32 %v573_v21, %v2054_v58  ;;  %v515_v24 = vpop.f32.mrb[5].mxu0  ;;  %v575_v25 = vpop.f32.mrb[5].mxu1 }
 0x127   :  { %v516_v27 = vadd.f32 %v515_v24, %v2059_v59  ;;  %v576_v28 = vadd.f32 %v575_v25, %v2059_v59  ;;  %v517_v29 = vpop.f32.mrb[6].mxu0  ;;  %v577_v30 = vpop.f32.mrb[6].mxu1 }
 0x128   :  { %v1153_v32 = vmax.f32 %v514_v22, 0.0  ;;  %v1285_v33 = vmax.f32 %v574_v23, 0.0  ;;  %v518_v34 = vadd.f32 %v517_v29, %v2054_v58  ;;  %v578_v35 = vadd.f32 %v577_v30, %v2054_v58  ;;  %v519_v36 = vpop.f32.mrb[7].mxu0  ;;  %v579_v37 = vpop.f32.mrb[7].mxu1 }
 0x129   :  { %v1154_v38 = vmax.f32 %v516_v27, 0.0  ;;  %v1286_v39 = vmax.f32 %v576_v28, 0.0  ;;  %v520_v40 = vadd.f32 %v519_v36, %v2059_v59  ;;  %v580_v41 = vadd.f32 %v579_v37, %v2059_v59 }
 0x12a   :  { %1329 = vst [vmem:[#allocation8 + $0xb0] sm:$0xff] %v1153_v32  ;;  %1461 = vst [vmem:[#allocation8 + $0x4d0] sm:$0xff] %v1285_v33  ;;  %v1164_v42 = vmax.f32 %v518_v34, 0.0  ;;  %v1296_v43 = vmax.f32 %v578_v35, 0.0 }
 0x12b   :  { %1330 = vst [vmem:[#allocation8 + $0xb8] sm:$0xff] %v1154_v38  ;;  %1462 = vst [vmem:[#allocation8 + $0x4d8] sm:$0xff] %v1286_v39  ;;  %v1165_v45 = vmax.f32 %v520_v40, 0.0  ;;  %v1297_v46 = vmax.f32 %v580_v41, 0.0 }
 0x12c   :  { %1340 = vst [vmem:[#allocation8 + $0x108] sm:$0xff] %v1164_v42  ;;  %1472 = vst [vmem:[#allocation8 + $0x528] sm:$0xff] %v1296_v43 }
 0x12d   :  { %1341 = vst [vmem:[#allocation8 + $0x110] sm:$0xff] %v1165_v45  ;;  %1473 = vst [vmem:[#allocation8 + $0x530] sm:$0xff] %v1297_v46  ;;  %v523_v48 = vpop.f32.mrb[8].mxu0  ;;  %v616_v49 = vpop.f32.mrb[8].mxu1 }
 0x12e   :  { %v524_v50 = vadd.f32 %v523_v48, %v2054_v58  ;;  %v617_v51 = vadd.f32 %v616_v49, %v2082_v44  ;;  %v525_v52 = vpop.f32.mrb[9].mxu0  ;;  %v618_v53 = vpop.f32.mrb[9].mxu1 }
 0x12f   :  { %v526_v60 = vadd.f32 %v525_v52, %v2059_v59  ;;  %v619_v61 = vadd.f32 %v618_v53, %v2085_v47  ;;  %v527_v62 = vpop.f32.mrb[10].mxu0  ;;  %v620_v63 = vpop.f32.mrb[10].mxu1 }
 0x130   :  { %v1175_v0 = vmax.f32 %v524_v50, 0.0  ;;  %v1133_v1 = vmax.f32 %v617_v51, 0.0  ;;  %v528_v2 = vadd.f32 %v527_v62, %v2054_v58  ;;  %v621_v3 = vadd.f32 %v620_v63, %v2082_v44  ;;  %v529_v4 = vpop.f32.mrb[11].mxu0  ;;  %v622_v5 = vpop.f32.mrb[11].mxu1 }
 0x131   :  { %v1176_v6 = vmax.f32 %v526_v60, 0.0  ;;  %v1134_v7 = vmax.f32 %v619_v61, 0.0  ;;  %v530_v8 = vadd.f32 %v529_v4, %v2059_v59  ;;  %v623_v9 = vadd.f32 %v622_v5, %v2085_v47 }
 0x132   :  { %1351 = vst [vmem:[#allocation8 + $0x160] sm:$0xff] %v1175_v0  ;;  %1309 = vst [vmem:[#allocation8 + $0x10] sm:$0xff] %v1133_v1  ;;  %v1186_v10 = vmax.f32 %v528_v2, 0.0  ;;  %v1144_v11 = vmax.f32 %v621_v3, 0.0 }
 0x133   :  { %1352 = vst [vmem:[#allocation8 + $0x168] sm:$0xff] %v1176_v6  ;;  %1310 = vst [vmem:[#allocation8 + $0x18] sm:$0xff] %v1134_v7  ;;  %v1187_v12 = vmax.f32 %v530_v8, 0.0  ;;  %v1145_v13 = vmax.f32 %v623_v9, 0.0 }
 0x134   :  { %1362 = vst [vmem:[#allocation8 + $0x1b8] sm:$0xff] %v1186_v10  ;;  %1320 = vst [vmem:[#allocation8 + $0x68] sm:$0xff] %v1144_v11 }
 0x135   :  { %1363 = vst [vmem:[#allocation8 + $0x1c0] sm:$0xff] %v1187_v12  ;;  %1321 = vst [vmem:[#allocation8 + $0x70] sm:$0xff] %v1145_v13  ;;  %v533_v14 = vpop.f32.mrb[12].mxu0  ;;  %v626_v15 = vpop.f32.mrb[12].mxu1  ;;  %v143_v13 = vsub.s32 4, %v2045_v54 }
 0x136   :  { %v534_v16 = vadd.f32 %v533_v14, %v2054_v58  ;;  %v627_v17 = vadd.f32 %v626_v15, %v2082_v44  ;;  %v535_v18 = vpop.f32.mrb[13].mxu0  ;;  %v628_v19 = vpop.f32.mrb[13].mxu1 }
 0x137   :  { %v536_v20 = vadd.f32 %v535_v18, %v2059_v59  ;;  %v629_v21 = vadd.f32 %v628_v19, %v2085_v47  ;;  %v537_v22 = vpop.f32.mrb[14].mxu0  ;;  %v630_v23 = vpop.f32.mrb[14].mxu1  ;;  %v147_v18 = vsub.s32 5, %v2045_v54 }
 0x138   :  { %v1197_v24 = vmax.f32 %v534_v16, 0.0  ;;  %v1155_v25 = vmax.f32 %v627_v17, 0.0  ;;  %v538_v27 = vadd.f32 %v537_v22, %v2054_v58  ;;  %v631_v28 = vadd.f32 %v630_v23, %v2082_v44  ;;  %v539_v29 = vpop.f32.mrb[15].mxu0  ;;  %v632_v30 = vpop.f32.mrb[15].mxu1 }
 0x139   :  { %v1198_v31 = vmax.f32 %v536_v20, 0.0  ;;  %v1156_v32 = vmax.f32 %v629_v21, 0.0  ;;  %v540_v33 = vadd.f32 %v539_v29, %v2059_v59  ;;  %v633_v34 = vadd.f32 %v632_v30, %v2085_v47 }
 0x13a   :  { %1373 = vst [vmem:[#allocation8 + $0x210] sm:$0xff] %v1197_v24  ;;  %1331 = vst [vmem:[#allocation8 + $0xc0] sm:$0xff] %v1155_v25  ;;  %v1208_v35 = vmax.f32 %v538_v27, 0.0  ;;  %v1166_v36 = vmax.f32 %v631_v28, 0.0 }
 0x13b   :  { %1374 = vst [vmem:[#allocation8 + $0x218] sm:$0xff] %v1198_v31  ;;  %1332 = vst [vmem:[#allocation8 + $0xc8] sm:$0xff] %v1156_v32  ;;  %v1209_v37 = vmax.f32 %v540_v33, 0.0  ;;  %v1167_v38 = vmax.f32 %v633_v34, 0.0  ;;  %v2122_v32 = vrot.slane %v2048_v56, %v143_v13  ;;  %v2125_v34 = vrot.slane %v2048_v56, %v147_v18 }
 0x13c   :  { %1384 = vst [vmem:[#allocation8 + $0x268] sm:$0xff] %v1208_v35  ;;  %1342 = vst [vmem:[#allocation8 + $0x118] sm:$0xff] %v1166_v36 }
 0x13d   :  { %1385 = vst [vmem:[#allocation8 + $0x270] sm:$0xff] %v1209_v37  ;;  %1343 = vst [vmem:[#allocation8 + $0x120] sm:$0xff] %v1167_v38  ;;  %v543_v39 = vpop.f32.mrb[16].mxu0  ;;  %v636_v40 = vpop.f32.mrb[16].mxu1 }
 0x13e   :  { %v544_v41 = vadd.f32 %v543_v39, %v2054_v58  ;;  %v637_v42 = vadd.f32 %v636_v40, %v2082_v44  ;;  %v545_v43 = vpop.f32.mrb[17].mxu0  ;;  %v638_v45 = vpop.f32.mrb[17].mxu1 }
 0x13f   :  { %v546_v46 = vadd.f32 %v545_v43, %v2059_v59  ;;  %v639_v48 = vadd.f32 %v638_v45, %v2085_v47  ;;  %v547_v49 = vpop.f32.mrb[18].mxu0  ;;  %v640_v50 = vpop.f32.mrb[18].mxu1 }
 0x140   :  { %v1219_v51 = vmax.f32 %v544_v41, 0.0  ;;  %v1177_v52 = vmax.f32 %v637_v42, 0.0  ;;  %v548_v53 = vadd.f32 %v547_v49, %v2054_v58  ;;  %v641_v60 = vadd.f32 %v640_v50, %v2082_v44  ;;  %v549_v61 = vpop.f32.mrb[19].mxu0  ;;  %v642_v62 = vpop.f32.mrb[19].mxu1 }
 0x141   :  { %v1220_v63 = vmax.f32 %v546_v46, 0.0  ;;  %v1178_v0 = vmax.f32 %v639_v48, 0.0  ;;  %v550_v1 = vadd.f32 %v549_v61, %v2059_v59  ;;  %v643_v2 = vadd.f32 %v642_v62, %v2085_v47 }
 0x142   :  { %1395 = vst [vmem:[#allocation8 + $0x2c0] sm:$0xff] %v1219_v51  ;;  %1353 = vst [vmem:[#allocation8 + $0x170] sm:$0xff] %v1177_v52  ;;  %v1230_v3 = vmax.f32 %v548_v53, 0.0  ;;  %v1188_v4 = vmax.f32 %v641_v60, 0.0 }
 0x143   :  { %1396 = vst [vmem:[#allocation8 + $0x2c8] sm:$0xff] %v1220_v63  ;;  %1354 = vst [vmem:[#allocation8 + $0x178] sm:$0xff] %v1178_v0  ;;  %v1231_v5 = vmax.f32 %v550_v1, 0.0  ;;  %v1189_v6 = vmax.f32 %v643_v2, 0.0 }
 0x144   :  { %1406 = vst [vmem:[#allocation8 + $0x318] sm:$0xff] %v1230_v3  ;;  %1364 = vst [vmem:[#allocation8 + $0x1c8] sm:$0xff] %v1188_v4 }
 0x145   :  { %1407 = vst [vmem:[#allocation8 + $0x320] sm:$0xff] %v1231_v5  ;;  %1365 = vst [vmem:[#allocation8 + $0x1d0] sm:$0xff] %v1189_v6  ;;  %v553_v7 = vpop.f32.mrb[20].mxu0  ;;  %v646_v8 = vpop.f32.mrb[20].mxu1 }
 0x146   :  { %v554_v9 = vadd.f32 %v553_v7, %v2054_v58  ;;  %v647_v10 = vadd.f32 %v646_v8, %v2082_v44  ;;  %v555_v11 = vpop.f32.mrb[21].mxu0  ;;  %v648_v12 = vpop.f32.mrb[21].mxu1 }
 0x147   :  { %v556_v14 = vadd.f32 %v555_v11, %v2059_v59  ;;  %v649_v15 = vadd.f32 %v648_v12, %v2085_v47  ;;  %v557_v16 = vpop.f32.mrb[22].mxu0  ;;  %v650_v17 = vpop.f32.mrb[22].mxu1 }
 0x148   :  { %v1241_v19 = vmax.f32 %v554_v9, 0.0  ;;  %v1199_v20 = vmax.f32 %v647_v10, 0.0  ;;  %v558_v21 = vadd.f32 %v557_v16, %v2054_v58  ;;  %v651_v22 = vadd.f32 %v650_v17, %v2082_v44  ;;  %v559_v23 = vpop.f32.mrb[23].mxu0  ;;  %v652_v24 = vpop.f32.mrb[23].mxu1 }
 0x149   :  { %v1242_v25 = vmax.f32 %v556_v14, 0.0  ;;  %v1200_v27 = vmax.f32 %v649_v15, 0.0  ;;  %v560_v28 = vadd.f32 %v559_v23, %v2059_v59  ;;  %v653_v29 = vadd.f32 %v652_v24, %v2085_v47 }
 0x14a   :  { %1417 = vst [vmem:[#allocation8 + $0x370] sm:$0xff] %v1241_v19  ;;  %1375 = vst [vmem:[#allocation8 + $0x220] sm:$0xff] %v1199_v20  ;;  %v1252_v30 = vmax.f32 %v558_v21, 0.0  ;;  %v1210_v31 = vmax.f32 %v651_v22, 0.0 }
 0x14b   :  { %1418 = vst [vmem:[#allocation8 + $0x378] sm:$0xff] %v1242_v25  ;;  %1376 = vst [vmem:[#allocation8 + $0x228] sm:$0xff] %v1200_v27  ;;  %v1253_v58 = vmax.f32 %v560_v28, 0.0  ;;  %v1211_v33 = vmax.f32 %v653_v29, 0.0 }
 0x14c   :  { %1428 = vst [vmem:[#allocation8 + $0x3c8] sm:$0xff] %v1252_v30  ;;  %1386 = vst [vmem:[#allocation8 + $0x278] sm:$0xff] %v1210_v31 }
 0x14d   :  { %1429 = vst [vmem:[#allocation8 + $0x3d0] sm:$0xff] %v1253_v58  ;;  %1387 = vst [vmem:[#allocation8 + $0x280] sm:$0xff] %v1211_v33  ;;  %v656_v59 = vpop.f32.mrb[24].mxu1  ;;  %v729_v35 = vpop.f32.mrb[24].mxu0 }
 0x14e   :  { %v657_v36 = vadd.f32 %v656_v59, %v2082_v44  ;;  %v730_v37 = vadd.f32 %v729_v35, %v2122_v32  ;;  %v658_v38 = vpop.f32.mrb[25].mxu1  ;;  %v731_v39 = vpop.f32.mrb[25].mxu0 }
 0x14f   :  { %v659_v40 = vadd.f32 %v658_v38, %v2085_v47  ;;  %v732_v41 = vadd.f32 %v731_v39, %v2125_v34  ;;  %v660_v42 = vpop.f32.mrb[26].mxu1  ;;  %v733_v43 = vpop.f32.mrb[26].mxu0 }
 0x150   :  { %v1221_v45 = vmax.f32 %v657_v36, 0.0  ;;  %v1135_v46 = vmax.f32 %v730_v37, 0.0  ;;  %v661_v48 = vadd.f32 %v660_v42, %v2082_v44  ;;  %v734_v49 = vadd.f32 %v733_v43, %v2122_v32  ;;  %v662_v50 = vpop.f32.mrb[27].mxu1  ;;  %v735_v51 = vpop.f32.mrb[27].mxu0 }
 0x151   :  { %v1222_v52 = vmax.f32 %v659_v40, 0.0  ;;  %v1136_v53 = vmax.f32 %v732_v41, 0.0  ;;  %v663_v60 = vadd.f32 %v662_v50, %v2085_v47  ;;  %v736_v61 = vadd.f32 %v735_v51, %v2125_v34 }
 0x152   :  { %1397 = vst [vmem:[#allocation8 + $0x2d0] sm:$0xff] %v1221_v45  ;;  %1311 = vst [vmem:[#allocation8 + $0x20] sm:$0xff] %v1135_v46  ;;  %v1232_v62 = vmax.f32 %v661_v48, 0.0  ;;  %v1146_v63 = vmax.f32 %v734_v49, 0.0 }
 0x153   :  { %1398 = vst [vmem:[#allocation8 + $0x2d8] sm:$0xff] %v1222_v52  ;;  %1312 = vst [vmem:[#allocation8 + $0x28] sm:$0xff] %v1136_v53  ;;  %v1233_v0 = vmax.f32 %v663_v60, 0.0  ;;  %v1147_v1 = vmax.f32 %v736_v61, 0.0 }
 0x154   :  { %1408 = vst [vmem:[#allocation8 + $0x328] sm:$0xff] %v1232_v62  ;;  %1322 = vst [vmem:[#allocation8 + $0x78] sm:$0xff] %v1146_v63 }
 0x155   :  { %1409 = vst [vmem:[#allocation8 + $0x330] sm:$0xff] %v1233_v0  ;;  %1323 = vst [vmem:[#allocation8 + $0x80] sm:$0xff] %v1147_v1  ;;  %v666_v2 = vpop.f32.mrb[28].mxu1  ;;  %v739_v3 = vpop.f32.mrb[28].mxu0  ;;  %v151_v1 = vsub.s32 6, %v2045_v54 }
 0x156   :  { %v667_v4 = vadd.f32 %v666_v2, %v2082_v44  ;;  %v740_v5 = vadd.f32 %v739_v3, %v2122_v32  ;;  %v668_v6 = vpop.f32.mrb[29].mxu1  ;;  %v741_v7 = vpop.f32.mrb[29].mxu0 }
 0x157   :  { %v669_v8 = vadd.f32 %v668_v6, %v2085_v47  ;;  %v742_v9 = vadd.f32 %v741_v7, %v2125_v34  ;;  %v670_v10 = vpop.f32.mrb[30].mxu1  ;;  %v743_v11 = vpop.f32.mrb[30].mxu0  ;;  %v155_v6 = vsub.s32 7, %v2045_v54 }
 0x158   :  { %v1243_v12 = vmax.f32 %v667_v4, 0.0  ;;  %v1157_v13 = vmax.f32 %v740_v5, 0.0  ;;  %v671_v14 = vadd.f32 %v670_v10, %v2082_v44  ;;  %v744_v15 = vadd.f32 %v743_v11, %v2122_v32  ;;  %v672_v16 = vpop.f32.mrb[31].mxu1  ;;  %v745_v17 = vpop.f32.mrb[31].mxu0 }
 0x159   :  { %v1244_v18 = vmax.f32 %v669_v8, 0.0  ;;  %v1158_v19 = vmax.f32 %v742_v9, 0.0  ;;  %v673_v20 = vadd.f32 %v672_v16, %v2085_v47  ;;  %v746_v21 = vadd.f32 %v745_v17, %v2125_v34 }
 0x15a   :  { %1419 = vst [vmem:[#allocation8 + $0x380] sm:$0xff] %v1243_v12  ;;  %1333 = vst [vmem:[#allocation8 + $0xd0] sm:$0xff] %v1157_v13  ;;  %v1254_v22 = vmax.f32 %v671_v14, 0.0  ;;  %v1168_v23 = vmax.f32 %v744_v15, 0.0 }
 0x15b   :  { %1420 = vst [vmem:[#allocation8 + $0x388] sm:$0xff] %v1244_v18  ;;  %1334 = vst [vmem:[#allocation8 + $0xd8] sm:$0xff] %v1158_v19  ;;  %v1255_v24 = vmax.f32 %v673_v20, 0.0  ;;  %v1169_v25 = vmax.f32 %v746_v21, 0.0  ;;  %v2162_v19 = vrot.slane %v2048_v56, %v151_v1  ;;  %v2165_v21 = vrot.slane %v2048_v56, %v155_v6 }
 0x15c   :  { %1430 = vst [vmem:[#allocation8 + $0x3d8] sm:$0xff] %v1254_v22  ;;  %1344 = vst [vmem:[#allocation8 + $0x128] sm:$0xff] %v1168_v23 }
 0x15d   :  { %1431 = vst [vmem:[#allocation8 + $0x3e0] sm:$0xff] %v1255_v24  ;;  %1345 = vst [vmem:[#allocation8 + $0x130] sm:$0xff] %v1169_v25  ;;  %v676_v27 = vpop.f32.mrb[32].mxu1  ;;  %v749_v28 = vpop.f32.mrb[32].mxu0 }
 0x15e   :  { %v677_v29 = vadd.f32 %v676_v27, %v2082_v44  ;;  %v750_v30 = vadd.f32 %v749_v28, %v2122_v32  ;;  %v678_v31 = vpop.f32.mrb[33].mxu1  ;;  %v751_v58 = vpop.f32.mrb[33].mxu0 }
 0x15f   :  { %v679_v33 = vadd.f32 %v678_v31, %v2085_v47  ;;  %v752_v59 = vadd.f32 %v751_v58, %v2125_v34  ;;  %v680_v35 = vpop.f32.mrb[34].mxu1  ;;  %v753_v36 = vpop.f32.mrb[34].mxu0 }
 0x160   :  { %v1265_v37 = vmax.f32 %v677_v29, 0.0  ;;  %v1179_v38 = vmax.f32 %v750_v30, 0.0  ;;  %v681_v39 = vadd.f32 %v680_v35, %v2082_v44  ;;  %v754_v40 = vadd.f32 %v753_v36, %v2122_v32  ;;  %v682_v41 = vpop.f32.mrb[35].mxu1  ;;  %v755_v42 = vpop.f32.mrb[35].mxu0 }
 0x161   :  { %v1266_v43 = vmax.f32 %v679_v33, 0.0  ;;  %v1180_v45 = vmax.f32 %v752_v59, 0.0  ;;  %v683_v46 = vadd.f32 %v682_v41, %v2085_v47  ;;  %v756_v48 = vadd.f32 %v755_v42, %v2125_v34 }
 0x162   :  { %1441 = vst [vmem:[#allocation8 + $0x430] sm:$0xff] %v1265_v37  ;;  %1355 = vst [vmem:[#allocation8 + $0x180] sm:$0xff] %v1179_v38  ;;  %v1276_v49 = vmax.f32 %v681_v39, 0.0  ;;  %v1190_v50 = vmax.f32 %v754_v40, 0.0 }
 0x163   :  { %1442 = vst [vmem:[#allocation8 + $0x438] sm:$0xff] %v1266_v43  ;;  %1356 = vst [vmem:[#allocation8 + $0x188] sm:$0xff] %v1180_v45  ;;  %v1277_v51 = vmax.f32 %v683_v46, 0.0  ;;  %v1191_v52 = vmax.f32 %v756_v48, 0.0 }
 0x164   :  { %1452 = vst [vmem:[#allocation8 + $0x488] sm:$0xff] %v1276_v49  ;;  %1366 = vst [vmem:[#allocation8 + $0x1d8] sm:$0xff] %v1190_v50 }
 0x165   :  { %1453 = vst [vmem:[#allocation8 + $0x490] sm:$0xff] %v1277_v51  ;;  %1367 = vst [vmem:[#allocation8 + $0x1e0] sm:$0xff] %v1191_v52  ;;  %v686_v53 = vpop.f32.mrb[36].mxu1  ;;  %v759_v60 = vpop.f32.mrb[36].mxu0 }
 0x166   :  { %v687_v61 = vadd.f32 %v686_v53, %v2082_v44  ;;  %v760_v62 = vadd.f32 %v759_v60, %v2122_v32  ;;  %v688_v63 = vpop.f32.mrb[37].mxu1  ;;  %v761_v0 = vpop.f32.mrb[37].mxu0 }
 0x167   :  { %v689_v2 = vadd.f32 %v688_v63, %v2085_v47  ;;  %v762_v3 = vadd.f32 %v761_v0, %v2125_v34  ;;  %v690_v4 = vpop.f32.mrb[38].mxu1  ;;  %v763_v5 = vpop.f32.mrb[38].mxu0 }
 0x168   :  { %v1287_v7 = vmax.f32 %v687_v61, 0.0  ;;  %v1201_v8 = vmax.f32 %v760_v62, 0.0  ;;  %v691_v9 = vadd.f32 %v690_v4, %v2082_v44  ;;  %v764_v10 = vadd.f32 %v763_v5, %v2122_v32  ;;  %v692_v11 = vpop.f32.mrb[39].mxu1  ;;  %v765_v12 = vpop.f32.mrb[39].mxu0 }
 0x169   :  { %v1288_v13 = vmax.f32 %v689_v2, 0.0  ;;  %v1202_v14 = vmax.f32 %v762_v3, 0.0  ;;  %v693_v15 = vadd.f32 %v692_v11, %v2085_v47  ;;  %v766_v16 = vadd.f32 %v765_v12, %v2125_v34 }
 0x16a   :  { %1463 = vst [vmem:[#allocation8 + $0x4e0] sm:$0xff] %v1287_v7  ;;  %1377 = vst [vmem:[#allocation8 + $0x230] sm:$0xff] %v1201_v8  ;;  %v1298_v17 = vmax.f32 %v691_v9, 0.0  ;;  %v1212_v18 = vmax.f32 %v764_v10, 0.0 }
 0x16b   :  { %1464 = vst [vmem:[#allocation8 + $0x4e8] sm:$0xff] %v1288_v13  ;;  %1378 = vst [vmem:[#allocation8 + $0x238] sm:$0xff] %v1202_v14  ;;  %v1299_v44 = vmax.f32 %v693_v15, 0.0  ;;  %v1213_v20 = vmax.f32 %v766_v16, 0.0 }
 0x16c   :  { %1474 = vst [vmem:[#allocation8 + $0x538] sm:$0xff] %v1298_v17  ;;  %1388 = vst [vmem:[#allocation8 + $0x288] sm:$0xff] %v1212_v18 }
 0x16d   :  { %1475 = vst [vmem:[#allocation8 + $0x540] sm:$0xff] %v1299_v44  ;;  %1389 = vst [vmem:[#allocation8 + $0x290] sm:$0xff] %v1213_v20  ;;  %v769_v47 = vpop.f32.mrb[40].mxu0  ;;  %v842_v22 = vpop.f32.mrb[40].mxu1 }
 0x16e   :  { %v770_v23 = vadd.f32 %v769_v47, %v2122_v32  ;;  %v843_v24 = vadd.f32 %v842_v22, %v2162_v19  ;;  %v771_v25 = vpop.f32.mrb[41].mxu0  ;;  %v844_v27 = vpop.f32.mrb[41].mxu1 }
 0x16f   :  { %v772_v28 = vadd.f32 %v771_v25, %v2125_v34  ;;  %v845_v29 = vadd.f32 %v844_v27, %v2165_v21  ;;  %v773_v30 = vpop.f32.mrb[42].mxu0  ;;  %v846_v31 = vpop.f32.mrb[42].mxu1 }
 0x170   :  { %v1223_v56 = vmax.f32 %v770_v23, 0.0  ;;  %v1137_v58 = vmax.f32 %v843_v24, 0.0  ;;  %v774_v33 = vadd.f32 %v773_v30, %v2122_v32  ;;  %v847_v59 = vadd.f32 %v846_v31, %v2162_v19  ;;  %v775_v35 = vpop.f32.mrb[43].mxu0  ;;  %v848_v36 = vpop.f32.mrb[43].mxu1 }
 0x171   :  { %v1224_v37 = vmax.f32 %v772_v28, 0.0  ;;  %v1138_v38 = vmax.f32 %v845_v29, 0.0  ;;  %v776_v39 = vadd.f32 %v775_v35, %v2125_v34  ;;  %v849_v40 = vadd.f32 %v848_v36, %v2165_v21 }
 0x172   :  { %1399 = vst [vmem:[#allocation8 + $0x2e0] sm:$0xff] %v1223_v56  ;;  %1313 = vst [vmem:[#allocation8 + $0x30] sm:$0xff] %v1137_v58  ;;  %v1234_v41 = vmax.f32 %v774_v33, 0.0  ;;  %v1148_v42 = vmax.f32 %v847_v59, 0.0 }
 0x173   :  { %1400 = vst [vmem:[#allocation8 + $0x2e8] sm:$0xff] %v1224_v37  ;;  %1314 = vst [vmem:[#allocation8 + $0x38] sm:$0xff] %v1138_v38  ;;  %v1235_v43 = vmax.f32 %v776_v39, 0.0  ;;  %v1149_v45 = vmax.f32 %v849_v40, 0.0 }
 0x174   :  { %1410 = vst [vmem:[#allocation8 + $0x338] sm:$0xff] %v1234_v41  ;;  %1324 = vst [vmem:[#allocation8 + $0x88] sm:$0xff] %v1148_v42 }
 0x175   :  { %1411 = vst [vmem:[#allocation8 + $0x340] sm:$0xff] %v1235_v43  ;;  %1325 = vst [vmem:[#allocation8 + $0x90] sm:$0xff] %v1149_v45  ;;  %v779_v46 = vpop.f32.mrb[44].mxu0  ;;  %v852_v48 = vpop.f32.mrb[44].mxu1 }
 0x176   :  { %v780_v49 = vadd.f32 %v779_v46, %v2122_v32  ;;  %v853_v50 = vadd.f32 %v852_v48, %v2162_v19  ;;  %v781_v51 = vpop.f32.mrb[45].mxu0  ;;  %v854_v52 = vpop.f32.mrb[45].mxu1 }
 0x177   :  { %v782_v53 = vadd.f32 %v781_v51, %v2125_v34  ;;  %v855_v60 = vadd.f32 %v854_v52, %v2165_v21  ;;  %v783_v61 = vpop.f32.mrb[46].mxu0  ;;  %v856_v62 = vpop.f32.mrb[46].mxu1 }
 0x178   :  { %v1245_v63 = vmax.f32 %v780_v49, 0.0  ;;  %v1159_v0 = vmax.f32 %v853_v50, 0.0  ;;  %v784_v1 = vadd.f32 %v783_v61, %v2122_v32  ;;  %v857_v2 = vadd.f32 %v856_v62, %v2162_v19  ;;  %v785_v3 = vpop.f32.mrb[47].mxu0  ;;  %v858_v4 = vpop.f32.mrb[47].mxu1  ;;  %v2195_v49 = vld [vmem:[#allocation7 + $0x8] sm:$0x7] }
 0x179   :  { %v1246_v5 = vmax.f32 %v782_v53, 0.0  ;;  %v1160_v6 = vmax.f32 %v855_v60, 0.0  ;;  %v786_v7 = vadd.f32 %v785_v3, %v2125_v34  ;;  %v859_v8 = vadd.f32 %v858_v4, %v2165_v21 }
 0x17a   :  { %1421 = vst [vmem:[#allocation8 + $0x390] sm:$0xff] %v1245_v63  ;;  %1335 = vst [vmem:[#allocation8 + $0xe0] sm:$0xff] %v1159_v0  ;;  %v1256_v9 = vmax.f32 %v784_v1, 0.0  ;;  %v1170_v10 = vmax.f32 %v857_v2, 0.0  ;;  %v2204_v4 = vrot.slane %v2195_v49, %v127_v55 }
 0x17b   :  { %1422 = vst [vmem:[#allocation8 + $0x398] sm:$0xff] %v1246_v5  ;;  %1336 = vst [vmem:[#allocation8 + $0xe8] sm:$0xff] %v1160_v6  ;;  %v1257_v11 = vmax.f32 %v786_v7, 0.0  ;;  %v1171_v12 = vmax.f32 %v859_v8, 0.0  ;;  %v2209_v6 = vrot.slane %v2195_v49, %v131_v57 }
 0x17c   :  { %1432 = vst [vmem:[#allocation8 + $0x3e8] sm:$0xff] %v1256_v9  ;;  %1346 = vst [vmem:[#allocation8 + $0x138] sm:$0xff] %v1170_v10 }
 0x17d   :  { %1433 = vst [vmem:[#allocation8 + $0x3f0] sm:$0xff] %v1257_v11  ;;  %1347 = vst [vmem:[#allocation8 + $0x140] sm:$0xff] %v1171_v12  ;;  %v789_v13 = vpop.f32.mrb[48].mxu0  ;;  %v862_v14 = vpop.f32.mrb[48].mxu1 }
 0x17e   :  { %v790_v15 = vadd.f32 %v789_v13, %v2122_v32  ;;  %v863_v16 = vadd.f32 %v862_v14, %v2162_v19  ;;  %v791_v17 = vpop.f32.mrb[49].mxu0  ;;  %v864_v18 = vpop.f32.mrb[49].mxu1 }
 0x17f   :  { %v792_v44 = vadd.f32 %v791_v17, %v2125_v34  ;;  %v865_v20 = vadd.f32 %v864_v18, %v2165_v21  ;;  %v793_v47 = vpop.f32.mrb[50].mxu0  ;;  %v866_v22 = vpop.f32.mrb[50].mxu1 }
 0x180   :  { %v1267_v23 = vmax.f32 %v790_v15, 0.0  ;;  %v1181_v24 = vmax.f32 %v863_v16, 0.0  ;;  %v794_v25 = vadd.f32 %v793_v47, %v2122_v32  ;;  %v867_v27 = vadd.f32 %v866_v22, %v2162_v19  ;;  %v795_v28 = vpop.f32.mrb[51].mxu0  ;;  %v868_v29 = vpop.f32.mrb[51].mxu1 }
 0x181   :  { %v1268_v30 = vmax.f32 %v792_v44, 0.0  ;;  %v1182_v31 = vmax.f32 %v865_v20, 0.0  ;;  %v796_v56 = vadd.f32 %v795_v28, %v2125_v34  ;;  %v869_v58 = vadd.f32 %v868_v29, %v2165_v21 }
 0x182   :  { %1443 = vst [vmem:[#allocation8 + $0x440] sm:$0xff] %v1267_v23  ;;  %1357 = vst [vmem:[#allocation8 + $0x190] sm:$0xff] %v1181_v24  ;;  %v1278_v33 = vmax.f32 %v794_v25, 0.0  ;;  %v1192_v59 = vmax.f32 %v867_v27, 0.0 }
 0x183   :  { %1444 = vst [vmem:[#allocation8 + $0x448] sm:$0xff] %v1268_v30  ;;  %1358 = vst [vmem:[#allocation8 + $0x198] sm:$0xff] %v1182_v31  ;;  %v1279_v35 = vmax.f32 %v796_v56, 0.0  ;;  %v1193_v36 = vmax.f32 %v869_v58, 0.0 }
 0x184   :  { %1454 = vst [vmem:[#allocation8 + $0x498] sm:$0xff] %v1278_v33  ;;  %1368 = vst [vmem:[#allocation8 + $0x1e8] sm:$0xff] %v1192_v59 }
 0x185   :  { %1455 = vst [vmem:[#allocation8 + $0x4a0] sm:$0xff] %v1279_v35  ;;  %1369 = vst [vmem:[#allocation8 + $0x1f0] sm:$0xff] %v1193_v36  ;;  %v799_v37 = vpop.f32.mrb[52].mxu0  ;;  %v872_v38 = vpop.f32.mrb[52].mxu1 }
 0x186   :  { %v800_v39 = vadd.f32 %v799_v37, %v2122_v32  ;;  %v873_v40 = vadd.f32 %v872_v38, %v2162_v19  ;;  %v801_v41 = vpop.f32.mrb[53].mxu0  ;;  %v874_v42 = vpop.f32.mrb[53].mxu1 }
 0x187   :  { %v802_v43 = vadd.f32 %v801_v41, %v2125_v34  ;;  %v875_v45 = vadd.f32 %v874_v42, %v2165_v21  ;;  %v803_v46 = vpop.f32.mrb[54].mxu0  ;;  %v876_v48 = vpop.f32.mrb[54].mxu1 }
 0x188   :  { %v1289_v50 = vmax.f32 %v800_v39, 0.0  ;;  %v1203_v51 = vmax.f32 %v873_v40, 0.0  ;;  %v804_v52 = vadd.f32 %v803_v46, %v2122_v32  ;;  %v877_v53 = vadd.f32 %v876_v48, %v2162_v19  ;;  %v805_v60 = vpop.f32.mrb[55].mxu0  ;;  %v878_v61 = vpop.f32.mrb[55].mxu1 }
 0x189   :  { %v1290_v62 = vmax.f32 %v802_v43, 0.0  ;;  %v1204_v63 = vmax.f32 %v875_v45, 0.0  ;;  %v806_v0 = vadd.f32 %v805_v60, %v2125_v34  ;;  %v879_v1 = vadd.f32 %v878_v61, %v2165_v21 }
 0x18a   :  { %1465 = vst [vmem:[#allocation8 + $0x4f0] sm:$0xff] %v1289_v50  ;;  %1379 = vst [vmem:[#allocation8 + $0x240] sm:$0xff] %v1203_v51  ;;  %v1300_v2 = vmax.f32 %v804_v52, 0.0  ;;  %v1214_v3 = vmax.f32 %v877_v53, 0.0 }
 0x18b   :  { %1466 = vst [vmem:[#allocation8 + $0x4f8] sm:$0xff] %v1290_v62  ;;  %1380 = vst [vmem:[#allocation8 + $0x248] sm:$0xff] %v1204_v63  ;;  %v1301_v32 = vmax.f32 %v806_v0, 0.0  ;;  %v1215_v5 = vmax.f32 %v879_v1, 0.0 }
 0x18c   :  { %1476 = vst [vmem:[#allocation8 + $0x548] sm:$0xff] %v1300_v2  ;;  %1390 = vst [vmem:[#allocation8 + $0x298] sm:$0xff] %v1214_v3 }
 0x18d   :  { %1477 = vst [vmem:[#allocation8 + $0x550] sm:$0xff] %v1301_v32  ;;  %1391 = vst [vmem:[#allocation8 + $0x2a0] sm:$0xff] %v1215_v5  ;;  %v882_v34 = vpop.f32.mrb[56].mxu1  ;;  %v955_v7 = vpop.f32.mrb[56].mxu0 }
 0x18e   :  { %v883_v8 = vadd.f32 %v882_v34, %v2162_v19  ;;  %v956_v55 = vadd.f32 %v955_v7, %v2204_v4  ;;  %v884_v9 = vpop.f32.mrb[57].mxu1  ;;  %v957_v10 = vpop.f32.mrb[57].mxu0 }
 0x18f   :  { %v885_v11 = vadd.f32 %v884_v9, %v2165_v21  ;;  %v958_v12 = vadd.f32 %v957_v10, %v2209_v6  ;;  %v886_v13 = vpop.f32.mrb[58].mxu1  ;;  %v959_v14 = vpop.f32.mrb[58].mxu0 }
 0x190   :  { %v1225_v57 = vmax.f32 %v883_v8, 0.0  ;;  %v1139_v15 = vmax.f32 %v956_v55, 0.0  ;;  %v887_v16 = vadd.f32 %v886_v13, %v2162_v19  ;;  %v960_v17 = vadd.f32 %v959_v14, %v2204_v4  ;;  %v888_v18 = vpop.f32.mrb[59].mxu1  ;;  %v961_v44 = vpop.f32.mrb[59].mxu0 }
 0x191   :  { %v1226_v20 = vmax.f32 %v885_v11, 0.0  ;;  %v1140_v47 = vmax.f32 %v958_v12, 0.0  ;;  %v889_v22 = vadd.f32 %v888_v18, %v2165_v21  ;;  %v962_v23 = vadd.f32 %v961_v44, %v2209_v6 }
 0x192   :  { %1401 = vst [vmem:[#allocation8 + $0x2f0] sm:$0xff] %v1225_v57  ;;  %1315 = vst [vmem:[#allocation8 + $0x40] sm:$0xff] %v1139_v15  ;;  %v1236_v24 = vmax.f32 %v887_v16, 0.0  ;;  %v1150_v25 = vmax.f32 %v960_v17, 0.0 }
 0x193   :  { %1402 = vst [vmem:[#allocation8 + $0x2f8] sm:$0xff] %v1226_v20  ;;  %1316 = vst [vmem:[#allocation8 + $0x48] sm:$0xff] %v1140_v47  ;;  %v1237_v27 = vmax.f32 %v889_v22, 0.0  ;;  %v1151_v28 = vmax.f32 %v962_v23, 0.0 }
 0x194   :  { %1412 = vst [vmem:[#allocation8 + $0x348] sm:$0xff] %v1236_v24  ;;  %1326 = vst [vmem:[#allocation8 + $0x98] sm:$0xff] %v1150_v25 }
 0x195   :  { %1413 = vst [vmem:[#allocation8 + $0x350] sm:$0xff] %v1237_v27  ;;  %1327 = vst [vmem:[#allocation8 + $0xa0] sm:$0xff] %v1151_v28  ;;  %v892_v29 = vpop.f32.mrb[60].mxu1  ;;  %v965_v30 = vpop.f32.mrb[60].mxu0 }
 0x196   :  { %v893_v31 = vadd.f32 %v892_v29, %v2162_v19  ;;  %v966_v56 = vadd.f32 %v965_v30, %v2204_v4  ;;  %v894_v58 = vpop.f32.mrb[61].mxu1  ;;  %v967_v33 = vpop.f32.mrb[61].mxu0 }
 0x197   :  { %v895_v59 = vadd.f32 %v894_v58, %v2165_v21  ;;  %v968_v35 = vadd.f32 %v967_v33, %v2209_v6  ;;  %v896_v36 = vpop.f32.mrb[62].mxu1  ;;  %v969_v37 = vpop.f32.mrb[62].mxu0 }
 0x198   :  { %v1247_v38 = vmax.f32 %v893_v31, 0.0  ;;  %v1161_v39 = vmax.f32 %v966_v56, 0.0  ;;  %v897_v40 = vadd.f32 %v896_v36, %v2162_v19  ;;  %v970_v41 = vadd.f32 %v969_v37, %v2204_v4  ;;  %v898_v42 = vpop.f32.mrb[63].mxu1  ;;  %v971_v43 = vpop.f32.mrb[63].mxu0 }
 0x199   :  { %v1248_v45 = vmax.f32 %v895_v59, 0.0  ;;  %v1162_v46 = vmax.f32 %v968_v35, 0.0  ;;  %v899_v48 = vadd.f32 %v898_v42, %v2165_v21  ;;  %v972_v50 = vadd.f32 %v971_v43, %v2209_v6 }
 0x19a   :  { %1423 = vst [vmem:[#allocation8 + $0x3a0] sm:$0xff] %v1247_v38  ;;  %1337 = vst [vmem:[#allocation8 + $0xf0] sm:$0xff] %v1161_v39  ;;  %v1258_v51 = vmax.f32 %v897_v40, 0.0  ;;  %v1172_v52 = vmax.f32 %v970_v41, 0.0  ;;  %v2246_v41 = vrot.slane %v2195_v49, %v135_v26 }
 0x19b   :  { %1424 = vst [vmem:[#allocation8 + $0x3a8] sm:$0xff] %v1248_v45  ;;  %1338 = vst [vmem:[#allocation8 + $0xf8] sm:$0xff] %v1162_v46  ;;  %v1259_v53 = vmax.f32 %v899_v48, 0.0  ;;  %v1173_v60 = vmax.f32 %v972_v50, 0.0 }
 0x19c   :  { %1434 = vst [vmem:[#allocation8 + $0x3f8] sm:$0xff] %v1258_v51  ;;  %1348 = vst [vmem:[#allocation8 + $0x148] sm:$0xff] %v1172_v52 }
 0x19d   :  { %1435 = vst [vmem:[#allocation8 + $0x400] sm:$0xff] %v1259_v53  ;;  %1349 = vst [vmem:[#allocation8 + $0x150] sm:$0xff] %v1173_v60  ;;  %v902_v61 = vpop.f32.mrb[64].mxu1  ;;  %v975_v62 = vpop.f32.mrb[64].mxu0 }
 0x19e   :  { %v903_v63 = vadd.f32 %v902_v61, %v2162_v19  ;;  %v976_v0 = vadd.f32 %v975_v62, %v2204_v4  ;;  %v904_v1 = vpop.f32.mrb[65].mxu1  ;;  %v977_v2 = vpop.f32.mrb[65].mxu0 }
 0x19f   :  { %v905_v3 = vadd.f32 %v904_v1, %v2165_v21  ;;  %v978_v32 = vadd.f32 %v977_v2, %v2209_v6  ;;  %v906_v5 = vpop.f32.mrb[66].mxu1  ;;  %v979_v34 = vpop.f32.mrb[66].mxu0 }
 0x1a0   :  { %v1269_v7 = vmax.f32 %v903_v63, 0.0  ;;  %v1183_v8 = vmax.f32 %v976_v0, 0.0  ;;  %v907_v55 = vadd.f32 %v906_v5, %v2162_v19  ;;  %v980_v9 = vadd.f32 %v979_v34, %v2204_v4  ;;  %v908_v10 = vpop.f32.mrb[67].mxu1  ;;  %v981_v11 = vpop.f32.mrb[67].mxu0 }
 0x1a1   :  { %v1270_v12 = vmax.f32 %v905_v3, 0.0  ;;  %v1184_v13 = vmax.f32 %v978_v32, 0.0  ;;  %v909_v14 = vadd.f32 %v908_v10, %v2165_v21  ;;  %v982_v57 = vadd.f32 %v981_v11, %v2209_v6 }
 0x1a2   :  { %1445 = vst [vmem:[#allocation8 + $0x450] sm:$0xff] %v1269_v7  ;;  %1359 = vst [vmem:[#allocation8 + $0x1a0] sm:$0xff] %v1183_v8  ;;  %v1280_v15 = vmax.f32 %v907_v55, 0.0  ;;  %v1194_v16 = vmax.f32 %v980_v9, 0.0 }
 0x1a3   :  { %1446 = vst [vmem:[#allocation8 + $0x458] sm:$0xff] %v1270_v12  ;;  %1360 = vst [vmem:[#allocation8 + $0x1a8] sm:$0xff] %v1184_v13  ;;  %v1281_v17 = vmax.f32 %v909_v14, 0.0  ;;  %v1195_v18 = vmax.f32 %v982_v57, 0.0 }
 0x1a4   :  { %1456 = vst [vmem:[#allocation8 + $0x4a8] sm:$0xff] %v1280_v15  ;;  %1370 = vst [vmem:[#allocation8 + $0x1f8] sm:$0xff] %v1194_v16 }
 0x1a5   :  { %1457 = vst [vmem:[#allocation8 + $0x4b0] sm:$0xff] %v1281_v17  ;;  %1371 = vst [vmem:[#allocation8 + $0x200] sm:$0xff] %v1195_v18  ;;  %v912_v44 = vpop.f32.mrb[68].mxu1  ;;  %v985_v20 = vpop.f32.mrb[68].mxu0 }
 0x1a6   :  { %v913_v47 = vadd.f32 %v912_v44, %v2162_v19  ;;  %v986_v22 = vadd.f32 %v985_v20, %v2204_v4  ;;  %v914_v23 = vpop.f32.mrb[69].mxu1  ;;  %v987_v24 = vpop.f32.mrb[69].mxu0 }
 0x1a7   :  { %v915_v25 = vadd.f32 %v914_v23, %v2165_v21  ;;  %v988_v27 = vadd.f32 %v987_v24, %v2209_v6  ;;  %v916_v28 = vpop.f32.mrb[70].mxu1  ;;  %v989_v29 = vpop.f32.mrb[70].mxu0 }
 0x1a8   :  { %v1291_v30 = vmax.f32 %v913_v47, 0.0  ;;  %v1205_v31 = vmax.f32 %v986_v22, 0.0  ;;  %v917_v56 = vadd.f32 %v916_v28, %v2162_v19  ;;  %v990_v58 = vadd.f32 %v989_v29, %v2204_v4  ;;  %v918_v33 = vpop.f32.mrb[71].mxu1  ;;  %v991_v59 = vpop.f32.mrb[71].mxu0 }
 0x1a9   :  { %v1292_v35 = vmax.f32 %v915_v25, 0.0  ;;  %v1206_v36 = vmax.f32 %v988_v27, 0.0  ;;  %v919_v37 = vadd.f32 %v918_v33, %v2165_v21  ;;  %v992_v38 = vadd.f32 %v991_v59, %v2209_v6 }
 0x1aa   :  { %1467 = vst [vmem:[#allocation8 + $0x500] sm:$0xff] %v1291_v30  ;;  %1381 = vst [vmem:[#allocation8 + $0x250] sm:$0xff] %v1205_v31  ;;  %v1302_v39 = vmax.f32 %v917_v56, 0.0  ;;  %v1216_v40 = vmax.f32 %v990_v58, 0.0 }
 0x1ab   :  { %1468 = vst [vmem:[#allocation8 + $0x508] sm:$0xff] %v1292_v35  ;;  %1382 = vst [vmem:[#allocation8 + $0x258] sm:$0xff] %v1206_v36  ;;  %v1303_v19 = vmax.f32 %v919_v37, 0.0  ;;  %v1217_v42 = vmax.f32 %v992_v38, 0.0 }
 0x1ac   :  { %1478 = vst [vmem:[#allocation8 + $0x558] sm:$0xff] %v1302_v39  ;;  %1392 = vst [vmem:[#allocation8 + $0x2a8] sm:$0xff] %v1216_v40 }
 0x1ad   :  { %1479 = vst [vmem:[#allocation8 + $0x560] sm:$0xff] %v1303_v19  ;;  %1393 = vst [vmem:[#allocation8 + $0x2b0] sm:$0xff] %v1217_v42  ;;  %v995_v21 = vpop.f32.mrb[72].mxu0  ;;  %v1627_v43 = vpop.f32.mrb[72].mxu1 }
 0x1ae   :  { %v996_v45 = vadd.f32 %v995_v21, %v2204_v4  ;;  %v1077_v46 = vadd.f32 %v1627_v43, %v2246_v41  ;;  %v997_v48 = vpop.f32.mrb[73].mxu0  ;;  %v1068_v50 = vpop.f32.mrb[73].mxu1 }
 0x1af   :  { %v998_v54 = vadd.f32 %v997_v48, %v2209_v6  ;;  %v1069_v26 = vadd.f32 %v1068_v50, %v2246_v41  ;;  %v999_v49 = vpop.f32.mrb[74].mxu0  ;;  %v1628_v51 = vpop.f32.mrb[74].mxu1 }
 0x1b0   :  { %v1227_v52 = vmax.f32 %v996_v45, 0.0  ;;  %v1163_v53 = vmax.f32 %v1077_v46, 0.0  ;;  %v1000_v60 = vadd.f32 %v999_v49, %v2204_v4  ;;  %v1080_v61 = vadd.f32 %v1628_v51, %v2246_v41  ;;  %v1001_v62 = vpop.f32.mrb[75].mxu0  ;;  %v1071_v63 = vpop.f32.mrb[75].mxu1 }
 0x1b1   :  { %v1228_v0 = vmax.f32 %v998_v54, 0.0  ;;  %v1141_v1 = vmax.f32 %v1069_v26, 0.0  ;;  %v1002_v2 = vadd.f32 %v1001_v62, %v2209_v6  ;;  %v1072_v3 = vadd.f32 %v1071_v63, %v2246_v41 }
 0x1b2   :  { %1403 = vst [vmem:[#allocation8 + $0x300] sm:$0xff] %v1227_v52  ;;  %1339 = vst [vmem:[#allocation8 + $0x100] sm:$0xff] %v1163_v53  ;;  %v1238_v32 = vmax.f32 %v1000_v60, 0.0  ;;  %v1174_v5 = vmax.f32 %v1080_v61, 0.0 }
 0x1b3   :  { %1404 = vst [vmem:[#allocation8 + $0x308] sm:$0xff] %v1228_v0  ;;  %1317 = vst [vmem:[#allocation8 + $0x50] sm:$0xff] %v1141_v1  ;;  %v1239_v34 = vmax.f32 %v1002_v2, 0.0  ;;  %v1152_v7 = vmax.f32 %v1072_v3, 0.0 }
 0x1b4   :  { %1414 = vst [vmem:[#allocation8 + $0x358] sm:$0xff] %v1238_v32  ;;  %1350 = vst [vmem:[#allocation8 + $0x158] sm:$0xff] %v1174_v5 }
 0x1b5   :  { %1415 = vst [vmem:[#allocation8 + $0x360] sm:$0xff] %v1239_v34  ;;  %1328 = vst [vmem:[#allocation8 + $0xa8] sm:$0xff] %v1152_v7  ;;  %v1005_v8 = vpop.f32.mrb[76].mxu0  ;;  %v1631_v55 = vpop.f32.mrb[76].mxu1 }
 0x1b6   :  { %v1006_v9 = vadd.f32 %v1005_v8, %v2204_v4  ;;  %v1093_v10 = vadd.f32 %v1631_v55, %v2246_v41  ;;  %v1007_v11 = vpop.f32.mrb[77].mxu0  ;;  %v1084_v12 = vpop.f32.mrb[77].mxu1 }
 0x1b7   :  { %v1008_v13 = vadd.f32 %v1007_v11, %v2209_v6  ;;  %v1085_v14 = vadd.f32 %v1084_v12, %v2246_v41  ;;  %v1009_v57 = vpop.f32.mrb[78].mxu0  ;;  %v1632_v15 = vpop.f32.mrb[78].mxu1 }
 0x1b8   :  { %v1249_v16 = vmax.f32 %v1006_v9, 0.0  ;;  %v1207_v17 = vmax.f32 %v1093_v10, 0.0  ;;  %v1010_v18 = vadd.f32 %v1009_v57, %v2204_v4  ;;  %v1096_v44 = vadd.f32 %v1632_v15, %v2246_v41  ;;  %v1011_v20 = vpop.f32.mrb[79].mxu0  ;;  %v1087_v47 = vpop.f32.mrb[79].mxu1 }
 0x1b9   :  { %v1250_v22 = vmax.f32 %v1008_v13, 0.0  ;;  %v1185_v23 = vmax.f32 %v1085_v14, 0.0  ;;  %v1012_v24 = vadd.f32 %v1011_v20, %v2209_v6  ;;  %v1088_v25 = vadd.f32 %v1087_v47, %v2246_v41 }
 0x1ba   :  { %1425 = vst [vmem:[#allocation8 + $0x3b0] sm:$0xff] %v1249_v16  ;;  %1383 = vst [vmem:[#allocation8 + $0x260] sm:$0xff] %v1207_v17  ;;  %v1260_v27 = vmax.f32 %v1010_v18, 0.0  ;;  %v1218_v28 = vmax.f32 %v1096_v44, 0.0 }
 0x1bb   :  { %1426 = vst [vmem:[#allocation8 + $0x3b8] sm:$0xff] %v1250_v22  ;;  %1361 = vst [vmem:[#allocation8 + $0x1b0] sm:$0xff] %v1185_v23  ;;  %v1261_v29 = vmax.f32 %v1012_v24, 0.0  ;;  %v1196_v30 = vmax.f32 %v1088_v25, 0.0 }
 0x1bc   :  { %1436 = vst [vmem:[#allocation8 + $0x408] sm:$0xff] %v1260_v27  ;;  %1394 = vst [vmem:[#allocation8 + $0x2b8] sm:$0xff] %v1218_v28 }
 0x1bd   :  { %1437 = vst [vmem:[#allocation8 + $0x410] sm:$0xff] %v1261_v29  ;;  %1372 = vst [vmem:[#allocation8 + $0x208] sm:$0xff] %v1196_v30  ;;  %v1015_v31 = vpop.f32.mrb[80].mxu0  ;;  %v1635_v56 = vpop.f32.mrb[80].mxu1 }
 0x1be   :  { %v1016_v58 = vadd.f32 %v1015_v31, %v2204_v4  ;;  %v1109_v33 = vadd.f32 %v1635_v56, %v2246_v41  ;;  %v1017_v59 = vpop.f32.mrb[81].mxu0  ;;  %v1100_v35 = vpop.f32.mrb[81].mxu1 }
 0x1bf   :  { %v1018_v36 = vadd.f32 %v1017_v59, %v2209_v6  ;;  %v1101_v37 = vadd.f32 %v1100_v35, %v2246_v41  ;;  %v1019_v38 = vpop.f32.mrb[82].mxu0  ;;  %v1636_v39 = vpop.f32.mrb[82].mxu1 }
 0x1c0   :  { %v1271_v40 = vmax.f32 %v1016_v58, 0.0  ;;  %v1251_v19 = vmax.f32 %v1109_v33, 0.0  ;;  %v1020_v42 = vadd.f32 %v1019_v38, %v2204_v4  ;;  %v1112_v21 = vadd.f32 %v1636_v39, %v2246_v41  ;;  %v1021_v43 = vpop.f32.mrb[83].mxu0  ;;  %v1103_v45 = vpop.f32.mrb[83].mxu1 }
 0x1c1   :  { %v1272_v46 = vmax.f32 %v1018_v36, 0.0  ;;  %v1229_v48 = vmax.f32 %v1101_v37, 0.0  ;;  %v1022_v50 = vadd.f32 %v1021_v43, %v2209_v6  ;;  %v1104_v54 = vadd.f32 %v1103_v45, %v2246_v41 }
 0x1c2   :  { %1447 = vst [vmem:[#allocation8 + $0x460] sm:$0xff] %v1271_v40  ;;  %1427 = vst [vmem:[#allocation8 + $0x3c0] sm:$0xff] %v1251_v19  ;;  %v1282_v26 = vmax.f32 %v1020_v42, 0.0  ;;  %v1262_v49 = vmax.f32 %v1112_v21, 0.0 }
 0x1c3   :  { %1448 = vst [vmem:[#allocation8 + $0x468] sm:$0xff] %v1272_v46  ;;  %1405 = vst [vmem:[#allocation8 + $0x310] sm:$0xff] %v1229_v48  ;;  %v1283_v51 = vmax.f32 %v1022_v50, 0.0  ;;  %v1240_v52 = vmax.f32 %v1104_v54, 0.0 }
 0x1c4   :  { %1458 = vst [vmem:[#allocation8 + $0x4b8] sm:$0xff] %v1282_v26  ;;  %1438 = vst [vmem:[#allocation8 + $0x418] sm:$0xff] %v1262_v49 }
 0x1c5   :  { %1459 = vst [vmem:[#allocation8 + $0x4c0] sm:$0xff] %v1283_v51  ;;  %1416 = vst [vmem:[#allocation8 + $0x368] sm:$0xff] %v1240_v52  ;;  %v1025_v53 = vpop.f32.mrb[84].mxu0  ;;  %v1639_v60 = vpop.f32.mrb[84].mxu1 }
 0x1c6   :  { %v1026_v61 = vadd.f32 %v1025_v53, %v2204_v4  ;;  %v1125_v62 = vadd.f32 %v1639_v60, %v2246_v41  ;;  %v1027_v63 = vpop.f32.mrb[85].mxu0  ;;  %v1116_v0 = vpop.f32.mrb[85].mxu1 }
 0x1c7   :  { %v1028_v1 = vadd.f32 %v1027_v63, %v2209_v6  ;;  %v1117_v2 = vadd.f32 %v1116_v0, %v2246_v41  ;;  %v1029_v3 = vpop.f32.mrb[86].mxu0  ;;  %v1640_v32 = vpop.f32.mrb[86].mxu1 }
 0x1c8   :  { %v1293_v5 = vmax.f32 %v1026_v61, 0.0  ;;  %v1295_v34 = vmax.f32 %v1125_v62, 0.0  ;;  %v1030_v7 = vadd.f32 %v1029_v3, %v2204_v4  ;;  %v1128_v8 = vadd.f32 %v1640_v32, %v2246_v41  ;;  %v1031_v55 = vpop.f32.mrb[87].mxu0  ;;  %v1119_v9 = vpop.f32.mrb[87].mxu1 }
 0x1c9   :  { %v1294_v10 = vmax.f32 %v1028_v1, 0.0  ;;  %v1273_v11 = vmax.f32 %v1117_v2, 0.0  ;;  %v1032_v12 = vadd.f32 %v1031_v55, %v2209_v6  ;;  %v1120_v13 = vadd.f32 %v1119_v9, %v2246_v41 }
 0x1ca   :  { %1469 = vst [vmem:[#allocation8 + $0x510] sm:$0xff] %v1293_v5  ;;  %1471 = vst [vmem:[#allocation8 + $0x520] sm:$0xff] %v1295_v34  ;;  %v1304_v14 = vmax.f32 %v1030_v7, 0.0  ;;  %v1306_v57 = vmax.f32 %v1128_v8, 0.0 }
 0x1cb   :  { %1470 = vst [vmem:[#allocation8 + $0x518] sm:$0xff] %v1294_v10  ;;  %1449 = vst [vmem:[#allocation8 + $0x470] sm:$0xff] %v1273_v11  ;;  %v1305_v15 = vmax.f32 %v1032_v12, 0.0  ;;  %v1284_v16 = vmax.f32 %v1120_v13, 0.0 }
 0x1cc   :  { %1480 = vst [vmem:[#allocation8 + $0x568] sm:$0xff] %v1304_v14  ;;  %1482 = vst [vmem:[#allocation8 + $0x578] sm:$0xff] %v1306_v57 }
 0x1cd   :  { %1481 = vst [vmem:[#allocation8 + $0x570] sm:$0xff] %v1305_v15  ;;  %1460 = vst [vmem:[#allocation8 + $0x4c8] sm:$0xff] %v1284_v16 }
 0x1ce   :  { %1809 = shalt.err (!%p1806_p0)
}
 0x1cf   :  { %s1810_s28 = scalar_lea.hbm %s2295_s3, 22528 }
 0x1d0   :  { %p1811_p1 = scmp.ne.s32.totalorder %s2295_s3, %s1810_s28  ;;  %p1814_p2 = scmp.lt.u32.totalorder %s1810_s28, %s2295_s3 }
 0x1d2   :  { %p1816_p3 = pnand %p1814_p2, %p1811_p1 }
 0x1d4   :  { %1819 = shalt.err (!%p1816_p3)
}
 0x1d5   :  { %s1835_s6 = smov 1408   ;;  %s1836_s7 = smov 88  }
 0x1d6   :  { %1498 = dma.vmem_to_hbm [thread:$0]  %s1493_s24, 22528, %s2295_s3, [#allocation4], %s1835_s6, %s1835_s6, %s1836_s7  }
 0x1d7   :  { %1824 = dma.done.wait [#allocation4], 22528  }
 0x1d8   :  { %1825 = vsyncadd [#allocation4], 4294944768 }
 0x1d9   :  { %1502 = vsyncpa [#allocation3], 1 }
 0x1da   :  { %1503 = vsyncpa [#allocation6], 1 }
 0x1db   :  { %1504 = vsyncpa [#allocation4], 1 }

// kernel: inception_e.5
= control target key start
LH: loop header
LB: loop body
LE: loop exit
PB: predicated region body
PF: predicated region fallthrough
CT: control target
= control target key end

     0   :  { %s5935_s0 = inlined_call_operand.hbm [shape: bf16[4,128,1152], index: 0, kind: input, shape index: {}]   ;;  %s5936_s1 = inlined_call_operand.hbm [shape: bf16[4,1152,384], index: 1, kind: input, shape index: {}]   ;;  %s5937_s2 = inlined_call_operand.hbm [shape: f32[4,1,384], index: 2, kind: input, shape index: {}]   ;;  %s5938_s3 = inlined_call_operand.hbm [shape: f32[128,1536], index: 3, kind: output, shape index: {}]  }
   0x1   :  { %5946 = sst [smem:[#allocation17_spill]] %s5935_s0 }
   0x2   :  { %5947 = sst [smem:[#allocation18_spill]] %s5936_s1 }
   0x3   :  { %8 = vsyncpa [#allocation3], 0 }
   0x4   :  { %10 = vsyncpa [#allocation3 + $0x1], 0 }
   0x5   :  { %11 = vsyncpa [#allocation6], 0 }
   0x6   :  { %13 = vsyncpa [#allocation6 + $0x1], 0 }
   0x7   :  { %14 = vsyncpa [#allocation4], 0 }
   0x8   :  { %16 = vsyncpa [#allocation4 + $0x1], 0  ;;  %s5008_s12 = smov 0   ;;  %s5010_s13 = smov 0  }
   0x9   :  { %s5012_s14 = smov 0   ;;  %s5014_s15 = smov 0  }
   0xa   :  { %s5016_s16 = smov 0   ;;  %s5018_s17 = smov 0  }
   0xb LB: > { %5948 = sst [smem:[#allocation12_spill]] %s4954_s12  ;;  %s5039_s18 = sadd.s32 4294967295, %s4974_s17   ;;  %s4974_s17 = sphi %s5018_s17, %s22_s17   ;;  %s4970_s16 = sphi %s5016_s16, %s5976_s16   ;;  %s4966_s15 = sphi %s5014_s15, %s5975_s15   ;;  %s4962_s14 = sphi %s5012_s14, %s5971_s14   ;;  %s4958_s13 = sphi %s5010_s13, %s5974_s13   ;;  %s4954_s12 = sphi %s5008_s12, %s5973_s12  }
   0xc   : > { %5949 = sst [smem:[#allocation13_spill]] %s4962_s14  ;;  %s3517_s19 = sadd.s32 4294967294, %s4974_s17  }
   0xd   : > { %s41_s20 = sadd.s32 1, %s4970_s16  ;;  %s50_s21 = sadd.s32 1, %s4962_s14 }
   0xe   : > { %p43_p0 = scmp.ge.s32.totalorder %s41_s20, 4  ;;  %p57_p1 = scmp.ne.s32.totalorder %s4962_s14, %s4958_s13 }
   0xf   : > { %p58_p2 = scmp.eq.s32.totalorder %s4974_s17, 0  ;;  %p63_p3 = scmp.ne.s32.totalorder %s4958_s13, %s4954_s12 }
  0x10   : > { %s5978_s20 = smov (%p43_p0, %s41_s20), 0  ;;  %p64_p5 = scmp.eq.s32.totalorder %s5039_s18, 0 }
  0x11   : > { %5950 = sst [smem:[#allocation14_spill]] %s5978_s20  ;;  %p5051_p4 = por %p58_p2, %p57_p1 }
  0x12   : > { %s45_s23 = ssub.s32 %s4970_s16, %s5978_s20  ;;  %p147_p6 = scmp.eq.s32.totalorder %s5039_s18, 3 }
  0x13   : > { %p48_p7 = scmp.eq.s32.totalorder %s45_s23, 0  ;;  %p5059_p8 = por %p64_p5, %p63_p3 }
  0x14   : > { %p5063_p9 = por %p147_p6, %p57_p1  ;;  %p153_p10 = scmp.eq.s32.totalorder %s3517_s19, 3 }
  0x15   : > { %s5952_s24 = scalar_select %p5059_p8, 1, 0 }
  0x16   : > { %s5953_s25 = scalar_select %p5063_p9, 1, 0 }
  0x17   : > { %s5068_s26 = scalar_select %p48_p7, %s4962_s14, %s50_s21  }
  0x18   : > { %p5070_p11 = por %p153_p10, %p63_p3  ;;  %p4328_p12 = scmp.lt.s32.totalorder %s4974_s17, 4 }
  0x19   : > { %5954 = sst [smem:[#allocation15_spill]] %s5068_s26  ;;  %s5076_s28 = sand.u32 1, %s4962_s14  }
  0x1a   : > { %s5955_s27 = scalar_select %p5070_p11, 1, 0 }
  0x1b   : > { %s197_s29 = sand.u32 1, %s4974_s17   ;;  %s4298_s30 = smul.u32 1728, %s5076_s28 }
  0x1c   : > { %5956 = sst [smem:[#allocation16_spill]] %s5955_s27  ;;  %p5082_p13 = pnand %p4328_p12, %p5051_p4 }
  0x1d   : > { %s4299_s5 = smul.u32 27648, %s4970_s16  ;;  %s201_s6 = scalar_lea.vmem [#allocation5], %s4298_s30 }
  0x1e   : > { %s5957_s4 = scalar_select %p5082_p13, 1, 0 }
  0x1f   : > { %s210_s7 = sshll.u32 %s201_s6, 4  ;;  %s5958_s1 = sld [smem:[#allocation18_spill]]  ;;  %s5092_s7 = int_to_ptr.vmem [resolvable:$true] %s210_s7 }
  0x20   : > { %s5094_s11 = scalar_lea.sflag [#allocation6], %s197_s29  ;;  %p5100_p1 = pneg %p5082_p13 }
  0x25   : > { %s5090_s10 = scalar_lea.hbm %s5958_s1, %s4299_s5  ;;  %s4803_s30 = scalar_lea.hbm %s5958_s1, 110592 }
  0x26   : > { %s4798_s19 = scalar_lea.hbm %s5090_s10, 27648  ;;  %p4804_p4 = scmp.lt.u32.totalorder %s5090_s10, %s5958_s1 }
  0x27   : > { %p4799_p0 = scmp.ne.s32.totalorder %s5090_s10, %s4798_s19  ;;  %p4805_p5 = scmp.lt.u32.totalorder %s4803_s30, %s4798_s19 }
  0x28   : > { %p4807_p7 = scmp.lt.u32.totalorder %s4798_s19, %s5090_s10 }
  0x29   : > { %p4801_p2 = pnand %p5100_p1, %p4799_p0  ;;  %p4806_p6 = por %p4805_p5, %p4804_p4 }
  0x2b   : > { %p4802_p3 = pneg %p4801_p2  ;;  %p4808_p10 = por %p4807_p7, %p4806_p6 }
  0x2d   : > { %p4809_p12 = pnand %p4808_p10, %p4802_p3 }
  0x2f   : > { %4812 = shalt.err (!%p4809_p12)
}
  0x30   : > { %s4813_s29 = scalar_lea.vmem %s5092_s7, 27648  ;;  %s4976_s8 = smov [#allocation5]  }
  0x31   : > { %p4814_p0 = scmp.ne.s32.totalorder %s5092_s7, %s4813_s29  ;;  %s4818_s9 = sshll.u32 %s4976_s8, 4  ;;  %s4819_s9 = int_to_ptr.vmem [resolvable:$false] %s4818_s9 }
  0x32   : > { %s4820_s22 = scalar_lea.vmem %s4819_s9, 55296  ;;  %p4821_p9 = scmp.lt.s32.totalorder %s5092_s7, %s4819_s9 }
  0x33   : > { %p4816_p2 = pnand %p4814_p0, %p5100_p1  ;;  %p4822_p8 = scmp.lt.s32.totalorder %s4820_s22, %s4813_s29 }
  0x35   : > { %p4817_p11 = pneg %p4816_p2  ;;  %p4823_p4 = por %p4822_p8, %p4821_p9 }
  0x37   : > { %p4824_p5 = pnand %p4823_p4, %p4817_p11 }
  0x39   : > { %4827 = shalt.err (!%p4824_p5)
}
  0x3a   : > { %s4977_s19 = smov 192   ;;  %s4978_s23 = smov 12  }
  0x3b   : > { %4320 = dma.hbm_to_vmem [thread:$0]  (!%p5082_p13), %s5090_s10, 27648, %s5092_s7, %s5094_s11, %s4977_s19, %s4977_s19, %s4978_s23  }
  0x3c   : > { %p3523_p3 = scmp.ge.s32.totalorder %s4974_s17, 1  ;;  %p239_p6 = scmp.lt.s32.totalorder %s4974_s17, 5 }
  0x3d   : > { %s4296_s5 = smul.u32 576, %s5076_s28  ;;  %s5961_s0 = sld [smem:[#allocation17_spill]] }
  0x3e   : > { %p5126_p8 = pnand %p3523_p3, %p239_p6  ;;  %s4297_s6 = smul.u32 9216, %s4970_s16 }
  0x3f   : > { %s177_s1 = scalar_lea.vmem [#allocation2], %s4296_s5  ;;  %s174_s10 = scalar_lea.sflag [#allocation3], %s5076_s28 }
  0x40   : > { %s5960_s30 = scalar_select %p5126_p8, 1, 0 }
  0x41   : > { %s187_s7 = sshll.u32 %s177_s1, 4  ;;  %s5138_s7 = int_to_ptr.vmem [resolvable:$true] %s187_s7 }
  0x43   : > { %s5136_s22 = scalar_lea.hbm %s5961_s0, %s4297_s6  ;;  %s4833_s8 = scalar_lea.hbm %s5961_s0, 36864 }
  0x44   : > { %s4828_s19 = scalar_lea.hbm %s5136_s22, 9216  ;;  %p4834_p10 = scmp.lt.u32.totalorder %s5136_s22, %s5961_s0 }
  0x45   : > { %p4829_p9 = scmp.ne.s32.totalorder %s5136_s22, %s4828_s19  ;;  %p4835_p12 = scmp.lt.u32.totalorder %s4833_s8, %s4828_s19 }
  0x46   : > { %p4837_p2 = scmp.lt.u32.totalorder %s4828_s19, %s5136_s22 }
  0x47   : > { %p4831_p11 = pnand %p4829_p9, %p5100_p1  ;;  %p4836_p0 = por %p4835_p12, %p4834_p10 }
  0x49   : > { %p4832_p7 = pneg %p4831_p11  ;;  %p4838_p4 = por %p4837_p2, %p4836_p0 }
  0x4b   : > { %p4839_p5 = pnand %p4838_p4, %p4832_p7 }
  0x4d   : > { %4842 = shalt.err (!%p4839_p5)
}
  0x4e   : > { %s4843_s1 = scalar_lea.vmem %s5138_s7, 9216  ;;  %s4979_s5 = smov [#allocation2]  }
  0x4f   : > { %p4844_p3 = scmp.ne.s32.totalorder %s5138_s7, %s4843_s1  ;;  %s4848_s29 = sshll.u32 %s4979_s5, 4  ;;  %s4849_s29 = int_to_ptr.vmem [resolvable:$false] %s4848_s29 }
  0x50   : > { %s4850_s23 = scalar_lea.vmem %s4849_s29, 18432  ;;  %p4851_p11 = scmp.lt.s32.totalorder %s5138_s7, %s4849_s29 }
  0x51   : > { %p4846_p6 = pnand %p4844_p3, %p5100_p1  ;;  %p4852_p8 = scmp.lt.s32.totalorder %s4850_s23, %s4843_s1 }
  0x53   : > { %p4847_p9 = pneg %p4846_p6  ;;  %p4853_p10 = por %p4852_p8, %p4851_p11 }
  0x55   : > { %p4854_p12 = pnand %p4853_p10, %p4847_p9 }
  0x57   : > { %4857 = shalt.err (!%p4854_p12)
}
  0x58   : > { %s4980_s19 = smov 576   ;;  %s4981_s8 = smov 36  }
  0x59   : > { %4317 = dma.hbm_to_vmem [thread:$0]  (!%p5082_p13), %s5136_s22, 9216, %s5138_s7, %s174_s10, %s4980_s19, %s4980_s19, %s4981_s8  }
  0x5a   : > { %s4301_s6 = smul.u32 48, %s4970_s16  ;;  %s4863_s27 = scalar_lea.hbm %s5937_s2, 192 }
  0x5b   : > { %s5962_s9 = smul.u32 3, %s5076_s28 }
  0x5c   : > { %s232_s0 = scalar_lea.hbm %s5937_s2, %s4301_s6 }
  0x5d   : > { %s224_s5 = scalar_lea.vmem [#allocation7], %s5962_s9  ;;  %s4858_s20 = scalar_lea.hbm %s232_s0, 48 }
  0x5e   : > { %s234_s29 = sshll.u32 %s224_s5, 4  ;;  %p4859_p8 = scmp.ne.s32.totalorder %s232_s0, %s4858_s20  ;;  %s235_s29 = int_to_ptr.vmem [resolvable:$true] %s234_s29 }
  0x5f   : > { %p4864_p2 = scmp.lt.u32.totalorder %s232_s0, %s5937_s2  ;;  %p4865_p4 = scmp.lt.u32.totalorder %s4863_s27, %s4858_s20 }
  0x60   : > { %p4861_p7 = pnand %p4859_p8, %p5100_p1  ;;  %p4867_p3 = scmp.lt.u32.totalorder %s4858_s20, %s232_s0 }
  0x61   : > { %p4866_p5 = por %p4865_p4, %p4864_p2 }
  0x62   : > { %p4862_p0 = pneg %p4861_p7 }
  0x63   : > { %p4868_p6 = por %p4867_p3, %p4866_p5 }
  0x65   : > { %p4869_p9 = pnand %p4868_p6, %p4862_p0 }
  0x67   : > { %4872 = shalt.err (!%p4869_p9)
}
  0x68   : > { %s4873_s28 = scalar_lea.vmem %s235_s29, 48  ;;  %s4982_s7 = smov [#allocation7]  }
  0x69   : > { %p4874_p11 = scmp.ne.s32.totalorder %s235_s29, %s4873_s28  ;;  %s4878_s10 = sshll.u32 %s4982_s7, 4  ;;  %s4879_s10 = int_to_ptr.vmem [resolvable:$false] %s4878_s10 }
  0x6a   : > { %s4880_s14 = scalar_lea.vmem %s4879_s10, 96  ;;  %p4881_p8 = scmp.lt.s32.totalorder %s235_s29, %s4879_s10 }
  0x6b   : > { %p4876_p10 = pnand %p4874_p11, %p5100_p1  ;;  %p4882_p7 = scmp.lt.s32.totalorder %s4880_s14, %s4873_s28 }
  0x6d   : > { %p4877_p12 = pneg %p4876_p10  ;;  %p4883_p13 = por %p4882_p7, %p4881_p8 }
  0x6f   : > { %p4884_p2 = pnand %p4883_p13, %p4877_p12 }
  0x71   : > { %4887 = shalt.err (!%p4884_p2)
}
  0x72   : > { %p5963_p4 = scmp.ne.s32.totalorder %s5957_s4, 0  ;;  %p5964_p0 = scmp.ne.s32.totalorder %s5960_s30, 0 }
  0x73   : > { %s5186_s12 = sand.u32 (!%p5964_p0), 1, %s4958_s13   ;;  %p5965_p1 = scmp.ne.s32.totalorder (!%p5964_p0), %s5952_s24, 0 }
  0x74   : > { %4323 = dma.hbm_to_vmem [thread:$0]  (!%p5963_p4), %s232_s0, 48, %s235_s29, %s5094_s11  }
  0x75   : > { %243 = sbr.rel (%p5964_p0) target bundleno = 710 (0x2c6), region = 32  ;;  %s246_s26 = scalar_lea.sflag (!%p5964_p0), [#allocation3], %s5186_s12 }
  0x76   : > { %s4302_s20 = smul.u32 (!%p5964_p0), 576, %s5186_s12 }
  0x78   : > { %s5190_s27 = scalar_lea.vmem (!%p5964_p0), [#allocation2], %s4302_s20 }
  0x7c   : > { %4941 = dma.done.wait (%p5965_p1), %s246_s26, 9216  }
  0x7d   : > { %4943 = vsyncadd (%p5965_p1), %s246_s26, 4294958080  ;;  %s254_s0 = sand.u32 1, %s5039_s18   ;;  %s4303_s4 = smul.u32 1728, %s5186_s12 }
  0x7e   : > { %s255_s11 = scalar_lea.sflag [#allocation6], %s254_s0 }
  0x7f   : > { %s5198_s21 = scalar_lea.vmem [#allocation5], %s4303_s4 }
  0x80   : > { %4945 = dma.done.wait (%p5965_p1), %s255_s11, 27696  }
  0x81   : > { %4947 = vsyncadd (%p5965_p1), %s255_s11, 4294939600  ;;  %v4983_v0 = vmov 0   ;;  %v4386_v1 = vld [vmem:[%s5198_s21 + $0x4] ss:$12 sps:$4 sm:$0xff]   ;;  %v4390_v3 = vld [vmem:[%s5198_s21] ss:$12 sps:$4 sm:$0xff]  }
  0x82   : > { %2736 = vmatprep.mubr.bf16.mxu1 %v4983_v0  ;;  %v4388_v2 = vld [vmem:[%s5198_s21 + $0x604] ss:$12 sps:$4 sm:$0xff]   ;;  %2212 = vmatprep.subr.bf16.mxu0 %v4386_v1  ;;  %v4391_v4 = vld [vmem:[%s5198_s21 + $0x600] ss:$12 sps:$4 sm:$0xff]   ;;  %v4392_v5 = vld [vmem:[%s5198_s21 + $0x1c] ss:$12 sps:$4 sm:$0xff]  }
  0x83   : > { %4120 = vmatprep.subr.bf16.mxu1 %v4388_v2  ;;  %2213 = vmatpush1.bf16.msra.mxu0 %v4390_v3  ;;  %v4394_v6 = vld [vmem:[%s5198_s21 + $0x61c] ss:$12 sps:$4 sm:$0xff]   ;;  %v4396_v7 = vld [vmem:[%s5198_s21 + $0x18] ss:$12 sps:$4 sm:$0xff]   ;;  %v4398_v9 = vld [vmem:[%s5198_s21 + $0x34] ss:$12 sps:$4 sm:$0xff]  }
  0x84   : > { %4128 = vmatpush1.bf16.msra.mxu1 %v4391_v4  ;;  %2214 = vmatprep.subr.bf16.mxu0 %v4392_v5  ;;  %v4397_v8 = vld [vmem:[%s5198_s21 + $0x618] ss:$12 sps:$4 sm:$0xff]   ;;  %v4400_v10 = vld [vmem:[%s5198_s21 + $0x634] ss:$12 sps:$4 sm:$0xff]   ;;  %v4402_v11 = vld [vmem:[%s5198_s21 + $0x30] ss:$12 sps:$4 sm:$0xff]  }
  0x85   : > { %4121 = vmatprep.subr.bf16.mxu1 %v4394_v6  ;;  %v4403_v12 = vld [vmem:[%s5198_s21 + $0x630] ss:$12 sps:$4 sm:$0xff]   ;;  %v4404_v13 = vld [vmem:[%s5198_s21 + $0x4c] ss:$12 sps:$4 sm:$0xff]   ;;  %v4408_v15 = vld [vmem:[%s5198_s21 + $0x48] ss:$12 sps:$4 sm:$0xff]  }
  0x86   : > { %v4406_v14 = vld [vmem:[%s5198_s21 + $0x64c] ss:$12 sps:$4 sm:$0xff]   ;;  %v4409_v16 = vld [vmem:[%s5198_s21 + $0x648] ss:$12 sps:$4 sm:$0xff]   ;;  %v4410_v17 = vld [vmem:[%s5198_s21 + $0x64] ss:$12 sps:$4 sm:$0xff]  }
  0x87   : > { %2215 = vmatpush1.bf16.msra.mxu0 %v4396_v7  ;;  %v4412_v18 = vld [vmem:[%s5198_s21 + $0x664] ss:$12 sps:$4 sm:$0xff]   ;;  %v4414_v19 = vld [vmem:[%s5198_s21 + $0x60] ss:$12 sps:$4 sm:$0xff]   ;;  %v4416_v21 = vld [vmem:[%s5198_s21 + $0x7c] ss:$12 sps:$4 sm:$0xff]  }
  0x88   : > { %4129 = vmatpush1.bf16.msra.mxu1 %v4397_v8  ;;  %2216 = vmatprep.subr.bf16.mxu0 %v4398_v9  ;;  %v4415_v20 = vld [vmem:[%s5198_s21 + $0x660] ss:$12 sps:$4 sm:$0xff]   ;;  %v4418_v22 = vld [vmem:[%s5198_s21 + $0x67c] ss:$12 sps:$4 sm:$0xff]   ;;  %v4420_v23 = vld [vmem:[%s5198_s21 + $0x78] ss:$12 sps:$4 sm:$0xff]  }
  0x89   : > { %4122 = vmatprep.subr.bf16.mxu1 %v4400_v10  ;;  %v4421_v24 = vld [vmem:[%s5198_s21 + $0x678] ss:$12 sps:$4 sm:$0xff]   ;;  %v4422_v25 = vld [vmem:[%s5198_s21 + $0x94] ss:$12 sps:$4 sm:$0xff]   ;;  %v4426_v27 = vld [vmem:[%s5198_s21 + $0x90] ss:$12 sps:$4 sm:$0xff]  }
  0x8a   : > { %v4424_v26 = vld [vmem:[%s5198_s21 + $0x694] ss:$12 sps:$4 sm:$0xff]   ;;  %v4427_v28 = vld [vmem:[%s5198_s21 + $0x690] ss:$12 sps:$4 sm:$0xff]   ;;  %v4428_v29 = vld [vmem:[%s5198_s21 + $0xac] ss:$12 sps:$4 sm:$0xff]  }
  0x8b   : > { %2217 = vmatpush1.bf16.msra.mxu0 %v4402_v11  ;;  %v4430_v30 = vld [vmem:[%s5198_s21 + $0x6ac] ss:$12 sps:$4 sm:$0xff]   ;;  %v4432_v31 = vld [vmem:[%s5198_s21 + $0xa8] ss:$12 sps:$4 sm:$0xff]   ;;  %v4434_v33 = vld [vmem:[%s5198_s21 + $0xc4] ss:$12 sps:$4 sm:$0xff]  }
  0x8c   : > { %4130 = vmatpush1.bf16.msra.mxu1 %v4403_v12  ;;  %2218 = vmatprep.subr.bf16.mxu0 %v4404_v13  ;;  %v4433_v32 = vld [vmem:[%s5198_s21 + $0x6a8] ss:$12 sps:$4 sm:$0xff]   ;;  %v4436_v34 = vld [vmem:[%s5190_s27 + $0x140] ss:$36 sps:$4 sm:$0xff]   ;;  %v4449_v45 = vld [vmem:[%s5198_s21 + $0xf0] ss:$12 sps:$4 sm:$0xff]  }
  0x8d   : > { %4123 = vmatprep.subr.bf16.mxu1 %v4406_v14  ;;  %v4437_v35 = vld [vmem:[%s5198_s21 + $0xc8] ss:$12 sps:$4 sm:$0xff]   ;;  %v4438_v36 = vld [vmem:[%s5198_s21 + $0xc0] ss:$12 sps:$4 sm:$0xff]   ;;  %v4443_v40 = vld [vmem:[%s5198_s21 + $0xd8] ss:$12 sps:$4 sm:$0xff]  }
  0x8e   : > { %v4439_v37 = vld [vmem:[%s5198_s21 + $0x8] ss:$12 sps:$4 sm:$0xff]   ;;  %v4442_v39 = vld [vmem:[%s5198_s21 + $0xe0] ss:$12 sps:$4 sm:$0xff]   ;;  %v4448_v43 = vld [vmem:[%s5198_s21 + $0xf8] ss:$12 sps:$4 sm:$0xff]  }
  0x8f   : > { %2219 = vmatpush1.bf16.msra.mxu0 %v4408_v15  ;;  %v4440_v38 = vld [vmem:[%s5198_s21 + $0xdc] ss:$12 sps:$4 sm:$0xff]   ;;  %v4444_v41 = vld [vmem:[%s5198_s21 + $0x20] ss:$12 sps:$4 sm:$0xff]   ;;  %v4450_v46 = vld [vmem:[%s5198_s21 + $0x38] ss:$12 sps:$4 sm:$0xff]  }
  0x90   : > { %4131 = vmatpush1.bf16.msra.mxu1 %v4409_v16  ;;  %2220 = vmatprep.subr.bf16.mxu0 %v4410_v17  ;;  %v4445_v42 = vld [vmem:[%s5198_s21 + $0xf4] ss:$12 sps:$4 sm:$0xff]   ;;  %v4447_v44 = vld [vmem:[%s5190_s27 + $0x188] ss:$36 sps:$4 sm:$0xff]   ;;  %v4453_v48 = vld [vmem:[%s5198_s21 + $0x110] ss:$12 sps:$4 sm:$0xff]  }
  0x91   : > { %4124 = vmatprep.subr.bf16.mxu1 %v4412_v18  ;;  %v4451_v47 = vld [vmem:[%s5198_s21 + $0x10c] ss:$12 sps:$4 sm:$0xff]   ;;  %v4454_v49 = vld [vmem:[%s5198_s21 + $0x108] ss:$12 sps:$4 sm:$0xff]   ;;  %v4455_v50 = vld [vmem:[%s5198_s21 + $0x50] ss:$12 sps:$4 sm:$0xff]  }
  0x92   : > { %v4456_v51 = vld [vmem:[%s5198_s21 + $0x124] ss:$12 sps:$4 sm:$0xff]   ;;  %v4459_v52 = vld [vmem:[%s5198_s21 + $0x128] ss:$12 sps:$4 sm:$0xff]   ;;  %v4460_v54 = vld [vmem:[%s5198_s21 + $0x120] ss:$12 sps:$4 sm:$0xff]  }
  0x93   : > { %2221 = vmatpush1.bf16.msra.mxu0 %v4414_v19  ;;  %v4458_v53 = vld [vmem:[%s5190_s27 + $0x1d0] ss:$36 sps:$4 sm:$0xff]   ;;  %v4462_v56 = vld [vmem:[%s5198_s21 + $0x13c] ss:$12 sps:$4 sm:$0xff]   ;;  %v4464_v57 = vld [vmem:[%s5198_s21 + $0x140] ss:$12 sps:$4 sm:$0xff]  }
  0x94   : > { %4132 = vmatpush1.bf16.msra.mxu1 %v4415_v20  ;;  %2222 = vmatprep.subr.bf16.mxu0 %v4416_v21  ;;  %v4461_v55 = vld [vmem:[%s5198_s21 + $0x68] ss:$12 sps:$4 sm:$0xff]   ;;  %v4465_v58 = vld [vmem:[%s5198_s21 + $0x138] ss:$12 sps:$4 sm:$0xff]   ;;  %v4466_v59 = vld [vmem:[%s5198_s21 + $0x80] ss:$12 sps:$4 sm:$0xff]  }
  0x95   : > { %4125 = vmatprep.subr.bf16.mxu1 %v4418_v22  ;;  %v4467_v60 = vld [vmem:[%s5198_s21 + $0x154] ss:$12 sps:$4 sm:$0xff]   ;;  %v4470_v61 = vld [vmem:[%s5198_s21 + $0x158] ss:$12 sps:$4 sm:$0xff]   ;;  %v4471_v1 = vld [vmem:[%s5198_s21 + $0x150] ss:$12 sps:$4 sm:$0xff]  }
  0x96   : > { %v4480_v62 = vld [vmem:[%s5190_s27 + $0x4] ss:$36 sps:$4 sm:$0xff]   ;;  %v4469_v63 = vld [vmem:[%s5190_s27 + $0x218] ss:$36 sps:$4 sm:$0xff]   ;;  %v4481_v10 = vld [vmem:[%s5198_s21 + $0x180] ss:$12 sps:$4 sm:$0xff]  }
  0x97   : > { %2223 = vmatpush1.bf16.msra.mxu0 %v4420_v23  ;;  %2244 = vmatprep.mubr.bf16.mxu0 %v4480_v62  ;;  %v4472_v2 = vld [vmem:[%s5198_s21 + $0x98] ss:$12 sps:$4 sm:$0xff]   ;;  %v4475_v4 = vld [vmem:[%s5198_s21 + $0x170] ss:$12 sps:$4 sm:$0xff]   ;;  %v4476_v5 = vld [vmem:[%s5198_s21 + $0x168] ss:$12 sps:$4 sm:$0xff]  }
  0x98   : > { %4133 = vmatpush1.bf16.msra.mxu1 %v4421_v24  ;;  %2224 = vmatprep.subr.bf16.mxu0 %v4422_v25  ;;  %v4473_v3 = vld [vmem:[%s5198_s21 + $0x16c] ss:$12 sps:$4 sm:$0xff]   ;;  %v4477_v6 = vld [vmem:[%s5198_s21 + $0xb0] ss:$12 sps:$4 sm:$0xff]   ;;  %v4484_v8 = vld [vmem:[%s5198_s21 + $0x248] ss:$12 sps:$4 sm:$0xff]  }
  0x99   : > { %4126 = vmatprep.subr.bf16.mxu1 %v4424_v26  ;;  %v4483_v7 = vld [vmem:[%s5198_s21 + $0x184] ss:$12 sps:$4 sm:$0xff]   ;;  %v4485_v11 = vld [vmem:[%s5198_s21 + $0x188] ss:$12 sps:$4 sm:$0xff]   ;;  %v4495_v14 = vld [vmem:[%s5198_s21 + $0x260] ss:$12 sps:$4 sm:$0xff]  }
  0x9a   : > { %v4478_v9 = vld [vmem:[%s5190_s27] ss:$36 sps:$4 sm:$0xff]   ;;  %v4488_v12 = vld [vmem:[%s5198_s21 + $0x19c] ss:$12 sps:$4 sm:$0xff]   ;;  %v4489_v13 = vld [vmem:[%s5190_s27 + $0x4c] ss:$36 sps:$4 sm:$0xff]  }
  0x9b   : > { %2225 = vmatpush1.bf16.msra.mxu0 %v4426_v27  ;;  %v4486_v15 = vld [vmem:[%s5198_s21 + $0x198] ss:$12 sps:$4 sm:$0xff]   ;;  %v4496_v16 = vld [vmem:[%s5198_s21 + $0x1a0] ss:$12 sps:$4 sm:$0xff]   ;;  %v4492_v20 = vld [vmem:[%s5198_s21 + $0x1b0] ss:$12 sps:$4 sm:$0xff]  }
  0x9c   : > { %4134 = vmatpush1.bf16.msra.mxu1 %v4427_v28  ;;  %2226 = vmatprep.subr.bf16.mxu0 %v4428_v29  ;;  %v4494_v17 = vld [vmem:[%s5198_s21 + $0x1b4] ss:$12 sps:$4 sm:$0xff]   ;;  %v4506_v18 = vld [vmem:[%s5198_s21 + $0x278] ss:$12 sps:$4 sm:$0xff]   ;;  %v4491_v19 = vld [vmem:[%s5190_s27 + $0x48] ss:$36 sps:$4 sm:$0xff]  }
  0x9d   : > { %4127 = vmatprep.subr.bf16.mxu1 %v4430_v30  ;;  %v4500_v21 = vld [vmem:[%s5190_s27 + $0x94] ss:$36 sps:$4 sm:$0xff]   ;;  %v4517_v24 = vld [vmem:[%s5198_s21 + $0x290] ss:$12 sps:$4 sm:$0xff]   ;;  %v4503_v29 = vld [vmem:[%s5198_s21 + $0x1e0] ss:$12 sps:$4 sm:$0xff]  }
  0x9e   : > { %v4499_v22 = vld [vmem:[%s5198_s21 + $0x1cc] ss:$12 sps:$4 sm:$0xff]   ;;  %v4497_v25 = vld [vmem:[%s5198_s21 + $0x1c8] ss:$12 sps:$4 sm:$0xff]   ;;  %v4505_v26 = vld [vmem:[%s5198_s21 + $0x1e4] ss:$12 sps:$4 sm:$0xff]  }
  0x9f   : > { %2227 = vmatpush1.bf16.msra.mxu0 %v4432_v31  ;;  %v4507_v23 = vld [vmem:[%s5198_s21 + $0x1b8] ss:$12 sps:$4 sm:$0xff]   ;;  %v4502_v27 = vld [vmem:[%s5190_s27 + $0x90] ss:$36 sps:$4 sm:$0xff]   ;;  %v4511_v30 = vld [vmem:[%s5190_s27 + $0xdc] ss:$36 sps:$4 sm:$0xff]  }
  0xa0   : > { %4135 = vmatpush1.bf16.msra.mxu1 %v4433_v32  ;;  %2228 = vmatprep.subr.bf16.mxu0 %v4434_v33  ;;  %v4518_v28 = vld [vmem:[%s5198_s21 + $0x1d0] ss:$12 sps:$4 sm:$0xff]   ;;  %v4528_v32 = vld [vmem:[%s5198_s21 + $0x2a8] ss:$12 sps:$4 sm:$0xff]   ;;  %s4304_s18 = smul.u32 3, %s5186_s12  ;;  %s3359_s29 = scalar_lea.sflag [#allocation4], %s5186_s12 }
  0xa1   : > { %3816 = vmatprep.subr.bf16.mxu1 %v4437_v35  ;;  %v4510_v31 = vld [vmem:[%s5198_s21 + $0x1fc] ss:$12 sps:$4 sm:$0xff]   ;;  %v4516_v35 = vld [vmem:[%s5198_s21 + $0x214] ss:$12 sps:$4 sm:$0xff]   ;;  %s4305_s30 = smul.u32 384, %s5186_s12  ;;  %p5966_p5 = scmp.ne.s32.totalorder %s5953_s25, 0 }
  0xa2   : > { %v4529_v33 = vld [vmem:[%s5198_s21 + $0x1e8] ss:$12 sps:$4 sm:$0xff]   ;;  %s267_s24 = scalar_lea.vmem [#allocation7], %s4304_s18  ;;  %s3815_s8 = smul.u32 384, %s4966_s15 }
  0xa3   : > { %2737 = vmatmul.mubr.bf16.vlgmr.msra.gmra.mrb[0].mxu1 %v4436_v34  ;;  %2229 = vmatpush1.bf16.msra.mxu0 %v4438_v36  ;;  %v4508_v34 = vld [vmem:[%s5198_s21 + $0x1f8] ss:$12 sps:$4 sm:$0xff]   ;;  %v4539_v36 = vld [vmem:[%s5198_s21 + $0x2c0] ss:$12 sps:$4 sm:$0xff]   ;;  %s5756_s19 = scalar_lea.vmem [#allocation8], %s4305_s30  ;;  %s4984_s23 = smov [#allocation8]  }
  0xa4   : > { %3817 = vmatpush3.bf16.msra.mxu1 %v4439_v37  ;;  %2230 = vmatprep.subr.bf16.mxu0 %v4440_v38  ;;  %v4513_v37 = vld [vmem:[%s5190_s27 + $0xd8] ss:$36 sps:$4 sm:$0xff]   ;;  %s3376_s6 = sshll.u32 %s5756_s19, 4  ;;  %s5877_s5 = scalar_lea.hbm %s5938_s3, %s3815_s8  ;;  %s5881_s6 = int_to_ptr.vmem [resolvable:$true] %s3376_s6 }
  0xa5   : > { %3818 = vmatprep.subr.bf16.mxu1 %v4442_v39  ;;  %2746 = vmatprep.mubr.bf16.mxu1 %v4983_v0  ;;  %v4514_v38 = vld [vmem:[%s5198_s21 + $0x210] ss:$12 sps:$4 sm:$0xff]   ;;  %v4522_v39 = vld [vmem:[%s5190_s27 + $0x124] ss:$36 sps:$4 sm:$0xff]   ;;  %s4888_s1 = scalar_lea.vmem %s5881_s6, 6144  ;;  %s4892_s22 = sshll.u32 %s4984_s23, 4  ;;  %s4893_s22 = int_to_ptr.vmem [resolvable:$false] %s4892_s22 }
  0xa6   : > { %p4889_p13 = scmp.ne.s32.totalorder %s5881_s6, %s4888_s1  ;;  %s4894_s28 = scalar_lea.vmem %s4893_s22, 12288 }
  0xa7   : > { %2231 = vmatpush1.bf16.msra.mxu0 %v4443_v40  ;;  %v4521_v40 = vld [vmem:[%s5198_s21 + $0x22c] ss:$12 sps:$4 sm:$0xff]   ;;  %p4895_p9 = scmp.lt.s32.totalorder %s5881_s6, %s4893_s22  ;;  %p4896_p11 = scmp.lt.s32.totalorder %s4894_s28, %s4888_s1 }
  0xa8   : > { %3819 = vmatpush3.bf16.msra.mxu1 %v4444_v41  ;;  %2232 = vmatprep.subr.bf16.mxu0 %v4445_v42  ;;  %v4540_v41 = vld [vmem:[%s5198_s21 + $0x200] ss:$12 sps:$4 sm:$0xff]   ;;  %v4550_v42 = vld [vmem:[%s5198_s21 + $0x2d8] ss:$12 sps:$4 sm:$0xff]   ;;  %p4890_p3 = pnand %p4889_p13, %p5966_p5 }
  0xa9   : > { %3820 = vmatprep.subr.bf16.mxu1 %v4448_v43  ;;  %v4519_v43 = vld [vmem:[%s5198_s21 + $0x228] ss:$12 sps:$4 sm:$0xff]   ;;  %p4897_p10 = por %p4896_p11, %p4895_p9 }
  0xaa   : > { %p4891_p6 = pneg %p4890_p3 }
  0xab   : > { %2747 = vmatmul.mubr.bf16.gmra.mrb[4].mxu1 %v4447_v44  ;;  %2233 = vmatpush1.bf16.msra.mxu0 %v4449_v45  ;;  %v4527_v44 = vld [vmem:[%s5198_s21 + $0x244] ss:$12 sps:$4 sm:$0xff]  }
  0xac   : > { %3821 = vmatpush3.bf16.msra.mxu1 %v4450_v46  ;;  %2234 = vmatprep.subr.bf16.mxu0 %v4451_v47  ;;  %v4551_v45 = vld [vmem:[%s5198_s21 + $0x218] ss:$12 sps:$4 sm:$0xff]   ;;  %v4525_v47 = vld [vmem:[%s5198_s21 + $0x240] ss:$12 sps:$4 sm:$0xff]   ;;  %p4898_p12 = pnand %p4897_p10, %p4891_p6 }
  0xad   : > { %3822 = vmatprep.subr.bf16.mxu1 %v4453_v48  ;;  %2756 = vmatprep.mubr.bf16.mxu1 %v4983_v0  ;;  %v4524_v46 = vld [vmem:[%s5190_s27 + $0x120] ss:$36 sps:$4 sm:$0xff]   ;;  %v4533_v48 = vld [vmem:[%s5190_s27 + $0x16c] ss:$36 sps:$4 sm:$0xff]  }
  0xaf   : > { %2235 = vmatpush1.bf16.msra.mxu0 %v4454_v49  ;;  %v4532_v49 = vld [vmem:[%s5198_s21 + $0x25c] ss:$12 sps:$4 sm:$0xff]  }
  0xb0   : > { %3823 = vmatpush3.bf16.msra.mxu1 %v4455_v50  ;;  %2236 = vmatprep.subr.bf16.mxu0 %v4456_v51  ;;  %v4561_v50 = vld [vmem:[%s5198_s21 + $0x2f0] ss:$12 sps:$4 sm:$0xff]  }
  0xb1   : > { %3824 = vmatprep.subr.bf16.mxu1 %v4459_v52  ;;  %v4562_v51 = vld [vmem:[%s5198_s21 + $0x230] ss:$12 sps:$4 sm:$0xff]   ;;  %v4530_v52 = vld [vmem:[%s5198_s21 + $0x258] ss:$12 sps:$4 sm:$0xff]  }
  0xb3   : > { %2757 = vmatmul.mubr.bf16.gmra.mrb[8].mxu1 %v4458_v53  ;;  %2237 = vmatpush1.bf16.msra.mxu0 %v4460_v54  ;;  %v4538_v53 = vld [vmem:[%s5198_s21 + $0x274] ss:$12 sps:$4 sm:$0xff]   ;;  %v4535_v54 = vld [vmem:[%s5190_s27 + $0x168] ss:$36 sps:$4 sm:$0xff]  }
  0xb4   : > { %3825 = vmatpush3.bf16.msra.mxu1 %v4461_v55  ;;  %2238 = vmatprep.subr.bf16.mxu0 %v4462_v56  ;;  %v4536_v55 = vld [vmem:[%s5198_s21 + $0x270] ss:$12 sps:$4 sm:$0xff]   ;;  %v4572_v56 = vld [vmem:[%s5198_s21 + $0x3c8] ss:$12 sps:$4 sm:$0xff]  }
  0xb5   : > { %3826 = vmatprep.subr.bf16.mxu1 %v4464_v57  ;;  %2766 = vmatprep.mubr.bf16.mxu1 %v4983_v0  ;;  %v4544_v57 = vld [vmem:[%s5190_s27 + $0x1b4] ss:$36 sps:$4 sm:$0xff]  }
  0xb7   : > { %2239 = vmatpush1.bf16.msra.mxu0 %v4465_v58  ;;  %v4543_v58 = vld [vmem:[%s5198_s21 + $0x28c] ss:$12 sps:$4 sm:$0xff]  }
  0xb8   : > { %3827 = vmatpush3.bf16.msra.mxu1 %v4466_v59  ;;  %2240 = vmatprep.subr.bf16.mxu0 %v4467_v60  ;;  %v4541_v59 = vld [vmem:[%s5198_s21 + $0x288] ss:$12 sps:$4 sm:$0xff]   ;;  %v4549_v60 = vld [vmem:[%s5198_s21 + $0x2a4] ss:$12 sps:$4 sm:$0xff]  }
  0xb9   : > { %3828 = vmatprep.subr.bf16.mxu1 %v4470_v61  ;;  %v4546_v61 = vld [vmem:[%s5190_s27 + $0x1b0] ss:$36 sps:$4 sm:$0xff]  }
  0xbb   : > { %2767 = vmatmul.mubr.bf16.gmra.mrb[12].mxu1 %v4469_v63  ;;  %2241 = vmatpush1.bf16.msra.mxu0 %v4471_v1  ;;  %v4555_v63 = vld [vmem:[%s5190_s27 + $0x1fc] ss:$36 sps:$4 sm:$0xff]  }
  0xbc   : > { %3829 = vmatpush3.bf16.msra.mxu1 %v4472_v2  ;;  %2242 = vmatprep.subr.bf16.mxu0 %v4473_v3  ;;  %v4554_v1 = vld [vmem:[%s5198_s21 + $0x2bc] ss:$12 sps:$4 sm:$0xff]   ;;  %v4552_v2 = vld [vmem:[%s5198_s21 + $0x2b8] ss:$12 sps:$4 sm:$0xff]   ;;  %v4560_v3 = vld [vmem:[%s5198_s21 + $0x2d4] ss:$12 sps:$4 sm:$0xff]  }
  0xbd   : > { %3830 = vmatprep.subr.bf16.mxu1 %v4475_v4  ;;  %2809 = vmatprep.mubr.bf16.mxu1 %v4480_v62  ;;  %v4547_v62 = vld [vmem:[%s5198_s21 + $0x2a0] ss:$12 sps:$4 sm:$0xff]   ;;  %v4557_v4 = vld [vmem:[%s5190_s27 + $0x1f8] ss:$36 sps:$4 sm:$0xff]  }
  0xbf   : > { %2243 = vmatpush1.bf16.msra.mxu0 %v4476_v5  ;;  %v4558_v5 = vld [vmem:[%s5198_s21 + $0x2d0] ss:$12 sps:$4 sm:$0xff]  }
  0xc0   : > { %3831 = vmatpush3.bf16.msra.mxu1 %v4477_v6  ;;  %2325 = vmatprep.subr.bf16.mxu0 %v4483_v7  ;;  %v4568_v6 = vld [vmem:[%s5190_s27 + $0xc] ss:$36 sps:$4 sm:$0xff]  }
  0xc1   : > { %3880 = vmatprep.subr.bf16.mxu1 %v4484_v8  ;;  %v4565_v7 = vld [vmem:[%s5198_s21 + $0x2ec] ss:$12 sps:$4 sm:$0xff]   ;;  %v4563_v8 = vld [vmem:[%s5198_s21 + $0x2e8] ss:$12 sps:$4 sm:$0xff]  }
  0xc2   : > { %2245 = vmatmul.mubr.bf16.vlgmr.msra.gmra.mrb[0].mxu0 %v4478_v9 }
  0xc3   : > { %2810 = vmatmul.mubr.bf16.vlgmr.msra.gmra.mrb[16].mxu1 %v4478_v9  ;;  %2326 = vmatpush1.bf16.msra.mxu0 %v4481_v10  ;;  %v4571_v9 = vld [vmem:[%s5198_s21 + $0x304] ss:$12 sps:$4 sm:$0xff]   ;;  %v4566_v10 = vld [vmem:[%s5190_s27 + $0x8] ss:$36 sps:$4 sm:$0xff]  }
  0xc4   : > { %3881 = vmatpush3.bf16.msra.mxu1 %v4485_v11  ;;  %2327 = vmatprep.subr.bf16.mxu0 %v4488_v12  ;;  %v4569_v11 = vld [vmem:[%s5198_s21 + $0x300] ss:$12 sps:$4 sm:$0xff]   ;;  %v4573_v12 = vld [vmem:[%s5198_s21 + $0x308] ss:$12 sps:$4 sm:$0xff]  }
  0xc5   : > { %2254 = vmatprep.mubr.bf16.mxu0 %v4489_v13  ;;  %2817 = vmatprep.mubr.bf16.mxu1 %v4489_v13  ;;  %v4576_v13 = vld [vmem:[%s5198_s21 + $0x31c] ss:$12 sps:$4 sm:$0xff]  }
  0xc6   : > { %3882 = vmatprep.subr.bf16.mxu1 %v4495_v14  ;;  %v4577_v14 = vld [vmem:[%s5190_s27 + $0x54] ss:$36 sps:$4 sm:$0xff]  }
  0xc7   : > { %2328 = vmatpush1.bf16.msra.mxu0 %v4486_v15  ;;  %v4583_v15 = vld [vmem:[%s5198_s21 + $0x3e0] ss:$12 sps:$4 sm:$0xff]  }
  0xc8   : > { %3883 = vmatpush3.bf16.msra.mxu1 %v4496_v16  ;;  %2329 = vmatprep.subr.bf16.mxu0 %v4494_v17  ;;  %v4574_v16 = vld [vmem:[%s5198_s21 + $0x318] ss:$12 sps:$4 sm:$0xff]   ;;  %v4582_v17 = vld [vmem:[%s5198_s21 + $0x334] ss:$12 sps:$4 sm:$0xff]  }
  0xc9   : > { %3884 = vmatprep.subr.bf16.mxu1 %v4506_v18  ;;  %v4584_v18 = vld [vmem:[%s5198_s21 + $0x320] ss:$12 sps:$4 sm:$0xff]  }
  0xca   : > { %2255 = vmatmul.mubr.bf16.gmra.mrb[4].mxu0 %v4491_v19 }
  0xcb   : > { %2818 = vmatmul.mubr.bf16.gmra.mrb[20].mxu1 %v4491_v19  ;;  %2330 = vmatpush1.bf16.msra.mxu0 %v4492_v20  ;;  %v4594_v19 = vld [vmem:[%s5198_s21 + $0x3f8] ss:$12 sps:$4 sm:$0xff]   ;;  %v4579_v20 = vld [vmem:[%s5190_s27 + $0x50] ss:$36 sps:$4 sm:$0xff]  }
  0xcc   : > { %2264 = vmatprep.mubr.bf16.mxu0 %v4500_v21  ;;  %2331 = vmatprep.subr.bf16.mxu0 %v4499_v22  ;;  %v4588_v22 = vld [vmem:[%s5190_s27 + $0x9c] ss:$36 sps:$4 sm:$0xff]  }
  0xcd   : > { %2825 = vmatprep.mubr.bf16.mxu1 %v4500_v21  ;;  %3885 = vmatpush3.bf16.msra.mxu1 %v4507_v23  ;;  %v4580_v21 = vld [vmem:[%s5198_s21 + $0x330] ss:$12 sps:$4 sm:$0xff]   ;;  %v4587_v23 = vld [vmem:[%s5198_s21 + $0x34c] ss:$12 sps:$4 sm:$0xff]  }
  0xce   : > { %3886 = vmatprep.subr.bf16.mxu1 %v4517_v24  ;;  %v4595_v24 = vld [vmem:[%s5198_s21 + $0x338] ss:$12 sps:$4 sm:$0xff]  }
  0xcf   : > { %2332 = vmatpush1.bf16.msra.mxu0 %v4497_v25  ;;  %v4605_v25 = vld [vmem:[%s5198_s21 + $0x410] ss:$12 sps:$4 sm:$0xff]  }
  0xd0   : > { %2333 = vmatprep.subr.bf16.mxu0 %v4505_v26  ;;  %v4585_v26 = vld [vmem:[%s5198_s21 + $0x348] ss:$12 sps:$4 sm:$0xff]  }
  0xd1   : > { %3887 = vmatpush3.bf16.msra.mxu1 %v4518_v28  ;;  %v4606_v28 = vld [vmem:[%s5198_s21 + $0x350] ss:$12 sps:$4 sm:$0xff]  }
  0xd2   : > { %2265 = vmatmul.mubr.bf16.gmra.mrb[8].mxu0 %v4502_v27  ;;  %3888 = vmatprep.subr.bf16.mxu1 %v4528_v32  ;;  %v4598_v32 = vld [vmem:[%s5198_s21 + $0x37c] ss:$12 sps:$4 sm:$0xff]  }
  0xd3   : > { %2826 = vmatmul.mubr.bf16.gmra.mrb[24].mxu1 %v4502_v27  ;;  %2334 = vmatpush1.bf16.msra.mxu0 %v4503_v29  ;;  %v4593_v27 = vld [vmem:[%s5198_s21 + $0x364] ss:$12 sps:$4 sm:$0xff]   ;;  %v4590_v29 = vld [vmem:[%s5190_s27 + $0x98] ss:$36 sps:$4 sm:$0xff]  }
  0xd4   : > { %2274 = vmatprep.mubr.bf16.mxu0 %v4511_v30  ;;  %2335 = vmatprep.subr.bf16.mxu0 %v4510_v31  ;;  %v4599_v31 = vld [vmem:[%s5190_s27 + $0xe4] ss:$36 sps:$4 sm:$0xff]  }
  0xd5   : > { %2833 = vmatprep.mubr.bf16.mxu1 %v4511_v30  ;;  %3889 = vmatpush3.bf16.msra.mxu1 %v4529_v33  ;;  %v4591_v30 = vld [vmem:[%s5198_s21 + $0x360] ss:$12 sps:$4 sm:$0xff]   ;;  %v4616_v33 = vld [vmem:[%s5198_s21 + $0x428] ss:$12 sps:$4 sm:$0xff]  }
  0xd6   : > { %3890 = vmatprep.subr.bf16.mxu1 %v4539_v36  ;;  %v4627_v36 = vld [vmem:[%s5198_s21 + $0x440] ss:$12 sps:$4 sm:$0xff]  }
  0xd7   : > { %2336 = vmatpush1.bf16.msra.mxu0 %v4508_v34  ;;  %v4596_v34 = vld [vmem:[%s5198_s21 + $0x378] ss:$12 sps:$4 sm:$0xff]  }
  0xd8   : > { %2337 = vmatprep.subr.bf16.mxu0 %v4516_v35  ;;  %v4617_v35 = vld [vmem:[%s5198_s21 + $0x368] ss:$12 sps:$4 sm:$0xff]  }
  0xd9   : > { %3891 = vmatpush3.bf16.msra.mxu1 %v4540_v41  ;;  %v4609_v41 = vld [vmem:[%s5198_s21 + $0x3ac] ss:$12 sps:$4 sm:$0xff]  }
  0xda   : > { %2275 = vmatmul.mubr.bf16.gmra.mrb[12].mxu0 %v4513_v37  ;;  %3892 = vmatprep.subr.bf16.mxu1 %v4550_v42  ;;  %v4628_v42 = vld [vmem:[%s5198_s21 + $0x380] ss:$12 sps:$4 sm:$0xff]  }
  0xdb   : > { %2834 = vmatmul.mubr.bf16.gmra.mrb[28].mxu1 %v4513_v37  ;;  %2338 = vmatpush1.bf16.msra.mxu0 %v4514_v38  ;;  %v4604_v37 = vld [vmem:[%s5198_s21 + $0x394] ss:$12 sps:$4 sm:$0xff]  }
  0xdc   : > { %2284 = vmatprep.mubr.bf16.mxu0 %v4522_v39  ;;  %2339 = vmatprep.subr.bf16.mxu0 %v4521_v40  ;;  %v4601_v38 = vld [vmem:[%s5190_s27 + $0xe0] ss:$36 sps:$4 sm:$0xff]   ;;  %v4610_v40 = vld [vmem:[%s5190_s27 + $0x12c] ss:$36 sps:$4 sm:$0xff]  }
  0xdd   : > { %2841 = vmatprep.mubr.bf16.mxu1 %v4522_v39  ;;  %3893 = vmatpush3.bf16.msra.mxu1 %v4551_v45  ;;  %v4602_v39 = vld [vmem:[%s5198_s21 + $0x390] ss:$12 sps:$4 sm:$0xff]  }
  0xde   : > { %3894 = vmatprep.subr.bf16.mxu1 %v4561_v50  ;;  %v4615_v45 = vld [vmem:[%s5198_s21 + $0x3c4] ss:$12 sps:$4 sm:$0xff]   ;;  %v4620_v50 = vld [vmem:[%s5198_s21 + $0x3dc] ss:$12 sps:$4 sm:$0xff]  }
  0xdf   : > { %2340 = vmatpush1.bf16.msra.mxu0 %v4519_v43  ;;  %v4638_v43 = vld [vmem:[%s5198_s21 + $0x458] ss:$12 sps:$4 sm:$0xff]  }
  0xe0   : > { %2341 = vmatprep.subr.bf16.mxu0 %v4527_v44  ;;  %v4607_v44 = vld [vmem:[%s5198_s21 + $0x3a8] ss:$12 sps:$4 sm:$0xff]  }
  0xe1   : > { %3895 = vmatpush3.bf16.msra.mxu1 %v4562_v51  ;;  %v4618_v51 = vld [vmem:[%s5198_s21 + $0x3d8] ss:$12 sps:$4 sm:$0xff]  }
  0xe2   : > { %2285 = vmatmul.mubr.bf16.gmra.mrb[16].mxu0 %v4524_v46  ;;  %3944 = vmatprep.subr.bf16.mxu1 %v4572_v56  ;;  %v4623_v56 = vld [vmem:[%s5190_s27 + $0x170] ss:$36 sps:$4 sm:$0xff]  }
  0xe3   : > { %2842 = vmatmul.mubr.bf16.gmra.mrb[32].mxu1 %v4524_v46  ;;  %2342 = vmatpush1.bf16.msra.mxu0 %v4525_v47  ;;  %v4639_v46 = vld [vmem:[%s5198_s21 + $0x398] ss:$12 sps:$4 sm:$0xff]   ;;  %v4612_v47 = vld [vmem:[%s5190_s27 + $0x128] ss:$36 sps:$4 sm:$0xff]  }
  0xe4   : > { %2294 = vmatprep.mubr.bf16.mxu0 %v4533_v48  ;;  %2343 = vmatprep.subr.bf16.mxu0 %v4532_v49  ;;  %v4621_v49 = vld [vmem:[%s5190_s27 + $0x174] ss:$36 sps:$4 sm:$0xff]  }
  0xe5   : > { %2849 = vmatprep.mubr.bf16.mxu1 %v4533_v48  ;;  %v4613_v48 = vld [vmem:[%s5198_s21 + $0x3c0] ss:$12 sps:$4 sm:$0xff]  }
  0xe7   : > { %2344 = vmatpush1.bf16.msra.mxu0 %v4530_v52  ;;  %v4649_v52 = vld [vmem:[%s5198_s21 + $0x470] ss:$12 sps:$4 sm:$0xff]  }
  0xe8   : > { %2345 = vmatprep.subr.bf16.mxu0 %v4538_v53  ;;  %v4650_v53 = vld [vmem:[%s5198_s21 + $0x3b0] ss:$12 sps:$4 sm:$0xff]  }
  0xea   : > { %2295 = vmatmul.mubr.bf16.gmra.mrb[20].mxu0 %v4535_v54 }
  0xeb   : > { %2850 = vmatmul.mubr.bf16.gmra.mrb[36].mxu1 %v4535_v54  ;;  %2346 = vmatpush1.bf16.msra.mxu0 %v4536_v55  ;;  %v4660_v54 = vld [vmem:[%s5198_s21 + $0x548] ss:$12 sps:$4 sm:$0xff]  }
  0xec   : > { %2304 = vmatprep.mubr.bf16.mxu0 %v4544_v57  ;;  %2347 = vmatprep.subr.bf16.mxu0 %v4543_v58  ;;  %v4626_v55 = vld [vmem:[%s5198_s21 + $0x3f4] ss:$12 sps:$4 sm:$0xff]  }
  0xed   : > { %2857 = vmatprep.mubr.bf16.mxu1 %v4544_v57  ;;  %v4624_v57 = vld [vmem:[%s5198_s21 + $0x3f0] ss:$12 sps:$4 sm:$0xff]  }
  0xee   : > { %v4632_v58 = vld [vmem:[%s5190_s27 + $0x1bc] ss:$36 sps:$4 sm:$0xff]  }
  0xef   : > { %2348 = vmatpush1.bf16.msra.mxu0 %v4541_v59  ;;  %v4631_v59 = vld [vmem:[%s5198_s21 + $0x40c] ss:$12 sps:$4 sm:$0xff]  }
  0xf0   : > { %2349 = vmatprep.subr.bf16.mxu0 %v4549_v60  ;;  %v4629_v60 = vld [vmem:[%s5198_s21 + $0x408] ss:$12 sps:$4 sm:$0xff]  }
  0xf2   : > { %2305 = vmatmul.mubr.bf16.gmra.mrb[24].mxu0 %v4546_v61 }
  0xf3   : > { %2858 = vmatmul.mubr.bf16.gmra.mrb[40].mxu1 %v4546_v61  ;;  %2350 = vmatpush1.bf16.msra.mxu0 %v4547_v62  ;;  %v4637_v61 = vld [vmem:[%s5198_s21 + $0x424] ss:$12 sps:$4 sm:$0xff]   ;;  %v4634_v62 = vld [vmem:[%s5190_s27 + $0x1b8] ss:$36 sps:$4 sm:$0xff]  }
  0xf4   : > { %2314 = vmatprep.mubr.bf16.mxu0 %v4555_v63  ;;  %2351 = vmatprep.subr.bf16.mxu0 %v4554_v1  ;;  %v4643_v1 = vld [vmem:[%s5190_s27 + $0x204] ss:$36 sps:$4 sm:$0xff]  }
  0xf5   : > { %2865 = vmatprep.mubr.bf16.mxu1 %v4555_v63  ;;  %v4635_v63 = vld [vmem:[%s5198_s21 + $0x420] ss:$12 sps:$4 sm:$0xff]  }
  0xf7   : > { %2352 = vmatpush1.bf16.msra.mxu0 %v4552_v2  ;;  %v4642_v2 = vld [vmem:[%s5198_s21 + $0x43c] ss:$12 sps:$4 sm:$0xff]  }
  0xf8   : > { %2353 = vmatprep.subr.bf16.mxu0 %v4560_v3  ;;  %v4640_v3 = vld [vmem:[%s5198_s21 + $0x438] ss:$12 sps:$4 sm:$0xff]  }
  0xfa   : > { %2315 = vmatmul.mubr.bf16.gmra.mrb[28].mxu0 %v4557_v4 }
  0xfb   : > { %2866 = vmatmul.mubr.bf16.gmra.mrb[44].mxu1 %v4557_v4  ;;  %2354 = vmatpush1.bf16.msra.mxu0 %v4558_v5  ;;  %v4648_v4 = vld [vmem:[%s5198_s21 + $0x454] ss:$12 sps:$4 sm:$0xff]  }
  0xfc   : > { %2357 = vmatprep.mubr.bf16.mxu0 %v4568_v6  ;;  %2355 = vmatprep.subr.bf16.mxu0 %v4565_v7  ;;  %v4645_v5 = vld [vmem:[%s5190_s27 + $0x200] ss:$36 sps:$4 sm:$0xff]   ;;  %v4656_v7 = vld [vmem:[%s5190_s27 + $0x14] ss:$36 sps:$4 sm:$0xff]  }
  0xfd   : > { %2906 = vmatprep.mubr.bf16.mxu1 %v4568_v6  ;;  %v4646_v6 = vld [vmem:[%s5198_s21 + $0x450] ss:$12 sps:$4 sm:$0xff]  }
  0xff   : > { %2356 = vmatpush1.bf16.msra.mxu0 %v4563_v8  ;;  %v4653_v8 = vld [vmem:[%s5198_s21 + $0x46c] ss:$12 sps:$4 sm:$0xff]  }
 0x100   : > { %2438 = vmatprep.subr.bf16.mxu0 %v4571_v9  ;;  %v4651_v9 = vld [vmem:[%s5198_s21 + $0x468] ss:$12 sps:$4 sm:$0xff]  }
 0x102   : > { %2358 = vmatmul.mubr.bf16.vlgmr.msra.gmra.mrb[0].mxu0 %v4566_v10 }
 0x103   : > { %2907 = vmatmul.mubr.bf16.vlgmr.msra.gmra.mrb[48].mxu1 %v4566_v10  ;;  %2439 = vmatpush1.bf16.msra.mxu0 %v4569_v11  ;;  %v4659_v10 = vld [vmem:[%s5198_s21 + $0x484] ss:$12 sps:$4 sm:$0xff]  }
 0x104   : > { %3945 = vmatpush3.bf16.msra.mxu1 %v4573_v12  ;;  %2440 = vmatprep.subr.bf16.mxu0 %v4576_v13  ;;  %v4654_v11 = vld [vmem:[%s5190_s27 + $0x10] ss:$36 sps:$4 sm:$0xff]   ;;  %v4657_v12 = vld [vmem:[%s5198_s21 + $0x480] ss:$12 sps:$4 sm:$0xff]  }
 0x105   : > { %2367 = vmatprep.mubr.bf16.mxu0 %v4577_v14  ;;  %2914 = vmatprep.mubr.bf16.mxu1 %v4577_v14  ;;  %v4661_v13 = vld [vmem:[%s5198_s21 + $0x488] ss:$12 sps:$4 sm:$0xff]  }
 0x106   : > { %3946 = vmatprep.subr.bf16.mxu1 %v4583_v15  ;;  %v4664_v14 = vld [vmem:[%s5198_s21 + $0x49c] ss:$12 sps:$4 sm:$0xff]  }
 0x107   : > { %2441 = vmatpush1.bf16.msra.mxu0 %v4574_v16  ;;  %v4665_v15 = vld [vmem:[%s5190_s27 + $0x5c] ss:$36 sps:$4 sm:$0xff]  }
 0x108   : > { %3947 = vmatpush3.bf16.msra.mxu1 %v4584_v18  ;;  %2442 = vmatprep.subr.bf16.mxu0 %v4582_v17  ;;  %v4671_v16 = vld [vmem:[%s5198_s21 + $0x560] ss:$12 sps:$4 sm:$0xff]   ;;  %v4662_v17 = vld [vmem:[%s5198_s21 + $0x498] ss:$12 sps:$4 sm:$0xff]  }
 0x109   : > { %3948 = vmatprep.subr.bf16.mxu1 %v4594_v19  ;;  %v4670_v18 = vld [vmem:[%s5198_s21 + $0x4b4] ss:$12 sps:$4 sm:$0xff]  }
 0x10a   : > { %2368 = vmatmul.mubr.bf16.gmra.mrb[4].mxu0 %v4579_v20  ;;  %v4672_v19 = vld [vmem:[%s5198_s21 + $0x4a0] ss:$12 sps:$4 sm:$0xff]  }
 0x10b   : > { %2915 = vmatmul.mubr.bf16.gmra.mrb[52].mxu1 %v4579_v20  ;;  %2443 = vmatpush1.bf16.msra.mxu0 %v4580_v21  ;;  %v4682_v20 = vld [vmem:[%s5198_s21 + $0x578] ss:$12 sps:$4 sm:$0xff]  }
 0x10c   : > { %2377 = vmatprep.mubr.bf16.mxu0 %v4588_v22  ;;  %2444 = vmatprep.subr.bf16.mxu0 %v4587_v23  ;;  %v4667_v21 = vld [vmem:[%s5190_s27 + $0x58] ss:$36 sps:$4 sm:$0xff]   ;;  %v4676_v23 = vld [vmem:[%s5190_s27 + $0xa4] ss:$36 sps:$4 sm:$0xff]  }
 0x10d   : > { %2922 = vmatprep.mubr.bf16.mxu1 %v4588_v22  ;;  %3949 = vmatpush3.bf16.msra.mxu1 %v4595_v24  ;;  %v4668_v22 = vld [vmem:[%s5198_s21 + $0x4b0] ss:$12 sps:$4 sm:$0xff]   ;;  %v4675_v24 = vld [vmem:[%s5198_s21 + $0x4cc] ss:$12 sps:$4 sm:$0xff]  }
 0x10e   : > { %3950 = vmatprep.subr.bf16.mxu1 %v4605_v25  ;;  %v4683_v25 = vld [vmem:[%s5198_s21 + $0x4b8] ss:$12 sps:$4 sm:$0xff]  }
 0x10f   : > { %2445 = vmatpush1.bf16.msra.mxu0 %v4585_v26  ;;  %v4693_v26 = vld [vmem:[%s5198_s21 + $0x590] ss:$12 sps:$4 sm:$0xff]  }
 0x110   : > { %2446 = vmatprep.subr.bf16.mxu0 %v4593_v27  ;;  %v4673_v27 = vld [vmem:[%s5198_s21 + $0x4c8] ss:$12 sps:$4 sm:$0xff]  }
 0x111   : > { %3951 = vmatpush3.bf16.msra.mxu1 %v4606_v28  ;;  %v4681_v28 = vld [vmem:[%s5198_s21 + $0x4e4] ss:$12 sps:$4 sm:$0xff]  }
 0x112   : > { %2378 = vmatmul.mubr.bf16.gmra.mrb[8].mxu0 %v4590_v29  ;;  %3952 = vmatprep.subr.bf16.mxu1 %v4616_v33  ;;  %v4686_v33 = vld [vmem:[%s5198_s21 + $0x4fc] ss:$12 sps:$4 sm:$0xff]  }
 0x113   : > { %2923 = vmatmul.mubr.bf16.gmra.mrb[56].mxu1 %v4590_v29  ;;  %2447 = vmatpush1.bf16.msra.mxu0 %v4591_v30  ;;  %v4678_v29 = vld [vmem:[%s5190_s27 + $0xa0] ss:$36 sps:$4 sm:$0xff]   ;;  %v4694_v30 = vld [vmem:[%s5198_s21 + $0x4d0] ss:$12 sps:$4 sm:$0xff]  }
 0x114   : > { %2387 = vmatprep.mubr.bf16.mxu0 %v4599_v31  ;;  %2448 = vmatprep.subr.bf16.mxu0 %v4598_v32  ;;  %v4687_v32 = vld [vmem:[%s5190_s27 + $0xec] ss:$36 sps:$4 sm:$0xff]  }
 0x115   : > { %2930 = vmatprep.mubr.bf16.mxu1 %v4599_v31  ;;  %3953 = vmatpush3.bf16.msra.mxu1 %v4617_v35  ;;  %v4679_v31 = vld [vmem:[%s5198_s21 + $0x4e0] ss:$12 sps:$4 sm:$0xff]   ;;  %v4684_v35 = vld [vmem:[%s5198_s21 + $0x4f8] ss:$12 sps:$4 sm:$0xff]  }
 0x116   : > { %3954 = vmatprep.subr.bf16.mxu1 %v4627_v36  ;;  %v4705_v36 = vld [vmem:[%s5198_s21 + $0x4e8] ss:$12 sps:$4 sm:$0xff]  }
 0x117   : > { %2449 = vmatpush1.bf16.msra.mxu0 %v4596_v34  ;;  %v4704_v34 = vld [vmem:[%s5198_s21 + $0x5a8] ss:$12 sps:$4 sm:$0xff]  }
 0x118   : > { %2450 = vmatprep.subr.bf16.mxu0 %v4604_v37  ;;  %v4715_v37 = vld [vmem:[%s5198_s21 + $0x5c0] ss:$12 sps:$4 sm:$0xff]  }
 0x119   : > { %3955 = vmatpush3.bf16.msra.mxu1 %v4628_v42  ;;  %v4697_v42 = vld [vmem:[%s5198_s21 + $0x52c] ss:$12 sps:$4 sm:$0xff]  }
 0x11a   : > { %2388 = vmatmul.mubr.bf16.gmra.mrb[12].mxu0 %v4601_v38  ;;  %3956 = vmatprep.subr.bf16.mxu1 %v4638_v43  ;;  %v4716_v43 = vld [vmem:[%s5198_s21 + $0x500] ss:$12 sps:$4 sm:$0xff]  }
 0x11b   : > { %2931 = vmatmul.mubr.bf16.gmra.mrb[60].mxu1 %v4601_v38  ;;  %2451 = vmatpush1.bf16.msra.mxu0 %v4602_v39  ;;  %v4692_v38 = vld [vmem:[%s5198_s21 + $0x514] ss:$12 sps:$4 sm:$0xff]   ;;  %v4689_v39 = vld [vmem:[%s5190_s27 + $0xe8] ss:$36 sps:$4 sm:$0xff]  }
 0x11c   : > { %2397 = vmatprep.mubr.bf16.mxu0 %v4610_v40  ;;  %2452 = vmatprep.subr.bf16.mxu0 %v4609_v41  ;;  %v4698_v41 = vld [vmem:[%s5190_s27 + $0x134] ss:$36 sps:$4 sm:$0xff]  }
 0x11d   : > { %2938 = vmatprep.mubr.bf16.mxu1 %v4610_v40  ;;  %3957 = vmatpush3.bf16.msra.mxu1 %v4639_v46  ;;  %v4690_v40 = vld [vmem:[%s5198_s21 + $0x510] ss:$12 sps:$4 sm:$0xff]  }
 0x11e   : > { %3958 = vmatprep.subr.bf16.mxu1 %v4649_v52  ;;  %v4703_v46 = vld [vmem:[%s5198_s21 + $0x544] ss:$12 sps:$4 sm:$0xff]  }
 0x11f   : > { %2453 = vmatpush1.bf16.msra.mxu0 %v4607_v44  ;;  %v4726_v44 = vld [vmem:[%s5198_s21 + $0x5d8] ss:$12 sps:$4 sm:$0xff]   ;;  %v4737_v52 = vld [vmem:[%s5198_s21 + $0x5f0] ss:$12 sps:$4 sm:$0xff]  }
 0x120   : > { %2454 = vmatprep.subr.bf16.mxu0 %v4615_v45  ;;  %v4695_v45 = vld [vmem:[%s5198_s21 + $0x528] ss:$12 sps:$4 sm:$0xff]  }
 0x121   : > { %3959 = vmatpush3.bf16.msra.mxu1 %v4650_v53  ;;  %v4738_v53 = vld [vmem:[%s5198_s21 + $0x530] ss:$12 sps:$4 sm:$0xff]  }
 0x122   : > { %2398 = vmatmul.mubr.bf16.gmra.mrb[16].mxu0 %v4612_v47  ;;  %4008 = vmatprep.subr.bf16.mxu1 %v4660_v54  ;;  %v4706_v54 = vld [vmem:[%s5198_s21 + $0x558] ss:$12 sps:$4 sm:$0xff]  }
 0x123   : > { %2939 = vmatmul.mubr.bf16.gmra.mrb[64].mxu1 %v4612_v47  ;;  %2455 = vmatpush1.bf16.msra.mxu0 %v4613_v48  ;;  %v4727_v47 = vld [vmem:[%s5198_s21 + $0x518] ss:$12 sps:$4 sm:$0xff]   ;;  %v4700_v48 = vld [vmem:[%s5190_s27 + $0x130] ss:$36 sps:$4 sm:$0xff]  }
 0x124   : > { %2407 = vmatprep.mubr.bf16.mxu0 %v4621_v49  ;;  %2456 = vmatprep.subr.bf16.mxu0 %v4620_v50  ;;  %v4709_v50 = vld [vmem:[%s5190_s27 + $0x17c] ss:$36 sps:$4 sm:$0xff]  }
 0x125   : > { %2946 = vmatprep.mubr.bf16.mxu1 %v4621_v49  ;;  %v4701_v49 = vld [vmem:[%s5198_s21 + $0x540] ss:$12 sps:$4 sm:$0xff]  }
 0x127   : > { %2457 = vmatpush1.bf16.msra.mxu0 %v4618_v51  ;;  %v4708_v51 = vld [vmem:[%s5198_s21 + $0x55c] ss:$12 sps:$4 sm:$0xff]  }
 0x128   : > { %2458 = vmatprep.subr.bf16.mxu0 %v4626_v55  ;;  %v5452_v55 = vld [vmem:[%s5198_s21 + $0x608] ss:$12 sps:$4 sm:$0xff]  }
 0x12a   : > { %2408 = vmatmul.mubr.bf16.gmra.mrb[20].mxu0 %v4623_v56 }
 0x12b   : > { %2947 = vmatmul.mubr.bf16.gmra.mrb[68].mxu1 %v4623_v56  ;;  %2459 = vmatpush1.bf16.msra.mxu0 %v4624_v57  ;;  %v4714_v56 = vld [vmem:[%s5198_s21 + $0x574] ss:$12 sps:$4 sm:$0xff]   ;;  %v4711_v57 = vld [vmem:[%s5190_s27 + $0x178] ss:$36 sps:$4 sm:$0xff]  }
 0x12c   : > { %2417 = vmatprep.mubr.bf16.mxu0 %v4632_v58  ;;  %2460 = vmatprep.subr.bf16.mxu0 %v4631_v59  ;;  %v4720_v59 = vld [vmem:[%s5190_s27 + $0x1c4] ss:$36 sps:$4 sm:$0xff]  }
 0x12d   : > { %2954 = vmatprep.mubr.bf16.mxu1 %v4632_v58  ;;  %v4712_v58 = vld [vmem:[%s5198_s21 + $0x570] ss:$12 sps:$4 sm:$0xff]  }
 0x12f   : > { %2461 = vmatpush1.bf16.msra.mxu0 %v4629_v60  ;;  %v4719_v60 = vld [vmem:[%s5198_s21 + $0x58c] ss:$12 sps:$4 sm:$0xff]  }
 0x130   : > { %2462 = vmatprep.subr.bf16.mxu0 %v4637_v61  ;;  %v4717_v61 = vld [vmem:[%s5198_s21 + $0x588] ss:$12 sps:$4 sm:$0xff]  }
 0x132   : > { %2418 = vmatmul.mubr.bf16.gmra.mrb[24].mxu0 %v4634_v62 }
 0x133   : > { %2955 = vmatmul.mubr.bf16.gmra.mrb[72].mxu1 %v4634_v62  ;;  %2463 = vmatpush1.bf16.msra.mxu0 %v4635_v63  ;;  %v4725_v62 = vld [vmem:[%s5198_s21 + $0x5a4] ss:$12 sps:$4 sm:$0xff]  }
 0x134   : > { %2427 = vmatprep.mubr.bf16.mxu0 %v4643_v1  ;;  %2464 = vmatprep.subr.bf16.mxu0 %v4642_v2  ;;  %v4722_v63 = vld [vmem:[%s5190_s27 + $0x1c0] ss:$36 sps:$4 sm:$0xff]   ;;  %v4731_v2 = vld [vmem:[%s5190_s27 + $0x20c] ss:$36 sps:$4 sm:$0xff]  }
 0x135   : > { %2962 = vmatprep.mubr.bf16.mxu1 %v4643_v1  ;;  %v4723_v1 = vld [vmem:[%s5198_s21 + $0x5a0] ss:$12 sps:$4 sm:$0xff]  }
 0x137   : > { %2465 = vmatpush1.bf16.msra.mxu0 %v4640_v3  ;;  %v4730_v3 = vld [vmem:[%s5198_s21 + $0x5bc] ss:$12 sps:$4 sm:$0xff]  }
 0x138   : > { %2466 = vmatprep.subr.bf16.mxu0 %v4648_v4  ;;  %v4728_v4 = vld [vmem:[%s5198_s21 + $0x5b8] ss:$12 sps:$4 sm:$0xff]  }
 0x13a   : > { %2428 = vmatmul.mubr.bf16.gmra.mrb[28].mxu0 %v4645_v5 }
 0x13b   : > { %2963 = vmatmul.mubr.bf16.gmra.mrb[76].mxu1 %v4645_v5  ;;  %2467 = vmatpush1.bf16.msra.mxu0 %v4646_v6  ;;  %v4736_v5 = vld [vmem:[%s5198_s21 + $0x5d4] ss:$12 sps:$4 sm:$0xff]  }
 0x13c   : > { %2470 = vmatprep.mubr.bf16.mxu0 %v4656_v7  ;;  %2468 = vmatprep.subr.bf16.mxu0 %v4653_v8  ;;  %v4733_v8 = vld [vmem:[%s5190_s27 + $0x208] ss:$36 sps:$4 sm:$0xff]  }
 0x13d   : > { %3003 = vmatprep.mubr.bf16.mxu1 %v4656_v7 }
 0x13f   : > { %2469 = vmatpush1.bf16.msra.mxu0 %v4651_v9 }
 0x140   : > { %2551 = vmatprep.subr.bf16.mxu0 %v4659_v10  ;;  %v4734_v10 = vld [vmem:[%s5198_s21 + $0x5d0] ss:$12 sps:$4 sm:$0xff]  }
 0x142   : > { %2471 = vmatmul.mubr.bf16.vlgmr.msra.gmra.mrb[0].mxu0 %v4654_v11 }
 0x143   : > { %3004 = vmatmul.mubr.bf16.vlgmr.msra.gmra.mrb[80].mxu1 %v4654_v11  ;;  %2552 = vmatpush1.bf16.msra.mxu0 %v4657_v12  ;;  %v4744_v11 = vld [vmem:[%s5190_s27 + $0x1c] ss:$36 sps:$4 sm:$0xff]  }
 0x144   : > { %4009 = vmatpush3.bf16.msra.mxu1 %v4661_v13  ;;  %2553 = vmatprep.subr.bf16.mxu0 %v4664_v14  ;;  %v4741_v13 = vld [vmem:[%s5198_s21 + $0x5ec] ss:$12 sps:$4 sm:$0xff]   ;;  %v4739_v14 = vld [vmem:[%s5198_s21 + $0x5e8] ss:$12 sps:$4 sm:$0xff]  }
 0x145   : > { %2480 = vmatprep.mubr.bf16.mxu0 %v4665_v15  ;;  %3011 = vmatprep.mubr.bf16.mxu1 %v4665_v15 }
 0x146   : > { %4010 = vmatprep.subr.bf16.mxu1 %v4671_v16 }
 0x147   : > { %2554 = vmatpush1.bf16.msra.mxu0 %v4662_v17  ;;  %v4742_v17 = vld [vmem:[%s5190_s27 + $0x18] ss:$36 sps:$4 sm:$0xff]  }
 0x148   : > { %4011 = vmatpush3.bf16.msra.mxu1 %v4672_v19  ;;  %2555 = vmatprep.subr.bf16.mxu0 %v4670_v18 }
 0x149   : > { %4012 = vmatprep.subr.bf16.mxu1 %v4682_v20  ;;  %v4778_v20 = vld [vmem:[%s5198_s21 + $0x604] ss:$12 sps:$4 sm:$0xff]  }
 0x14a   : > { %2481 = vmatmul.mubr.bf16.gmra.mrb[4].mxu0 %v4667_v21 }
 0x14b   : > { %3012 = vmatmul.mubr.bf16.gmra.mrb[84].mxu1 %v4667_v21  ;;  %2556 = vmatpush1.bf16.msra.mxu0 %v4668_v22  ;;  %v4746_v21 = vld [vmem:[%s5190_s27 + $0x64] ss:$36 sps:$4 sm:$0xff]   ;;  %v4749_v22 = vld [vmem:[%s5198_s21 + $0x620] ss:$12 sps:$4 sm:$0xff]  }
 0x14c   : > { %2490 = vmatprep.mubr.bf16.mxu0 %v4676_v23  ;;  %2557 = vmatprep.subr.bf16.mxu0 %v4675_v24  ;;  %v4753_v24 = vld [vmem:[%s5198_s21 + $0x638] ss:$12 sps:$4 sm:$0xff]  }
 0x14d   : > { %3019 = vmatprep.mubr.bf16.mxu1 %v4676_v23  ;;  %4013 = vmatpush3.bf16.msra.mxu1 %v4683_v25  ;;  %v4779_v23 = vld [vmem:[%s5198_s21 + $0x600] ss:$12 sps:$4 sm:$0xff]  }
 0x14e   : > { %4014 = vmatprep.subr.bf16.mxu1 %v4693_v26  ;;  %v4780_v26 = vld [vmem:[%s5198_s21 + $0x61c] ss:$12 sps:$4 sm:$0xff]  }
 0x14f   : > { %2558 = vmatpush1.bf16.msra.mxu0 %v4673_v27 }
 0x150   : > { %2559 = vmatprep.subr.bf16.mxu0 %v4681_v28  ;;  %v4748_v28 = vld [vmem:[%s5190_s27 + $0x60] ss:$36 sps:$4 sm:$0xff]  }
 0x151   : > { %4015 = vmatpush3.bf16.msra.mxu1 %v4694_v30  ;;  %v4781_v30 = vld [vmem:[%s5198_s21 + $0x618] ss:$12 sps:$4 sm:$0xff]  }
 0x152   : > { %2491 = vmatmul.mubr.bf16.gmra.mrb[8].mxu0 %v4678_v29  ;;  %4016 = vmatprep.subr.bf16.mxu1 %v4704_v34  ;;  %v4757_v34 = vld [vmem:[%s5198_s21 + $0x650] ss:$12 sps:$4 sm:$0xff]  }
 0x153   : > { %3020 = vmatmul.mubr.bf16.gmra.mrb[88].mxu1 %v4678_v29  ;;  %2560 = vmatpush1.bf16.msra.mxu0 %v4679_v31  ;;  %v4750_v31 = vld [vmem:[%s5190_s27 + $0xac] ss:$36 sps:$4 sm:$0xff]  }
 0x154   : > { %2500 = vmatprep.mubr.bf16.mxu0 %v4687_v32  ;;  %2561 = vmatprep.subr.bf16.mxu0 %v4686_v33  ;;  %v4782_v33 = vld [vmem:[%s5198_s21 + $0x634] ss:$12 sps:$4 sm:$0xff]  }
 0x155   : > { %3027 = vmatprep.mubr.bf16.mxu1 %v4687_v32  ;;  %4017 = vmatpush3.bf16.msra.mxu1 %v4705_v36 }
 0x156   : > { %4018 = vmatprep.subr.bf16.mxu1 %v4715_v37  ;;  %v4784_v37 = vld [vmem:[%s5198_s21 + $0x64c] ss:$12 sps:$4 sm:$0xff]  }
 0x157   : > { %2562 = vmatpush1.bf16.msra.mxu0 %v4684_v35  ;;  %v4783_v35 = vld [vmem:[%s5198_s21 + $0x630] ss:$12 sps:$4 sm:$0xff]  }
 0x158   : > { %2563 = vmatprep.subr.bf16.mxu0 %v4692_v38  ;;  %v4761_v38 = vld [vmem:[%s5198_s21 + $0x668] ss:$12 sps:$4 sm:$0xff]  }
 0x159   : > { %4019 = vmatpush3.bf16.msra.mxu1 %v4716_v43 }
 0x15a   : > { %2501 = vmatmul.mubr.bf16.gmra.mrb[12].mxu0 %v4689_v39  ;;  %4020 = vmatprep.subr.bf16.mxu1 %v4726_v44  ;;  %v4785_v44 = vld [vmem:[%s5198_s21 + $0x648] ss:$12 sps:$4 sm:$0xff]  }
 0x15b   : > { %3028 = vmatmul.mubr.bf16.gmra.mrb[92].mxu1 %v4689_v39  ;;  %2564 = vmatpush1.bf16.msra.mxu0 %v4690_v40  ;;  %v4752_v40 = vld [vmem:[%s5190_s27 + $0xa8] ss:$36 sps:$4 sm:$0xff]  }
 0x15c   : > { %2510 = vmatprep.mubr.bf16.mxu0 %v4698_v41  ;;  %2565 = vmatprep.subr.bf16.mxu0 %v4697_v42  ;;  %v4754_v42 = vld [vmem:[%s5190_s27 + $0xf4] ss:$36 sps:$4 sm:$0xff]  }
 0x15d   : > { %3035 = vmatprep.mubr.bf16.mxu1 %v4698_v41  ;;  %4021 = vmatpush3.bf16.msra.mxu1 %v4727_v47  ;;  %v4787_v47 = vld [vmem:[%s5198_s21 + $0x660] ss:$12 sps:$4 sm:$0xff]  }
 0x15e   : > { %4022 = vmatprep.subr.bf16.mxu1 %v4737_v52  ;;  %v4756_v52 = vld [vmem:[%s5190_s27 + $0xf0] ss:$36 sps:$4 sm:$0xff]  }
 0x15f   : > { %2566 = vmatpush1.bf16.msra.mxu0 %v4695_v45  ;;  %v4786_v45 = vld [vmem:[%s5198_s21 + $0x664] ss:$12 sps:$4 sm:$0xff]  }
 0x160   : > { %2567 = vmatprep.subr.bf16.mxu0 %v4703_v46  ;;  %v4765_v46 = vld [vmem:[%s5198_s21 + $0x680] ss:$12 sps:$4 sm:$0xff]  }
 0x161   : > { %4023 = vmatpush3.bf16.msra.mxu1 %v4738_v53 }
 0x162   : > { %2511 = vmatmul.mubr.bf16.gmra.mrb[16].mxu0 %v4700_v48  ;;  %4088 = vmatprep.subr.bf16.mxu1 %v5452_v55 }
 0x163   : > { %3036 = vmatmul.mubr.bf16.gmra.mrb[96].mxu1 %v4700_v48  ;;  %2568 = vmatpush1.bf16.msra.mxu0 %v4701_v49  ;;  %v4788_v49 = vld [vmem:[%s5198_s21 + $0x67c] ss:$12 sps:$4 sm:$0xff]  }
 0x164   : > { %2520 = vmatprep.mubr.bf16.mxu0 %v4709_v50  ;;  %2569 = vmatprep.subr.bf16.mxu0 %v4708_v51 }
 0x165   : > { %3043 = vmatprep.mubr.bf16.mxu1 %v4709_v50  ;;  %v4769_v50 = vld [vmem:[%s5198_s21 + $0x698] ss:$12 sps:$4 sm:$0xff]  }
 0x167   : > { %2570 = vmatpush1.bf16.msra.mxu0 %v4706_v54 }
 0x168   : > { %2571 = vmatprep.subr.bf16.mxu0 %v4714_v56 }
 0x16a   : > { %2521 = vmatmul.mubr.bf16.gmra.mrb[20].mxu0 %v4711_v57 }
 0x16b   : > { %3044 = vmatmul.mubr.bf16.gmra.mrb[100].mxu1 %v4711_v57  ;;  %2572 = vmatpush1.bf16.msra.mxu0 %v4712_v58  ;;  %v4789_v57 = vld [vmem:[%s5198_s21 + $0x678] ss:$12 sps:$4 sm:$0xff]  }
 0x16c   : > { %2530 = vmatprep.mubr.bf16.mxu0 %v4720_v59  ;;  %2573 = vmatprep.subr.bf16.mxu0 %v4719_v60  ;;  %v4773_v60 = vld [vmem:[%s5198_s21 + $0x6b0] ss:$12 sps:$4 sm:$0xff]  }
 0x16d   : > { %3051 = vmatprep.mubr.bf16.mxu1 %v4720_v59  ;;  %v4790_v59 = vld [vmem:[%s5198_s21 + $0x694] ss:$12 sps:$4 sm:$0xff]  }
 0x16f   : > { %2574 = vmatpush1.bf16.msra.mxu0 %v4717_v61  ;;  %v4791_v61 = vld [vmem:[%s5198_s21 + $0x690] ss:$12 sps:$4 sm:$0xff]  }
 0x170   : > { %2575 = vmatprep.subr.bf16.mxu0 %v4725_v62 }
 0x172   : > { %2531 = vmatmul.mubr.bf16.gmra.mrb[24].mxu0 %v4722_v63 }
 0x173   : > { %3052 = vmatmul.mubr.bf16.gmra.mrb[104].mxu1 %v4722_v63  ;;  %2576 = vmatpush1.bf16.msra.mxu0 %v4723_v1  ;;  %v4792_v63 = vld [vmem:[%s5198_s21 + $0x6ac] ss:$12 sps:$4 sm:$0xff]  }
 0x174   : > { %2540 = vmatprep.mubr.bf16.mxu0 %v4731_v2  ;;  %2577 = vmatprep.subr.bf16.mxu0 %v4730_v3 }
 0x175   : > { %3059 = vmatprep.mubr.bf16.mxu1 %v4731_v2  ;;  %v4760_v2 = vld [vmem:[%s5190_s27 + $0x138] ss:$36 sps:$4 sm:$0xff]  }
 0x176   : > { %v5468_v6 = vpop.f32.mrb[0].mxu1 }
 0x177   : > { %v5470_v7 = vpop.f32.mrb[1].mxu1  ;;  %2578 = vmatpush1.bf16.msra.mxu0 %v4728_v4 }
 0x178   : > { %v5473_v9 = vpop.f32.mrb[2].mxu1  ;;  %2579 = vmatprep.subr.bf16.mxu0 %v4736_v5  ;;  %v4762_v5 = vld [vmem:[%s5190_s27 + $0x184] ss:$36 sps:$4 sm:$0xff]  }
 0x179   : > { %v5477_v12 = vpop.f32.mrb[3].mxu1 }
 0x17a   : > { %2541 = vmatmul.mubr.bf16.gmra.mrb[28].mxu0 %v4733_v8 }
 0x17b   : > { %3060 = vmatmul.mubr.bf16.gmra.mrb[108].mxu1 %v4733_v8  ;;  %2580 = vmatpush1.bf16.msra.mxu0 %v4734_v10  ;;  %v4793_v10 = vld [vmem:[%s5198_s21 + $0x6a8] ss:$12 sps:$4 sm:$0xff]  }
 0x17c   : > { %2583 = vmatprep.mubr.bf16.mxu0 %v4744_v11  ;;  %2581 = vmatprep.subr.bf16.mxu0 %v4741_v13 }
 0x17d   : > { %3100 = vmatprep.mubr.bf16.mxu1 %v4744_v11 }
 0x17e   : > { %v5481_v15 = vpop.f32.mrb[4].mxu1 }
 0x17f   : > { %v5483_v16 = vpop.f32.mrb[5].mxu1  ;;  %2582 = vmatpush1.bf16.msra.mxu0 %v4739_v14 }
 0x180   : > { %v5486_v18 = vpop.f32.mrb[6].mxu1  ;;  %2664 = vmatprep.subr.bf16.mxu0 %v4778_v20 }
 0x181   : > { %v5488_v19 = vpop.f32.mrb[7].mxu1 }
 0x182   : > { %2584 = vmatmul.mubr.bf16.vlgmr.msra.gmra.mrb[0].mxu0 %v4742_v17 }
 0x183   : > { %3101 = vmatmul.mubr.bf16.vlgmr.msra.gmra.mrb[112].mxu1 %v4742_v17  ;;  %2665 = vmatpush1.bf16.msra.mxu0 %v4779_v23  ;;  %v4764_v17 = vld [vmem:[%s5190_s27 + $0x180] ss:$36 sps:$4 sm:$0xff]  }
 0x184   : > { %4089 = vmatpush3.bf16.msra.mxu1 %v5452_v55  ;;  %2593 = vmatprep.mubr.bf16.mxu0 %v4746_v21  ;;  %v4758_v55 = vld [vmem:[%s5190_s27 + $0x13c] ss:$36 sps:$4 sm:$0xff]  }
 0x185   : > { %3108 = vmatprep.mubr.bf16.mxu1 %v4746_v21  ;;  %2666 = vmatprep.subr.bf16.mxu0 %v4780_v26 }
 0x186   : > { %v5496_v25 = vpop.f32.mrb[8].mxu1  ;;  %4090 = vmatprep.subr.bf16.mxu1 %v4749_v22 }
 0x187   : > { %v5499_v27 = vpop.f32.mrb[9].mxu1  ;;  %2667 = vmatpush1.bf16.msra.mxu0 %v4781_v30  ;;  %v4768_v30 = vld [vmem:[%s5190_s27 + $0x1c8] ss:$36 sps:$4 sm:$0xff]  }
 0x188   : > { %v5502_v29 = vpop.f32.mrb[10].mxu1  ;;  %4091 = vmatpush3.bf16.msra.mxu1 %v4749_v22  ;;  %2668 = vmatprep.subr.bf16.mxu0 %v4782_v33  ;;  %v4766_v22 = vld [vmem:[%s5190_s27 + $0x1cc] ss:$36 sps:$4 sm:$0xff]  }
 0x189   : > { %v5506_v32 = vpop.f32.mrb[11].mxu1  ;;  %4092 = vmatprep.subr.bf16.mxu1 %v4753_v24 }
 0x18a   : > { %2594 = vmatmul.mubr.bf16.gmra.mrb[4].mxu0 %v4748_v28 }
 0x18b   : > { %3109 = vmatmul.mubr.bf16.gmra.mrb[116].mxu1 %v4748_v28  ;;  %2603 = vmatprep.mubr.bf16.mxu0 %v4750_v31 }
 0x18c   : > { %3116 = vmatprep.mubr.bf16.mxu1 %v4750_v31  ;;  %2669 = vmatpush1.bf16.msra.mxu0 %v4783_v35 }
 0x18d   : > { %4093 = vmatpush3.bf16.msra.mxu1 %v4753_v24  ;;  %2670 = vmatprep.subr.bf16.mxu0 %v4784_v37 }
 0x18e   : > { %v5511_v36 = vpop.f32.mrb[12].mxu1  ;;  %4094 = vmatprep.subr.bf16.mxu1 %v4757_v34 }
 0x18f   : > { %v5515_v39 = vpop.f32.mrb[13].mxu1 }
 0x190   : > { %v5518_v41 = vpop.f32.mrb[14].mxu1  ;;  %2671 = vmatpush1.bf16.msra.mxu0 %v4785_v44 }
 0x191   : > { %v5521_v43 = vpop.f32.mrb[15].mxu1  ;;  %4095 = vmatpush3.bf16.msra.mxu1 %v4757_v34  ;;  %2672 = vmatprep.subr.bf16.mxu0 %v4786_v45  ;;  %v4770_v34 = vld [vmem:[%s5190_s27 + $0x214] ss:$36 sps:$4 sm:$0xff]  }
 0x192   : > { %4096 = vmatprep.subr.bf16.mxu1 %v4761_v38  ;;  %2604 = vmatmul.mubr.bf16.gmra.mrb[8].mxu0 %v4752_v40 }
 0x193   : > { %3117 = vmatmul.mubr.bf16.gmra.mrb[120].mxu1 %v4752_v40  ;;  %2613 = vmatprep.mubr.bf16.mxu0 %v4754_v42 }
 0x194   : > { %3124 = vmatprep.mubr.bf16.mxu1 %v4754_v42  ;;  %2673 = vmatpush1.bf16.msra.mxu0 %v4787_v47  ;;  %v4772_v42 = vld [vmem:[%s5190_s27 + $0x210] ss:$36 sps:$4 sm:$0xff]  }
 0x195   : > { %4097 = vmatpush3.bf16.msra.mxu1 %v4761_v38  ;;  %2674 = vmatprep.subr.bf16.mxu0 %v4788_v49 }
 0x196   : > { %v3832_v48 = vpop.f32.mrb[16].mxu1  ;;  %4098 = vmatprep.subr.bf16.mxu1 %v4765_v46 }
 0x197   : > { %v3833_v51 = vpop.f32.mrb[17].mxu1 }
 0x198   : > { %v5530_v53 = vadd.f32 %v3833_v51, %v3832_v48  ;;  %v3835_v54 = vpop.f32.mrb[18].mxu1  ;;  %2675 = vmatpush1.bf16.msra.mxu0 %v4789_v57  ;;  %v4775_v51 = vld [vmem:[%s5190_s27 + $0x68] ss:$36 sps:$4 sm:$0xff]  }
 0x199   : > { %v3836_v56 = vpop.f32.mrb[19].mxu1  ;;  %4099 = vmatpush3.bf16.msra.mxu1 %v4765_v46  ;;  %2676 = vmatprep.subr.bf16.mxu0 %v4790_v59  ;;  %v4774_v46 = vld [vmem:[%s5190_s27 + $0x20] ss:$36 sps:$4 sm:$0xff]  }
 0x19a   : > { %v5534_v58 = vadd.f32 %v3836_v56, %v3835_v54  ;;  %4100 = vmatprep.subr.bf16.mxu1 %v4769_v50  ;;  %2614 = vmatmul.mubr.bf16.gmra.mrb[12].mxu0 %v4756_v52 }
 0x19b   : > { %3125 = vmatmul.mubr.bf16.gmra.mrb[124].mxu1 %v4756_v52  ;;  %2623 = vmatprep.mubr.bf16.mxu0 %v4758_v55 }
 0x19c   : > { %3132 = vmatprep.mubr.bf16.mxu1 %v4758_v55  ;;  %2677 = vmatpush1.bf16.msra.mxu0 %v4791_v61  ;;  %v4776_v55 = vld [vmem:[%s5190_s27 + $0xb0] ss:$36 sps:$4 sm:$0xff]   ;;  %v4777_v61 = vld [vmem:[%s5190_s27 + $0xf8] ss:$36 sps:$4 sm:$0xff]  }
 0x19d   : > { %4101 = vmatpush3.bf16.msra.mxu1 %v4769_v50  ;;  %2678 = vmatprep.subr.bf16.mxu0 %v4792_v63 }
 0x19e   : > { %v3838_v62 = vpop.f32.mrb[20].mxu1  ;;  %4102 = vmatprep.subr.bf16.mxu1 %v4773_v60 }
 0x19f   : > { %v3839_v1 = vpop.f32.mrb[21].mxu1 }
 0x1a0   : > { %v5541_v3 = vadd.f32 %v3839_v1, %v3838_v62  ;;  %v3841_v4 = vpop.f32.mrb[22].mxu1  ;;  %2679 = vmatpush1.bf16.msra.mxu0 %v4793_v10  ;;  %v677_v62 = vlaneseq }
 0x1a1   : > { %v3842_v8 = vpop.f32.mrb[23].mxu1  ;;  %4103 = vmatpush3.bf16.msra.mxu1 %v4773_v60 }
 0x1a2   : > { %v5545_v11 = vadd.f32 %v3842_v8, %v3841_v4  ;;  %2624 = vmatmul.mubr.bf16.gmra.mrb[16].mxu0 %v4760_v2  ;;  %v4794_v8 = vld [vmem:[%s5190_s27 + $0x140] ss:$36 sps:$4 sm:$0xff]  }
 0x1a3   : > { %3133 = vmatmul.mubr.bf16.gmra.mrb[128].mxu1 %v4760_v2  ;;  %2633 = vmatprep.mubr.bf16.mxu0 %v4762_v5 }
 0x1a4   : > { %3140 = vmatprep.mubr.bf16.mxu1 %v4762_v5  ;;  %v5579_v5 = vshrl.u32 %v677_v62, 7 }
 0x1a6   : > { %v3844_v13 = vpop.f32.mrb[24].mxu1 }
 0x1a7   : > { %v3845_v14 = vpop.f32.mrb[25].mxu1 }
 0x1a8   : > { %v5548_v20 = vadd.f32 %v3845_v14, %v3844_v13  ;;  %v3847_v21 = vpop.f32.mrb[26].mxu1  ;;  %v687_v14 = vsub.s32 2, %v5579_v5 }
 0x1a9   : > { %v3848_v23 = vpop.f32.mrb[27].mxu1 }
 0x1aa   : > { %v5551_v24 = vadd.f32 %v3848_v23, %v3847_v21  ;;  %2634 = vmatmul.mubr.bf16.gmra.mrb[20].mxu0 %v4764_v17 }
 0x1ab   : > { %3141 = vmatmul.mubr.bf16.gmra.mrb[132].mxu1 %v4764_v17  ;;  %2643 = vmatprep.mubr.bf16.mxu0 %v4766_v22 }
 0x1ac   : > { %3148 = vmatprep.mubr.bf16.mxu1 %v4766_v22  ;;  %v5586_v22 = vld [vmem:[%s267_s24] sm:$0x7] }
 0x1ae   : > { %v3850_v26 = vpop.f32.mrb[28].mxu1 }
 0x1af   : > { %v3851_v28 = vpop.f32.mrb[29].mxu1 }
 0x1b0   : > { %v5554_v31 = vadd.f32 %v3851_v28, %v3850_v26  ;;  %v3853_v33 = vpop.f32.mrb[30].mxu1  ;;  %v4795_v28 = vld [vmem:[%s5190_s27 + $0x188] ss:$36 sps:$4 sm:$0xff]  }
 0x1b1   : > { %v3854_v35 = vpop.f32.mrb[31].mxu1 }
 0x1b2   : > { %v5557_v37 = vadd.f32 %v3854_v35, %v3853_v33  ;;  %2644 = vmatmul.mubr.bf16.gmra.mrb[24].mxu0 %v4768_v30  ;;  %v4796_v33 = vld [vmem:[%s5190_s27 + $0x1d0] ss:$36 sps:$4 sm:$0xff]  }
 0x1b3   : > { %3149 = vmatmul.mubr.bf16.gmra.mrb[136].mxu1 %v4768_v30  ;;  %2653 = vmatprep.mubr.bf16.mxu0 %v4770_v34  ;;  %v5592_v30 = vrot.slane %v5586_v22, %v687_v14 }
 0x1b4   : > { %3156 = vmatprep.mubr.bf16.mxu1 %v4770_v34 }
 0x1b6   : > { %v3856_v38 = vpop.f32.mrb[32].mxu1 }
 0x1b7   : > { %v3857_v40 = vpop.f32.mrb[33].mxu1 }
 0x1b8   : > { %v5560_v44 = vadd.f32 %v3857_v40, %v3856_v38  ;;  %v3859_v45 = vpop.f32.mrb[34].mxu1  ;;  %v2812_v38 = vadd.f32 %v5530_v53, %v5592_v30 }
 0x1b9   : > { %v3860_v47 = vpop.f32.mrb[35].mxu1 }
 0x1ba   : > { %v5563_v48 = vadd.f32 %v3860_v47, %v3859_v45  ;;  %2654 = vmatmul.mubr.bf16.gmra.mrb[28].mxu0 %v4772_v42 }
 0x1bb   : > { %3157 = vmatmul.mubr.bf16.gmra.mrb[140].mxu1 %v4772_v42  ;;  %2696 = vmatprep.mubr.bf16.mxu0 %v4983_v0 }
 0x1bc   : > { %4104 = vmatprep.mubr.bf16.mxu1 %v4774_v46 }
 0x1be   : > { %v3862_v49 = vpop.f32.mrb[36].mxu1 }
 0x1bf   : > { %v3863_v50 = vpop.f32.mrb[37].mxu1 }
 0x1c0   : > { %v5567_v52 = vadd.f32 %v3863_v50, %v3862_v49  ;;  %v3865_v54 = vpop.f32.mrb[38].mxu1  ;;  %v4797_v50 = vld [vmem:[%s5190_s27 + $0x218] ss:$36 sps:$4 sm:$0xff]  }
 0x1c1   : > { %v3866_v56 = vpop.f32.mrb[39].mxu1 }
 0x1c2   : > { %v5570_v57 = vadd.f32 %v3866_v56, %v3865_v54  ;;  %2697 = vmatmul.mubr.bf16.vlgmr.msra.gmra.mrb[0].mxu0 %v4774_v46  ;;  %v2815_v46 = vadd.f32 %v5534_v58, %v5592_v30 }
 0x1c3   : > { %4105 = vmatmul.mubr.bf16.vlgmr.msra.gmra.mrb[144].mxu1 %v4775_v51  ;;  %2706 = vmatprep.mubr.bf16.mxu0 %v4983_v0 }
 0x1c4   : > { %4108 = vmatprep.mubr.bf16.mxu1 %v4776_v55 }
 0x1c6   : > { %v3868_v59 = vpop.f32.mrb[40].mxu1 }
 0x1c7   : > { %v3869_v60 = vpop.f32.mrb[41].mxu1 }
 0x1c8   : > { %v5574_v63 = vadd.f32 %v3869_v60, %v3868_v59  ;;  %v3871_v1 = vpop.f32.mrb[42].mxu1  ;;  %v2823_v60 = vadd.f32 %v5545_v11, %v5592_v30 }
 0x1c9   : > { %v3872_v2 = vpop.f32.mrb[43].mxu1 }
 0x1ca   : > { %v5577_v4 = vadd.f32 %v3872_v2, %v3871_v1  ;;  %2707 = vmatmul.mubr.bf16.gmra.mrb[4].mxu0 %v4775_v51 }
 0x1cb   : > { %4109 = vmatmul.mubr.bf16.gmra.mrb[148].mxu1 %v4777_v61  ;;  %2716 = vmatprep.mubr.bf16.mxu0 %v4983_v0 }
 0x1cc   : > { %4112 = vmatprep.mubr.bf16.mxu1 %v4794_v8  ;;  %v2828_v8 = vadd.f32 %v5548_v20, %v5592_v30  ;;  %v2839_v20 = vadd.f32 %v5557_v37, %v5592_v30 }
 0x1ce   : > { %v3874_v10 = vpop.f32.mrb[44].mxu1 }
 0x1cf   : > { %v3875_v13 = vpop.f32.mrb[45].mxu1 }
 0x1d0   : > { %v5584_v17 = vadd.f32 %v3875_v13, %v3874_v10  ;;  %v3877_v21 = vpop.f32.mrb[46].mxu1 }
 0x1d1   : > { %v3878_v23 = vpop.f32.mrb[47].mxu1 }
 0x1d2   : > { %v5588_v26 = vadd.f32 %v3878_v23, %v3877_v21  ;;  %2717 = vmatmul.mubr.bf16.gmra.mrb[8].mxu0 %v4776_v55  ;;  %v2820_v55 = vadd.f32 %v5541_v3, %v5592_v30  ;;  %v2831_v3 = vadd.f32 %v5551_v24, %v5592_v30 }
 0x1d3   : > { %4113 = vmatmul.mubr.bf16.gmra.mrb[152].mxu1 %v4795_v28  ;;  %2726 = vmatprep.mubr.bf16.mxu0 %v4983_v0 }
 0x1d4   : > { %4116 = vmatprep.mubr.bf16.mxu1 %v4796_v33 }
 0x1d6   : > { %v3896_v34 = vpop.f32.mrb[48].mxu1 }
 0x1d7   : > { %v3897_v35 = vpop.f32.mrb[49].mxu1 }
 0x1d8   : > { %v3898_v40 = vadd.f32 %v3897_v35, %v3896_v34  ;;  %v3899_v42 = vpop.f32.mrb[50].mxu1  ;;  %v2836_v34 = vadd.f32 %v5554_v31, %v5592_v30  ;;  %v2847_v31 = vadd.f32 %v5563_v48, %v5592_v30 }
 0x1d9   : > { %v3900_v45 = vpop.f32.mrb[51].mxu1 }
 0x1da   : > { %v5600_v47 = vadd.f32 %v3898_v40, %v2812_v38  ;;  %v3901_v49 = vadd.f32 %v3900_v45, %v3899_v42  ;;  %2727 = vmatmul.mubr.bf16.gmra.mrb[12].mxu0 %v4777_v61 }
 0x1db   : > { %4117 = vmatmul.mubr.bf16.gmra.mrb[156].mxu1 %v4797_v50  ;;  %v2844_v50 = vadd.f32 %v5560_v44, %v5592_v30  ;;  %v2855_v44 = vadd.f32 %v5570_v57, %v5592_v30 }
 0x1dc   : > { %v5603_v0 = vadd.f32 %v3901_v49, %v2815_v46 }
 0x1de   : > { %v3902_v51 = vpop.f32.mrb[52].mxu1 }
 0x1df   : > { %v3903_v54 = vpop.f32.mrb[53].mxu1 }
 0x1e0   : > { %v3904_v53 = vadd.f32 %v3903_v54, %v3902_v51  ;;  %v3905_v56 = vpop.f32.mrb[54].mxu1 }
 0x1e1   : > { %v3906_v59 = vpop.f32.mrb[55].mxu1 }
 0x1e2   : > { %v5609_v58 = vadd.f32 %v3904_v53, %v2820_v55  ;;  %v3907_v62 = vadd.f32 %v3906_v59, %v3905_v56 }
 0x1e4   : > { %v5611_v1 = vadd.f32 %v3907_v62, %v2823_v60  ;;  %v2852_v62 = vadd.f32 %v5567_v52, %v5592_v30  ;;  %v2863_v52 = vadd.f32 %v5577_v4, %v5592_v30 }
 0x1e6   : > { %v3908_v61 = vpop.f32.mrb[56].mxu1 }
 0x1e7   : > { %v3909_v2 = vpop.f32.mrb[57].mxu1 }
 0x1e8   : > { %v3910_v10 = vadd.f32 %v3909_v2, %v3908_v61  ;;  %v3911_v13 = vpop.f32.mrb[58].mxu1 }
 0x1e9   : > { %v3912_v14 = vpop.f32.mrb[59].mxu1 }
 0x1ea   : > { %v5617_v21 = vadd.f32 %v3910_v10, %v2828_v8  ;;  %v3913_v23 = vadd.f32 %v3912_v14, %v3911_v13 }
 0x1ec   : > { %v5619_v11 = vadd.f32 %v3913_v23, %v2831_v3  ;;  %v2860_v23 = vadd.f32 %v5574_v63, %v5592_v30  ;;  %v2871_v63 = vadd.f32 %v5588_v26, %v5592_v30 }
 0x1ee   : > { %v3914_v28 = vpop.f32.mrb[60].mxu1 }
 0x1ef   : > { %v3915_v33 = vpop.f32.mrb[61].mxu1 }
 0x1f0   : > { %v3916_v35 = vadd.f32 %v3915_v33, %v3914_v28  ;;  %v3917_v38 = vpop.f32.mrb[62].mxu1 }
 0x1f1   : > { %v3918_v40 = vpop.f32.mrb[63].mxu1 }
 0x1f2   : > { %v5625_v42 = vadd.f32 %v3916_v35, %v2836_v34  ;;  %v3919_v45 = vadd.f32 %v3918_v40, %v3917_v38 }
 0x1f4   : > { %v5627_v24 = vadd.f32 %v3919_v45, %v2839_v20  ;;  %v2868_v45 = vadd.f32 %v5584_v17, %v5592_v30 }
 0x1f6   : > { %v3920_v46 = vpop.f32.mrb[64].mxu1 }
 0x1f7   : > { %v3921_v49 = vpop.f32.mrb[65].mxu1 }
 0x1f8   : > { %v3922_v51 = vadd.f32 %v3921_v49, %v3920_v46  ;;  %v3923_v54 = vpop.f32.mrb[66].mxu1 }
 0x1f9   : > { %v3924_v55 = vpop.f32.mrb[67].mxu1 }
 0x1fa   : > { %v5633_v53 = vadd.f32 %v3922_v51, %v2844_v50  ;;  %v3925_v56 = vadd.f32 %v3924_v55, %v3923_v54 }
 0x1fc   : > { %v5635_v37 = vadd.f32 %v3925_v56, %v2847_v31 }
 0x1fe   : > { %v3926_v59 = vpop.f32.mrb[68].mxu1 }
 0x1ff   : > { %v3927_v60 = vpop.f32.mrb[69].mxu1 }
 0x200   : > { %v3928_v61 = vadd.f32 %v3927_v60, %v3926_v59  ;;  %v3929_v2 = vpop.f32.mrb[70].mxu1 }
 0x201   : > { %v3930_v8 = vpop.f32.mrb[71].mxu1 }
 0x202   : > { %v5641_v10 = vadd.f32 %v3928_v61, %v2852_v62  ;;  %v3931_v13 = vadd.f32 %v3930_v8, %v3929_v2 }
 0x204   : > { %v5643_v48 = vadd.f32 %v3931_v13, %v2855_v44 }
 0x206   : > { %v3932_v14 = vpop.f32.mrb[72].mxu1 }
 0x207   : > { %v3933_v3 = vpop.f32.mrb[73].mxu1 }
 0x208   : > { %v3934_v28 = vadd.f32 %v3933_v3, %v3932_v14  ;;  %v3935_v33 = vpop.f32.mrb[74].mxu1 }
 0x209   : > { %v3936_v34 = vpop.f32.mrb[75].mxu1 }
 0x20a   : > { %v5649_v35 = vadd.f32 %v3934_v28, %v2860_v23  ;;  %v3937_v38 = vadd.f32 %v3936_v34, %v3935_v33 }
 0x20c   : > { %v5651_v57 = vadd.f32 %v3937_v38, %v2863_v52 }
 0x20e   : > { %v3938_v40 = vpop.f32.mrb[76].mxu1 }
 0x20f   : > { %v3939_v20 = vpop.f32.mrb[77].mxu1 }
 0x210   : > { %v3940_v46 = vadd.f32 %v3939_v20, %v3938_v40  ;;  %v3941_v49 = vpop.f32.mrb[78].mxu1 }
 0x211   : > { %v3942_v50 = vpop.f32.mrb[79].mxu1 }
 0x212   : > { %v5657_v51 = vadd.f32 %v3940_v46, %v2868_v45  ;;  %v3943_v54 = vadd.f32 %v3942_v50, %v3941_v49 }
 0x214   : > { %v5659_v4 = vadd.f32 %v3943_v54, %v2871_v63 }
 0x216   : > { %v3960_v55 = vpop.f32.mrb[80].mxu1 }
 0x217   : > { %v3961_v31 = vpop.f32.mrb[81].mxu1 }
 0x218   : > { %v3962_v56 = vadd.f32 %v3961_v31, %v3960_v55  ;;  %v3963_v59 = vpop.f32.mrb[82].mxu1 }
 0x219   : > { %v3964_v60 = vpop.f32.mrb[83].mxu1 }
 0x21a   : > { %v5662_v62 = vadd.f32 %v3962_v56, %v5600_v47  ;;  %v3965_v17 = vadd.f32 %v3964_v60, %v3963_v59 }
 0x21c   : > { %v5665_v61 = vadd.f32 %v3965_v17, %v5603_v0 }
 0x21e   : > { %v3966_v2 = vpop.f32.mrb[84].mxu1 }
 0x21f   : > { %v3967_v8 = vpop.f32.mrb[85].mxu1 }
 0x220   : > { %v3968_v26 = vadd.f32 %v3967_v8, %v3966_v2  ;;  %v3969_v30 = vpop.f32.mrb[86].mxu1 }
 0x221   : > { %v3970_v44 = vpop.f32.mrb[87].mxu1 }
 0x222   : > { %v5668_v13 = vadd.f32 %v3968_v26, %v5609_v58  ;;  %v3971_v14 = vadd.f32 %v3970_v44, %v3969_v30 }
 0x224   : > { %v5671_v3 = vadd.f32 %v3971_v14, %v5611_v1 }
 0x226   : > { %v3972_v23 = vpop.f32.mrb[88].mxu1 }
 0x227   : > { %v3973_v28 = vpop.f32.mrb[89].mxu1 }
 0x228   : > { %v3974_v47 = vadd.f32 %v3973_v28, %v3972_v23  ;;  %v3975_v33 = vpop.f32.mrb[90].mxu1 }
 0x229   : > { %v3976_v34 = vpop.f32.mrb[91].mxu1 }
 0x22a   : > { %v5674_v0 = vadd.f32 %v3974_v47, %v5617_v21  ;;  %v3977_v52 = vadd.f32 %v3976_v34, %v3975_v33 }
 0x22c   : > { %v5677_v38 = vadd.f32 %v3977_v52, %v5619_v11 }
 0x22e   : > { %v3978_v40 = vpop.f32.mrb[92].mxu1 }
 0x22f   : > { %v3979_v20 = vpop.f32.mrb[93].mxu1 }
 0x230   : > { %v3980_v58 = vadd.f32 %v3979_v20, %v3978_v40  ;;  %v3981_v45 = vpop.f32.mrb[94].mxu1 }
 0x231   : > { %v3982_v46 = vpop.f32.mrb[95].mxu1 }
 0x232   : > { %v5680_v1 = vadd.f32 %v3980_v58, %v5625_v42  ;;  %v3983_v49 = vadd.f32 %v3982_v46, %v3981_v45 }
 0x234   : > { %v5683_v50 = vadd.f32 %v3983_v49, %v5627_v24 }
 0x236   : > { %v3984_v63 = vpop.f32.mrb[96].mxu1 }
 0x237   : > { %v3985_v54 = vpop.f32.mrb[97].mxu1 }
 0x238   : > { %v3986_v21 = vadd.f32 %v3985_v54, %v3984_v63  ;;  %v3987_v55 = vpop.f32.mrb[98].mxu1 }
 0x239   : > { %v3988_v31 = vpop.f32.mrb[99].mxu1 }
 0x23a   : > { %v5686_v11 = vadd.f32 %v3986_v21, %v5633_v53  ;;  %v3989_v56 = vadd.f32 %v3988_v31, %v3987_v55 }
 0x23c   : > { %v5689_v59 = vadd.f32 %v3989_v56, %v5635_v37 }
 0x23e   : > { %v3990_v60 = vpop.f32.mrb[100].mxu1 }
 0x23f   : > { %v3991_v17 = vpop.f32.mrb[101].mxu1 }
 0x240   : > { %v3992_v42 = vadd.f32 %v3991_v17, %v3990_v60  ;;  %v3993_v2 = vpop.f32.mrb[102].mxu1 }
 0x241   : > { %v3994_v8 = vpop.f32.mrb[103].mxu1 }
 0x242   : > { %v5692_v24 = vadd.f32 %v3992_v42, %v5641_v10  ;;  %v3995_v26 = vadd.f32 %v3994_v8, %v3993_v2 }
 0x244   : > { %v5695_v30 = vadd.f32 %v3995_v26, %v5643_v48 }
 0x246   : > { %v3996_v44 = vpop.f32.mrb[104].mxu1 }
 0x247   : > { %v3997_v14 = vpop.f32.mrb[105].mxu1 }
 0x248   : > { %v3998_v53 = vadd.f32 %v3997_v14, %v3996_v44  ;;  %v3999_v23 = vpop.f32.mrb[106].mxu1 }
 0x249   : > { %v4000_v28 = vpop.f32.mrb[107].mxu1 }
 0x24a   : > { %v5698_v37 = vadd.f32 %v3998_v53, %v5649_v35  ;;  %v4001_v47 = vadd.f32 %v4000_v28, %v3999_v23 }
 0x24c   : > { %v5701_v33 = vadd.f32 %v4001_v47, %v5651_v57 }
 0x24e   : > { %v4002_v34 = vpop.f32.mrb[108].mxu1 }
 0x24f   : > { %v4003_v52 = vpop.f32.mrb[109].mxu1 }
 0x250   : > { %v4004_v10 = vadd.f32 %v4003_v52, %v4002_v34  ;;  %v4005_v40 = vpop.f32.mrb[110].mxu1  ;;  %v683_v52 = vsub.s32 1, %v5579_v5 }
 0x251   : > { %v4006_v20 = vpop.f32.mrb[111].mxu1 }
 0x252   : > { %v5704_v48 = vadd.f32 %v4004_v10, %v5657_v51  ;;  %v4007_v58 = vadd.f32 %v4006_v20, %v4005_v40 }
 0x254   : > { %v5707_v45 = vadd.f32 %v4007_v58, %v5659_v4 }
 0x256   : > { %v4024_v46 = vpop.f32.mrb[112].mxu1 }
 0x257   : > { %v4025_v49 = vpop.f32.mrb[113].mxu1 }
 0x258   : > { %v4026_v35 = vadd.f32 %v4025_v49, %v4024_v46  ;;  %v4027_v63 = vpop.f32.mrb[114].mxu1 }
 0x259   : > { %v4028_v54 = vpop.f32.mrb[115].mxu1 }
 0x25a   : > { %v4029_v21 = vadd.f32 %v4028_v54, %v4027_v63  ;;  %v5710_v57 = vadd.f32 %v4026_v35, %v5662_v62 }
 0x25c   : > { %v5713_v55 = vadd.f32 %v4029_v21, %v5665_v61 }
 0x25e   : > { %v4030_v31 = vpop.f32.mrb[116].mxu1 }
 0x25f   : > { %v4031_v56 = vpop.f32.mrb[117].mxu1 }
 0x260   : > { %v4032_v51 = vadd.f32 %v4031_v56, %v4030_v31  ;;  %v4033_v60 = vpop.f32.mrb[118].mxu1 }
 0x261   : > { %v4034_v17 = vpop.f32.mrb[119].mxu1 }
 0x262   : > { %v4035_v42 = vadd.f32 %v4034_v17, %v4033_v60  ;;  %v5716_v4 = vadd.f32 %v4032_v51, %v5668_v13  ;;  %v679_v13 = vsub.s32 0, %v5579_v5 }
 0x264   : > { %v5719_v2 = vadd.f32 %v4035_v42, %v5671_v3  ;;  %v5733_v58 = vrot.slane %v5586_v22, %v679_v13 }
 0x266   : > { %v4036_v8 = vpop.f32.mrb[120].mxu1 }
 0x267   : > { %v4037_v26 = vpop.f32.mrb[121].mxu1 }
 0x268   : > { %v4038_v44 = vadd.f32 %v4037_v26, %v4036_v8  ;;  %v4039_v62 = vpop.f32.mrb[122].mxu1 }
 0x269   : > { %v4040_v14 = vpop.f32.mrb[123].mxu1 }
 0x26a   : > { %v4041_v61 = vadd.f32 %v4040_v14, %v4039_v62  ;;  %v5722_v53 = vadd.f32 %v4038_v44, %v5674_v0  ;;  %v5736_v0 = vrot.slane %v5586_v22, %v683_v52 }
 0x26c   : > { %v5725_v23 = vadd.f32 %v4041_v61, %v5677_v38 }
 0x26e   : > { %v4042_v28 = vpop.f32.mrb[124].mxu1 }
 0x26f   : > { %v4043_v47 = vpop.f32.mrb[125].mxu1 }
 0x270   : > { %v4044_v34 = vadd.f32 %v4043_v47, %v4042_v28  ;;  %v4045_v3 = vpop.f32.mrb[126].mxu1 }
 0x271   : > { %v4046_v10 = vpop.f32.mrb[127].mxu1 }
 0x272   : > { %v4047_v40 = vadd.f32 %v4046_v10, %v4045_v3  ;;  %v5730_v20 = vadd.f32 %v4044_v34, %v5680_v1 }
 0x274   : > { %v5739_v38 = vadd.f32 %v4047_v40, %v5683_v50 }
 0x275   : > { %v2625_v46 = vpop.f32.mrb[16].mxu0 }
 0x276   : > { %v4048_v49 = vpop.f32.mrb[128].mxu1  ;;  %v4152_v35 = vadd.f32 %v2625_v46, %v5733_v58  ;;  %v2627_v5 = vpop.f32.mrb[17].mxu0 }
 0x277   : > { %v4049_v63 = vpop.f32.mrb[129].mxu1  ;;  %v4154_v54 = vadd.f32 %v2627_v5, %v5736_v0  ;;  %v2629_v21 = vpop.f32.mrb[18].mxu0 }
 0x278   : > { %v4050_v1 = vadd.f32 %v4049_v63, %v4048_v49  ;;  %v4051_v31 = vpop.f32.mrb[130].mxu1  ;;  %v4153_v56 = vadd.f32 %v4152_v35, %v5468_v6  ;;  %v4156_v22 = vadd.f32 %v2629_v21, %v5733_v58  ;;  %v2631_v51 = vpop.f32.mrb[19].mxu0 }
 0x279   : > { %v4052_v60 = vpop.f32.mrb[131].mxu1  ;;  %v4155_v50 = vadd.f32 %v4154_v54, %v5470_v7  ;;  %v4158_v17 = vadd.f32 %v2631_v51, %v5736_v0 }
 0x27a   : > { %v4053_v42 = vadd.f32 %v4052_v60, %v4051_v31  ;;  %v5749_v8 = vadd.f32 %v4050_v1, %v5686_v11  ;;  %v3286_v26 = vmax.f32 %v4153_v56, 0.0  ;;  %v4157_v44 = vadd.f32 %v4156_v22, %v5473_v9 }
 0x27b   : > { %v3287_v62 = vmax.f32 %v4155_v50, 0.0  ;;  %v4159_v14 = vadd.f32 %v4158_v17, %v5477_v12 }
 0x27c   : > { %v5754_v6 = vadd.f32 %v4053_v42, %v5689_v59  ;;  %3334 = vst [vmem:[%s5756_s19 + $0xc0] sm:$0xff] %v3286_v26  ;;  %v3289_v7 = vmax.f32 %v4157_v44, 0.0 }
 0x27d   : > { %3335 = vst [vmem:[%s5756_s19 + $0xc8] sm:$0xff] %v3287_v62  ;;  %v3290_v11 = vmax.f32 %v4159_v14, 0.0  ;;  %v2635_v61 = vpop.f32.mrb[20].mxu0 }
 0x27e   : > { %v4054_v28 = vpop.f32.mrb[132].mxu1  ;;  %3337 = vst [vmem:[%s5756_s19 + $0xd8] sm:$0xff] %v3289_v7  ;;  %v4160_v9 = vadd.f32 %v2635_v61, %v5733_v58  ;;  %v2637_v47 = vpop.f32.mrb[21].mxu0 }
 0x27f   : > { %v4055_v12 = vpop.f32.mrb[133].mxu1  ;;  %3338 = vst [vmem:[%s5756_s19 + $0xe0] sm:$0xff] %v3290_v11  ;;  %v4162_v59 = vadd.f32 %v2637_v47, %v5736_v0  ;;  %v2639_v34 = vpop.f32.mrb[22].mxu0 }
 0x280   : > { %v4056_v13 = vadd.f32 %v4055_v12, %v4054_v28  ;;  %v4057_v3 = vpop.f32.mrb[134].mxu1  ;;  %v4161_v52 = vadd.f32 %v4160_v9, %v5481_v15  ;;  %v4164_v10 = vadd.f32 %v2639_v34, %v5733_v58  ;;  %v2641_v40 = vpop.f32.mrb[23].mxu0 }
 0x281   : > { %v4058_v46 = vpop.f32.mrb[135].mxu1  ;;  %v4163_v49 = vadd.f32 %v4162_v59, %v5483_v16  ;;  %v4166_v35 = vadd.f32 %v2641_v40, %v5736_v0 }
 0x282   : > { %v4059_v5 = vadd.f32 %v4058_v46, %v4057_v3  ;;  %v5769_v63 = vadd.f32 %v4056_v13, %v5692_v24  ;;  %v3292_v54 = vmax.f32 %v4161_v52, 0.0  ;;  %v4165_v1 = vadd.f32 %v4164_v10, %v5486_v18 }
 0x283   : > { %v3293_v21 = vmax.f32 %v4163_v49, 0.0  ;;  %v4167_v15 = vadd.f32 %v4166_v35, %v5488_v19 }
 0x284   : > { %v5774_v31 = vadd.f32 %v4059_v5, %v5695_v30  ;;  %3340 = vst [vmem:[%s5756_s19 + $0xf0] sm:$0xff] %v3292_v54  ;;  %v3295_v56 = vmax.f32 %v4165_v1, 0.0 }
 0x285   : > { %3341 = vst [vmem:[%s5756_s19 + $0xf8] sm:$0xff] %v3293_v21  ;;  %v3296_v16 = vmax.f32 %v4167_v15, 0.0  ;;  %v2645_v22 = vpop.f32.mrb[24].mxu0 }
 0x286   : > { %v4060_v51 = vpop.f32.mrb[136].mxu1  ;;  %3343 = vst [vmem:[%s5756_s19 + $0x108] sm:$0xff] %v3295_v56  ;;  %v4168_v24 = vadd.f32 %v2645_v22, %v5733_v58  ;;  %v2647_v60 = vpop.f32.mrb[25].mxu0 }
 0x287   : > { %v4061_v50 = vpop.f32.mrb[137].mxu1  ;;  %3344 = vst [vmem:[%s5756_s19 + $0x110] sm:$0xff] %v3296_v16  ;;  %v4170_v18 = vadd.f32 %v2647_v60, %v5736_v0  ;;  %v2649_v19 = vpop.f32.mrb[26].mxu0 }
 0x288   : > { %v4062_v17 = vadd.f32 %v4061_v50, %v4060_v51  ;;  %v4063_v42 = vpop.f32.mrb[138].mxu1  ;;  %v4169_v30 = vadd.f32 %v4168_v24, %v5496_v25  ;;  %v4172_v26 = vadd.f32 %v2649_v19, %v5733_v58  ;;  %v2651_v44 = vpop.f32.mrb[27].mxu0 }
 0x289   : > { %v4064_v62 = vpop.f32.mrb[139].mxu1  ;;  %v4171_v14 = vadd.f32 %v4170_v18, %v5499_v27  ;;  %v4174_v7 = vadd.f32 %v2651_v44, %v5736_v0 }
 0x28a   : > { %v4065_v11 = vadd.f32 %v4064_v62, %v4063_v42  ;;  %v5787_v61 = vadd.f32 %v4062_v17, %v5698_v37  ;;  %v3298_v28 = vmax.f32 %v4169_v30, 0.0  ;;  %v4173_v9 = vadd.f32 %v4172_v26, %v5502_v29 }
 0x28b   : > { %v3299_v47 = vmax.f32 %v4171_v14, 0.0  ;;  %v4175_v25 = vadd.f32 %v4174_v7, %v5506_v32 }
 0x28c   : > { %v5792_v12 = vadd.f32 %v4065_v11, %v5701_v33  ;;  %3346 = vst [vmem:[%s5756_s19 + $0x120] sm:$0xff] %v3298_v28  ;;  %v3301_v59 = vmax.f32 %v4173_v9, 0.0 }
 0x28d   : > { %3347 = vst [vmem:[%s5756_s19 + $0x128] sm:$0xff] %v3299_v47  ;;  %v3302_v27 = vmax.f32 %v4175_v25, 0.0  ;;  %v2655_v13 = vpop.f32.mrb[28].mxu0 }
 0x28e   : > { %v4066_v34 = vpop.f32.mrb[140].mxu1  ;;  %3349 = vst [vmem:[%s5756_s19 + $0x138] sm:$0xff] %v3301_v59  ;;  %v4176_v37 = vadd.f32 %v2655_v13, %v5733_v58  ;;  %v2657_v3 = vpop.f32.mrb[29].mxu0 }
 0x28f   : > { %v4067_v52 = vpop.f32.mrb[141].mxu1  ;;  %3350 = vst [vmem:[%s5756_s19 + $0x140] sm:$0xff] %v3302_v27  ;;  %v4178_v29 = vadd.f32 %v2657_v3, %v5736_v0  ;;  %v2659_v32 = vpop.f32.mrb[30].mxu0 }
 0x290   : > { %v4068_v10 = vadd.f32 %v4067_v52, %v4066_v34  ;;  %v4069_v40 = vpop.f32.mrb[142].mxu1  ;;  %v4177_v33 = vadd.f32 %v4176_v37, %v5511_v36  ;;  %v4180_v46 = vadd.f32 %v2659_v32, %v5733_v58  ;;  %v2661_v49 = vpop.f32.mrb[31].mxu0 }
 0x291   : > { %v4070_v35 = vpop.f32.mrb[143].mxu1  ;;  %v4179_v5 = vadd.f32 %v4178_v29, %v5515_v39  ;;  %v4182_v54 = vadd.f32 %v2661_v49, %v5736_v0 }
 0x292   : > { %v4071_v1 = vadd.f32 %v4070_v35, %v4069_v40  ;;  %v5805_v21 = vadd.f32 %v4068_v10, %v5704_v48  ;;  %v3304_v15 = vmax.f32 %v4177_v33, 0.0  ;;  %v4181_v56 = vadd.f32 %v4180_v46, %v5518_v41 }
 0x293   : > { %v3305_v16 = vmax.f32 %v4179_v5, 0.0  ;;  %v4183_v36 = vadd.f32 %v4182_v54, %v5521_v43 }
 0x294   : > { %v5810_v22 = vadd.f32 %v4071_v1, %v5707_v45  ;;  %3352 = vst [vmem:[%s5756_s19 + $0x150] sm:$0xff] %v3304_v15  ;;  %v3307_v51 = vmax.f32 %v4181_v56, 0.0 }
 0x295   : > { %3353 = vst [vmem:[%s5756_s19 + $0x158] sm:$0xff] %v3305_v16  ;;  %v3308_v39 = vmax.f32 %v4183_v36, 0.0  ;;  %v2698_v24 = vpop.f32.mrb[0].mxu0 }
 0x296   : > { %v4106_v60 = vpop.f32.mrb[144].mxu1  ;;  %3355 = vst [vmem:[%s5756_s19 + $0x168] sm:$0xff] %v3307_v51  ;;  %v4136_v48 = vadd.f32 %v2698_v24, %v5733_v58  ;;  %v2700_v18 = vpop.f32.mrb[1].mxu0 }
 0x297   : > { %v3208_v50 = vadd.f32 %v4106_v60, %v5716_v4  ;;  %v3199_v17 = vpop.f32.mrb[145].mxu1  ;;  %3356 = vst [vmem:[%s5756_s19 + $0x170] sm:$0xff] %v3308_v39  ;;  %v4137_v41 = vadd.f32 %v2700_v18, %v5736_v0  ;;  %v2702_v45 = vpop.f32.mrb[2].mxu0 }
 0x298   : > { %v3200_v43 = vadd.f32 %v3199_v17, %v5710_v57  ;;  %v4107_v19 = vpop.f32.mrb[146].mxu1  ;;  %v3262_v42 = vmax.f32 %v4136_v48, 0.0  ;;  %v4138_v26 = vadd.f32 %v2702_v45, %v5733_v58  ;;  %v2704_v44 = vpop.f32.mrb[3].mxu0 }
 0x299   : > { %v3270_v30 = vmax.f32 %v3208_v50, 0.0  ;;  %v3211_v4 = vadd.f32 %v4107_v19, %v5719_v2  ;;  %v3202_v62 = vpop.f32.mrb[147].mxu1  ;;  %v3263_v14 = vmax.f32 %v4137_v41, 0.0  ;;  %v4139_v57 = vadd.f32 %v2704_v44, %v5736_v0 }
 0x29a   : > { %v3264_v7 = vmax.f32 %v3200_v43, 0.0  ;;  %v3203_v11 = vadd.f32 %v3202_v62, %v5713_v55  ;;  %3310 = vst [vmem:[%s5756_s19] sm:$0xff] %v3262_v42  ;;  %v3265_v28 = vmax.f32 %v4138_v26, 0.0 }
 0x29b   : > { %3318 = vst [vmem:[%s5756_s19 + $0x40] sm:$0xff] %v3270_v30  ;;  %v3273_v9 = vmax.f32 %v3211_v4, 0.0  ;;  %3311 = vst [vmem:[%s5756_s19 + $0x8] sm:$0xff] %v3263_v14  ;;  %v3266_v47 = vmax.f32 %v4139_v57, 0.0 }
 0x29c   : > { %3312 = vst [vmem:[%s5756_s19 + $0x10] sm:$0xff] %v3264_v7  ;;  %v3267_v25 = vmax.f32 %v3203_v11, 0.0  ;;  %3313 = vst [vmem:[%s5756_s19 + $0x18] sm:$0xff] %v3265_v28 }
 0x29d   : > { %3321 = vst [vmem:[%s5756_s19 + $0x58] sm:$0xff] %v3273_v9  ;;  %3314 = vst [vmem:[%s5756_s19 + $0x20] sm:$0xff] %v3266_v47  ;;  %v2708_v2 = vpop.f32.mrb[4].mxu0 }
 0x29e   : > { %3315 = vst [vmem:[%s5756_s19 + $0x28] sm:$0xff] %v3267_v25  ;;  %v4110_v59 = vpop.f32.mrb[148].mxu1  ;;  %v4140_v27 = vadd.f32 %v2708_v2, %v5733_v58  ;;  %v2710_v34 = vpop.f32.mrb[5].mxu0 }
 0x29f   : > { %v3224_v13 = vadd.f32 %v4110_v59, %v5730_v20  ;;  %v3215_v55 = vpop.f32.mrb[149].mxu1  ;;  %v4141_v37 = vadd.f32 %v2710_v34, %v5736_v0  ;;  %v2712_v52 = vpop.f32.mrb[6].mxu0 }
 0x2a0   : > { %v3216_v3 = vadd.f32 %v3215_v55, %v5722_v53  ;;  %v4111_v29 = vpop.f32.mrb[150].mxu1  ;;  %v3268_v10 = vmax.f32 %v4140_v27, 0.0  ;;  %v4142_v40 = vadd.f32 %v2712_v52, %v5733_v58  ;;  %v2714_v20 = vpop.f32.mrb[7].mxu0 }
 0x2a1   : > { %v3282_v32 = vmax.f32 %v3224_v13, 0.0  ;;  %v3227_v33 = vadd.f32 %v4111_v29, %v5739_v38  ;;  %v3218_v46 = vpop.f32.mrb[151].mxu1  ;;  %v3269_v49 = vmax.f32 %v4141_v37, 0.0  ;;  %v4143_v53 = vadd.f32 %v2714_v20, %v5736_v0 }
 0x2a2   : > { %v3276_v35 = vmax.f32 %v3216_v3, 0.0  ;;  %v3219_v5 = vadd.f32 %v3218_v46, %v5725_v23  ;;  %3316 = vst [vmem:[%s5756_s19 + $0x30] sm:$0xff] %v3268_v10  ;;  %v3271_v54 = vmax.f32 %v4142_v40, 0.0 }
 0x2a3   : > { %3330 = vst [vmem:[%s5756_s19 + $0xa0] sm:$0xff] %v3282_v32  ;;  %v3285_v1 = vmax.f32 %v3227_v33, 0.0  ;;  %3317 = vst [vmem:[%s5756_s19 + $0x38] sm:$0xff] %v3269_v49  ;;  %v3272_v15 = vmax.f32 %v4143_v53, 0.0 }
 0x2a4   : > { %3324 = vst [vmem:[%s5756_s19 + $0x70] sm:$0xff] %v3276_v35  ;;  %v3279_v56 = vmax.f32 %v3219_v5, 0.0  ;;  %3319 = vst [vmem:[%s5756_s19 + $0x48] sm:$0xff] %v3271_v54 }
 0x2a5   : > { %3333 = vst [vmem:[%s5756_s19 + $0xb8] sm:$0xff] %v3285_v1  ;;  %3320 = vst [vmem:[%s5756_s19 + $0x50] sm:$0xff] %v3272_v15  ;;  %v2718_v38 = vpop.f32.mrb[8].mxu0 }
 0x2a6   : > { %3327 = vst [vmem:[%s5756_s19 + $0x88] sm:$0xff] %v3279_v56  ;;  %v4114_v16 = vpop.f32.mrb[152].mxu1  ;;  %v4144_v36 = vadd.f32 %v2718_v38, %v5733_v58  ;;  %v2720_v39 = vpop.f32.mrb[9].mxu0 }
 0x2a7   : > { %v3240_v51 = vadd.f32 %v4114_v16, %v5769_v63  ;;  %v3231_v23 = vpop.f32.mrb[153].mxu1  ;;  %v4145_v24 = vadd.f32 %v2720_v39, %v5736_v0  ;;  %v2722_v48 = vpop.f32.mrb[10].mxu0 }
 0x2a8   : > { %v3232_v60 = vadd.f32 %v3231_v23, %v5749_v8  ;;  %v4115_v50 = vpop.f32.mrb[154].mxu1  ;;  %v3274_v18 = vmax.f32 %v4144_v36, 0.0  ;;  %v4146_v41 = vadd.f32 %v2722_v48, %v5733_v58  ;;  %v2724_v63 = vpop.f32.mrb[11].mxu0 }
 0x2a9   : > { %v3294_v17 = vmax.f32 %v3240_v51, 0.0  ;;  %v3243_v43 = vadd.f32 %v4115_v50, %v5774_v31  ;;  %v3234_v45 = vpop.f32.mrb[155].mxu1  ;;  %v3275_v19 = vmax.f32 %v4145_v24, 0.0  ;;  %v4147_v8 = vadd.f32 %v2724_v63, %v5736_v0 }
 0x2aa   : > { %v3288_v42 = vmax.f32 %v3232_v60, 0.0  ;;  %v3235_v30 = vadd.f32 %v3234_v45, %v5754_v6  ;;  %3322 = vst [vmem:[%s5756_s19 + $0x60] sm:$0xff] %v3274_v18  ;;  %v3277_v26 = vmax.f32 %v4146_v41, 0.0 }
 0x2ab   : > { %3342 = vst [vmem:[%s5756_s19 + $0x100] sm:$0xff] %v3294_v17  ;;  %v3297_v4 = vmax.f32 %v3243_v43, 0.0  ;;  %3323 = vst [vmem:[%s5756_s19 + $0x68] sm:$0xff] %v3275_v19  ;;  %v3278_v44 = vmax.f32 %v4147_v8, 0.0 }
 0x2ac   : > { %3336 = vst [vmem:[%s5756_s19 + $0xd0] sm:$0xff] %v3288_v42  ;;  %v3291_v31 = vmax.f32 %v3235_v30, 0.0  ;;  %3325 = vst [vmem:[%s5756_s19 + $0x78] sm:$0xff] %v3277_v26 }
 0x2ad   : > { %3345 = vst [vmem:[%s5756_s19 + $0x118] sm:$0xff] %v3297_v4  ;;  %3326 = vst [vmem:[%s5756_s19 + $0x80] sm:$0xff] %v3278_v44  ;;  %v2728_v62 = vpop.f32.mrb[12].mxu0 }
 0x2ae   : > { %3339 = vst [vmem:[%s5756_s19 + $0xe8] sm:$0xff] %v3291_v31  ;;  %v4118_v14 = vpop.f32.mrb[156].mxu1  ;;  %v4148_v7 = vadd.f32 %v2728_v62, %v5733_v58  ;;  %v2730_v57 = vpop.f32.mrb[13].mxu0 }
 0x2af   : > { %v3256_v6 = vadd.f32 %v4118_v14, %v5805_v21  ;;  %v3247_v11 = vpop.f32.mrb[157].mxu1  ;;  %v4149_v28 = vadd.f32 %v2730_v57, %v5736_v0  ;;  %v2732_v47 = vpop.f32.mrb[14].mxu0 }
 0x2b0   : > { %v3248_v9 = vadd.f32 %v3247_v11, %v5787_v61  ;;  %v4119_v25 = vpop.f32.mrb[158].mxu1  ;;  %v3280_v2 = vmax.f32 %v4148_v7, 0.0  ;;  %v4150_v27 = vadd.f32 %v2732_v47, %v5733_v58  ;;  %v2734_v21 = vpop.f32.mrb[15].mxu0 }
 0x2b1   : > { %v3306_v59 = vmax.f32 %v3256_v6, 0.0  ;;  %v3259_v13 = vadd.f32 %v4119_v25, %v5810_v22  ;;  %v3250_v34 = vpop.f32.mrb[159].mxu1  ;;  %v3281_v55 = vmax.f32 %v4149_v28, 0.0  ;;  %v4151_v61 = vadd.f32 %v2734_v21, %v5736_v0 }
 0x2b2   : > { %v3300_v37 = vmax.f32 %v3248_v9, 0.0  ;;  %v3251_v3 = vadd.f32 %v3250_v34, %v5792_v12  ;;  %3328 = vst [vmem:[%s5756_s19 + $0x90] sm:$0xff] %v3280_v2  ;;  %v3283_v58 = vmax.f32 %v4150_v27, 0.0 }
 0x2b3   : > { %3354 = vst [vmem:[%s5756_s19 + $0x160] sm:$0xff] %v3306_v59  ;;  %v3309_v22 = vmax.f32 %v3259_v13, 0.0  ;;  %3329 = vst [vmem:[%s5756_s19 + $0x98] sm:$0xff] %v3281_v55  ;;  %v3284_v0 = vmax.f32 %v4151_v61, 0.0 }
 0x2b4   : > { %3348 = vst [vmem:[%s5756_s19 + $0x130] sm:$0xff] %v3300_v37  ;;  %v3303_v52 = vmax.f32 %v3251_v3, 0.0  ;;  %3331 = vst [vmem:[%s5756_s19 + $0xa8] sm:$0xff] %v3283_v58 }
 0x2b5   : > { %3357 = vst [vmem:[%s5756_s19 + $0x178] sm:$0xff] %v3309_v22  ;;  %3332 = vst [vmem:[%s5756_s19 + $0xb0] sm:$0xff] %v3284_v0 }
 0x2b6   : > { %3351 = vst [vmem:[%s5756_s19 + $0x148] sm:$0xff] %v3303_v52 }
 0x2b7   : > { %4901 = shalt.err (!%p4898_p12)
}
 0x2b8   : > { %s4902_s7 = scalar_lea.hbm %s5877_s5, 6144  ;;  %s4906_s20 = scalar_lea.hbm %s5938_s3, 24576 }
 0x2b9   : > { %p4903_p8 = scmp.ne.s32.totalorder %s5877_s5, %s4902_s7  ;;  %p4907_p4 = scmp.lt.u32.totalorder %s5877_s5, %s5938_s3 }
 0x2ba   : > { %p4908_p0 = scmp.lt.u32.totalorder %s4906_s20, %s4902_s7  ;;  %p4910_p13 = scmp.lt.u32.totalorder %s4902_s7, %s5877_s5 }
 0x2bb   : > { %p4904_p7 = pnand %p4903_p8, %p5966_p5 }
 0x2bc   : > { %p4909_p1 = por %p4908_p0, %p4907_p4 }
 0x2bd   : > { %p4905_p2 = pneg %p4904_p7 }
 0x2be   : > { %p4911_p3 = por %p4910_p13, %p4909_p1 }
 0x2c0   : > { %p4912_p6 = pnand %p4911_p3, %p4905_p2 }
 0x2c2   : > { %4915 = shalt.err (!%p4912_p6)
}
 0x2c3   : > { %s4985_s0 = smov 384   ;;  %s4986_s4 = smov 1536  }
 0x2c4   : > { %s4987_s11 = smov 24  }
 0x2c5   : > { %4312 = dma.vmem_to_hbm [thread:$0]  (%p5966_p5), %s5881_s6, 6144, %s5877_s5, %s3359_s29, %s4985_s0, %s4986_s4, %s4987_s11  }
 0x2c6 PF: > { %s5967_s21 = sld [smem:[#allocation12_spill]]  ;;  %s5968_s18 = sld [smem:[#allocation16_spill]] }
 0x2c7   : > { %p4329_p9 = scmp.ge.s32.totalorder %s4974_s17, 2 }
 0x2cc   : > { %s3391_s24 = sand.u32 1, %s5967_s21   ;;  %p5969_p11 = scmp.ne.s32.totalorder %s5968_s18, 0 }
 0x2cd   : > { %s3392_s30 = scalar_lea.sflag [#allocation4], %s3391_s24 }
 0x2ce   : > { %p4325_p10 = pnand %p4329_p9, %p5969_p11 }
 0x2d0   : > { %4949 = dma.done.wait (!%p4325_p10), %s3392_s30, 6144  }
 0x2d1   : > { %4951 = vsyncadd (!%p4325_p10), %s3392_s30, 4294961152  ;;  %s22_s17 = sadd.s32 1, %s4974_s17   ;;  %s5970_s19 = sld [smem:[#allocation13_spill]] }
 0x2d2   : > { %p19_p12 = scmp.ge.s32.totalorder %s22_s17, 6   ;;  %s5971_s14 = sld [smem:[#allocation15_spill]] }
 0x2d3   : > { %s5972_s25 = sld [smem:[#allocation14_spill]]  ;;  %s5973_s12 = smov %s4958_s13 }
 0x2d4   : > { %s5975_s15 = smov %s4970_s16  ;;  %21 = sbr.rel (!%p19_p12) target bundleno = 11 (0xb), region = 101 }
 0x2d7   : > { %s5974_s13 = smov %s5970_s19 }
 0x2d9   : > { %s5976_s16 = smov %s5972_s25 }
 0x2db   :  { %3397 = vsyncpa [#allocation3], 1 }
 0x2dc   :  { %3399 = vsyncpa [#allocation3 + $0x1], 1 }
 0x2dd   :  { %3400 = vsyncpa [#allocation6], 1 }
 0x2de   :  { %3402 = vsyncpa [#allocation6 + $0x1], 1 }
 0x2df   :  { %3403 = vsyncpa [#allocation4], 1 }
 0x2e0   :  { %3405 = vsyncpa [#allocation4 + $0x1], 1 }

// kernel: inception_e.4
= control target key start
LH: loop header
LB: loop body
LE: loop exit
PB: predicated region body
PF: predicated region fallthrough
CT: control target
= control target key end

     0   :  { %8 = vsyncpa [#allocation3], 0  ;;  %s15845_s0 = inlined_call_operand.hbm [shape: bf16[1,128,4032], index: 0, kind: input, shape index: {}]   ;;  %s15846_s1 = inlined_call_operand.hbm [shape: bf16[1,4032,384], index: 1, kind: input, shape index: {}]   ;;  %s15847_s2 = inlined_call_operand.hbm [shape: f32[1,1,384], index: 2, kind: input, shape index: {}]   ;;  %s15848_s3 = inlined_call_operand.hbm [shape: bf16[128,384], index: 3, kind: output, shape index: {}]  }
   0x1   :  { %9 = vsyncpa [#allocation6], 0 }
   0x2   :  { %10 = vsyncpa [#allocation4], 0  ;;  %s13965_s12 = smov [#allocation5]   ;;  %s13871_s16 = scalar_lea.hbm %s15846_s1, 96768 }
   0x3   :  { %s28_s13 = sshll.u32 %s13965_s12, 4  ;;  %p13872_p0 = scmp.ne.s32.totalorder %s15846_s1, %s13871_s16  ;;  %s29_s13 = int_to_ptr.vmem [resolvable:$true] %s28_s13 }
   0x4   :  { %p13875_p1 = scmp.lt.u32.totalorder %s13871_s16, %s15846_s1 }
   0x6   :  { %p13877_p2 = pnand %p13875_p1, %p13872_p0 }
   0x8   :  { %13880 = shalt.err (!%p13877_p2)
}
   0x9   :  { %s13881_s21 = scalar_lea.vmem %s29_s13, 96768  ;;  %p13886_p4 = scmp.lt.s32.totalorder %s29_s13, %s29_s13 }
   0xa   :  { %p13882_p3 = scmp.ne.s32.totalorder %s29_s13, %s13881_s21  ;;  %p13887_p5 = scmp.lt.s32.totalorder %s13881_s21, %s13881_s21 }
   0xc   :  { %p13888_p6 = por %p13887_p5, %p13886_p4 }
   0xe   :  { %p13889_p7 = pnand %p13888_p6, %p13882_p3 }
  0x10   :  { %13892 = shalt.err (!%p13889_p7)
}
  0x11   :  { %s13966_s22 = smov 192   ;;  %s13967_s23 = smov 12  }
  0x12   :  { %34 = dma.hbm_to_vmem [thread:$0]  %s15846_s1, 96768, %s29_s13, [#allocation6], %s13966_s22, %s13966_s22, %s13967_s23  }
  0x13   :  { %s13968_s26 = smov [#allocation2]   ;;  %s13893_s30 = scalar_lea.hbm %s15845_s0, 32768 }
  0x14   :  { %s16_s27 = sshll.u32 %s13968_s26, 4  ;;  %p13894_p8 = scmp.ne.s32.totalorder %s15845_s0, %s13893_s30  ;;  %s17_s27 = int_to_ptr.vmem [resolvable:$true] %s16_s27 }
  0x15   :  { %p13897_p9 = scmp.lt.u32.totalorder %s13893_s30, %s15845_s0 }
  0x17   :  { %p13899_p10 = pnand %p13897_p9, %p13894_p8 }
  0x19   :  { %13902 = shalt.err (!%p13899_p10)
}
  0x1a   :  { %s13903_s8 = scalar_lea.vmem %s17_s27, 32768  ;;  %p13908_p12 = scmp.lt.s32.totalorder %s17_s27, %s17_s27 }
  0x1b   :  { %p13904_p11 = scmp.ne.s32.totalorder %s17_s27, %s13903_s8  ;;  %p13909_p13 = scmp.lt.s32.totalorder %s13903_s8, %s13903_s8 }
  0x1d   :  { %p13910_p0 = por %p13909_p13, %p13908_p12 }
  0x1f   :  { %p13911_p1 = pnand %p13910_p0, %p13904_p11 }
  0x21   :  { %13914 = shalt.err (!%p13911_p1)
}
  0x22   :  { %s13969_s1 = smov 2048   ;;  %s13970_s9 = smov 128  }
  0x23   :  { %22 = dma.hbm_to_vmem [thread:$0]  %s15845_s0, 32768, %s17_s27, [#allocation3], %s13969_s1, %s13969_s1, %s13970_s9  }
  0x24   :  { %s13971_s12 = smov [#allocation7]   ;;  %s13915_s16 = scalar_lea.hbm %s15847_s2, 48 }
  0x25   :  { %s41_s13 = sshll.u32 %s13971_s12, 4  ;;  %p13916_p2 = scmp.ne.s32.totalorder %s15847_s2, %s13915_s16  ;;  %s42_s13 = int_to_ptr.vmem [resolvable:$true] %s41_s13 }
  0x26   :  { %p13919_p3 = scmp.lt.u32.totalorder %s13915_s16, %s15847_s2 }
  0x28   :  { %p13921_p4 = pnand %p13919_p3, %p13916_p2 }
  0x2a   :  { %13924 = shalt.err (!%p13921_p4)
}
  0x2b   :  { %s13925_s21 = scalar_lea.vmem %s42_s13, 48  ;;  %s13929_s0 = scalar_lea.vmem %s42_s13, 64 }
  0x2c   :  { %p13926_p5 = scmp.ne.s32.totalorder %s42_s13, %s13925_s21  ;;  %p13930_p6 = scmp.lt.s32.totalorder %s42_s13, %s42_s13 }
  0x2d   :  { %p13931_p7 = scmp.lt.s32.totalorder %s13929_s0, %s13925_s21 }
  0x2f   :  { %p13932_p8 = por %p13931_p7, %p13930_p6 }
  0x31   :  { %p13933_p9 = pnand %p13932_p8, %p13926_p5 }
  0x33   :  { %13936 = shalt.err (!%p13933_p9)
}
  0x34   :  { %44 = dma.hbm_to_vmem [thread:$0]  %s15847_s2, 48, %s42_s13, [#allocation6]  }
  0x35   :  { %13959 = dma.done.wait [#allocation3], 32768  }
  0x36   :  { %13960 = vsyncadd [#allocation3], 4294934528 }
  0x37   :  { %13961 = dma.done.wait [#allocation6], 96816  }
  0x38   :  { %13962 = vsyncadd [#allocation6], 4294870480  ;;  %v12862_v0 = vld [vmem:[#allocation5 + $0x4] ss:$12 sps:$4 sm:$0xff]   ;;  %v12864_v1 = vld [vmem:[#allocation5 + $0xc8] ss:$12 sps:$4 sm:$0xff]  }
  0x39   :  { %6667 = vmatprep.subr.bf16.mxu0 %v12862_v0  ;;  %v12865_v2 = vld [vmem:[#allocation5] ss:$12 sps:$4 sm:$0xff]   ;;  %11381 = vmatprep.subr.bf16.mxu1 %v12864_v1  ;;  %v12866_v3 = vld [vmem:[#allocation5 + $0x8] ss:$12 sps:$4 sm:$0xff]   ;;  %v12870_v6 = vld [vmem:[#allocation5 + $0x18] ss:$12 sps:$4 sm:$0xff]  }
  0x3a   :  { %6668 = vmatpush1.bf16.msra.mxu0 %v12865_v2  ;;  %v12867_v4 = vld [vmem:[#allocation5 + $0x1c] ss:$12 sps:$4 sm:$0xff]   ;;  %11382 = vmatpush3.bf16.msra.mxu1 %v12866_v3  ;;  %v12869_v5 = vld [vmem:[#allocation5 + $0xe0] ss:$12 sps:$4 sm:$0xff]   ;;  %v12874_v9 = vld [vmem:[#allocation5 + $0xf8] ss:$12 sps:$4 sm:$0xff]  }
  0x3b   :  { %6669 = vmatprep.subr.bf16.mxu0 %v12867_v4  ;;  %v12871_v7 = vld [vmem:[#allocation5 + $0x20] ss:$12 sps:$4 sm:$0xff]   ;;  %11383 = vmatprep.subr.bf16.mxu1 %v12869_v5  ;;  %v12875_v10 = vld [vmem:[#allocation5 + $0x30] ss:$12 sps:$4 sm:$0xff]   ;;  %v12876_v11 = vld [vmem:[#allocation5 + $0x38] ss:$12 sps:$4 sm:$0xff]  }
  0x3c   :  { %v12872_v8 = vld [vmem:[#allocation5 + $0x34] ss:$12 sps:$4 sm:$0xff]   ;;  %v12877_v12 = vld [vmem:[#allocation5 + $0x4c] ss:$12 sps:$4 sm:$0xff]   ;;  %v12879_v13 = vld [vmem:[#allocation5 + $0x110] ss:$12 sps:$4 sm:$0xff]  }
  0x3d   :  { %v12880_v14 = vld [vmem:[#allocation5 + $0x48] ss:$12 sps:$4 sm:$0xff]   ;;  %v12881_v15 = vld [vmem:[#allocation5 + $0x50] ss:$12 sps:$4 sm:$0xff]   ;;  %v12885_v18 = vld [vmem:[#allocation5 + $0x60] ss:$12 sps:$4 sm:$0xff]  }
  0x3e   :  { %6670 = vmatpush1.bf16.msra.mxu0 %v12870_v6  ;;  %11384 = vmatpush3.bf16.msra.mxu1 %v12871_v7  ;;  %v12882_v16 = vld [vmem:[#allocation5 + $0x64] ss:$12 sps:$4 sm:$0xff]   ;;  %v12884_v17 = vld [vmem:[#allocation5 + $0x128] ss:$12 sps:$4 sm:$0xff]   ;;  %v12889_v21 = vld [vmem:[#allocation5 + $0x140] ss:$12 sps:$4 sm:$0xff]  }
  0x3f   :  { %6671 = vmatprep.subr.bf16.mxu0 %v12872_v8  ;;  %11385 = vmatprep.subr.bf16.mxu1 %v12874_v9  ;;  %v12886_v19 = vld [vmem:[#allocation5 + $0x68] ss:$12 sps:$4 sm:$0xff]   ;;  %v12890_v22 = vld [vmem:[#allocation5 + $0x78] ss:$12 sps:$4 sm:$0xff]   ;;  %v12891_v23 = vld [vmem:[#allocation5 + $0x80] ss:$12 sps:$4 sm:$0xff]  }
  0x40   :  { %v12887_v20 = vld [vmem:[#allocation5 + $0x7c] ss:$12 sps:$4 sm:$0xff]   ;;  %v12892_v24 = vld [vmem:[#allocation5 + $0x94] ss:$12 sps:$4 sm:$0xff]   ;;  %v12894_v25 = vld [vmem:[#allocation5 + $0x158] ss:$12 sps:$4 sm:$0xff]  }
  0x41   :  { %v12895_v26 = vld [vmem:[#allocation5 + $0x90] ss:$12 sps:$4 sm:$0xff]   ;;  %v12896_v27 = vld [vmem:[#allocation5 + $0x98] ss:$12 sps:$4 sm:$0xff]   ;;  %v12900_v32 = vld [vmem:[#allocation5 + $0xa8] ss:$12 sps:$4 sm:$0xff]  }
  0x42   :  { %6672 = vmatpush1.bf16.msra.mxu0 %v12875_v10  ;;  %11386 = vmatpush3.bf16.msra.mxu1 %v12876_v11  ;;  %v12897_v28 = vld [vmem:[#allocation5 + $0xac] ss:$12 sps:$4 sm:$0xff]   ;;  %v12899_v29 = vld [vmem:[#allocation5 + $0x170] ss:$12 sps:$4 sm:$0xff]   ;;  %v57_v30 = vld [vmem:[#allocation2] sm:$0xff]  ;;  %vm6642_vm0 = vcmask 523264  }
  0x43   :  { %6673 = vmatprep.subr.bf16.mxu0 %v12877_v12  ;;  %11387 = vmatprep.subr.bf16.mxu1 %v12879_v13  ;;  %v73_v31 = vld [vmem:[#allocation2 + $0x80] sm:$0xff]  ;;  %v12901_v34 = vld [vmem:[#allocation5 + $0xb0] ss:$12 sps:$4 sm:$0xff]   ;;  %v12911_v48 = vld [vmem:[#allocation5 + $0x10c] ss:$12 sps:$4 sm:$0xff]   ;;  %s13973_s2 = smov [#allocation8]  }
  0x44   :  { %v10290_v33 = vcombine.high %v57_v30, %v73_v31  ;;  %v12902_v35 = vld [vmem:[#allocation5 + $0xc4] ss:$12 sps:$4 sm:$0xff]   ;;  %v14033_v38 = vcombine.low %v57_v30, %v73_v31  ;;  %v12904_v39 = vld [vmem:[#allocation5 + $0xc0] ss:$12 sps:$4 sm:$0xff]   ;;  %v12905_v40 = vld [vmem:[#allocation5 + $0xdc] ss:$12 sps:$4 sm:$0xff]  }
  0x45   :  { %v89_v36 = vld [vmem:[#allocation2 + $0x100] sm:$0xff]  ;;  %v12910_v47 = vld [vmem:[#allocation5 + $0xf0] ss:$12 sps:$4 sm:$0xff]   ;;  %v12913_v50 = vld [vmem:[#allocation5 + $0x108] ss:$12 sps:$4 sm:$0xff]   ;;  %s10276_s26 = sshll.u32 %s13973_s2, 4  ;;  %s10277_s26 = int_to_ptr.vmem [resolvable:$true] %s10276_s26 }
  0x46   :  { %6674 = vmatpush1.bf16.msra.mxu0 %v12880_v14  ;;  %11388 = vmatpush3.bf16.msra.mxu1 %v12881_v15  ;;  %v105_v37 = vld [vmem:[#allocation2 + $0x180] sm:$0xff]  ;;  %v12929_v51 = vld [vmem:[#allocation5 + $0x248] ss:$12 sps:$4 sm:$0xff]   ;;  %v12944_v2 = vld [vmem:[#allocation5 + $0x290] ss:$12 sps:$4 sm:$0xff]   ;;  %s13937_s27 = scalar_lea.vmem %s10277_s26, 3072  ;;  %p13942_p11 = scmp.lt.s32.totalorder %s10277_s26, %s10277_s26 }
  0x47   :  { %6675 = vmatprep.subr.bf16.mxu0 %v12882_v16  ;;  %11389 = vmatprep.subr.bf16.mxu1 %v12884_v17  ;;  %v14035_v41 = vcombine.high %v89_v36, %v105_v37  ;;  %v12907_v42 = vld [vmem:[#allocation5 + $0xd8] ss:$12 sps:$4 sm:$0xff]   ;;  %v12908_v43 = vld [vmem:[#allocation5 + $0xf4] ss:$12 sps:$4 sm:$0xff]   ;;  %v14039_v46 = vcombine.low %v89_v36, %v105_v37  ;;  %v12917_v60 = vld [vmem:[#allocation5 + $0x13c] ss:$12 sps:$4 sm:$0xff]   ;;  %p13938_p10 = scmp.ne.s32.totalorder %s10277_s26, %s13937_s27  ;;  %p13943_p12 = scmp.lt.s32.totalorder %s13937_s27, %s13937_s27 }
  0x48   :  { %8507 = vmatprep.mubr.bf16.mxu1 %v10290_v33  ;;  %6699 = vmatprep.mubr.bf16.mxu0 %v10290_v33  ;;  %v121_v44 = vld [vmem:[#allocation2 + $0x200] sm:$0xff]  ;;  %v12930_v53 = vld [vmem:[#allocation5 + $0x188] ss:$12 sps:$4 sm:$0xff]   ;;  %v12945_v5 = vld [vmem:[#allocation5 + $0x1d0] ss:$12 sps:$4 sm:$0xff]  }
  0x49   :  { %v137_v45 = vld [vmem:[#allocation2 + $0x280] sm:$0xff]  ;;  %v12922_v7 = vld [vmem:[#allocation5 + $0x150] ss:$12 sps:$4 sm:$0xff]   ;;  %v12923_v8 = vld [vmem:[#allocation5 + $0x16c] ss:$12 sps:$4 sm:$0xff]   ;;  %p13944_p13 = por %p13943_p12, %p13942_p11 }
  0x4a   :  { %6676 = vmatpush1.bf16.msra.mxu0 %v12885_v18  ;;  %11390 = vmatpush3.bf16.msra.mxu1 %v12886_v19  ;;  %v14041_v49 = vcombine.high %v121_v44, %v137_v45  ;;  %v12914_v52 = vld [vmem:[#allocation5 + $0x124] ss:$12 sps:$4 sm:$0xff]   ;;  %v12934_v56 = vld [vmem:[#allocation5 + $0x260] ss:$12 sps:$4 sm:$0xff]   ;;  %v14045_v58 = vcombine.low %v121_v44, %v137_v45  ;;  %v12949_v10 = vld [vmem:[#allocation5 + $0x2a8] ss:$12 sps:$4 sm:$0xff]  }
  0x4b   :  { %6677 = vmatprep.subr.bf16.mxu0 %v12887_v20  ;;  %11391 = vmatprep.subr.bf16.mxu1 %v12889_v21  ;;  %v153_v54 = vld [vmem:[#allocation2 + $0x300] sm:$0xff]  ;;  %v12925_v11 = vld [vmem:[#allocation5 + $0x168] ss:$12 sps:$4 sm:$0xff]   ;;  %v12936_v30 = vld [vmem:[#allocation5 + $0x1b0] ss:$12 sps:$4 sm:$0xff]   ;;  %p13945_p0 = pnand %p13944_p13, %p13938_p10 }
  0x4c   :  { %v169_v55 = vld [vmem:[#allocation2 + $0x380] sm:$0xff]  ;;  %v12950_v12 = vld [vmem:[#allocation5 + $0x1e8] ss:$12 sps:$4 sm:$0xff]  }
  0x4d   :  { %v12935_v57 = vld [vmem:[#allocation5 + $0x1a0] ss:$12 sps:$4 sm:$0xff]   ;;  %v14047_v61 = vcombine.high %v153_v54, %v169_v55  ;;  %v12939_v62 = vld [vmem:[#allocation5 + $0x278] ss:$12 sps:$4 sm:$0xff]   ;;  %v14051_v6 = vcombine.low %v153_v54, %v169_v55  ;;  %v12933_v20 = vld [vmem:[#allocation5 + $0x19c] ss:$12 sps:$4 sm:$0xff]  }
  0x4e   :  { %6678 = vmatpush1.bf16.msra.mxu0 %v12890_v22  ;;  %11392 = vmatpush3.bf16.msra.mxu1 %v12891_v23  ;;  %v12916_v59 = vld [vmem:[#allocation5 + $0x120] ss:$12 sps:$4 sm:$0xff]   ;;  %v12940_v63 = vld [vmem:[#allocation5 + $0x1b8] ss:$12 sps:$4 sm:$0xff]   ;;  %v12993_v44 = vld [vmem:[#allocation5 + $0x3c8] ss:$12 sps:$4 sm:$0xff]  }
  0x4f   :  { %6679 = vmatprep.subr.bf16.mxu0 %v12892_v24  ;;  %11393 = vmatprep.subr.bf16.mxu1 %v12894_v25  ;;  %v12919_v0 = vld [vmem:[#allocation5 + $0x138] ss:$12 sps:$4 sm:$0xff]   ;;  %v12920_v1 = vld [vmem:[#allocation5 + $0x154] ss:$12 sps:$4 sm:$0xff]   ;;  %v12964_v25 = vld [vmem:[#allocation5 + $0x2f0] ss:$12 sps:$4 sm:$0xff]  }
  0x50   :  { %v185_v3 = vld [vmem:[#allocation2 + $0x400] sm:$0xff]  ;;  %v58_v45 = vld [vmem:[#allocation2 + $0x8] sm:$0xff] }
  0x51   :  { %v201_v4 = vld [vmem:[#allocation2 + $0x480] sm:$0xff]  ;;  %v106_v54 = vld [vmem:[#allocation2 + $0x188] sm:$0xff] }
  0x52   :  { %6680 = vmatpush1.bf16.msra.mxu0 %v12895_v26  ;;  %11394 = vmatpush3.bf16.msra.mxu1 %v12896_v27  ;;  %v14053_v9 = vcombine.high %v185_v3, %v201_v4  ;;  %v12954_v13 = vld [vmem:[#allocation5 + $0x2c0] ss:$12 sps:$4 sm:$0xff]   ;;  %v12928_v14 = vld [vmem:[#allocation5 + $0x184] ss:$12 sps:$4 sm:$0xff]   ;;  %v14057_v19 = vcombine.low %v185_v3, %v201_v4 }
  0x53   :  { %6681 = vmatprep.subr.bf16.mxu0 %v12897_v28  ;;  %11395 = vmatprep.subr.bf16.mxu1 %v12899_v29  ;;  %v217_v15 = vld [vmem:[#allocation2 + $0x500] sm:$0xff]  ;;  %v12965_v29 = vld [vmem:[#allocation5 + $0x230] ss:$12 sps:$4 sm:$0xff]  }
  0x54   :  { %v233_v16 = vld [vmem:[#allocation2 + $0x580] sm:$0xff]  ;;  %v12972_v3 = vld [vmem:[#allocation5 + $0x270] ss:$12 sps:$4 sm:$0xff]  }
  0x55   :  { %v12955_v17 = vld [vmem:[#allocation5 + $0x200] ss:$12 sps:$4 sm:$0xff]   ;;  %v12931_v21 = vld [vmem:[#allocation5 + $0x198] ss:$12 sps:$4 sm:$0xff]   ;;  %v14059_v22 = vcombine.high %v217_v15, %v233_v16  ;;  %v14065_v31 = vcombine.low %v217_v15, %v233_v16 }
  0x56   :  { %6682 = vmatpush1.bf16.msra.mxu0 %v12900_v32  ;;  %11396 = vmatpush3.bf16.msra.mxu1 %v12901_v34  ;;  %v12926_v18 = vld [vmem:[#allocation5 + $0x180] ss:$12 sps:$4 sm:$0xff]   ;;  %v12959_v23 = vld [vmem:[#allocation5 + $0x2d8] ss:$12 sps:$4 sm:$0xff]   ;;  %v12941_v34 = vld [vmem:[#allocation5 + $0x1c8] ss:$12 sps:$4 sm:$0xff]  }
  0x57   :  { %6683 = vmatprep.subr.bf16.mxu0 %v12902_v35  ;;  %11445 = vmatprep.subr.bf16.mxu1 %v12929_v51  ;;  %v12960_v24 = vld [vmem:[#allocation5 + $0x218] ss:$12 sps:$4 sm:$0xff]   ;;  %v12938_v26 = vld [vmem:[#allocation5 + $0x1b4] ss:$12 sps:$4 sm:$0xff]  }
  0x58   :  { %v249_v27 = vld [vmem:[#allocation2 + $0x600] sm:$0xff]  ;;  %v12943_v32 = vld [vmem:[#allocation5 + $0x1cc] ss:$12 sps:$4 sm:$0xff]   ;;  %v12961_v51 = vld [vmem:[#allocation5 + $0x228] ss:$12 sps:$4 sm:$0xff]  }
  0x59   :  { %8508 = vmatmul.mubr.bf16.vlgmr.msra.gmra.mrb[0].mxu1 %v14033_v38  ;;  %v265_v28 = vld [vmem:[#allocation2 + $0x680] sm:$0xff] }
  0x5a   :  { %6684 = vmatpush1.bf16.msra.mxu0 %v12904_v39  ;;  %8515 = vmatprep.mubr.bf16.mxu1 %v14035_v41  ;;  %v14067_v33 = vcombine.high %v249_v27, %v265_v28  ;;  %v12948_v35 = vld [vmem:[#allocation5 + $0x1e4] ss:$12 sps:$4 sm:$0xff]   ;;  %v14073_v39 = vcombine.low %v249_v27, %v265_v28  ;;  %v12978_v15 = vld [vmem:[#allocation5 + $0x2a0] ss:$12 sps:$4 sm:$0xff]  }
  0x5b   :  { %6685 = vmatprep.subr.bf16.mxu0 %v12905_v40  ;;  %11446 = vmatpush3.bf16.msra.mxu1 %v12930_v53  ;;  %v281_v36 = vld [vmem:[#allocation2 + $0x700] sm:$0xff]  ;;  %v12953_v40 = vld [vmem:[#allocation5 + $0x1fc] ss:$12 sps:$4 sm:$0xff]  }
  0x5c   :  { %11447 = vmatprep.subr.bf16.mxu1 %v12934_v56  ;;  %v297_v37 = vld [vmem:[#allocation2 + $0x780] sm:$0xff]  ;;  %v90_v53 = vld [vmem:[#allocation2 + $0x108] sm:$0xff]  ;;  %v12984_v27 = vld [vmem:[#allocation5 + $0x2d0] ss:$12 sps:$4 sm:$0xff]  }
  0x5d   :  { %v12966_v56 = vld [vmem:[#allocation5 + $0x240] ss:$12 sps:$4 sm:$0xff]   ;;  %v14097_v4 = vcombine.low %v90_v53, %v106_v54 }
  0x5e   :  { %6686 = vmatpush1.bf16.msra.mxu0 %v12907_v42  ;;  %v12951_v42 = vld [vmem:[#allocation5 + $0x1f8] ss:$12 sps:$4 sm:$0xff]  }
  0x5f   :  { %6687 = vmatprep.subr.bf16.mxu0 %v12908_v43  ;;  %11448 = vmatpush3.bf16.msra.mxu1 %v12935_v57  ;;  %v12958_v43 = vld [vmem:[#allocation5 + $0x214] ss:$12 sps:$4 sm:$0xff]   ;;  %v12971_v57 = vld [vmem:[#allocation5 + $0x25c] ss:$12 sps:$4 sm:$0xff]  }
  0x60   :  { %11449 = vmatprep.subr.bf16.mxu1 %v12939_v62  ;;  %v12974_v62 = vld [vmem:[#allocation5 + $0x274] ss:$12 sps:$4 sm:$0xff]  }
  0x61   :  { %8516 = vmatmul.mubr.bf16.gmra.mrb[4].mxu1 %v14039_v46 }
  0x62   :  { %6688 = vmatpush1.bf16.msra.mxu0 %v12910_v47  ;;  %8523 = vmatprep.mubr.bf16.mxu1 %v14041_v49  ;;  %v12956_v47 = vld [vmem:[#allocation5 + $0x210] ss:$12 sps:$4 sm:$0xff]  }
  0x63   :  { %6689 = vmatprep.subr.bf16.mxu0 %v12911_v48  ;;  %11450 = vmatpush3.bf16.msra.mxu1 %v12940_v63  ;;  %v14081_v48 = vcombine.low %v281_v36, %v297_v37  ;;  %v122_v63 = vld [vmem:[#allocation2 + $0x208] sm:$0xff] }
  0x64   :  { %11451 = vmatprep.subr.bf16.mxu1 %v12944_v2  ;;  %v13003_v2 = vld [vmem:[#allocation5 + $0x3f8] ss:$12 sps:$4 sm:$0xff]  }
  0x66   :  { %6690 = vmatpush1.bf16.msra.mxu0 %v12913_v50 }
  0x67   :  { %6691 = vmatprep.subr.bf16.mxu0 %v12914_v52  ;;  %11452 = vmatpush3.bf16.msra.mxu1 %v12945_v5  ;;  %v12968_v52 = vld [vmem:[#allocation5 + $0x244] ss:$12 sps:$4 sm:$0xff]   ;;  %v12977_v5 = vld [vmem:[#allocation5 + $0x28c] ss:$12 sps:$4 sm:$0xff]  }
  0x68   :  { %11453 = vmatprep.subr.bf16.mxu1 %v12949_v10  ;;  %v12980_v10 = vld [vmem:[#allocation5 + $0x2a4] ss:$12 sps:$4 sm:$0xff]  }
  0x69   :  { %8524 = vmatmul.mubr.bf16.gmra.mrb[8].mxu1 %v14045_v58 }
  0x6a   :  { %6692 = vmatpush1.bf16.msra.mxu0 %v12916_v59  ;;  %8531 = vmatprep.mubr.bf16.mxu1 %v14047_v61  ;;  %v14091_v59 = vcombine.high %v90_v53, %v106_v54  ;;  %v282_v53 = vld [vmem:[#allocation2 + $0x708] sm:$0xff] }
  0x6b   :  { %6693 = vmatprep.subr.bf16.mxu0 %v12917_v60  ;;  %11454 = vmatpush3.bf16.msra.mxu1 %v12950_v12  ;;  %v12994_v60 = vld [vmem:[#allocation5 + $0x308] ss:$12 sps:$4 sm:$0xff]  }
  0x6c   :  { %11455 = vmatprep.subr.bf16.mxu1 %v12954_v13  ;;  %v170_v12 = vld [vmem:[#allocation2 + $0x388] sm:$0xff]  ;;  %v13009_v13 = vld [vmem:[#allocation5 + $0x350] ss:$12 sps:$4 sm:$0xff]  }
  0x6d   :  { %v298_v54 = vld [vmem:[#allocation2 + $0x788] sm:$0xff] }
  0x6e   :  { %6694 = vmatpush1.bf16.msra.mxu0 %v12919_v0  ;;  %v138_v0 = vld [vmem:[#allocation2 + $0x288] sm:$0xff] }
  0x6f   :  { %6695 = vmatprep.subr.bf16.mxu0 %v12920_v1  ;;  %11456 = vmatpush3.bf16.msra.mxu1 %v12955_v17  ;;  %v12999_v1 = vld [vmem:[#allocation5 + $0x320] ss:$12 sps:$4 sm:$0xff]   ;;  %v14105_v16 = vcombine.low %v122_v63, %v138_v0  ;;  %v12983_v17 = vld [vmem:[#allocation5 + $0x2bc] ss:$12 sps:$4 sm:$0xff]  }
  0x70   :  { %11457 = vmatprep.subr.bf16.mxu1 %v12959_v23  ;;  %v186_v23 = vld [vmem:[#allocation2 + $0x408] sm:$0xff] }
  0x71   :  { %8532 = vmatmul.mubr.bf16.gmra.mrb[12].mxu1 %v14051_v6 }
  0x72   :  { %6696 = vmatpush1.bf16.msra.mxu0 %v12922_v7  ;;  %8539 = vmatprep.mubr.bf16.mxu1 %v14053_v9  ;;  %v14099_v7 = vcombine.high %v122_v63, %v138_v0  ;;  %v13020_v63 = vld [vmem:[#allocation5 + $0x390] ss:$12 sps:$4 sm:$0xff]   ;;  %v14145_v0 = vcombine.low %v282_v53, %v298_v54 }
  0x73   :  { %6697 = vmatprep.subr.bf16.mxu0 %v12923_v8  ;;  %11458 = vmatpush3.bf16.msra.mxu1 %v12960_v24  ;;  %v13004_v8 = vld [vmem:[#allocation5 + $0x338] ss:$12 sps:$4 sm:$0xff]   ;;  %v202_v24 = vld [vmem:[#allocation2 + $0x488] sm:$0xff] }
  0x74   :  { %11459 = vmatprep.subr.bf16.mxu1 %v12964_v25  ;;  %v13019_v25 = vld [vmem:[#allocation5 + $0x380] ss:$12 sps:$4 sm:$0xff]  }
  0x76   :  { %6698 = vmatpush1.bf16.msra.mxu0 %v12925_v11  ;;  %v154_v11 = vld [vmem:[#allocation2 + $0x308] sm:$0xff] }
  0x77   :  { %6780 = vmatprep.subr.bf16.mxu0 %v12928_v14  ;;  %11460 = vmatpush3.bf16.msra.mxu1 %v12965_v29  ;;  %v13013_v14 = vld [vmem:[#allocation5 + $0x428] ss:$12 sps:$4 sm:$0xff]   ;;  %v14113_v28 = vcombine.low %v154_v11, %v170_v12  ;;  %v12989_v29 = vld [vmem:[#allocation5 + $0x2ec] ss:$12 sps:$4 sm:$0xff]  }
  0x78   :  { %11509 = vmatprep.subr.bf16.mxu1 %v12993_v44  ;;  %v13002_v44 = vld [vmem:[#allocation5 + $0x334] ss:$12 sps:$4 sm:$0xff]  }
  0x79   :  { %6700 = vmatmul.mubr.bf16.vlgmr.msra.gmra.mrb[0].mxu0 %v14033_v38  ;;  %8540 = vmatmul.mubr.bf16.gmra.mrb[16].mxu1 %v14057_v19  ;;  %v12946_v38 = vld [vmem:[#allocation5 + $0x1e0] ss:$12 sps:$4 sm:$0xff]  }
  0x7a   :  { %6781 = vmatpush1.bf16.msra.mxu0 %v12926_v18  ;;  %6709 = vmatprep.mubr.bf16.mxu0 %v14035_v41  ;;  %v14075_v41 = vcombine.high %v281_v36, %v297_v37  ;;  %v14107_v18 = vcombine.high %v154_v11, %v170_v12  ;;  %v12990_v36 = vld [vmem:[#allocation5 + $0x300] ss:$12 sps:$4 sm:$0xff]   ;;  %v13029_v37 = vld [vmem:[#allocation5 + $0x3b0] ss:$12 sps:$4 sm:$0xff]   ;;  %v13058_v11 = vld [vmem:[#allocation5 + $0x488] ss:$12 sps:$4 sm:$0xff]  }
  0x7b   :  { %6782 = vmatprep.subr.bf16.mxu0 %v12933_v20  ;;  %8547 = vmatprep.mubr.bf16.mxu1 %v14059_v22  ;;  %v13018_v20 = vld [vmem:[#allocation5 + $0x440] ss:$12 sps:$4 sm:$0xff]  }
  0x7c   :  { %v13062_v12 = vld [vmem:[#allocation5 + $0x560] ss:$12 sps:$4 sm:$0xff]  }
  0x7e   :  { %6783 = vmatpush1.bf16.msra.mxu0 %v12931_v21  ;;  %v12981_v21 = vld [vmem:[#allocation5 + $0x2b8] ss:$12 sps:$4 sm:$0xff]  }
  0x7f   :  { %6784 = vmatprep.subr.bf16.mxu0 %v12938_v26  ;;  %v13023_v26 = vld [vmem:[#allocation5 + $0x458] ss:$12 sps:$4 sm:$0xff]  }
  0x81   :  { %6710 = vmatmul.mubr.bf16.gmra.mrb[4].mxu0 %v14039_v46  ;;  %8548 = vmatmul.mubr.bf16.gmra.mrb[20].mxu1 %v14065_v31  ;;  %v74_v46 = vld [vmem:[#allocation2 + $0x88] sm:$0xff] }
  0x82   :  { %6785 = vmatpush1.bf16.msra.mxu0 %v12936_v30  ;;  %6719 = vmatprep.mubr.bf16.mxu0 %v14041_v49  ;;  %v12963_v49 = vld [vmem:[#allocation5 + $0x22c] ss:$12 sps:$4 sm:$0xff]   ;;  %v14083_v50 = vcombine.high %v58_v45, %v74_v46  ;;  %v14089_v55 = vcombine.low %v58_v45, %v74_v46  ;;  %v14115_v30 = vcombine.high %v186_v23, %v202_v24 }
  0x83   :  { %6786 = vmatprep.subr.bf16.mxu0 %v12943_v32  ;;  %8555 = vmatprep.mubr.bf16.mxu1 %v14067_v33  ;;  %v13028_v32 = vld [vmem:[#allocation5 + $0x470] ss:$12 sps:$4 sm:$0xff]   ;;  %v250_v45 = vld [vmem:[#allocation2 + $0x608] sm:$0xff] }
  0x84   :  { %v266_v46 = vld [vmem:[#allocation2 + $0x688] sm:$0xff] }
  0x86   :  { %6787 = vmatpush1.bf16.msra.mxu0 %v12941_v34  ;;  %v12992_v34 = vld [vmem:[#allocation5 + $0x304] ss:$12 sps:$4 sm:$0xff]  }
  0x87   :  { %6788 = vmatprep.subr.bf16.mxu0 %v12948_v35  ;;  %v218_v35 = vld [vmem:[#allocation2 + $0x508] sm:$0xff] }
  0x89   :  { %6720 = vmatmul.mubr.bf16.gmra.mrb[8].mxu0 %v14045_v58  ;;  %8556 = vmatmul.mubr.bf16.gmra.mrb[24].mxu1 %v14073_v39  ;;  %v12969_v58 = vld [vmem:[#allocation5 + $0x258] ss:$12 sps:$4 sm:$0xff]  }
  0x8a   :  { %6789 = vmatpush1.bf16.msra.mxu0 %v12946_v38  ;;  %6729 = vmatprep.mubr.bf16.mxu0 %v14047_v61  ;;  %v12998_v61 = vld [vmem:[#allocation5 + $0x3e0] ss:$12 sps:$4 sm:$0xff]  }
  0x8b   :  { %6790 = vmatprep.subr.bf16.mxu0 %v12953_v40  ;;  %8563 = vmatprep.mubr.bf16.mxu1 %v14075_v41  ;;  %v234_v38 = vld [vmem:[#allocation2 + $0x588] sm:$0xff] }
  0x8c   :  { %v13057_v40 = vld [vmem:[#allocation5 + $0x548] ss:$12 sps:$4 sm:$0xff]  }
  0x8e   :  { %6791 = vmatpush1.bf16.msra.mxu0 %v12951_v42  ;;  %v14123_v42 = vcombine.high %v218_v35, %v234_v38 }
  0x8f   :  { %6792 = vmatprep.subr.bf16.mxu0 %v12958_v43  ;;  %v12995_v43 = vld [vmem:[#allocation5 + $0x318] ss:$12 sps:$4 sm:$0xff]  }
  0x91   :  { %6730 = vmatmul.mubr.bf16.gmra.mrb[12].mxu0 %v14051_v6  ;;  %8564 = vmatmul.mubr.bf16.gmra.mrb[28].mxu1 %v14081_v48  ;;  %v12975_v6 = vld [vmem:[#allocation5 + $0x288] ss:$12 sps:$4 sm:$0xff]  }
  0x92   :  { %6793 = vmatpush1.bf16.msra.mxu0 %v12956_v47  ;;  %6739 = vmatprep.mubr.bf16.mxu0 %v14053_v9  ;;  %v13008_v9 = vld [vmem:[#allocation5 + $0x410] ss:$12 sps:$4 sm:$0xff]  }
  0x93   :  { %6794 = vmatprep.subr.bf16.mxu0 %v12963_v49  ;;  %8604 = vmatprep.mubr.bf16.mxu1 %v14083_v50  ;;  %v13000_v47 = vld [vmem:[#allocation5 + $0x330] ss:$12 sps:$4 sm:$0xff]   ;;  %v13007_v49 = vld [vmem:[#allocation5 + $0x34c] ss:$12 sps:$4 sm:$0xff]  }
  0x96   :  { %6795 = vmatpush1.bf16.msra.mxu0 %v12961_v51  ;;  %v13005_v51 = vld [vmem:[#allocation5 + $0x348] ss:$12 sps:$4 sm:$0xff]  }
  0x97   :  { %6796 = vmatprep.subr.bf16.mxu0 %v12968_v52  ;;  %v13012_v52 = vld [vmem:[#allocation5 + $0x364] ss:$12 sps:$4 sm:$0xff]  }
  0x99   :  { %6740 = vmatmul.mubr.bf16.gmra.mrb[16].mxu0 %v14057_v19  ;;  %8605 = vmatmul.mubr.bf16.vlgmr.msra.gmra.mrb[32].mxu1 %v14089_v55  ;;  %v13014_v19 = vld [vmem:[#allocation5 + $0x368] ss:$12 sps:$4 sm:$0xff]  }
  0x9a   :  { %6797 = vmatpush1.bf16.msra.mxu0 %v12966_v56  ;;  %6749 = vmatprep.mubr.bf16.mxu0 %v14059_v22  ;;  %v12986_v22 = vld [vmem:[#allocation5 + $0x2d4] ss:$12 sps:$4 sm:$0xff]   ;;  %v14137_v56 = vcombine.low %v250_v45, %v266_v46 }
  0x9b   :  { %6798 = vmatprep.subr.bf16.mxu0 %v12971_v57  ;;  %8612 = vmatprep.mubr.bf16.mxu1 %v14091_v59  ;;  %v13017_v57 = vld [vmem:[#allocation5 + $0x37c] ss:$12 sps:$4 sm:$0xff]  }
  0x9c   :  { %11510 = vmatpush3.bf16.msra.mxu1 %v12994_v60  ;;  %v13022_v60 = vld [vmem:[#allocation5 + $0x394] ss:$12 sps:$4 sm:$0xff]  }
  0x9d   :  { %11511 = vmatprep.subr.bf16.mxu1 %v12998_v61  ;;  %v59_v61 = vld [vmem:[#allocation2 + $0x10] sm:$0xff] }
  0x9e   :  { %6799 = vmatpush1.bf16.msra.mxu0 %v12969_v58  ;;  %v14139_v58 = vcombine.high %v282_v53, %v298_v54  ;;  %v13093_v53 = vld [vmem:[#allocation5 + $0x530] ss:$12 sps:$4 sm:$0xff]   ;;  %v13121_v54 = vld [vmem:[#allocation5 + $0x6c8] ss:$12 sps:$4 sm:$0xff]  }
  0x9f   :  { %6800 = vmatprep.subr.bf16.mxu0 %v12974_v62  ;;  %v75_v62 = vld [vmem:[#allocation2 + $0x90] sm:$0xff] }
  0xa0   :  { %11512 = vmatpush3.bf16.msra.mxu1 %v12999_v1  ;;  %v13027_v1 = vld [vmem:[#allocation5 + $0x3ac] ss:$12 sps:$4 sm:$0xff]  }
  0xa1   :  { %6750 = vmatmul.mubr.bf16.gmra.mrb[20].mxu0 %v14065_v31  ;;  %11513 = vmatprep.subr.bf16.mxu1 %v13003_v2  ;;  %v13024_v31 = vld [vmem:[#allocation5 + $0x398] ss:$12 sps:$4 sm:$0xff]   ;;  %v14147_v2 = vcombine.high %v59_v61, %v75_v62 }
  0xa2   :  { %8613 = vmatmul.mubr.bf16.gmra.mrb[36].mxu1 %v14097_v4  ;;  %6801 = vmatpush1.bf16.msra.mxu0 %v12972_v3  ;;  %v13025_v3 = vld [vmem:[#allocation5 + $0x3a8] ss:$12 sps:$4 sm:$0xff]  }
  0xa3   :  { %6802 = vmatprep.subr.bf16.mxu0 %v12977_v5  ;;  %6759 = vmatprep.mubr.bf16.mxu0 %v14067_v33  ;;  %v12987_v33 = vld [vmem:[#allocation5 + $0x2e8] ss:$12 sps:$4 sm:$0xff]  }
  0xa4   :  { %8620 = vmatprep.mubr.bf16.mxu1 %v14099_v7  ;;  %11514 = vmatpush3.bf16.msra.mxu1 %v13004_v8  ;;  %v91_v5 = vld [vmem:[#allocation2 + $0x110] sm:$0xff]  ;;  %v13030_v8 = vld [vmem:[#allocation5 + $0x3c0] ss:$12 sps:$4 sm:$0xff]  }
  0xa5   :  { %11515 = vmatprep.subr.bf16.mxu1 %v13008_v9  ;;  %v13035_v9 = vld [vmem:[#allocation5 + $0x3dc] ss:$12 sps:$4 sm:$0xff]  }
  0xa6   :  { %6803 = vmatpush1.bf16.msra.mxu0 %v12975_v6  ;;  %v107_v6 = vld [vmem:[#allocation2 + $0x190] sm:$0xff] }
  0xa7   :  { %6804 = vmatprep.subr.bf16.mxu0 %v12980_v10  ;;  %v14155_v10 = vcombine.high %v91_v5, %v107_v6 }
  0xa8   :  { %11516 = vmatpush3.bf16.msra.mxu1 %v13009_v13  ;;  %v13033_v13 = vld [vmem:[#allocation5 + $0x3d8] ss:$12 sps:$4 sm:$0xff]  }
  0xa9   :  { %6760 = vmatmul.mubr.bf16.gmra.mrb[24].mxu0 %v14073_v39  ;;  %11517 = vmatprep.subr.bf16.mxu1 %v13013_v14  ;;  %v14121_v39 = vcombine.low %v186_v23, %v202_v24  ;;  %v13038_v14 = vld [vmem:[#allocation5 + $0x3f4] ss:$12 sps:$4 sm:$0xff]   ;;  %v13068_v23 = vld [vmem:[#allocation5 + $0x4b8] ss:$12 sps:$4 sm:$0xff]   ;;  %v13072_v24 = vld [vmem:[#allocation5 + $0x590] ss:$12 sps:$4 sm:$0xff]  }
  0xaa   :  { %8621 = vmatmul.mubr.bf16.gmra.mrb[40].mxu1 %v14105_v16  ;;  %6805 = vmatpush1.bf16.msra.mxu0 %v12978_v15  ;;  %v123_v15 = vld [vmem:[#allocation2 + $0x210] sm:$0xff] }
  0xab   :  { %6806 = vmatprep.subr.bf16.mxu0 %v12983_v17  ;;  %6769 = vmatprep.mubr.bf16.mxu0 %v14075_v41  ;;  %v12997_v41 = vld [vmem:[#allocation5 + $0x31c] ss:$12 sps:$4 sm:$0xff]   ;;  %v139_v17 = vld [vmem:[#allocation2 + $0x290] sm:$0xff] }
  0xac   :  { %8628 = vmatprep.mubr.bf16.mxu1 %v14107_v18  ;;  %11518 = vmatpush3.bf16.msra.mxu1 %v13014_v19  ;;  %v13036_v19 = vld [vmem:[#allocation5 + $0x3f0] ss:$12 sps:$4 sm:$0xff]  }
  0xad   :  { %11519 = vmatprep.subr.bf16.mxu1 %v13018_v20  ;;  %v14161_v20 = vcombine.low %v91_v5, %v107_v6  ;;  %v283_v5 = vld [vmem:[#allocation2 + $0x710] sm:$0xff] }
  0xae   :  { %6807 = vmatpush1.bf16.msra.mxu0 %v12981_v21  ;;  %v13041_v21 = vld [vmem:[#allocation5 + $0x40c] ss:$12 sps:$4 sm:$0xff]   ;;  %v299_v6 = vld [vmem:[#allocation2 + $0x790] sm:$0xff] }
  0xaf   :  { %6808 = vmatprep.subr.bf16.mxu0 %v12986_v22  ;;  %v14163_v22 = vcombine.high %v123_v15, %v139_v17 }
  0xb0   :  { %11520 = vmatpush3.bf16.msra.mxu1 %v13019_v25  ;;  %v13039_v25 = vld [vmem:[#allocation5 + $0x408] ss:$12 sps:$4 sm:$0xff]  }
  0xb1   :  { %6770 = vmatmul.mubr.bf16.gmra.mrb[28].mxu0 %v14081_v48  ;;  %11521 = vmatprep.subr.bf16.mxu1 %v13023_v26  ;;  %v14129_v48 = vcombine.low %v218_v35, %v234_v38  ;;  %v13044_v26 = vld [vmem:[#allocation5 + $0x424] ss:$12 sps:$4 sm:$0xff]   ;;  %v13078_v35 = vld [vmem:[#allocation5 + $0x4e8] ss:$12 sps:$4 sm:$0xff]  }
  0xb2   :  { %8629 = vmatmul.mubr.bf16.gmra.mrb[44].mxu1 %v14113_v28  ;;  %6809 = vmatpush1.bf16.msra.mxu0 %v12984_v27  ;;  %v13073_v27 = vld [vmem:[#allocation5 + $0x4d0] ss:$12 sps:$4 sm:$0xff]   ;;  %v13050_v38 = vld [vmem:[#allocation5 + $0x454] ss:$12 sps:$4 sm:$0xff]  }
  0xb3   :  { %6810 = vmatprep.subr.bf16.mxu0 %v12989_v29  ;;  %6812 = vmatprep.mubr.bf16.mxu0 %v14083_v50  ;;  %v14131_v50 = vcombine.high %v250_v45, %v266_v46  ;;  %v171_v29 = vld [vmem:[#allocation2 + $0x390] sm:$0xff]  ;;  %v13053_v45 = vld [vmem:[#allocation5 + $0x46c] ss:$12 sps:$4 sm:$0xff]  }
  0xb4   :  { %8636 = vmatprep.mubr.bf16.mxu1 %v14115_v30  ;;  %11522 = vmatpush3.bf16.msra.mxu1 %v13024_v31  ;;  %v13042_v31 = vld [vmem:[#allocation5 + $0x420] ss:$12 sps:$4 sm:$0xff]  }
  0xb5   :  { %11523 = vmatprep.subr.bf16.mxu1 %v13028_v32  ;;  %v14169_v32 = vcombine.low %v123_v15, %v139_v17  ;;  %v13084_v15 = vld [vmem:[#allocation5 + $0x510] ss:$12 sps:$4 sm:$0xff]   ;;  %v13091_v17 = vld [vmem:[#allocation5 + $0x52c] ss:$12 sps:$4 sm:$0xff]  }
  0xb6   :  { %6811 = vmatpush1.bf16.msra.mxu0 %v12987_v33  ;;  %v13047_v33 = vld [vmem:[#allocation5 + $0x43c] ss:$12 sps:$4 sm:$0xff]  }
  0xb7   :  { %6893 = vmatprep.subr.bf16.mxu0 %v12992_v34 }
  0xb8   :  { %11524 = vmatpush3.bf16.msra.mxu1 %v13029_v37  ;;  %v13045_v37 = vld [vmem:[#allocation5 + $0x438] ss:$12 sps:$4 sm:$0xff]  }
  0xb9   :  { %6813 = vmatmul.mubr.bf16.vlgmr.msra.gmra.mrb[0].mxu0 %v14089_v55  ;;  %11573 = vmatprep.subr.bf16.mxu1 %v13057_v40  ;;  %v13010_v55 = vld [vmem:[#allocation5 + $0x360] ss:$12 sps:$4 sm:$0xff]   ;;  %v203_v40 = vld [vmem:[#allocation2 + $0x490] sm:$0xff] }
  0xba   :  { %8637 = vmatmul.mubr.bf16.gmra.mrb[48].mxu1 %v14121_v39  ;;  %6894 = vmatpush1.bf16.msra.mxu0 %v12990_v36  ;;  %v13082_v36 = vld [vmem:[#allocation5 + $0x5c0] ss:$12 sps:$4 sm:$0xff]  }
  0xbb   :  { %6895 = vmatprep.subr.bf16.mxu0 %v12997_v41  ;;  %6822 = vmatprep.mubr.bf16.mxu0 %v14091_v59  ;;  %v13015_v59 = vld [vmem:[#allocation5 + $0x378] ss:$12 sps:$4 sm:$0xff]   ;;  %v13083_v41 = vld [vmem:[#allocation5 + $0x500] ss:$12 sps:$4 sm:$0xff]  }
  0xbc   :  { %8644 = vmatprep.mubr.bf16.mxu1 %v14123_v42 }
  0xbe   :  { %6896 = vmatpush1.bf16.msra.mxu0 %v12995_v43  ;;  %v13048_v43 = vld [vmem:[#allocation5 + $0x450] ss:$12 sps:$4 sm:$0xff]  }
  0xbf   :  { %6897 = vmatprep.subr.bf16.mxu0 %v13002_v44 }
  0xc1   :  { %6823 = vmatmul.mubr.bf16.gmra.mrb[4].mxu0 %v14097_v4  ;;  %v13032_v4 = vld [vmem:[#allocation5 + $0x3c4] ss:$12 sps:$4 sm:$0xff]  }
  0xc2   :  { %8645 = vmatmul.mubr.bf16.gmra.mrb[52].mxu1 %v14129_v48  ;;  %6898 = vmatpush1.bf16.msra.mxu0 %v13000_v47  ;;  %v13088_v47 = vld [vmem:[#allocation5 + $0x518] ss:$12 sps:$4 sm:$0xff]  }
  0xc3   :  { %6899 = vmatprep.subr.bf16.mxu0 %v13007_v49  ;;  %6832 = vmatprep.mubr.bf16.mxu0 %v14099_v7  ;;  %v14153_v7 = vcombine.low %v59_v61, %v75_v62  ;;  %v13051_v49 = vld [vmem:[#allocation5 + $0x468] ss:$12 sps:$4 sm:$0xff]  }
  0xc4   :  { %8652 = vmatprep.mubr.bf16.mxu1 %v14131_v50  ;;  %v251_v61 = vld [vmem:[#allocation2 + $0x610] sm:$0xff] }
  0xc5   :  { %v267_v62 = vld [vmem:[#allocation2 + $0x690] sm:$0xff] }
  0xc6   :  { %6900 = vmatpush1.bf16.msra.mxu0 %v13005_v51  ;;  %v219_v51 = vld [vmem:[#allocation2 + $0x510] sm:$0xff] }
  0xc7   :  { %6901 = vmatprep.subr.bf16.mxu0 %v13012_v52  ;;  %v235_v52 = vld [vmem:[#allocation2 + $0x590] sm:$0xff] }
  0xc9   :  { %6833 = vmatmul.mubr.bf16.gmra.mrb[8].mxu0 %v14105_v16  ;;  %v13063_v16 = vld [vmem:[#allocation5 + $0x4a0] ss:$12 sps:$4 sm:$0xff]  }
  0xca   :  { %8653 = vmatmul.mubr.bf16.gmra.mrb[56].mxu1 %v14137_v56  ;;  %6902 = vmatpush1.bf16.msra.mxu0 %v13010_v55  ;;  %v13054_v55 = vld [vmem:[#allocation5 + $0x480] ss:$12 sps:$4 sm:$0xff]  }
  0xcb   :  { %6903 = vmatprep.subr.bf16.mxu0 %v13017_v57  ;;  %6842 = vmatprep.mubr.bf16.mxu0 %v14107_v18  ;;  %v13067_v18 = vld [vmem:[#allocation5 + $0x578] ss:$12 sps:$4 sm:$0xff]   ;;  %v13061_v57 = vld [vmem:[#allocation5 + $0x49c] ss:$12 sps:$4 sm:$0xff]  }
  0xcc   :  { %8660 = vmatprep.mubr.bf16.mxu1 %v14139_v58 }
  0xce   :  { %6904 = vmatpush1.bf16.msra.mxu0 %v13015_v59  ;;  %v13059_v59 = vld [vmem:[#allocation5 + $0x498] ss:$12 sps:$4 sm:$0xff]  }
  0xcf   :  { %6905 = vmatprep.subr.bf16.mxu0 %v13022_v60  ;;  %v13066_v60 = vld [vmem:[#allocation5 + $0x4b4] ss:$12 sps:$4 sm:$0xff]  }
  0xd1   :  { %6843 = vmatmul.mubr.bf16.gmra.mrb[12].mxu0 %v14113_v28  ;;  %v155_v28 = vld [vmem:[#allocation2 + $0x310] sm:$0xff] }
  0xd2   :  { %8661 = vmatmul.mubr.bf16.gmra.mrb[60].mxu1 %v14145_v0  ;;  %6906 = vmatpush1.bf16.msra.mxu0 %v13020_v63  ;;  %v14171_v34 = vcombine.high %v155_v28, %v171_v29  ;;  %v14177_v44 = vcombine.low %v155_v28, %v171_v29  ;;  %v13064_v63 = vld [vmem:[#allocation5 + $0x4b0] ss:$12 sps:$4 sm:$0xff]   ;;  %v13097_v28 = vld [vmem:[#allocation5 + $0x558] ss:$12 sps:$4 sm:$0xff]   ;;  %v13126_v29 = vld [vmem:[#allocation5 + $0x6e0] ss:$12 sps:$4 sm:$0xff]  }
  0xd3   :  { %6907 = vmatprep.subr.bf16.mxu0 %v13027_v1  ;;  %6852 = vmatprep.mubr.bf16.mxu0 %v14115_v30  ;;  %v13077_v30 = vld [vmem:[#allocation5 + $0x5a8] ss:$12 sps:$4 sm:$0xff]   ;;  %v13071_v1 = vld [vmem:[#allocation5 + $0x4cc] ss:$12 sps:$4 sm:$0xff]  }
  0xd4   :  { %8701 = vmatprep.mubr.bf16.mxu1 %v14147_v2 }
  0xd6   :  { %6908 = vmatpush1.bf16.msra.mxu0 %v13025_v3  ;;  %v13069_v3 = vld [vmem:[#allocation5 + $0x4c8] ss:$12 sps:$4 sm:$0xff]  }
  0xd7   :  { %6909 = vmatprep.subr.bf16.mxu0 %v13032_v4  ;;  %v13076_v4 = vld [vmem:[#allocation5 + $0x4e4] ss:$12 sps:$4 sm:$0xff]  }
  0xd9   :  { %6853 = vmatmul.mubr.bf16.gmra.mrb[16].mxu0 %v14121_v39  ;;  %v187_v39 = vld [vmem:[#allocation2 + $0x410] sm:$0xff] }
  0xda   :  { %8702 = vmatmul.mubr.bf16.vlgmr.msra.gmra.mrb[64].mxu1 %v14153_v7  ;;  %6910 = vmatpush1.bf16.msra.mxu0 %v13030_v8  ;;  %v14179_v46 = vcombine.high %v187_v39, %v203_v40  ;;  %v14201_v8 = vcombine.low %v251_v61, %v267_v62 }
  0xdb   :  { %6911 = vmatprep.subr.bf16.mxu0 %v13035_v9  ;;  %6862 = vmatprep.mubr.bf16.mxu0 %v14123_v42  ;;  %v13087_v42 = vld [vmem:[#allocation5 + $0x5d8] ss:$12 sps:$4 sm:$0xff]   ;;  %v13081_v9 = vld [vmem:[#allocation5 + $0x4fc] ss:$12 sps:$4 sm:$0xff]  }
  0xdc   :  { %8709 = vmatprep.mubr.bf16.mxu1 %v14155_v10  ;;  %11574 = vmatpush3.bf16.msra.mxu1 %v13058_v11  ;;  %v13079_v11 = vld [vmem:[#allocation5 + $0x4f8] ss:$12 sps:$4 sm:$0xff]  }
  0xdd   :  { %11575 = vmatprep.subr.bf16.mxu1 %v13062_v12  ;;  %v13086_v12 = vld [vmem:[#allocation5 + $0x514] ss:$12 sps:$4 sm:$0xff]  }
  0xde   :  { %6912 = vmatpush1.bf16.msra.mxu0 %v13033_v13  ;;  %v60_v13 = vld [vmem:[#allocation2 + $0x18] sm:$0xff] }
  0xdf   :  { %6913 = vmatprep.subr.bf16.mxu0 %v13038_v14  ;;  %v76_v14 = vld [vmem:[#allocation2 + $0x98] sm:$0xff] }
  0xe0   :  { %11576 = vmatpush3.bf16.msra.mxu1 %v13063_v16  ;;  %v14209_v16 = vcombine.low %v283_v5, %v299_v6 }
  0xe1   :  { %6863 = vmatmul.mubr.bf16.gmra.mrb[20].mxu0 %v14129_v48  ;;  %11577 = vmatprep.subr.bf16.mxu1 %v13067_v18  ;;  %v13092_v48 = vld [vmem:[#allocation5 + $0x5f0] ss:$12 sps:$4 sm:$0xff]   ;;  %v14211_v18 = vcombine.high %v60_v13, %v76_v14 }
  0xe2   :  { %8710 = vmatmul.mubr.bf16.gmra.mrb[68].mxu1 %v14161_v20  ;;  %6914 = vmatpush1.bf16.msra.mxu0 %v13036_v19  ;;  %v13089_v19 = vld [vmem:[#allocation5 + $0x528] ss:$12 sps:$4 sm:$0xff]  }
  0xe3   :  { %6915 = vmatprep.subr.bf16.mxu0 %v13041_v21  ;;  %6872 = vmatprep.mubr.bf16.mxu0 %v14131_v50  ;;  %v13056_v50 = vld [vmem:[#allocation5 + $0x484] ss:$12 sps:$4 sm:$0xff]   ;;  %v92_v21 = vld [vmem:[#allocation2 + $0x118] sm:$0xff] }
  0xe4   :  { %8717 = vmatprep.mubr.bf16.mxu1 %v14163_v22  ;;  %11578 = vmatpush3.bf16.msra.mxu1 %v13068_v23  ;;  %v14217_v23 = vcombine.low %v60_v13, %v76_v14  ;;  %v13185_v13 = vld [vmem:[#allocation5 + $0x848] ss:$12 sps:$4 sm:$0xff]   ;;  %v13118_v14 = vld [vmem:[#allocation5 + $0x600] ss:$12 sps:$4 sm:$0xff]  }
  0xe5   :  { %11579 = vmatprep.subr.bf16.mxu1 %v13072_v24  ;;  %v13094_v24 = vld [vmem:[#allocation5 + $0x540] ss:$12 sps:$4 sm:$0xff]  }
  0xe6   :  { %6916 = vmatpush1.bf16.msra.mxu0 %v13039_v25  ;;  %v13099_v25 = vld [vmem:[#allocation5 + $0x55c] ss:$12 sps:$4 sm:$0xff]  }
  0xe7   :  { %6917 = vmatprep.subr.bf16.mxu0 %v13044_v26 }
  0xe8   :  { %11580 = vmatpush3.bf16.msra.mxu1 %v13073_v27  ;;  %v13122_v27 = vld [vmem:[#allocation5 + $0x608] ss:$12 sps:$4 sm:$0xff]  }
  0xe9   :  { %6873 = vmatmul.mubr.bf16.gmra.mrb[24].mxu0 %v14137_v56  ;;  %11581 = vmatprep.subr.bf16.mxu1 %v13077_v30  ;;  %v14185_v56 = vcombine.low %v187_v39, %v203_v40  ;;  %v13102_v30 = vld [vmem:[#allocation5 + $0x574] ss:$12 sps:$4 sm:$0xff]   ;;  %v13132_v40 = vld [vmem:[#allocation5 + $0x638] ss:$12 sps:$4 sm:$0xff]  }
  0xea   :  { %8718 = vmatmul.mubr.bf16.gmra.mrb[72].mxu1 %v14169_v32  ;;  %6918 = vmatpush1.bf16.msra.mxu0 %v13042_v31  ;;  %v124_v31 = vld [vmem:[#allocation2 + $0x218] sm:$0xff] }
  0xeb   :  { %6919 = vmatprep.subr.bf16.mxu0 %v13047_v33  ;;  %6882 = vmatprep.mubr.bf16.mxu0 %v14139_v58  ;;  %v14187_v58 = vcombine.high %v219_v51, %v235_v52  ;;  %v13127_v33 = vld [vmem:[#allocation5 + $0x620] ss:$12 sps:$4 sm:$0xff]  }
  0xec   :  { %8725 = vmatprep.mubr.bf16.mxu1 %v14171_v34  ;;  %11582 = vmatpush3.bf16.msra.mxu1 %v13078_v35  ;;  %v13100_v35 = vld [vmem:[#allocation5 + $0x570] ss:$12 sps:$4 sm:$0xff]  }
  0xed   :  { %11583 = vmatprep.subr.bf16.mxu1 %v13082_v36 }
  0xee   :  { %6920 = vmatpush1.bf16.msra.mxu0 %v13045_v37  ;;  %v13105_v37 = vld [vmem:[#allocation5 + $0x58c] ss:$12 sps:$4 sm:$0xff]  }
  0xef   :  { %6921 = vmatprep.subr.bf16.mxu0 %v13050_v38  ;;  %v13103_v38 = vld [vmem:[#allocation5 + $0x588] ss:$12 sps:$4 sm:$0xff]  }
  0xf0   :  { %11584 = vmatpush3.bf16.msra.mxu1 %v13083_v41  ;;  %v13136_v41 = vld [vmem:[#allocation5 + $0x710] ss:$12 sps:$4 sm:$0xff]  }
  0xf1   :  { %6883 = vmatmul.mubr.bf16.gmra.mrb[28].mxu0 %v14145_v0  ;;  %11585 = vmatprep.subr.bf16.mxu1 %v13087_v42  ;;  %v14193_v0 = vcombine.low %v219_v51, %v235_v52  ;;  %v13108_v42 = vld [vmem:[#allocation5 + $0x5a4] ss:$12 sps:$4 sm:$0xff]   ;;  %v13142_v51 = vld [vmem:[#allocation5 + $0x668] ss:$12 sps:$4 sm:$0xff]   ;;  %v13146_v52 = vld [vmem:[#allocation5 + $0x740] ss:$12 sps:$4 sm:$0xff]  }
  0xf2   :  { %8726 = vmatmul.mubr.bf16.gmra.mrb[76].mxu1 %v14177_v44  ;;  %6922 = vmatpush1.bf16.msra.mxu0 %v13048_v43  ;;  %v156_v43 = vld [vmem:[#allocation2 + $0x318] sm:$0xff] }
  0xf3   :  { %6923 = vmatprep.subr.bf16.mxu0 %v13053_v45  ;;  %6925 = vmatprep.mubr.bf16.mxu0 %v14147_v2  ;;  %v14195_v2 = vcombine.high %v251_v61, %v267_v62  ;;  %v13137_v45 = vld [vmem:[#allocation5 + $0x650] ss:$12 sps:$4 sm:$0xff]  }
  0xf4   :  { %8733 = vmatprep.mubr.bf16.mxu1 %v14179_v46  ;;  %11586 = vmatpush3.bf16.msra.mxu1 %v13088_v47  ;;  %v13106_v47 = vld [vmem:[#allocation5 + $0x5a0] ss:$12 sps:$4 sm:$0xff]  }
  0xf5   :  { %11587 = vmatprep.subr.bf16.mxu1 %v13092_v48 }
  0xf6   :  { %6924 = vmatpush1.bf16.msra.mxu0 %v13051_v49  ;;  %v13111_v49 = vld [vmem:[#allocation5 + $0x5bc] ss:$12 sps:$4 sm:$0xff]  }
  0xf7   :  { %7006 = vmatprep.subr.bf16.mxu0 %v13056_v50 }
  0xf8   :  { %11588 = vmatpush3.bf16.msra.mxu1 %v13093_v53  ;;  %v13109_v53 = vld [vmem:[#allocation5 + $0x5b8] ss:$12 sps:$4 sm:$0xff]  }
  0xf9   :  { %6926 = vmatmul.mubr.bf16.vlgmr.msra.gmra.mrb[0].mxu0 %v14153_v7  ;;  %11637 = vmatprep.subr.bf16.mxu1 %v13121_v54  ;;  %v13074_v7 = vld [vmem:[#allocation5 + $0x4e0] ss:$12 sps:$4 sm:$0xff]  }
  0xfa   :  { %8734 = vmatmul.mubr.bf16.gmra.mrb[80].mxu1 %v14185_v56  ;;  %7007 = vmatpush1.bf16.msra.mxu0 %v13054_v55  ;;  %v13114_v54 = vld [vmem:[#allocation5 + $0x5d4] ss:$12 sps:$4 sm:$0xff]   ;;  %v188_v55 = vld [vmem:[#allocation2 + $0x418] sm:$0xff] }
  0xfb   :  { %7008 = vmatprep.subr.bf16.mxu0 %v13061_v57  ;;  %6935 = vmatprep.mubr.bf16.mxu0 %v14155_v10  ;;  %v14203_v10 = vcombine.high %v283_v5, %v299_v6  ;;  %v204_v57 = vld [vmem:[#allocation2 + $0x498] sm:$0xff] }
  0xfc   :  { %8741 = vmatprep.mubr.bf16.mxu1 %v14187_v58  ;;  %v13152_v5 = vld [vmem:[#allocation5 + $0x698] ss:$12 sps:$4 sm:$0xff]  }
  0xfe   :  { %7009 = vmatpush1.bf16.msra.mxu0 %v13059_v59  ;;  %v13151_v59 = vld [vmem:[#allocation5 + $0x758] ss:$12 sps:$4 sm:$0xff]  }
  0xff   :  { %7010 = vmatprep.subr.bf16.mxu0 %v13066_v60  ;;  %v13112_v60 = vld [vmem:[#allocation5 + $0x5d0] ss:$12 sps:$4 sm:$0xff]  }
 0x101   :  { %6936 = vmatmul.mubr.bf16.gmra.mrb[4].mxu0 %v14161_v20  ;;  %v13096_v20 = vld [vmem:[#allocation5 + $0x544] ss:$12 sps:$4 sm:$0xff]  }
 0x102   :  { %8742 = vmatmul.mubr.bf16.gmra.mrb[84].mxu1 %v14193_v0  ;;  %7011 = vmatpush1.bf16.msra.mxu0 %v13064_v63  ;;  %v13117_v63 = vld [vmem:[#allocation5 + $0x5ec] ss:$12 sps:$4 sm:$0xff]  }
 0x103   :  { %7012 = vmatprep.subr.bf16.mxu0 %v13071_v1  ;;  %6945 = vmatprep.mubr.bf16.mxu0 %v14163_v22  ;;  %v108_v22 = vld [vmem:[#allocation2 + $0x198] sm:$0xff] }
 0x104   :  { %8749 = vmatprep.mubr.bf16.mxu1 %v14195_v2  ;;  %v14219_v26 = vcombine.high %v92_v21, %v108_v22  ;;  %v14225_v36 = vcombine.low %v92_v21, %v108_v22  ;;  %v13123_v22 = vld [vmem:[#allocation5 + $0x618] ss:$12 sps:$4 sm:$0xff]  }
 0x106   :  { %7013 = vmatpush1.bf16.msra.mxu0 %v13069_v3  ;;  %v14245_v3 = vcombine.high %v188_v55, %v204_v57 }
 0x107   :  { %7014 = vmatprep.subr.bf16.mxu0 %v13076_v4 }
 0x109   :  { %6946 = vmatmul.mubr.bf16.gmra.mrb[8].mxu0 %v14169_v32  ;;  %v140_v32 = vld [vmem:[#allocation2 + $0x298] sm:$0xff] }
 0x10a   :  { %8750 = vmatmul.mubr.bf16.gmra.mrb[88].mxu1 %v14201_v8  ;;  %7015 = vmatpush1.bf16.msra.mxu0 %v13074_v7  ;;  %v14227_v39 = vcombine.high %v124_v31, %v140_v32  ;;  %v14233_v48 = vcombine.low %v124_v31, %v140_v32  ;;  %v13156_v7 = vld [vmem:[#allocation5 + $0x770] ss:$12 sps:$4 sm:$0xff]  }
 0x10b   :  { %7016 = vmatprep.subr.bf16.mxu0 %v13081_v9  ;;  %6955 = vmatprep.mubr.bf16.mxu0 %v14171_v34  ;;  %v13131_v34 = vld [vmem:[#allocation5 + $0x6f8] ss:$12 sps:$4 sm:$0xff]  }
 0x10c   :  { %8757 = vmatprep.mubr.bf16.mxu1 %v14203_v10  ;;  %v220_v9 = vld [vmem:[#allocation2 + $0x518] sm:$0xff] }
 0x10e   :  { %7017 = vmatpush1.bf16.msra.mxu0 %v13079_v11  ;;  %v13157_v11 = vld [vmem:[#allocation5 + $0x6b0] ss:$12 sps:$4 sm:$0xff]  }
 0x10f   :  { %7018 = vmatprep.subr.bf16.mxu0 %v13086_v12 }
 0x111   :  { %6956 = vmatmul.mubr.bf16.gmra.mrb[12].mxu0 %v14177_v44  ;;  %v172_v44 = vld [vmem:[#allocation2 + $0x398] sm:$0xff] }
 0x112   :  { %8758 = vmatmul.mubr.bf16.gmra.mrb[92].mxu1 %v14209_v16  ;;  %7019 = vmatpush1.bf16.msra.mxu0 %v13084_v15  ;;  %v14235_v50 = vcombine.high %v156_v43, %v172_v44  ;;  %v14241_v61 = vcombine.low %v156_v43, %v172_v44  ;;  %v14253_v15 = vcombine.low %v188_v55, %v204_v57  ;;  %v300_v43 = vld [vmem:[#allocation2 + $0x798] sm:$0xff]  ;;  %v61_v55 = vld [vmem:[#allocation2 + $0x20] sm:$0xff] }
 0x113   :  { %7020 = vmatprep.subr.bf16.mxu0 %v13091_v17  ;;  %6965 = vmatprep.mubr.bf16.mxu0 %v14179_v46  ;;  %v13141_v46 = vld [vmem:[#allocation5 + $0x728] ss:$12 sps:$4 sm:$0xff]  }
 0x114   :  { %8798 = vmatprep.mubr.bf16.mxu1 %v14211_v18 }
 0x116   :  { %7021 = vmatpush1.bf16.msra.mxu0 %v13089_v19 }
 0x117   :  { %7022 = vmatprep.subr.bf16.mxu0 %v13096_v20 }
 0x119   :  { %6966 = vmatmul.mubr.bf16.gmra.mrb[16].mxu0 %v14185_v56  ;;  %v13147_v56 = vld [vmem:[#allocation5 + $0x680] ss:$12 sps:$4 sm:$0xff]  }
 0x11a   :  { %8799 = vmatmul.mubr.bf16.vlgmr.msra.gmra.mrb[96].mxu1 %v14217_v23  ;;  %7023 = vmatpush1.bf16.msra.mxu0 %v13094_v24  ;;  %v13130_v24 = vld [vmem:[#allocation5 + $0x634] ss:$12 sps:$4 sm:$0xff]  }
 0x11b   :  { %7024 = vmatprep.subr.bf16.mxu0 %v13099_v25  ;;  %6975 = vmatprep.mubr.bf16.mxu0 %v14187_v58 }
 0x11c   :  { %8806 = vmatprep.mubr.bf16.mxu1 %v14219_v26  ;;  %11638 = vmatpush3.bf16.msra.mxu1 %v13122_v27  ;;  %v13128_v27 = vld [vmem:[#allocation5 + $0x630] ss:$12 sps:$4 sm:$0xff]  }
 0x11d   :  { %11639 = vmatprep.subr.bf16.mxu1 %v13126_v29  ;;  %v268_v29 = vld [vmem:[#allocation2 + $0x698] sm:$0xff] }
 0x11e   :  { %7025 = vmatpush1.bf16.msra.mxu0 %v13097_v28  ;;  %v252_v28 = vld [vmem:[#allocation2 + $0x618] sm:$0xff] }
 0x11f   :  { %7026 = vmatprep.subr.bf16.mxu0 %v13102_v30 }
 0x120   :  { %11640 = vmatpush3.bf16.msra.mxu1 %v13127_v33 }
 0x121   :  { %6976 = vmatmul.mubr.bf16.gmra.mrb[20].mxu0 %v14193_v0  ;;  %11641 = vmatprep.subr.bf16.mxu1 %v13131_v34 }
 0x122   :  { %8807 = vmatmul.mubr.bf16.gmra.mrb[100].mxu1 %v14225_v36  ;;  %7027 = vmatpush1.bf16.msra.mxu0 %v13100_v35  ;;  %v14269_v35 = vcombine.high %v252_v28, %v268_v29 }
 0x123   :  { %7028 = vmatprep.subr.bf16.mxu0 %v13105_v37  ;;  %6985 = vmatprep.mubr.bf16.mxu0 %v14195_v2  ;;  %v13115_v2 = vld [vmem:[#allocation5 + $0x5e8] ss:$12 sps:$4 sm:$0xff]  }
 0x124   :  { %8814 = vmatprep.mubr.bf16.mxu1 %v14227_v39  ;;  %11642 = vmatpush3.bf16.msra.mxu1 %v13132_v40 }
 0x125   :  { %11643 = vmatprep.subr.bf16.mxu1 %v13136_v41  ;;  %v13138_v41 = vld [vmem:[#allocation5 + $0x660] ss:$12 sps:$4 sm:$0xff]  }
 0x126   :  { %7029 = vmatpush1.bf16.msra.mxu0 %v13103_v38  ;;  %v13140_v38 = vld [vmem:[#allocation5 + $0x664] ss:$12 sps:$4 sm:$0xff]  }
 0x127   :  { %7030 = vmatprep.subr.bf16.mxu0 %v13108_v42  ;;  %v284_v42 = vld [vmem:[#allocation2 + $0x718] sm:$0xff] }
 0x128   :  { %11644 = vmatpush3.bf16.msra.mxu1 %v13137_v45  ;;  %v14277_v45 = vcombine.low %v252_v28, %v268_v29  ;;  %v141_v28 = vld [vmem:[#allocation2 + $0x2a0] sm:$0xff]  ;;  %v13164_v29 = vld [vmem:[#allocation5 + $0x6f0] ss:$12 sps:$4 sm:$0xff]  }
 0x129   :  { %6986 = vmatmul.mubr.bf16.gmra.mrb[24].mxu0 %v14201_v8  ;;  %11645 = vmatprep.subr.bf16.mxu1 %v13141_v46  ;;  %v13120_v8 = vld [vmem:[#allocation5 + $0x604] ss:$12 sps:$4 sm:$0xff]  }
 0x12a   :  { %8815 = vmatmul.mubr.bf16.gmra.mrb[104].mxu1 %v14233_v48  ;;  %7031 = vmatpush1.bf16.msra.mxu0 %v13106_v47 }
 0x12b   :  { %7032 = vmatprep.subr.bf16.mxu0 %v13111_v49  ;;  %6995 = vmatprep.mubr.bf16.mxu0 %v14203_v10  ;;  %v236_v10 = vld [vmem:[#allocation2 + $0x598] sm:$0xff] }
 0x12c   :  { %8822 = vmatprep.mubr.bf16.mxu1 %v14235_v50  ;;  %11646 = vmatpush3.bf16.msra.mxu1 %v13142_v51  ;;  %v11397_v58 = vpop.f32.mrb[0].mxu1  ;;  %v14265_v31 = vcombine.low %v220_v9, %v236_v10  ;;  %v14281_v51 = vcombine.high %v284_v42, %v300_v43 }
 0x12d   :  { %11647 = vmatprep.subr.bf16.mxu1 %v13146_v52  ;;  %v11398_v62 = vpop.f32.mrb[1].mxu1 }
 0x12e   :  { %7033 = vmatpush1.bf16.msra.mxu0 %v13109_v53  ;;  %v14243_v0 = vadd.f32 %v11398_v62, %v11397_v58  ;;  %v11400_v1 = vpop.f32.mrb[2].mxu1  ;;  %v13150_v53 = vld [vmem:[#allocation5 + $0x694] ss:$12 sps:$4 sm:$0xff]   ;;  %v13148_v58 = vld [vmem:[#allocation5 + $0x690] ss:$12 sps:$4 sm:$0xff]  }
 0x12f   :  { %7034 = vmatprep.subr.bf16.mxu0 %v13114_v54  ;;  %v11401_v4 = vpop.f32.mrb[3].mxu1 }
 0x130   :  { %11648 = vmatpush3.bf16.msra.mxu1 %v13147_v56  ;;  %v14248_v6 = vadd.f32 %v11401_v4, %v11400_v1  ;;  %v77_v56 = vld [vmem:[#allocation2 + $0xa0] sm:$0xff] }
 0x131   :  { %6996 = vmatmul.mubr.bf16.gmra.mrb[28].mxu0 %v14209_v16  ;;  %11649 = vmatprep.subr.bf16.mxu1 %v13151_v59  ;;  %v13125_v16 = vld [vmem:[#allocation5 + $0x61c] ss:$12 sps:$4 sm:$0xff]   ;;  %v14289_v59 = vcombine.low %v284_v42, %v300_v43  ;;  %v14293_v1 = vcombine.high %v61_v55, %v77_v56  ;;  %v13160_v4 = vld [vmem:[#allocation5 + $0x6c4] ss:$12 sps:$4 sm:$0xff]  }
 0x132   :  { %8823 = vmatmul.mubr.bf16.gmra.mrb[108].mxu1 %v14241_v61  ;;  %7035 = vmatpush1.bf16.msra.mxu0 %v13112_v60 }
 0x133   :  { %7036 = vmatprep.subr.bf16.mxu0 %v13117_v63  ;;  %7038 = vmatprep.mubr.bf16.mxu0 %v14211_v18  ;;  %v14257_v18 = vcombine.high %v220_v9, %v236_v10  ;;  %v109_v9 = vld [vmem:[#allocation2 + $0x1a0] sm:$0xff]  ;;  %v14301_v10 = vcombine.low %v61_v55, %v77_v56 }
 0x134   :  { %8830 = vmatprep.mubr.bf16.mxu1 %v14245_v3  ;;  %11650 = vmatpush3.bf16.msra.mxu1 %v13152_v5  ;;  %v11403_v12 = vpop.f32.mrb[4].mxu1  ;;  %v13170_v55 = vld [vmem:[#allocation5 + $0x720] ss:$12 sps:$4 sm:$0xff]  }
 0x135   :  { %11651 = vmatprep.subr.bf16.mxu1 %v13156_v7  ;;  %v11404_v17 = vpop.f32.mrb[5].mxu1 }
 0x136   :  { %7037 = vmatpush1.bf16.msra.mxu0 %v13115_v2  ;;  %v14255_v19 = vadd.f32 %v11404_v17, %v11403_v12  ;;  %v11406_v20 = vpop.f32.mrb[6].mxu1 }
 0x137   :  { %7119 = vmatprep.subr.bf16.mxu0 %v13120_v8  ;;  %v11407_v21 = vpop.f32.mrb[7].mxu1  ;;  %v93_v8 = vld [vmem:[#allocation2 + $0x120] sm:$0xff] }
 0x138   :  { %11652 = vmatpush3.bf16.msra.mxu1 %v13157_v11  ;;  %v14260_v25 = vadd.f32 %v11407_v21, %v11406_v20  ;;  %v13158_v11 = vld [vmem:[#allocation5 + $0x6c0] ss:$12 sps:$4 sm:$0xff]   ;;  %v14305_v17 = vcombine.high %v93_v8, %v109_v9 }
 0x139   :  { %7039 = vmatmul.mubr.bf16.vlgmr.msra.gmra.mrb[0].mxu0 %v14217_v23  ;;  %11701 = vmatprep.subr.bf16.mxu1 %v13185_v13  ;;  %v13135_v23 = vld [vmem:[#allocation5 + $0x64c] ss:$12 sps:$4 sm:$0xff]   ;;  %v13166_v21 = vld [vmem:[#allocation5 + $0x6f4] ss:$12 sps:$4 sm:$0xff]  }
 0x13a   :  { %8831 = vmatmul.mubr.bf16.gmra.mrb[112].mxu1 %v14253_v15  ;;  %7120 = vmatpush1.bf16.msra.mxu0 %v13118_v14 }
 0x13b   :  { %7121 = vmatprep.subr.bf16.mxu0 %v13125_v16  ;;  %7048 = vmatprep.mubr.bf16.mxu0 %v14219_v26  ;;  %v13133_v26 = vld [vmem:[#allocation5 + $0x648] ss:$12 sps:$4 sm:$0xff]   ;;  %v13161_v16 = vld [vmem:[#allocation5 + $0x6d8] ss:$12 sps:$4 sm:$0xff]  }
 0x13c   :  { %8838 = vmatprep.mubr.bf16.mxu1 %v14257_v18  ;;  %v11409_v30 = vpop.f32.mrb[8].mxu1 }
 0x13d   :  { %v11410_v32 = vpop.f32.mrb[9].mxu1 }
 0x13e   :  { %7122 = vmatpush1.bf16.msra.mxu0 %v13123_v22  ;;  %v14267_v33 = vadd.f32 %v11410_v32, %v11409_v30  ;;  %v11412_v34 = vpop.f32.mrb[10].mxu1  ;;  %v13191_v30 = vld [vmem:[#allocation5 + $0x7a0] ss:$12 sps:$4 sm:$0xff]   ;;  %v1323_v32 = vlaneseq }
 0x13f   :  { %7123 = vmatprep.subr.bf16.mxu0 %v13130_v24  ;;  %v11413_v37 = vpop.f32.mrb[11].mxu1  ;;  %v13190_v24 = vld [vmem:[#allocation5 + $0x860] ss:$12 sps:$4 sm:$0xff]  }
 0x140   :  { %v14272_v40 = vadd.f32 %v11413_v37, %v11412_v34  ;;  %v14313_v34 = vcombine.low %v93_v8, %v109_v9  ;;  %v13169_v37 = vld [vmem:[#allocation5 + $0x70c] ss:$12 sps:$4 sm:$0xff]   ;;  %v13206_v9 = vld [vmem:[#allocation5 + $0x7e8] ss:$12 sps:$4 sm:$0xff]  }
 0x141   :  { %7049 = vmatmul.mubr.bf16.gmra.mrb[4].mxu0 %v14225_v36  ;;  %v13145_v36 = vld [vmem:[#allocation5 + $0x67c] ss:$12 sps:$4 sm:$0xff]  }
 0x142   :  { %8839 = vmatmul.mubr.bf16.gmra.mrb[116].mxu1 %v14265_v31  ;;  %7124 = vmatpush1.bf16.msra.mxu0 %v13128_v27  ;;  %v125_v27 = vld [vmem:[#allocation2 + $0x220] sm:$0xff] }
 0x143   :  { %7125 = vmatprep.subr.bf16.mxu0 %v13135_v23  ;;  %7058 = vmatprep.mubr.bf16.mxu0 %v14227_v39  ;;  %v13143_v39 = vld [vmem:[#allocation5 + $0x678] ss:$12 sps:$4 sm:$0xff]   ;;  %v14317_v43 = vcombine.high %v125_v27, %v141_v28 }
 0x144   :  { %8846 = vmatprep.mubr.bf16.mxu1 %v14269_v35  ;;  %v11415_v44 = vpop.f32.mrb[12].mxu1 }
 0x145   :  { %v11416_v46 = vpop.f32.mrb[13].mxu1 }
 0x146   :  { %7126 = vmatpush1.bf16.msra.mxu0 %v13133_v26  ;;  %v14279_v47 = vadd.f32 %v11416_v46, %v11415_v44  ;;  %v11418_v49 = vpop.f32.mrb[14].mxu1  ;;  %v13196_v44 = vld [vmem:[#allocation5 + $0x7b8] ss:$12 sps:$4 sm:$0xff]  }
 0x147   :  { %7127 = vmatprep.subr.bf16.mxu0 %v13140_v38  ;;  %v11419_v52 = vpop.f32.mrb[15].mxu1  ;;  %v13172_v46 = vld [vmem:[#allocation5 + $0x724] ss:$12 sps:$4 sm:$0xff]  }
 0x148   :  { %v14284_v54 = vadd.f32 %v11419_v52, %v11418_v49  ;;  %v13200_v49 = vld [vmem:[#allocation5 + $0x890] ss:$12 sps:$4 sm:$0xff]   ;;  %v14322_v52 = vshrl.u32 %v1323_v32, 7  ;;  %v13179_v32 = vld [vmem:[#allocation5 + $0x768] ss:$12 sps:$4 sm:$0xff]  }
 0x149   :  { %7059 = vmatmul.mubr.bf16.gmra.mrb[8].mxu0 %v14233_v48  ;;  %v13155_v48 = vld [vmem:[#allocation5 + $0x6ac] ss:$12 sps:$4 sm:$0xff]  }
 0x14a   :  { %8847 = vmatmul.mubr.bf16.gmra.mrb[120].mxu1 %v14277_v45  ;;  %7128 = vmatpush1.bf16.msra.mxu0 %v13138_v41  ;;  %v13167_v41 = vld [vmem:[#allocation5 + $0x708] ss:$12 sps:$4 sm:$0xff]  }
 0x14b   :  { %7129 = vmatprep.subr.bf16.mxu0 %v13145_v36  ;;  %7068 = vmatprep.mubr.bf16.mxu0 %v14235_v50  ;;  %v13153_v50 = vld [vmem:[#allocation5 + $0x6a8] ss:$12 sps:$4 sm:$0xff]  }
 0x14c   :  { %8854 = vmatprep.mubr.bf16.mxu1 %v14281_v51  ;;  %v11421_v57 = vpop.f32.mrb[16].mxu1 }
 0x14d   :  { %v11422_v60 = vpop.f32.mrb[17].mxu1 }
 0x14e   :  { %7130 = vmatpush1.bf16.msra.mxu0 %v13143_v39  ;;  %v14291_v62 = vadd.f32 %v11422_v60, %v11421_v57  ;;  %v11424_v63 = vpop.f32.mrb[18].mxu1  ;;  %v157_v39 = vld [vmem:[#allocation2 + $0x320] sm:$0xff]  ;;  %v13205_v57 = vld [vmem:[#allocation5 + $0x8a8] ss:$12 sps:$4 sm:$0xff]  }
 0x14f   :  { %7131 = vmatprep.subr.bf16.mxu0 %v13150_v53  ;;  %v11425_v2 = vpop.f32.mrb[19].mxu1  ;;  %v173_v53 = vld [vmem:[#allocation2 + $0x3a0] sm:$0xff] }
 0x150   :  { %v14296_v5 = vadd.f32 %v11425_v2, %v11424_v63  ;;  %v14328_v63 = vcombine.low %v125_v27, %v141_v28  ;;  %v13175_v2 = vld [vmem:[#allocation5 + $0x73c] ss:$12 sps:$4 sm:$0xff]   ;;  %v14332_v8 = vcombine.high %v157_v39, %v173_v53  ;;  %v14342_v28 = vcombine.low %v157_v39, %v173_v53  ;;  %v237_v39 = vld [vmem:[#allocation2 + $0x5a0] sm:$0xff] }
 0x151   :  { %7069 = vmatmul.mubr.bf16.gmra.mrb[12].mxu0 %v14241_v61  ;;  %v13163_v61 = vld [vmem:[#allocation5 + $0x6dc] ss:$12 sps:$4 sm:$0xff]  }
 0x152   :  { %8855 = vmatmul.mubr.bf16.gmra.mrb[124].mxu1 %v14289_v59  ;;  %7132 = vmatpush1.bf16.msra.mxu0 %v13148_v58  ;;  %v1321_v58 = vld [vmem:[#allocation7] sm:$0x7]  ;;  %v13176_v27 = vld [vmem:[#allocation5 + $0x750] ss:$12 sps:$4 sm:$0xff]  }
 0x153   :  { %7133 = vmatprep.subr.bf16.mxu0 %v13155_v48  ;;  %7078 = vmatprep.mubr.bf16.mxu0 %v14245_v3  ;;  %v13186_v3 = vld [vmem:[#allocation5 + $0x788] ss:$12 sps:$4 sm:$0xff]   ;;  %v1333_v48 = vsub.s32 2, %v14322_v52 }
 0x154   :  { %8895 = vmatprep.mubr.bf16.mxu1 %v14293_v1  ;;  %v11427_v7 = vpop.f32.mrb[20].mxu1 }
 0x155   :  { %v11428_v12 = vpop.f32.mrb[21].mxu1 }
 0x156   :  { %7134 = vmatpush1.bf16.msra.mxu0 %v13153_v50  ;;  %v14303_v13 = vadd.f32 %v11428_v12, %v11427_v7  ;;  %v11430_v14 = vpop.f32.mrb[22].mxu1  ;;  %v13173_v7 = vld [vmem:[#allocation5 + $0x738] ss:$12 sps:$4 sm:$0xff]   ;;  %v13210_v12 = vld [vmem:[#allocation5 + $0x8c0] ss:$12 sps:$4 sm:$0xff]  }
 0x157   :  { %7135 = vmatprep.subr.bf16.mxu0 %v13160_v4  ;;  %v11431_v20 = vpop.f32.mrb[23].mxu1 }
 0x158   :  { %v14308_v22 = vadd.f32 %v11431_v20, %v11430_v14  ;;  %v14338_v14 = vrot.slane %v1321_v58, %v1333_v48  ;;  %v205_v20 = vld [vmem:[#allocation2 + $0x4a0] sm:$0xff] }
 0x159   :  { %7079 = vmatmul.mubr.bf16.gmra.mrb[16].mxu0 %v14253_v15  ;;  %v13195_v15 = vld [vmem:[#allocation5 + $0x878] ss:$12 sps:$4 sm:$0xff]  }
 0x15a   :  { %8896 = vmatmul.mubr.bf16.vlgmr.msra.gmra.mrb[128].mxu1 %v14301_v10  ;;  %7136 = vmatpush1.bf16.msra.mxu0 %v13158_v11  ;;  %v8518_v58 = vadd.f32 %v14255_v19, %v14338_v14 }
 0x15b   :  { %7137 = vmatprep.subr.bf16.mxu0 %v13163_v61  ;;  %7088 = vmatprep.mubr.bf16.mxu0 %v14257_v18  ;;  %v13178_v61 = vld [vmem:[#allocation5 + $0x754] ss:$12 sps:$4 sm:$0xff]  }
 0x15c   :  { %8903 = vmatprep.mubr.bf16.mxu1 %v14305_v17  ;;  %11702 = vmatpush3.bf16.msra.mxu1 %v13186_v3  ;;  %v11433_v23 = vpop.f32.mrb[24].mxu1  ;;  %v13211_v3 = vld [vmem:[#allocation5 + $0x800] ss:$12 sps:$4 sm:$0xff]  }
 0x15d   :  { %11703 = vmatprep.subr.bf16.mxu1 %v13190_v24  ;;  %v11434_v26 = vpop.f32.mrb[25].mxu1 }
 0x15e   :  { %7138 = vmatpush1.bf16.msra.mxu0 %v13161_v16  ;;  %v14315_v38 = vadd.f32 %v11434_v26, %v11433_v23  ;;  %v11436_v18 = vpop.f32.mrb[26].mxu1  ;;  %v189_v16 = vld [vmem:[#allocation2 + $0x420] sm:$0xff] }
 0x15f   :  { %7139 = vmatprep.subr.bf16.mxu0 %v13166_v21  ;;  %v11437_v42 = vpop.f32.mrb[27].mxu1  ;;  %v13215_v21 = vld [vmem:[#allocation5 + $0x8d8] ss:$12 sps:$4 sm:$0xff]  }
 0x160   :  { %11704 = vmatpush3.bf16.msra.mxu1 %v13191_v30  ;;  %v14320_v36 = vadd.f32 %v11437_v42, %v11436_v18  ;;  %v8510_v30 = vadd.f32 %v14243_v0, %v14338_v14  ;;  %v13216_v26 = vld [vmem:[#allocation5 + $0x818] ss:$12 sps:$4 sm:$0xff]   ;;  %v8513_v18 = vadd.f32 %v14248_v6, %v14338_v14  ;;  %v13220_v0 = vld [vmem:[#allocation5 + $0x8f0] ss:$12 sps:$4 sm:$0xff]  }
 0x161   :  { %7089 = vmatmul.mubr.bf16.gmra.mrb[20].mxu0 %v14265_v31  ;;  %11705 = vmatprep.subr.bf16.mxu1 %v13195_v15  ;;  %v13201_v31 = vld [vmem:[#allocation5 + $0x7d0] ss:$12 sps:$4 sm:$0xff]  }
 0x162   :  { %8904 = vmatmul.mubr.bf16.gmra.mrb[132].mxu1 %v14313_v34  ;;  %7140 = vmatpush1.bf16.msra.mxu0 %v13164_v29  ;;  %v13181_v29 = vld [vmem:[#allocation5 + $0x76c] ss:$12 sps:$4 sm:$0xff]   ;;  %v13221_v6 = vld [vmem:[#allocation5 + $0x830] ss:$12 sps:$4 sm:$0xff]  }
 0x163   :  { %7141 = vmatprep.subr.bf16.mxu0 %v13169_v37  ;;  %7098 = vmatprep.mubr.bf16.mxu0 %v14269_v35  ;;  %v14346_v37 = vcombine.high %v189_v16, %v205_v20 }
 0x164   :  { %8911 = vmatprep.mubr.bf16.mxu1 %v14317_v43  ;;  %11706 = vmatpush3.bf16.msra.mxu1 %v13196_v44  ;;  %v11439_v56 = vpop.f32.mrb[28].mxu1  ;;  %v13184_v44 = vld [vmem:[#allocation5 + $0x784] ss:$12 sps:$4 sm:$0xff]  }
 0x165   :  { %11707 = vmatprep.subr.bf16.mxu1 %v13200_v49  ;;  %v11440_v60 = vpop.f32.mrb[29].mxu1  ;;  %v221_v49 = vld [vmem:[#allocation2 + $0x520] sm:$0xff] }
 0x166   :  { %7142 = vmatpush1.bf16.msra.mxu0 %v13167_v41  ;;  %v14330_v35 = vadd.f32 %v11440_v60, %v11439_v56  ;;  %v11442_v50 = vpop.f32.mrb[30].mxu1  ;;  %v14358_v56 = vcombine.low %v189_v16, %v205_v20  ;;  %v253_v16 = vld [vmem:[#allocation2 + $0x620] sm:$0xff] }
 0x167   :  { %7143 = vmatprep.subr.bf16.mxu0 %v13172_v46  ;;  %v11443_v4 = vpop.f32.mrb[31].mxu1  ;;  %v269_v20 = vld [vmem:[#allocation2 + $0x6a0] sm:$0xff] }
 0x168   :  { %11708 = vmatpush3.bf16.msra.mxu1 %v13201_v31  ;;  %v14335_v11 = vadd.f32 %v11443_v4, %v11442_v50  ;;  %v13182_v31 = vld [vmem:[#allocation5 + $0x780] ss:$12 sps:$4 sm:$0xff]   ;;  %v8521_v50 = vadd.f32 %v14260_v25, %v14338_v14 }
 0x169   :  { %7099 = vmatmul.mubr.bf16.gmra.mrb[24].mxu0 %v14277_v45  ;;  %11709 = vmatprep.subr.bf16.mxu1 %v13205_v57  ;;  %v13189_v57 = vld [vmem:[#allocation5 + $0x79c] ss:$12 sps:$4 sm:$0xff]  }
 0x16a   :  { %8912 = vmatmul.mubr.bf16.gmra.mrb[136].mxu1 %v14328_v63  ;;  %7144 = vmatpush1.bf16.msra.mxu0 %v13170_v55 }
 0x16b   :  { %7145 = vmatprep.subr.bf16.mxu0 %v13175_v2  ;;  %7108 = vmatprep.mubr.bf16.mxu0 %v14281_v51  ;;  %v14362_v2 = vcombine.high %v221_v49, %v237_v39 }
 0x16c   :  { %8919 = vmatprep.mubr.bf16.mxu1 %v14332_v8  ;;  %11710 = vmatpush3.bf16.msra.mxu1 %v13206_v9  ;;  %v11461_v45 = vpop.f32.mrb[32].mxu1  ;;  %v13187_v9 = vld [vmem:[#allocation5 + $0x798] ss:$12 sps:$4 sm:$0xff]  }
 0x16d   :  { %11711 = vmatprep.subr.bf16.mxu1 %v13210_v12  ;;  %v11462_v24 = vpop.f32.mrb[33].mxu1  ;;  %v13192_v12 = vld [vmem:[#allocation5 + $0x7b0] ss:$12 sps:$4 sm:$0xff]  }
 0x16e   :  { %7146 = vmatpush1.bf16.msra.mxu0 %v13173_v7  ;;  %v11463_v23 = vadd.f32 %v11462_v24, %v11461_v45  ;;  %v11464_v51 = vpop.f32.mrb[34].mxu1  ;;  %v13199_v45 = vld [vmem:[#allocation5 + $0x7cc] ss:$12 sps:$4 sm:$0xff]  }
 0x16f   :  { %7147 = vmatprep.subr.bf16.mxu0 %v13178_v61  ;;  %v11465_v15 = vpop.f32.mrb[35].mxu1  ;;  %v13194_v61 = vld [vmem:[#allocation5 + $0x7b4] ss:$12 sps:$4 sm:$0xff]  }
 0x170   :  { %11712 = vmatpush3.bf16.msra.mxu1 %v13211_v3  ;;  %v14350_v41 = vadd.f32 %v11463_v23, %v8510_v30  ;;  %v11466_v42 = vadd.f32 %v11465_v15, %v11464_v51  ;;  %v14378_v30 = vcombine.high %v253_v16, %v269_v20  ;;  %v13197_v15 = vld [vmem:[#allocation5 + $0x7c8] ss:$12 sps:$4 sm:$0xff]  }
 0x171   :  { %7109 = vmatmul.mubr.bf16.gmra.mrb[28].mxu0 %v14289_v59  ;;  %11713 = vmatprep.subr.bf16.mxu1 %v13215_v21  ;;  %v13249_v59 = vld [vmem:[#allocation5 + $0x9c8] ss:$12 sps:$4 sm:$0xff]   ;;  %v8526_v21 = vadd.f32 %v14267_v33, %v14338_v14 }
 0x172   :  { %8920 = vmatmul.mubr.bf16.gmra.mrb[140].mxu1 %v14342_v28  ;;  %7148 = vmatpush1.bf16.msra.mxu0 %v13176_v27  ;;  %v14354_v46 = vadd.f32 %v11466_v42, %v8513_v18  ;;  %v301_v42 = vld [vmem:[#allocation2 + $0x7a0] sm:$0xff] }
 0x173   :  { %7149 = vmatprep.subr.bf16.mxu0 %v13181_v29  ;;  %7151 = vmatprep.mubr.bf16.mxu0 %v14293_v1 }
 0x174   :  { %8927 = vmatprep.mubr.bf16.mxu1 %v14346_v37  ;;  %11714 = vmatpush3.bf16.msra.mxu1 %v13216_v26  ;;  %v13202_v26 = vld [vmem:[#allocation5 + $0x7e0] ss:$12 sps:$4 sm:$0xff]  }
 0x175   :  { %v11467_v53 = vpop.f32.mrb[36].mxu1  ;;  %11715 = vmatprep.subr.bf16.mxu1 %v13220_v0  ;;  %v14390_v0 = vcombine.low %v253_v16, %v269_v20 }
 0x176   :  { %v11468_v55 = vpop.f32.mrb[37].mxu1  ;;  %7150 = vmatpush1.bf16.msra.mxu0 %v13179_v32  ;;  %v13204_v32 = vld [vmem:[#allocation5 + $0x7e4] ss:$12 sps:$4 sm:$0xff]  }
 0x177   :  { %v11469_v48 = vadd.f32 %v11468_v55, %v11467_v53  ;;  %v11470_v1 = vpop.f32.mrb[38].mxu1  ;;  %7232 = vmatprep.subr.bf16.mxu0 %v13184_v44 }
 0x178   :  { %v11471_v60 = vpop.f32.mrb[39].mxu1  ;;  %11716 = vmatpush3.bf16.msra.mxu1 %v13221_v6 }
 0x179   :  { %v14366_v4 = vadd.f32 %v11469_v48, %v8518_v58  ;;  %v11472_v7 = vadd.f32 %v11471_v60, %v11470_v1  ;;  %7152 = vmatmul.mubr.bf16.vlgmr.msra.gmra.mrb[0].mxu0 %v14301_v10  ;;  %11765 = vmatprep.subr.bf16.mxu1 %v13249_v59  ;;  %v14374_v10 = vcombine.low %v221_v49, %v237_v39  ;;  %v13214_v58 = vld [vmem:[#allocation5 + $0x814] ss:$12 sps:$4 sm:$0xff]   ;;  %v62_v1 = vld [vmem:[#allocation2 + $0x28] sm:$0xff] }
 0x17a   :  { %8928 = vmatmul.mubr.bf16.gmra.mrb[144].mxu1 %v14358_v56  ;;  %7233 = vmatpush1.bf16.msra.mxu0 %v13182_v31  ;;  %v8534_v49 = vadd.f32 %v14279_v47, %v14338_v14 }
 0x17b   :  { %v14370_v19 = vadd.f32 %v11472_v7, %v8521_v50  ;;  %7234 = vmatprep.subr.bf16.mxu0 %v13189_v57  ;;  %7161 = vmatprep.mubr.bf16.mxu0 %v14305_v17  ;;  %v8529_v17 = vadd.f32 %v14272_v40, %v14338_v14  ;;  %v285_v40 = vld [vmem:[#allocation2 + $0x720] sm:$0xff]  ;;  %v13212_v50 = vld [vmem:[#allocation5 + $0x810] ss:$12 sps:$4 sm:$0xff]  }
 0x17c   :  { %8935 = vmatprep.mubr.bf16.mxu1 %v14362_v2  ;;  %v14394_v59 = vcombine.high %v285_v40, %v301_v42  ;;  %v13207_v57 = vld [vmem:[#allocation5 + $0x7f8] ss:$12 sps:$4 sm:$0xff]   ;;  %v14406_v7 = vcombine.low %v285_v40, %v301_v42  ;;  %v13250_v42 = vld [vmem:[#allocation5 + $0x908] ss:$12 sps:$4 sm:$0xff]  }
 0x17d   :  { %v11473_v25 = vpop.f32.mrb[40].mxu1  ;;  %v13225_v40 = vld [vmem:[#allocation5 + $0x858] ss:$12 sps:$4 sm:$0xff]  }
 0x17e   :  { %v11474_v3 = vpop.f32.mrb[41].mxu1  ;;  %7235 = vmatpush1.bf16.msra.mxu0 %v13187_v9  ;;  %v8542_v9 = vadd.f32 %v14291_v62, %v14338_v14 }
 0x17f   :  { %v11475_v24 = vadd.f32 %v11474_v3, %v11473_v25  ;;  %v11476_v27 = vpop.f32.mrb[42].mxu1  ;;  %7236 = vmatprep.subr.bf16.mxu0 %v13194_v61 }
 0x180   :  { %v11477_v29 = vpop.f32.mrb[43].mxu1 }
 0x181   :  { %v14382_v23 = vadd.f32 %v11475_v24, %v8526_v21  ;;  %v11478_v51 = vadd.f32 %v11477_v29, %v11476_v27  ;;  %7162 = vmatmul.mubr.bf16.gmra.mrb[4].mxu0 %v14313_v34  ;;  %v13209_v34 = vld [vmem:[#allocation5 + $0x7fc] ss:$12 sps:$4 sm:$0xff]   ;;  %v13224_v21 = vld [vmem:[#allocation5 + $0x844] ss:$12 sps:$4 sm:$0xff]  }
 0x182   :  { %8936 = vmatmul.mubr.bf16.gmra.mrb[148].mxu1 %v14374_v10  ;;  %7237 = vmatpush1.bf16.msra.mxu0 %v13192_v12  ;;  %v94_v27 = vld [vmem:[#allocation2 + $0x128] sm:$0xff] }
 0x183   :  { %v14386_v33 = vadd.f32 %v11478_v51, %v8529_v17  ;;  %7238 = vmatprep.subr.bf16.mxu0 %v13199_v45  ;;  %7171 = vmatprep.mubr.bf16.mxu0 %v14317_v43  ;;  %v8537_v43 = vadd.f32 %v14284_v54, %v14338_v14  ;;  %v78_v54 = vld [vmem:[#allocation2 + $0xa8] sm:$0xff] }
 0x184   :  { %8943 = vmatprep.mubr.bf16.mxu1 %v14378_v30  ;;  %v14410_v16 = vcombine.high %v62_v1, %v78_v54  ;;  %v13217_v45 = vld [vmem:[#allocation5 + $0x828] ss:$12 sps:$4 sm:$0xff]   ;;  %v14422_v17 = vcombine.low %v62_v1, %v78_v54  ;;  %v13233_v1 = vld [vmem:[#allocation5 + $0x88c] ss:$12 sps:$4 sm:$0xff]   ;;  %v8558_v54 = vadd.f32 %v14315_v38, %v14338_v14  ;;  %v13264_v38 = vld [vmem:[#allocation5 + $0xa10] ss:$12 sps:$4 sm:$0xff]  }
 0x185   :  { %v11479_v18 = vpop.f32.mrb[44].mxu1  ;;  %v13227_v51 = vld [vmem:[#allocation5 + $0x85c] ss:$12 sps:$4 sm:$0xff]  }
 0x186   :  { %v11480_v44 = vpop.f32.mrb[45].mxu1  ;;  %7239 = vmatpush1.bf16.msra.mxu0 %v13197_v15  ;;  %v8550_v15 = vadd.f32 %v14303_v13, %v14338_v14 }
 0x187   :  { %v11481_v39 = vadd.f32 %v11480_v44, %v11479_v18  ;;  %v11482_v6 = vpop.f32.mrb[46].mxu1  ;;  %7240 = vmatprep.subr.bf16.mxu0 %v13204_v32  ;;  %v8553_v44 = vadd.f32 %v14308_v22, %v14338_v14  ;;  %v13228_v22 = vld [vmem:[#allocation5 + $0x870] ss:$12 sps:$4 sm:$0xff]  }
 0x188   :  { %v11483_v53 = vpop.f32.mrb[47].mxu1 }
 0x189   :  { %v14398_v55 = vadd.f32 %v11481_v39, %v8534_v49  ;;  %v11484_v31 = vadd.f32 %v11483_v53, %v11482_v6  ;;  %7172 = vmatmul.mubr.bf16.gmra.mrb[8].mxu0 %v14328_v63  ;;  %v13219_v63 = vld [vmem:[#allocation5 + $0x82c] ss:$12 sps:$4 sm:$0xff]   ;;  %v13230_v39 = vld [vmem:[#allocation5 + $0x874] ss:$12 sps:$4 sm:$0xff]  }
 0x18a   :  { %8944 = vmatmul.mubr.bf16.gmra.mrb[152].mxu1 %v14390_v0  ;;  %7241 = vmatpush1.bf16.msra.mxu0 %v13202_v26  ;;  %v13254_v6 = vld [vmem:[#allocation5 + $0x9e0] ss:$12 sps:$4 sm:$0xff]  }
 0x18b   :  { %v14402_v47 = vadd.f32 %v11484_v31, %v8537_v43  ;;  %7242 = vmatprep.subr.bf16.mxu0 %v13209_v34  ;;  %7181 = vmatprep.mubr.bf16.mxu0 %v14332_v8  ;;  %v8545_v8 = vadd.f32 %v14296_v5, %v14338_v14  ;;  %v110_v5 = vld [vmem:[#allocation2 + $0x1a8] sm:$0xff] }
 0x18c   :  { %8951 = vmatprep.mubr.bf16.mxu1 %v14394_v59  ;;  %v126_v53 = vld [vmem:[#allocation2 + $0x228] sm:$0xff] }
 0x18d   :  { %v11485_v48 = vpop.f32.mrb[48].mxu1  ;;  %v142_v43 = vld [vmem:[#allocation2 + $0x2a8] sm:$0xff] }
 0x18e   :  { %v11486_v60 = vpop.f32.mrb[49].mxu1  ;;  %7243 = vmatpush1.bf16.msra.mxu0 %v13207_v57  ;;  %v13255_v31 = vld [vmem:[#allocation5 + $0x920] ss:$12 sps:$4 sm:$0xff]  }
 0x18f   :  { %v11487_v61 = vadd.f32 %v11486_v60, %v11485_v48  ;;  %v11488_v12 = vpop.f32.mrb[50].mxu1  ;;  %7244 = vmatprep.subr.bf16.mxu0 %v13214_v58  ;;  %v14438_v48 = vcombine.low %v94_v27, %v110_v5 }
 0x190   :  { %v11489_v25 = vpop.f32.mrb[51].mxu1 }
 0x191   :  { %v14414_v20 = vadd.f32 %v11487_v61, %v8542_v9  ;;  %v11490_v3 = vadd.f32 %v11489_v25, %v11488_v12  ;;  %7182 = vmatmul.mubr.bf16.gmra.mrb[12].mxu0 %v14342_v28  ;;  %v13222_v28 = vld [vmem:[#allocation5 + $0x840] ss:$12 sps:$4 sm:$0xff]   ;;  %v14442_v9 = vcombine.high %v126_v53, %v142_v43  ;;  %v13260_v61 = vld [vmem:[#allocation5 + $0x938] ss:$12 sps:$4 sm:$0xff]   ;;  %v8561_v12 = vadd.f32 %v14320_v36, %v14338_v14 }
 0x192   :  { %8952 = vmatmul.mubr.bf16.gmra.mrb[156].mxu1 %v14406_v7  ;;  %7245 = vmatpush1.bf16.msra.mxu0 %v13212_v50  ;;  %v13234_v36 = vld [vmem:[#allocation5 + $0x8a0] ss:$12 sps:$4 sm:$0xff]  }
 0x193   :  { %v14418_v62 = vadd.f32 %v11490_v3, %v8545_v8  ;;  %7246 = vmatprep.subr.bf16.mxu0 %v13219_v63  ;;  %7191 = vmatprep.mubr.bf16.mxu0 %v14346_v37  ;;  %v14426_v37 = vcombine.high %v94_v27, %v110_v5  ;;  %v13231_v63 = vld [vmem:[#allocation5 + $0x888] ss:$12 sps:$4 sm:$0xff]   ;;  %v13236_v3 = vld [vmem:[#allocation5 + $0x8a4] ss:$12 sps:$4 sm:$0xff]  }
 0x194   :  { %8992 = vmatprep.mubr.bf16.mxu1 %v14410_v16  ;;  %v13265_v27 = vld [vmem:[#allocation5 + $0x950] ss:$12 sps:$4 sm:$0xff]  }
 0x195   :  { %v11491_v24 = vpop.f32.mrb[52].mxu1 }
 0x196   :  { %v11492_v29 = vpop.f32.mrb[53].mxu1  ;;  %7247 = vmatpush1.bf16.msra.mxu0 %v13217_v45 }
 0x197   :  { %v11493_v32 = vadd.f32 %v11492_v29, %v11491_v24  ;;  %v11494_v26 = vpop.f32.mrb[54].mxu1  ;;  %7248 = vmatprep.subr.bf16.mxu0 %v13224_v21  ;;  %v158_v21 = vld [vmem:[#allocation2 + $0x328] sm:$0xff] }
 0x198   :  { %v11495_v18 = vpop.f32.mrb[55].mxu1  ;;  %v174_v24 = vld [vmem:[#allocation2 + $0x3a8] sm:$0xff] }
 0x199   :  { %v14430_v34 = vadd.f32 %v11493_v32, %v8550_v15  ;;  %v11496_v49 = vadd.f32 %v11495_v18, %v11494_v26  ;;  %7192 = vmatmul.mubr.bf16.gmra.mrb[16].mxu0 %v14358_v56  ;;  %v13259_v56 = vld [vmem:[#allocation5 + $0x9f8] ss:$12 sps:$4 sm:$0xff]   ;;  %v8566_v15 = vadd.f32 %v14330_v35, %v14338_v14  ;;  %v13274_v35 = vld [vmem:[#allocation5 + $0xa40] ss:$12 sps:$4 sm:$0xff]  }
 0x19a   :  { %8993 = vmatmul.mubr.bf16.vlgmr.msra.gmra.mrb[160].mxu1 %v14422_v17  ;;  %7249 = vmatpush1.bf16.msra.mxu0 %v13222_v28  ;;  %v14454_v28 = vcombine.low %v126_v53, %v142_v43  ;;  %v13237_v18 = vld [vmem:[#allocation5 + $0x8b8] ss:$12 sps:$4 sm:$0xff]   ;;  %v190_v43 = vld [vmem:[#allocation2 + $0x428] sm:$0xff] }
 0x19b   :  { %v14434_v13 = vadd.f32 %v11496_v49, %v8553_v44  ;;  %7250 = vmatprep.subr.bf16.mxu0 %v13227_v51  ;;  %7201 = vmatprep.mubr.bf16.mxu0 %v14362_v2  ;;  %v13239_v51 = vld [vmem:[#allocation5 + $0x8bc] ss:$12 sps:$4 sm:$0xff]   ;;  %v8569_v44 = vadd.f32 %v14335_v11, %v14338_v14  ;;  %v13275_v11 = vld [vmem:[#allocation5 + $0x980] ss:$12 sps:$4 sm:$0xff]  }
 0x19c   :  { %9000 = vmatprep.mubr.bf16.mxu1 %v14426_v37  ;;  %11766 = vmatpush3.bf16.msra.mxu1 %v13250_v42  ;;  %v13270_v42 = vld [vmem:[#allocation5 + $0x968] ss:$12 sps:$4 sm:$0xff]  }
 0x19d   :  { %v11497_v57 = vpop.f32.mrb[56].mxu1  ;;  %11767 = vmatprep.subr.bf16.mxu1 %v13254_v6  ;;  %v13242_v6 = vld [vmem:[#allocation5 + $0x8d4] ss:$12 sps:$4 sm:$0xff]  }
 0x19e   :  { %v11498_v58 = vpop.f32.mrb[57].mxu1  ;;  %7251 = vmatpush1.bf16.msra.mxu0 %v13225_v40  ;;  %v14458_v40 = vcombine.high %v158_v21, %v174_v24 }
 0x19f   :  { %v11499_v60 = vadd.f32 %v11498_v58, %v11497_v57  ;;  %v11500_v2 = vpop.f32.mrb[58].mxu1  ;;  %7252 = vmatprep.subr.bf16.mxu0 %v13230_v39  ;;  %v13240_v57 = vld [vmem:[#allocation5 + $0x8d0] ss:$12 sps:$4 sm:$0xff]   ;;  %v13245_v58 = vld [vmem:[#allocation5 + $0x8ec] ss:$12 sps:$4 sm:$0xff]  }
 0x1a0   :  { %v11501_v50 = vpop.f32.mrb[59].mxu1  ;;  %11768 = vmatpush3.bf16.msra.mxu1 %v13255_v31 }
 0x1a1   :  { %v14446_v25 = vadd.f32 %v11499_v60, %v8558_v54  ;;  %v11502_v8 = vadd.f32 %v11501_v50, %v11500_v2  ;;  %7202 = vmatmul.mubr.bf16.gmra.mrb[20].mxu0 %v14374_v10  ;;  %11769 = vmatprep.subr.bf16.mxu1 %v13259_v56  ;;  %v13269_v10 = vld [vmem:[#allocation5 + $0xa28] ss:$12 sps:$4 sm:$0xff]   ;;  %v14470_v56 = vcombine.low %v158_v21, %v174_v24  ;;  %v13280_v50 = vld [vmem:[#allocation5 + $0x998] ss:$12 sps:$4 sm:$0xff]  }
 0x1a2   :  { %9001 = vmatmul.mubr.bf16.gmra.mrb[164].mxu1 %v14438_v48  ;;  %7253 = vmatpush1.bf16.msra.mxu0 %v13228_v22  ;;  %v206_v22 = vld [vmem:[#allocation2 + $0x4a8] sm:$0xff] }
 0x1a3   :  { %v14450_v45 = vadd.f32 %v11502_v8, %v8561_v12  ;;  %7254 = vmatprep.subr.bf16.mxu0 %v13233_v1  ;;  %7211 = vmatprep.mubr.bf16.mxu0 %v14378_v30  ;;  %v14472_v2 = vcombine.high %v190_v43, %v206_v22  ;;  %v13248_v12 = vld [vmem:[#allocation5 + $0x904] ss:$12 sps:$4 sm:$0xff]   ;;  %v238_v21 = vld [vmem:[#allocation2 + $0x5a8] sm:$0xff] }
 0x1a4   :  { %9008 = vmatprep.mubr.bf16.mxu1 %v14442_v9  ;;  %11770 = vmatpush3.bf16.msra.mxu1 %v13260_v61  ;;  %v13284_v8 = vld [vmem:[#allocation5 + $0xa70] ss:$12 sps:$4 sm:$0xff]  }
 0x1a5   :  { %v11503_v5 = vpop.f32.mrb[60].mxu1  ;;  %11771 = vmatprep.subr.bf16.mxu1 %v13264_v38  ;;  %v222_v38 = vld [vmem:[#allocation2 + $0x528] sm:$0xff] }
 0x1a6   :  { %v11504_v29 = vpop.f32.mrb[61].mxu1  ;;  %7255 = vmatpush1.bf16.msra.mxu0 %v13231_v63 }
 0x1a7   :  { %v11505_v32 = vadd.f32 %v11504_v29, %v11503_v5  ;;  %v11506_v30 = vpop.f32.mrb[62].mxu1  ;;  %7256 = vmatprep.subr.bf16.mxu0 %v13236_v3  ;;  %v14484_v5 = vcombine.low %v190_v43, %v206_v22 }
 0x1a8   :  { %v11507_v26 = vpop.f32.mrb[63].mxu1  ;;  %11772 = vmatpush3.bf16.msra.mxu1 %v13265_v27  ;;  %v13246_v27 = vld [vmem:[#allocation5 + $0x900] ss:$12 sps:$4 sm:$0xff]  }
 0x1a9   :  { %v14462_v49 = vadd.f32 %v11505_v32, %v8566_v15  ;;  %v11508_v39 = vadd.f32 %v11507_v26, %v11506_v30  ;;  %7212 = vmatmul.mubr.bf16.gmra.mrb[24].mxu0 %v14390_v0  ;;  %11773 = vmatprep.subr.bf16.mxu1 %v13269_v10  ;;  %v13279_v0 = vld [vmem:[#allocation5 + $0xa58] ss:$12 sps:$4 sm:$0xff]   ;;  %v13253_v10 = vld [vmem:[#allocation5 + $0x91c] ss:$12 sps:$4 sm:$0xff]   ;;  %v13258_v26 = vld [vmem:[#allocation5 + $0x934] ss:$12 sps:$4 sm:$0xff]  }
 0x1aa   :  { %9009 = vmatmul.mubr.bf16.gmra.mrb[168].mxu1 %v14454_v28  ;;  %7257 = vmatpush1.bf16.msra.mxu0 %v13234_v36  ;;  %v13251_v30 = vld [vmem:[#allocation5 + $0x918] ss:$12 sps:$4 sm:$0xff]  }
 0x1ab   :  { %v14466_v53 = vadd.f32 %v11508_v39, %v8569_v44  ;;  %7258 = vmatprep.subr.bf16.mxu0 %v13239_v51  ;;  %7221 = vmatprep.mubr.bf16.mxu0 %v14394_v59  ;;  %v13243_v59 = vld [vmem:[#allocation5 + $0x8e8] ss:$12 sps:$4 sm:$0xff]  }
 0x1ac   :  { %9016 = vmatprep.mubr.bf16.mxu1 %v14458_v40  ;;  %11774 = vmatpush3.bf16.msra.mxu1 %v13270_v42  ;;  %v13256_v42 = vld [vmem:[#allocation5 + $0x930] ss:$12 sps:$4 sm:$0xff]   ;;  %v254_v44 = vld [vmem:[#allocation2 + $0x628] sm:$0xff] }
 0x1ad   :  { %v11525_v14 = vpop.f32.mrb[64].mxu1  ;;  %11775 = vmatprep.subr.bf16.mxu1 %v13274_v35  ;;  %v270_v39 = vld [vmem:[#allocation2 + $0x6a8] sm:$0xff] }
 0x1ae   :  { %v11526_v31 = vpop.f32.mrb[65].mxu1  ;;  %7259 = vmatpush1.bf16.msra.mxu0 %v13237_v18  ;;  %v13263_v35 = vld [vmem:[#allocation5 + $0x94c] ss:$12 sps:$4 sm:$0xff]  }
 0x1af   :  { %v11527_v1 = vadd.f32 %v11526_v31, %v11525_v14  ;;  %v11528_v54 = vpop.f32.mrb[66].mxu1  ;;  %7260 = vmatprep.subr.bf16.mxu0 %v13242_v6  ;;  %v13268_v31 = vld [vmem:[#allocation5 + $0x964] ss:$12 sps:$4 sm:$0xff]  }
 0x1b0   :  { %v11529_v60 = vpop.f32.mrb[67].mxu1  ;;  %11776 = vmatpush3.bf16.msra.mxu1 %v13275_v11 }
 0x1b1   :  { %v14475_v63 = vadd.f32 %v11527_v1, %v14350_v41  ;;  %v11530_v61 = vadd.f32 %v11529_v60, %v11528_v54  ;;  %7222 = vmatmul.mubr.bf16.gmra.mrb[28].mxu0 %v14406_v7  ;;  %11777 = vmatprep.subr.bf16.mxu1 %v13279_v0  ;;  %v13285_v41 = vld [vmem:[#allocation5 + $0x9b0] ss:$12 sps:$4 sm:$0xff]   ;;  %v13313_v7 = vld [vmem:[#allocation5 + $0xb48] ss:$12 sps:$4 sm:$0xff]  }
 0x1b2   :  { %9017 = vmatmul.mubr.bf16.gmra.mrb[172].mxu1 %v14470_v56  ;;  %7261 = vmatpush1.bf16.msra.mxu0 %v13240_v57  ;;  %v13261_v0 = vld [vmem:[#allocation5 + $0x948] ss:$12 sps:$4 sm:$0xff]  }
 0x1b3   :  { %v14480_v3 = vadd.f32 %v11530_v61, %v14354_v46  ;;  %7262 = vmatprep.subr.bf16.mxu0 %v13245_v58  ;;  %7264 = vmatprep.mubr.bf16.mxu0 %v14410_v16  ;;  %v14486_v16 = vcombine.high %v222_v38, %v238_v21  ;;  %v13266_v58 = vld [vmem:[#allocation5 + $0x960] ss:$12 sps:$4 sm:$0xff]  }
 0x1b4   :  { %9024 = vmatprep.mubr.bf16.mxu1 %v14472_v2  ;;  %11778 = vmatpush3.bf16.msra.mxu1 %v13280_v50  ;;  %v302_v54 = vld [vmem:[#allocation2 + $0x7a8] sm:$0xff] }
 0x1b5   :  { %v11531_v24 = vpop.f32.mrb[68].mxu1  ;;  %11779 = vmatprep.subr.bf16.mxu1 %v13284_v8 }
 0x1b6   :  { %v11532_v36 = vpop.f32.mrb[69].mxu1  ;;  %7263 = vmatpush1.bf16.msra.mxu0 %v13243_v59  ;;  %v13273_v59 = vld [vmem:[#allocation5 + $0x97c] ss:$12 sps:$4 sm:$0xff]  }
 0x1b7   :  { %v11533_v46 = vadd.f32 %v11532_v36, %v11531_v24  ;;  %v11534_v29 = vpop.f32.mrb[70].mxu1  ;;  %7345 = vmatprep.subr.bf16.mxu0 %v13248_v12 }
 0x1b8   :  { %v11535_v51 = vpop.f32.mrb[71].mxu1  ;;  %11780 = vmatpush3.bf16.msra.mxu1 %v13285_v41 }
 0x1b9   :  { %v14489_v15 = vadd.f32 %v11533_v46, %v14366_v4  ;;  %v11536_v32 = vadd.f32 %v11535_v51, %v11534_v29  ;;  %7265 = vmatmul.mubr.bf16.vlgmr.msra.gmra.mrb[0].mxu0 %v14422_v17  ;;  %11829 = vmatprep.subr.bf16.mxu1 %v13313_v7  ;;  %v14498_v17 = vcombine.low %v222_v38, %v238_v21  ;;  %v13271_v38 = vld [vmem:[#allocation5 + $0x978] ss:$12 sps:$4 sm:$0xff]   ;;  %v13278_v21 = vld [vmem:[#allocation5 + $0x994] ss:$12 sps:$4 sm:$0xff]  }
 0x1ba   :  { %9025 = vmatmul.mubr.bf16.gmra.mrb[176].mxu1 %v14484_v5  ;;  %7346 = vmatpush1.bf16.msra.mxu0 %v13246_v27  ;;  %v63_v7 = vld [vmem:[#allocation2 + $0x30] sm:$0xff] }
 0x1bb   :  { %v14494_v18 = vadd.f32 %v11536_v32, %v14370_v19  ;;  %7347 = vmatprep.subr.bf16.mxu0 %v13253_v10  ;;  %7274 = vmatprep.mubr.bf16.mxu0 %v14426_v37  ;;  %v14500_v19 = vcombine.high %v254_v44, %v270_v39  ;;  %v13276_v27 = vld [vmem:[#allocation5 + $0x990] ss:$12 sps:$4 sm:$0xff]   ;;  %v13283_v10 = vld [vmem:[#allocation5 + $0x9ac] ss:$12 sps:$4 sm:$0xff]  }
 0x1bc   :  { %9032 = vmatprep.mubr.bf16.mxu1 %v14486_v16 }
 0x1bd   :  { %v11537_v4 = vpop.f32.mrb[72].mxu1 }
 0x1be   :  { %v11538_v6 = vpop.f32.mrb[73].mxu1  ;;  %7348 = vmatpush1.bf16.msra.mxu0 %v13251_v30  ;;  %v13281_v30 = vld [vmem:[#allocation5 + $0x9a8] ss:$12 sps:$4 sm:$0xff]  }
 0x1bf   :  { %v11539_v43 = vadd.f32 %v11538_v6, %v11537_v4  ;;  %v11540_v22 = vpop.f32.mrb[74].mxu1  ;;  %7349 = vmatprep.subr.bf16.mxu0 %v13258_v26  ;;  %v13288_v26 = vld [vmem:[#allocation5 + $0x9c4] ss:$12 sps:$4 sm:$0xff]  }
 0x1c0   :  { %v11541_v11 = vpop.f32.mrb[75].mxu1 }
 0x1c1   :  { %v14503_v14 = vadd.f32 %v11539_v43, %v14382_v23  ;;  %v11542_v37 = vadd.f32 %v11541_v11, %v11540_v22  ;;  %7275 = vmatmul.mubr.bf16.gmra.mrb[4].mxu0 %v14438_v48  ;;  %v286_v23 = vld [vmem:[#allocation2 + $0x728] sm:$0xff]  ;;  %v14512_v48 = vcombine.low %v254_v44, %v270_v39  ;;  %v95_v44 = vld [vmem:[#allocation2 + $0x130] sm:$0xff] }
 0x1c2   :  { %9033 = vmatmul.mubr.bf16.gmra.mrb[180].mxu1 %v14498_v17  ;;  %7350 = vmatpush1.bf16.msra.mxu0 %v13256_v42 }
 0x1c3   :  { %v14508_v57 = vadd.f32 %v11542_v37, %v14386_v33  ;;  %7351 = vmatprep.subr.bf16.mxu0 %v13263_v35  ;;  %7284 = vmatprep.mubr.bf16.mxu0 %v14442_v9  ;;  %v14514_v33 = vcombine.high %v286_v23, %v302_v54  ;;  %v13291_v35 = vld [vmem:[#allocation5 + $0x9dc] ss:$12 sps:$4 sm:$0xff]  }
 0x1c4   :  { %9040 = vmatprep.mubr.bf16.mxu1 %v14500_v19 }
 0x1c5   :  { %v11543_v1 = vpop.f32.mrb[76].mxu1 }
 0x1c6   :  { %v11544_v60 = vpop.f32.mrb[77].mxu1  ;;  %7352 = vmatpush1.bf16.msra.mxu0 %v13261_v0  ;;  %v13314_v0 = vld [vmem:[#allocation5 + $0xa88] ss:$12 sps:$4 sm:$0xff]  }
 0x1c7   :  { %v11545_v50 = vadd.f32 %v11544_v60, %v11543_v1  ;;  %v11546_v61 = vpop.f32.mrb[78].mxu1  ;;  %7353 = vmatprep.subr.bf16.mxu0 %v13268_v31  ;;  %v13318_v1 = vld [vmem:[#allocation5 + $0xb60] ss:$12 sps:$4 sm:$0xff]   ;;  %v143_v60 = vld [vmem:[#allocation2 + $0x2b0] sm:$0xff] }
 0x1c8   :  { %v11547_v12 = vpop.f32.mrb[79].mxu1 }
 0x1c9   :  { %v14517_v8 = vadd.f32 %v11545_v50, %v14398_v55  ;;  %v11548_v9 = vadd.f32 %v11547_v12, %v11546_v61  ;;  %7285 = vmatmul.mubr.bf16.gmra.mrb[8].mxu0 %v14454_v28  ;;  %v79_v55 = vld [vmem:[#allocation2 + $0xb0] sm:$0xff]  ;;  %v14526_v28 = vcombine.low %v286_v23, %v302_v54 }
 0x1ca   :  { %9041 = vmatmul.mubr.bf16.gmra.mrb[184].mxu1 %v14512_v48  ;;  %7354 = vmatpush1.bf16.msra.mxu0 %v13266_v58  ;;  %v14540_v6 = vcombine.low %v63_v7, %v79_v55  ;;  %v13294_v58 = vld [vmem:[#allocation5 + $0x9f4] ss:$12 sps:$4 sm:$0xff]  }
 0x1cb   :  { %v14522_v41 = vadd.f32 %v11548_v9, %v14402_v47  ;;  %7355 = vmatprep.subr.bf16.mxu0 %v13273_v59  ;;  %7294 = vmatprep.mubr.bf16.mxu0 %v14458_v40  ;;  %v14528_v47 = vcombine.high %v63_v7, %v79_v55  ;;  %v127_v54 = vld [vmem:[#allocation2 + $0x230] sm:$0xff]  ;;  %v13319_v59 = vld [vmem:[#allocation5 + $0xaa0] ss:$12 sps:$4 sm:$0xff]   ;;  %v13324_v7 = vld [vmem:[#allocation5 + $0xab8] ss:$12 sps:$4 sm:$0xff]  }
 0x1cc   :  { %9048 = vmatprep.mubr.bf16.mxu1 %v14514_v33  ;;  %v13297_v9 = vld [vmem:[#allocation5 + $0xa0c] ss:$12 sps:$4 sm:$0xff]  }
 0x1cd   :  { %v11549_v24 = vpop.f32.mrb[80].mxu1 }
 0x1ce   :  { %v11550_v36 = vpop.f32.mrb[81].mxu1  ;;  %7356 = vmatpush1.bf16.msra.mxu0 %v13271_v38 }
 0x1cf   :  { %v11551_v46 = vadd.f32 %v11550_v36, %v11549_v24  ;;  %v11552_v29 = vpop.f32.mrb[82].mxu1  ;;  %7357 = vmatprep.subr.bf16.mxu0 %v13278_v21  ;;  %v14556_v24 = vcombine.high %v127_v54, %v143_v60 }
 0x1d0   :  { %v11553_v51 = vpop.f32.mrb[83].mxu1 }
 0x1d1   :  { %v14531_v32 = vadd.f32 %v11551_v46, %v14414_v20  ;;  %v11554_v40 = vadd.f32 %v11553_v51, %v11552_v29  ;;  %7295 = vmatmul.mubr.bf16.gmra.mrb[12].mxu0 %v14470_v56  ;;  %v111_v20 = vld [vmem:[#allocation2 + $0x1b0] sm:$0xff]  ;;  %v13286_v56 = vld [vmem:[#allocation5 + $0x9c0] ss:$12 sps:$4 sm:$0xff]  }
 0x1d2   :  { %9049 = vmatmul.mubr.bf16.gmra.mrb[188].mxu1 %v14526_v28  ;;  %7358 = vmatpush1.bf16.msra.mxu0 %v13276_v27  ;;  %v14542_v37 = vcombine.high %v95_v44, %v111_v20  ;;  %v14554_v12 = vcombine.low %v95_v44, %v111_v20  ;;  %v13300_v27 = vld [vmem:[#allocation5 + $0xa24] ss:$12 sps:$4 sm:$0xff]   ;;  %v13303_v44 = vld [vmem:[#allocation5 + $0xa3c] ss:$12 sps:$4 sm:$0xff]  }
 0x1d3   :  { %v14536_v42 = vadd.f32 %v11554_v40, %v14418_v62  ;;  %7359 = vmatprep.subr.bf16.mxu0 %v13283_v10  ;;  %7304 = vmatprep.mubr.bf16.mxu0 %v14472_v2  ;;  %v13289_v62 = vld [vmem:[#allocation5 + $0x9d8] ss:$12 sps:$4 sm:$0xff]   ;;  %v13328_v10 = vld [vmem:[#allocation5 + $0xb90] ss:$12 sps:$4 sm:$0xff]  }
 0x1d4   :  { %9089 = vmatprep.mubr.bf16.mxu1 %v14528_v47  ;;  %v159_v29 = vld [vmem:[#allocation2 + $0x330] sm:$0xff] }
 0x1d5   :  { %v11555_v4 = vpop.f32.mrb[84].mxu1  ;;  %v175_v51 = vld [vmem:[#allocation2 + $0x3b0] sm:$0xff] }
 0x1d6   :  { %v11556_v39 = vpop.f32.mrb[85].mxu1  ;;  %7360 = vmatpush1.bf16.msra.mxu0 %v13281_v30  ;;  %v13329_v40 = vld [vmem:[#allocation5 + $0xad0] ss:$12 sps:$4 sm:$0xff]   ;;  %v13333_v30 = vld [vmem:[#allocation5 + $0xba8] ss:$12 sps:$4 sm:$0xff]  }
 0x1d7   :  { %v11557_v43 = vadd.f32 %v11556_v39, %v11555_v4  ;;  %v11558_v22 = vpop.f32.mrb[86].mxu1  ;;  %7361 = vmatprep.subr.bf16.mxu0 %v13288_v26  ;;  %v14568_v4 = vcombine.low %v127_v54, %v143_v60  ;;  %v13304_v60 = vld [vmem:[#allocation5 + $0xa50] ss:$12 sps:$4 sm:$0xff]  }
 0x1d8   :  { %v11559_v11 = vpop.f32.mrb[87].mxu1 }
 0x1d9   :  { %v14545_v2 = vadd.f32 %v11557_v43, %v14430_v34  ;;  %v11560_v31 = vadd.f32 %v11559_v11, %v11558_v22  ;;  %7305 = vmatmul.mubr.bf16.gmra.mrb[16].mxu0 %v14484_v5  ;;  %v13292_v34 = vld [vmem:[#allocation5 + $0x9f0] ss:$12 sps:$4 sm:$0xff]   ;;  %v13323_v5 = vld [vmem:[#allocation5 + $0xb78] ss:$12 sps:$4 sm:$0xff]   ;;  %v13306_v11 = vld [vmem:[#allocation5 + $0xa54] ss:$12 sps:$4 sm:$0xff]  }
 0x1da   :  { %9090 = vmatmul.mubr.bf16.vlgmr.msra.gmra.mrb[192].mxu1 %v14540_v6  ;;  %7362 = vmatpush1.bf16.msra.mxu0 %v13286_v56  ;;  %v14570_v56 = vcombine.high %v159_v29, %v175_v51 }
 0x1db   :  { %v14550_v23 = vadd.f32 %v11560_v31, %v14434_v13  ;;  %7363 = vmatprep.subr.bf16.mxu0 %v13291_v35  ;;  %7314 = vmatprep.mubr.bf16.mxu0 %v14486_v16  ;;  %v13295_v16 = vld [vmem:[#allocation5 + $0xa08] ss:$12 sps:$4 sm:$0xff]  }
 0x1dc   :  { %9097 = vmatprep.mubr.bf16.mxu1 %v14542_v37  ;;  %11830 = vmatpush3.bf16.msra.mxu1 %v13314_v0  ;;  %v13334_v35 = vld [vmem:[#allocation5 + $0xae8] ss:$12 sps:$4 sm:$0xff]  }
 0x1dd   :  { %v11561_v50 = vpop.f32.mrb[88].mxu1  ;;  %11831 = vmatprep.subr.bf16.mxu1 %v13318_v1  ;;  %v191_v31 = vld [vmem:[#allocation2 + $0x430] sm:$0xff] }
 0x1de   :  { %v11562_v61 = vpop.f32.mrb[89].mxu1  ;;  %7364 = vmatpush1.bf16.msra.mxu0 %v13289_v62  ;;  %v13338_v62 = vld [vmem:[#allocation5 + $0xbc0] ss:$12 sps:$4 sm:$0xff]  }
 0x1df   :  { %v11563_v13 = vadd.f32 %v11562_v61, %v11561_v50  ;;  %v11564_v38 = vpop.f32.mrb[90].mxu1  ;;  %7365 = vmatprep.subr.bf16.mxu0 %v13294_v58  ;;  %v207_v58 = vld [vmem:[#allocation2 + $0x4b0] sm:$0xff] }
 0x1e0   :  { %v11565_v21 = vpop.f32.mrb[91].mxu1  ;;  %11832 = vmatpush3.bf16.msra.mxu1 %v13319_v59  ;;  %v13309_v59 = vld [vmem:[#allocation5 + $0xa6c] ss:$12 sps:$4 sm:$0xff]   ;;  %v14584_v61 = vcombine.high %v191_v31, %v207_v58 }
 0x1e1   :  { %v14559_v55 = vadd.f32 %v11563_v13, %v14446_v25  ;;  %v11566_v36 = vadd.f32 %v11565_v21, %v11564_v38  ;;  %7315 = vmatmul.mubr.bf16.gmra.mrb[20].mxu0 %v14498_v17  ;;  %11833 = vmatprep.subr.bf16.mxu1 %v13323_v5  ;;  %v13298_v25 = vld [vmem:[#allocation5 + $0xa20] ss:$12 sps:$4 sm:$0xff]   ;;  %v13312_v21 = vld [vmem:[#allocation5 + $0xa84] ss:$12 sps:$4 sm:$0xff]  }
 0x1e2   :  { %9098 = vmatmul.mubr.bf16.gmra.mrb[196].mxu1 %v14554_v12  ;;  %7366 = vmatpush1.bf16.msra.mxu0 %v13292_v34  ;;  %v14582_v34 = vcombine.low %v159_v29, %v175_v51  ;;  %v13310_v51 = vld [vmem:[#allocation5 + $0xa80] ss:$12 sps:$4 sm:$0xff]  }
 0x1e3   :  { %v14564_v46 = vadd.f32 %v11566_v36, %v14450_v45  ;;  %7367 = vmatprep.subr.bf16.mxu0 %v13297_v9  ;;  %7324 = vmatprep.mubr.bf16.mxu0 %v14500_v19  ;;  %v13301_v19 = vld [vmem:[#allocation5 + $0xa38] ss:$12 sps:$4 sm:$0xff]   ;;  %v223_v36 = vld [vmem:[#allocation2 + $0x530] sm:$0xff] }
 0x1e4   :  { %9105 = vmatprep.mubr.bf16.mxu1 %v14556_v24  ;;  %11834 = vmatpush3.bf16.msra.mxu1 %v13324_v7  ;;  %v13344_v9 = vld [vmem:[#allocation5 + $0xb18] ss:$12 sps:$4 sm:$0xff]  }
 0x1e5   :  { %v11567_v17 = vpop.f32.mrb[92].mxu1  ;;  %11835 = vmatprep.subr.bf16.mxu1 %v13328_v10 }
 0x1e6   :  { %v11568_v26 = vpop.f32.mrb[93].mxu1  ;;  %7368 = vmatpush1.bf16.msra.mxu0 %v13295_v16  ;;  %v13348_v16 = vld [vmem:[#allocation5 + $0xbf0] ss:$12 sps:$4 sm:$0xff]  }
 0x1e7   :  { %v11569_v45 = vadd.f32 %v11568_v26, %v11567_v17  ;;  %v11570_v20 = vpop.f32.mrb[94].mxu1  ;;  %7369 = vmatprep.subr.bf16.mxu0 %v13300_v27  ;;  %v239_v27 = vld [vmem:[#allocation2 + $0x5b0] sm:$0xff] }
 0x1e8   :  { %v11571_v39 = vpop.f32.mrb[95].mxu1  ;;  %11836 = vmatpush3.bf16.msra.mxu1 %v13329_v40  ;;  %v13317_v40 = vld [vmem:[#allocation5 + $0xa9c] ss:$12 sps:$4 sm:$0xff]  }
 0x1e9   :  { %v14573_v43 = vadd.f32 %v11569_v45, %v14462_v49  ;;  %v11572_v22 = vadd.f32 %v11571_v39, %v11570_v20  ;;  %7325 = vmatmul.mubr.bf16.gmra.mrb[24].mxu0 %v14512_v48  ;;  %11837 = vmatprep.subr.bf16.mxu1 %v13333_v30  ;;  %v13339_v49 = vld [vmem:[#allocation5 + $0xb00] ss:$12 sps:$4 sm:$0xff]   ;;  %v13343_v48 = vld [vmem:[#allocation5 + $0xbd8] ss:$12 sps:$4 sm:$0xff]  }
 0x1ea   :  { %9106 = vmatmul.mubr.bf16.gmra.mrb[200].mxu1 %v14568_v4  ;;  %7370 = vmatpush1.bf16.msra.mxu0 %v13298_v25  ;;  %v14596_v25 = vcombine.low %v191_v31, %v207_v58  ;;  %v13315_v45 = vld [vmem:[#allocation5 + $0xa98] ss:$12 sps:$4 sm:$0xff]   ;;  %v13322_v20 = vld [vmem:[#allocation5 + $0xab4] ss:$12 sps:$4 sm:$0xff]  }
 0x1eb   :  { %v14578_v0 = vadd.f32 %v11572_v22, %v14466_v53  ;;  %7371 = vmatprep.subr.bf16.mxu0 %v13303_v44  ;;  %7334 = vmatprep.mubr.bf16.mxu0 %v14514_v33  ;;  %v13307_v33 = vld [vmem:[#allocation5 + $0xa68] ss:$12 sps:$4 sm:$0xff]  }
 0x1ec   :  { %9113 = vmatprep.mubr.bf16.mxu1 %v14570_v56  ;;  %11838 = vmatpush3.bf16.msra.mxu1 %v13334_v35  ;;  %v255_v35 = vld [vmem:[#allocation2 + $0x630] sm:$0xff] }
 0x1ed   :  { %v11589_v1 = vpop.f32.mrb[96].mxu1  ;;  %11839 = vmatprep.subr.bf16.mxu1 %v13338_v62  ;;  %v271_v22 = vld [vmem:[#allocation2 + $0x6b0] sm:$0xff]  ;;  %v13327_v62 = vld [vmem:[#allocation5 + $0xacc] ss:$12 sps:$4 sm:$0xff]  }
 0x1ee   :  { %v11590_v54 = vpop.f32.mrb[97].mxu1  ;;  %7372 = vmatpush1.bf16.msra.mxu0 %v13301_v19  ;;  %v13320_v19 = vld [vmem:[#allocation5 + $0xab0] ss:$12 sps:$4 sm:$0xff]  }
 0x1ef   :  { %v11591_v53 = vadd.f32 %v11590_v54, %v11589_v1  ;;  %v11592_v50 = vpop.f32.mrb[98].mxu1  ;;  %7373 = vmatprep.subr.bf16.mxu0 %v13306_v11  ;;  %v13332_v54 = vld [vmem:[#allocation5 + $0xae4] ss:$12 sps:$4 sm:$0xff]  }
 0x1f0   :  { %v11593_v5 = vpop.f32.mrb[99].mxu1  ;;  %11840 = vmatpush3.bf16.msra.mxu1 %v13339_v49 }
 0x1f1   :  { %v14587_v13 = vadd.f32 %v11591_v53, %v14475_v63  ;;  %v11594_v38 = vadd.f32 %v11593_v5, %v11592_v50  ;;  %7335 = vmatmul.mubr.bf16.gmra.mrb[28].mxu0 %v14526_v28  ;;  %11841 = vmatprep.subr.bf16.mxu1 %v13343_v48  ;;  %v13349_v63 = vld [vmem:[#allocation5 + $0xb30] ss:$12 sps:$4 sm:$0xff]   ;;  %v13377_v28 = vld [vmem:[#allocation5 + $0xcc8] ss:$12 sps:$4 sm:$0xff]  }
 0x1f2   :  { %9114 = vmatmul.mubr.bf16.gmra.mrb[204].mxu1 %v14582_v34  ;;  %7374 = vmatpush1.bf16.msra.mxu0 %v13304_v60  ;;  %v13325_v48 = vld [vmem:[#allocation5 + $0xac8] ss:$12 sps:$4 sm:$0xff]  }
 0x1f3   :  { %v14592_v7 = vadd.f32 %v11594_v38, %v14480_v3  ;;  %7375 = vmatprep.subr.bf16.mxu0 %v13309_v59  ;;  %7377 = vmatprep.mubr.bf16.mxu0 %v14528_v47  ;;  %v14598_v47 = vcombine.high %v223_v36, %v239_v27  ;;  %v13330_v59 = vld [vmem:[#allocation5 + $0xae0] ss:$12 sps:$4 sm:$0xff]   ;;  %v303_v50 = vld [vmem:[#allocation2 + $0x7b0] sm:$0xff] }
 0x1f4   :  { %9121 = vmatprep.mubr.bf16.mxu1 %v14584_v61  ;;  %11842 = vmatpush3.bf16.msra.mxu1 %v13344_v9 }
 0x1f5   :  { %v11595_v10 = vpop.f32.mrb[100].mxu1  ;;  %11843 = vmatprep.subr.bf16.mxu1 %v13348_v16 }
 0x1f6   :  { %v11596_v29 = vpop.f32.mrb[101].mxu1  ;;  %7376 = vmatpush1.bf16.msra.mxu0 %v13307_v33  ;;  %v13337_v33 = vld [vmem:[#allocation5 + $0xafc] ss:$12 sps:$4 sm:$0xff]  }
 0x1f7   :  { %v11597_v3 = vadd.f32 %v11596_v29, %v11595_v10  ;;  %v11598_v17 = vpop.f32.mrb[102].mxu1  ;;  %7458 = vmatprep.subr.bf16.mxu0 %v13312_v21 }
 0x1f8   :  { %v11599_v30 = vpop.f32.mrb[103].mxu1  ;;  %11844 = vmatpush3.bf16.msra.mxu1 %v13349_v63 }
 0x1f9   :  { %v14601_v26 = vadd.f32 %v11597_v3, %v14489_v15  ;;  %v11600_v44 = vadd.f32 %v11599_v30, %v11598_v17  ;;  %7378 = vmatmul.mubr.bf16.vlgmr.msra.gmra.mrb[0].mxu0 %v14540_v6  ;;  %11893 = vmatprep.subr.bf16.mxu1 %v13377_v28  ;;  %v14610_v6 = vcombine.low %v223_v36, %v239_v27  ;;  %v13335_v36 = vld [vmem:[#allocation5 + $0xaf8] ss:$12 sps:$4 sm:$0xff]   ;;  %v13342_v27 = vld [vmem:[#allocation5 + $0xb14] ss:$12 sps:$4 sm:$0xff]  }
 0x1fa   :  { %9122 = vmatmul.mubr.bf16.gmra.mrb[208].mxu1 %v14596_v25  ;;  %7459 = vmatpush1.bf16.msra.mxu0 %v13310_v51  ;;  %v64_v28 = vld [vmem:[#allocation2 + $0x38] sm:$0xff] }
 0x1fb   :  { %v14606_v39 = vadd.f32 %v11600_v44, %v14494_v18  ;;  %7460 = vmatprep.subr.bf16.mxu0 %v13317_v40  ;;  %7387 = vmatprep.mubr.bf16.mxu0 %v14542_v37  ;;  %v14612_v18 = vcombine.high %v255_v35, %v271_v22  ;;  %v13340_v51 = vld [vmem:[#allocation5 + $0xb10] ss:$12 sps:$4 sm:$0xff]   ;;  %v13347_v40 = vld [vmem:[#allocation5 + $0xb2c] ss:$12 sps:$4 sm:$0xff]  }
 0x1fc   :  { %9129 = vmatprep.mubr.bf16.mxu1 %v14598_v47 }
 0x1fd   :  { %v11601_v15 = vpop.f32.mrb[104].mxu1 }
 0x1fe   :  { %v11602_v11 = vpop.f32.mrb[105].mxu1  ;;  %7461 = vmatpush1.bf16.msra.mxu0 %v13315_v45  ;;  %v13345_v45 = vld [vmem:[#allocation5 + $0xb28] ss:$12 sps:$4 sm:$0xff]  }
 0x1ff   :  { %v11603_v31 = vadd.f32 %v11602_v11, %v11601_v15  ;;  %v11604_v58 = vpop.f32.mrb[106].mxu1  ;;  %7462 = vmatprep.subr.bf16.mxu0 %v13322_v20  ;;  %v13352_v20 = vld [vmem:[#allocation5 + $0xb44] ss:$12 sps:$4 sm:$0xff]  }
 0x200   :  { %v11605_v49 = vpop.f32.mrb[107].mxu1 }
 0x201   :  { %v14615_v1 = vadd.f32 %v11603_v31, %v14503_v14  ;;  %v11606_v37 = vadd.f32 %v11605_v49, %v11604_v58  ;;  %7388 = vmatmul.mubr.bf16.gmra.mrb[4].mxu0 %v14554_v12  ;;  %v287_v14 = vld [vmem:[#allocation2 + $0x730] sm:$0xff]  ;;  %v14624_v12 = vcombine.low %v255_v35, %v271_v22  ;;  %v96_v35 = vld [vmem:[#allocation2 + $0x138] sm:$0xff] }
 0x202   :  { %9130 = vmatmul.mubr.bf16.gmra.mrb[212].mxu1 %v14610_v6  ;;  %7463 = vmatpush1.bf16.msra.mxu0 %v13320_v19 }
 0x203   :  { %v14620_v60 = vadd.f32 %v11606_v37, %v14508_v57  ;;  %7464 = vmatprep.subr.bf16.mxu0 %v13327_v62  ;;  %7397 = vmatprep.mubr.bf16.mxu0 %v14556_v24  ;;  %v14626_v57 = vcombine.high %v287_v14, %v303_v50  ;;  %v13355_v62 = vld [vmem:[#allocation5 + $0xb5c] ss:$12 sps:$4 sm:$0xff]  }
 0x204   :  { %9137 = vmatprep.mubr.bf16.mxu1 %v14612_v18 }
 0x205   :  { %v11607_v53 = vpop.f32.mrb[108].mxu1 }
 0x206   :  { %v11608_v5 = vpop.f32.mrb[109].mxu1  ;;  %7465 = vmatpush1.bf16.msra.mxu0 %v13325_v48  ;;  %v13378_v48 = vld [vmem:[#allocation5 + $0xc08] ss:$12 sps:$4 sm:$0xff]  }
 0x207   :  { %v11609_v9 = vadd.f32 %v11608_v5, %v11607_v53  ;;  %v11610_v38 = vpop.f32.mrb[110].mxu1  ;;  %7466 = vmatprep.subr.bf16.mxu0 %v13332_v54  ;;  %v13382_v53 = vld [vmem:[#allocation5 + $0xce0] ss:$12 sps:$4 sm:$0xff]   ;;  %v144_v5 = vld [vmem:[#allocation2 + $0x2b8] sm:$0xff] }
 0x208   :  { %v11611_v21 = vpop.f32.mrb[111].mxu1 }
 0x209   :  { %v14629_v16 = vadd.f32 %v11609_v9, %v14517_v8  ;;  %v11612_v24 = vadd.f32 %v11611_v21, %v11610_v38  ;;  %7398 = vmatmul.mubr.bf16.gmra.mrb[8].mxu0 %v14568_v4  ;;  %v80_v8 = vld [vmem:[#allocation2 + $0xb8] sm:$0xff]  ;;  %v14638_v4 = vcombine.low %v287_v14, %v303_v50 }
 0x20a   :  { %9138 = vmatmul.mubr.bf16.gmra.mrb[216].mxu1 %v14624_v12  ;;  %7467 = vmatpush1.bf16.msra.mxu0 %v13330_v59  ;;  %v14652_v11 = vcombine.low %v64_v28, %v80_v8  ;;  %v13358_v59 = vld [vmem:[#allocation5 + $0xb74] ss:$12 sps:$4 sm:$0xff]   ;;  %v128_v50 = vld [vmem:[#allocation2 + $0x238] sm:$0xff] }
 0x20b   :  { %v14634_v63 = vadd.f32 %v11612_v24, %v14522_v41  ;;  %7468 = vmatprep.subr.bf16.mxu0 %v13337_v33  ;;  %7407 = vmatprep.mubr.bf16.mxu0 %v14570_v56  ;;  %v14640_v41 = vcombine.high %v64_v28, %v80_v8  ;;  %v13383_v33 = vld [vmem:[#allocation5 + $0xc20] ss:$12 sps:$4 sm:$0xff]   ;;  %v13388_v28 = vld [vmem:[#allocation5 + $0xc38] ss:$12 sps:$4 sm:$0xff]  }
 0x20c   :  { %9145 = vmatprep.mubr.bf16.mxu1 %v14626_v57  ;;  %v13361_v24 = vld [vmem:[#allocation5 + $0xb8c] ss:$12 sps:$4 sm:$0xff]  }
 0x20d   :  { %v11613_v10 = vpop.f32.mrb[112].mxu1 }
 0x20e   :  { %v11614_v29 = vpop.f32.mrb[113].mxu1  ;;  %7469 = vmatpush1.bf16.msra.mxu0 %v13335_v36 }
 0x20f   :  { %v11615_v3 = vadd.f32 %v11614_v29, %v11613_v10  ;;  %v11616_v17 = vpop.f32.mrb[114].mxu1  ;;  %7470 = vmatprep.subr.bf16.mxu0 %v13342_v27  ;;  %v14668_v10 = vcombine.high %v128_v50, %v144_v5 }
 0x210   :  { %v11617_v30 = vpop.f32.mrb[115].mxu1 }
 0x211   :  { %v14643_v44 = vadd.f32 %v11615_v3, %v14531_v32  ;;  %v11618_v56 = vadd.f32 %v11617_v30, %v11616_v17  ;;  %7408 = vmatmul.mubr.bf16.gmra.mrb[12].mxu0 %v14582_v34  ;;  %v112_v32 = vld [vmem:[#allocation2 + $0x1b8] sm:$0xff]  ;;  %v13350_v34 = vld [vmem:[#allocation5 + $0xb40] ss:$12 sps:$4 sm:$0xff]  }
 0x212   :  { %9146 = vmatmul.mubr.bf16.gmra.mrb[220].mxu1 %v14638_v4  ;;  %7471 = vmatpush1.bf16.msra.mxu0 %v13340_v51  ;;  %v14654_v37 = vcombine.high %v96_v35, %v112_v32  ;;  %v14666_v21 = vcombine.low %v96_v35, %v112_v32  ;;  %v13364_v51 = vld [vmem:[#allocation5 + $0xba4] ss:$12 sps:$4 sm:$0xff]   ;;  %v160_v17 = vld [vmem:[#allocation2 + $0x338] sm:$0xff] }
 0x213   :  { %v14648_v19 = vadd.f32 %v11618_v56, %v14536_v42  ;;  %7472 = vmatprep.subr.bf16.mxu0 %v13347_v40  ;;  %7417 = vmatprep.mubr.bf16.mxu0 %v14584_v61  ;;  %v13353_v42 = vld [vmem:[#allocation5 + $0xb58] ss:$12 sps:$4 sm:$0xff]   ;;  %v13392_v40 = vld [vmem:[#allocation5 + $0xd10] ss:$12 sps:$4 sm:$0xff]  }
 0x214   :  { %9186 = vmatprep.mubr.bf16.mxu1 %v14640_v41  ;;  %v176_v30 = vld [vmem:[#allocation2 + $0x3b8] sm:$0xff] }
 0x215   :  { %v11619_v15 = vpop.f32.mrb[116].mxu1  ;;  %v13393_v56 = vld [vmem:[#allocation5 + $0xc50] ss:$12 sps:$4 sm:$0xff]  }
 0x216   :  { %v11620_v22 = vpop.f32.mrb[117].mxu1  ;;  %7473 = vmatpush1.bf16.msra.mxu0 %v13345_v45  ;;  %v13397_v45 = vld [vmem:[#allocation5 + $0xd28] ss:$12 sps:$4 sm:$0xff]  }
 0x217   :  { %v11621_v31 = vadd.f32 %v11620_v22, %v11619_v15  ;;  %v11622_v58 = vpop.f32.mrb[118].mxu1  ;;  %7474 = vmatprep.subr.bf16.mxu0 %v13352_v20  ;;  %v14680_v15 = vcombine.low %v128_v50, %v144_v5  ;;  %v13367_v35 = vld [vmem:[#allocation5 + $0xbbc] ss:$12 sps:$4 sm:$0xff]  }
 0x218   :  { %v11623_v49 = vpop.f32.mrb[119].mxu1  ;;  %v13368_v5 = vld [vmem:[#allocation5 + $0xbd0] ss:$12 sps:$4 sm:$0xff]  }
 0x219   :  { %v14657_v61 = vadd.f32 %v11621_v31, %v14545_v2  ;;  %v11624_v54 = vadd.f32 %v11623_v49, %v11622_v58  ;;  %7418 = vmatmul.mubr.bf16.gmra.mrb[16].mxu0 %v14596_v25  ;;  %v13356_v2 = vld [vmem:[#allocation5 + $0xb70] ss:$12 sps:$4 sm:$0xff]   ;;  %v13387_v25 = vld [vmem:[#allocation5 + $0xcf8] ss:$12 sps:$4 sm:$0xff]   ;;  %v13370_v49 = vld [vmem:[#allocation5 + $0xbd4] ss:$12 sps:$4 sm:$0xff]  }
 0x21a   :  { %9187 = vmatmul.mubr.bf16.vlgmr.msra.gmra.mrb[224].mxu1 %v14652_v11  ;;  %7475 = vmatpush1.bf16.msra.mxu0 %v13350_v34  ;;  %v14682_v34 = vcombine.high %v160_v17, %v176_v30 }
 0x21b   :  { %v14662_v14 = vadd.f32 %v11624_v54, %v14550_v23  ;;  %7476 = vmatprep.subr.bf16.mxu0 %v13355_v62  ;;  %7427 = vmatprep.mubr.bf16.mxu0 %v14598_v47  ;;  %v13359_v47 = vld [vmem:[#allocation5 + $0xb88] ss:$12 sps:$4 sm:$0xff]   ;;  %v192_v54 = vld [vmem:[#allocation2 + $0x438] sm:$0xff] }
 0x21c   :  { %9194 = vmatprep.mubr.bf16.mxu1 %v14654_v37  ;;  %11894 = vmatpush3.bf16.msra.mxu1 %v13378_v48  ;;  %v13398_v62 = vld [vmem:[#allocation5 + $0xc68] ss:$12 sps:$4 sm:$0xff]  }
 0x21d   :  { %v11625_v9 = vpop.f32.mrb[120].mxu1  ;;  %11895 = vmatprep.subr.bf16.mxu1 %v13382_v53 }
 0x21e   :  { %v11626_v38 = vpop.f32.mrb[121].mxu1  ;;  %7477 = vmatpush1.bf16.msra.mxu0 %v13353_v42  ;;  %v13402_v42 = vld [vmem:[#allocation5 + $0xd40] ss:$12 sps:$4 sm:$0xff]  }
 0x21f   :  { %v11627_v23 = vadd.f32 %v11626_v38, %v11625_v9  ;;  %v11628_v36 = vpop.f32.mrb[122].mxu1  ;;  %7478 = vmatprep.subr.bf16.mxu0 %v13358_v59  ;;  %v208_v59 = vld [vmem:[#allocation2 + $0x4b8] sm:$0xff] }
 0x220   :  { %v11629_v27 = vpop.f32.mrb[123].mxu1  ;;  %11896 = vmatpush3.bf16.msra.mxu1 %v13383_v33  ;;  %v13373_v33 = vld [vmem:[#allocation5 + $0xbec] ss:$12 sps:$4 sm:$0xff]   ;;  %v14696_v38 = vcombine.high %v192_v54, %v208_v59 }
 0x221   :  { %v14671_v8 = vadd.f32 %v11627_v23, %v14559_v55  ;;  %v11630_v29 = vadd.f32 %v11629_v27, %v11628_v36  ;;  %7428 = vmatmul.mubr.bf16.gmra.mrb[20].mxu0 %v14610_v6  ;;  %11897 = vmatprep.subr.bf16.mxu1 %v13387_v25  ;;  %v13362_v55 = vld [vmem:[#allocation5 + $0xba0] ss:$12 sps:$4 sm:$0xff]   ;;  %v13376_v27 = vld [vmem:[#allocation5 + $0xc04] ss:$12 sps:$4 sm:$0xff]  }
 0x222   :  { %9195 = vmatmul.mubr.bf16.gmra.mrb[228].mxu1 %v14666_v21  ;;  %7479 = vmatpush1.bf16.msra.mxu0 %v13356_v2  ;;  %v14694_v2 = vcombine.low %v160_v17, %v176_v30  ;;  %v13374_v30 = vld [vmem:[#allocation5 + $0xc00] ss:$12 sps:$4 sm:$0xff]  }
 0x223   :  { %v14676_v3 = vadd.f32 %v11630_v29, %v14564_v46  ;;  %7480 = vmatprep.subr.bf16.mxu0 %v13361_v24  ;;  %7437 = vmatprep.mubr.bf16.mxu0 %v14612_v18  ;;  %v13365_v18 = vld [vmem:[#allocation5 + $0xbb8] ss:$12 sps:$4 sm:$0xff]  }
 0x224   :  { %9202 = vmatprep.mubr.bf16.mxu1 %v14668_v10  ;;  %11898 = vmatpush3.bf16.msra.mxu1 %v13388_v28  ;;  %v13408_v24 = vld [vmem:[#allocation5 + $0xc98] ss:$12 sps:$4 sm:$0xff]  }
 0x225   :  { %v11631_v6 = vpop.f32.mrb[124].mxu1  ;;  %11899 = vmatprep.subr.bf16.mxu1 %v13392_v40  ;;  %v224_v29 = vld [vmem:[#allocation2 + $0x538] sm:$0xff] }
 0x226   :  { %v11632_v20 = vpop.f32.mrb[125].mxu1  ;;  %7481 = vmatpush1.bf16.msra.mxu0 %v13359_v47  ;;  %v13412_v47 = vld [vmem:[#allocation5 + $0xd70] ss:$12 sps:$4 sm:$0xff]  }
 0x227   :  { %v11633_v46 = vadd.f32 %v11632_v20, %v11631_v6  ;;  %v11634_v32 = vpop.f32.mrb[126].mxu1  ;;  %7482 = vmatprep.subr.bf16.mxu0 %v13364_v51  ;;  %v240_v51 = vld [vmem:[#allocation2 + $0x5b8] sm:$0xff] }
 0x228   :  { %v11635_v22 = vpop.f32.mrb[127].mxu1  ;;  %11900 = vmatpush3.bf16.msra.mxu1 %v13393_v56  ;;  %v13381_v56 = vld [vmem:[#allocation5 + $0xc1c] ss:$12 sps:$4 sm:$0xff]  }
 0x229   :  { %v14685_v31 = vadd.f32 %v11633_v46, %v14573_v43  ;;  %v11636_v58 = vadd.f32 %v11635_v22, %v11634_v32  ;;  %7438 = vmatmul.mubr.bf16.gmra.mrb[24].mxu0 %v14624_v12  ;;  %11901 = vmatprep.subr.bf16.mxu1 %v13397_v45  ;;  %v13403_v43 = vld [vmem:[#allocation5 + $0xc80] ss:$12 sps:$4 sm:$0xff]   ;;  %v13407_v12 = vld [vmem:[#allocation5 + $0xd58] ss:$12 sps:$4 sm:$0xff]  }
 0x22a   :  { %9203 = vmatmul.mubr.bf16.gmra.mrb[232].mxu1 %v14680_v15  ;;  %7483 = vmatpush1.bf16.msra.mxu0 %v13362_v55  ;;  %v14708_v55 = vcombine.low %v192_v54, %v208_v59  ;;  %v13379_v46 = vld [vmem:[#allocation5 + $0xc18] ss:$12 sps:$4 sm:$0xff]   ;;  %v13386_v32 = vld [vmem:[#allocation5 + $0xc34] ss:$12 sps:$4 sm:$0xff]  }
 0x22b   :  { %v14690_v48 = vadd.f32 %v11636_v58, %v14578_v0  ;;  %7484 = vmatprep.subr.bf16.mxu0 %v13367_v35  ;;  %7447 = vmatprep.mubr.bf16.mxu0 %v14626_v57  ;;  %v13371_v57 = vld [vmem:[#allocation5 + $0xbe8] ss:$12 sps:$4 sm:$0xff]   ;;  %v272_v58 = vld [vmem:[#allocation2 + $0x6b8] sm:$0xff] }
 0x22c   :  { %9210 = vmatprep.mubr.bf16.mxu1 %v14682_v34  ;;  %11902 = vmatpush3.bf16.msra.mxu1 %v13398_v62  ;;  %v256_v62 = vld [vmem:[#allocation2 + $0x638] sm:$0xff] }
 0x22d   :  { %v11653_v53 = vpop.f32.mrb[128].mxu1  ;;  %11903 = vmatprep.subr.bf16.mxu1 %v13402_v42  ;;  %v13391_v42 = vld [vmem:[#allocation5 + $0xc4c] ss:$12 sps:$4 sm:$0xff]  }
 0x22e   :  { %v11654_v50 = vpop.f32.mrb[129].mxu1  ;;  %7485 = vmatpush1.bf16.msra.mxu0 %v13365_v18  ;;  %v13384_v18 = vld [vmem:[#allocation5 + $0xc30] ss:$12 sps:$4 sm:$0xff]  }
 0x22f   :  { %v11655_v0 = vadd.f32 %v11654_v50, %v11653_v53  ;;  %v11656_v9 = vpop.f32.mrb[130].mxu1  ;;  %7486 = vmatprep.subr.bf16.mxu0 %v13370_v49  ;;  %v13396_v50 = vld [vmem:[#allocation5 + $0xc64] ss:$12 sps:$4 sm:$0xff]  }
 0x230   :  { %v11657_v25 = vpop.f32.mrb[131].mxu1  ;;  %11904 = vmatpush3.bf16.msra.mxu1 %v13403_v43 }
 0x231   :  { %v14699_v23 = vadd.f32 %v11655_v0, %v14587_v13  ;;  %v11658_v36 = vadd.f32 %v11657_v25, %v11656_v9  ;;  %7448 = vmatmul.mubr.bf16.gmra.mrb[28].mxu0 %v14638_v4  ;;  %11905 = vmatprep.subr.bf16.mxu1 %v13407_v12  ;;  %v13413_v13 = vld [vmem:[#allocation5 + $0xcb0] ss:$12 sps:$4 sm:$0xff]   ;;  %v13441_v4 = vld [vmem:[#allocation5 + $0xe48] ss:$12 sps:$4 sm:$0xff]  }
 0x232   :  { %9211 = vmatmul.mubr.bf16.gmra.mrb[236].mxu1 %v14694_v2  ;;  %7487 = vmatpush1.bf16.msra.mxu0 %v13368_v5  ;;  %v13389_v12 = vld [vmem:[#allocation5 + $0xc48] ss:$12 sps:$4 sm:$0xff]   ;;  %v304_v9 = vld [vmem:[#allocation2 + $0x7b8] sm:$0xff] }
 0x233   :  { %v14704_v28 = vadd.f32 %v11658_v36, %v14592_v7  ;;  %7488 = vmatprep.subr.bf16.mxu0 %v13373_v33  ;;  %7490 = vmatprep.mubr.bf16.mxu0 %v14640_v41  ;;  %v14710_v41 = vcombine.high %v224_v29, %v240_v51  ;;  %v13394_v33 = vld [vmem:[#allocation5 + $0xc60] ss:$12 sps:$4 sm:$0xff]  }
 0x234   :  { %9218 = vmatprep.mubr.bf16.mxu1 %v14696_v38  ;;  %11906 = vmatpush3.bf16.msra.mxu1 %v13408_v24 }
 0x235   :  { %v11659_v40 = vpop.f32.mrb[132].mxu1  ;;  %11907 = vmatprep.subr.bf16.mxu1 %v13412_v47 }
 0x236   :  { %v11660_v17 = vpop.f32.mrb[133].mxu1  ;;  %7489 = vmatpush1.bf16.msra.mxu0 %v13371_v57  ;;  %v13401_v57 = vld [vmem:[#allocation5 + $0xc7c] ss:$12 sps:$4 sm:$0xff]  }
 0x237   :  { %v11661_v7 = vadd.f32 %v11660_v17, %v11659_v40  ;;  %v11662_v6 = vpop.f32.mrb[134].mxu1  ;;  %7571 = vmatprep.subr.bf16.mxu0 %v13376_v27 }
 0x238   :  { %v11663_v45 = vpop.f32.mrb[135].mxu1  ;;  %11908 = vmatpush3.bf16.msra.mxu1 %v13413_v13 }
 0x239   :  { %v14713_v20 = vadd.f32 %v11661_v7, %v14601_v26  ;;  %v11664_v35 = vadd.f32 %v11663_v45, %v11662_v6  ;;  %7491 = vmatmul.mubr.bf16.vlgmr.msra.gmra.mrb[0].mxu0 %v14652_v11  ;;  %11957 = vmatprep.subr.bf16.mxu1 %v13441_v4  ;;  %v14722_v11 = vcombine.low %v224_v29, %v240_v51  ;;  %v13399_v29 = vld [vmem:[#allocation5 + $0xc78] ss:$12 sps:$4 sm:$0xff]   ;;  %v13406_v51 = vld [vmem:[#allocation5 + $0xc94] ss:$12 sps:$4 sm:$0xff]  }
 0x23a   :  { %9219 = vmatmul.mubr.bf16.gmra.mrb[240].mxu1 %v14708_v55  ;;  %7572 = vmatpush1.bf16.msra.mxu0 %v13374_v30  ;;  %v65_v4 = vld [vmem:[#allocation2 + $0x40] sm:$0xff]  ;;  %v13404_v30 = vld [vmem:[#allocation5 + $0xc90] ss:$12 sps:$4 sm:$0xff]  }
 0x23b   :  { %v14718_v22 = vadd.f32 %v11664_v35, %v14606_v39  ;;  %7573 = vmatprep.subr.bf16.mxu0 %v13381_v56  ;;  %7500 = vmatprep.mubr.bf16.mxu0 %v14654_v37  ;;  %v14724_v39 = vcombine.high %v256_v62, %v272_v58  ;;  %v13411_v56 = vld [vmem:[#allocation5 + $0xcac] ss:$12 sps:$4 sm:$0xff]  }
 0x23c   :  { %9226 = vmatprep.mubr.bf16.mxu1 %v14710_v41 }
 0x23d   :  { %v11665_v26 = vpop.f32.mrb[136].mxu1 }
 0x23e   :  { %v11666_v49 = vpop.f32.mrb[137].mxu1  ;;  %7574 = vmatpush1.bf16.msra.mxu0 %v13379_v46  ;;  %v13409_v46 = vld [vmem:[#allocation5 + $0xca8] ss:$12 sps:$4 sm:$0xff]  }
 0x23f   :  { %v11667_v54 = vadd.f32 %v11666_v49, %v11665_v26  ;;  %v11668_v59 = vpop.f32.mrb[138].mxu1  ;;  %7575 = vmatprep.subr.bf16.mxu0 %v13386_v32  ;;  %v13416_v32 = vld [vmem:[#allocation5 + $0xcc4] ss:$12 sps:$4 sm:$0xff]   ;;  %v13414_v26 = vld [vmem:[#allocation5 + $0xcc0] ss:$12 sps:$4 sm:$0xff]  }
 0x240   :  { %v11669_v43 = vpop.f32.mrb[139].mxu1 }
 0x241   :  { %v14727_v53 = vadd.f32 %v11667_v54, %v14615_v1  ;;  %v11670_v37 = vadd.f32 %v11669_v43, %v11668_v59  ;;  %7501 = vmatmul.mubr.bf16.gmra.mrb[4].mxu0 %v14666_v21  ;;  %v288_v1 = vld [vmem:[#allocation2 + $0x738] sm:$0xff]  ;;  %v14736_v21 = vcombine.low %v256_v62, %v272_v58  ;;  %v113_v58 = vld [vmem:[#allocation2 + $0x1c0] sm:$0xff] }
 0x242   :  { %9227 = vmatmul.mubr.bf16.gmra.mrb[244].mxu1 %v14722_v11  ;;  %7576 = vmatpush1.bf16.msra.mxu0 %v13384_v18 }
 0x243   :  { %v14732_v5 = vadd.f32 %v11670_v37, %v14620_v60  ;;  %7577 = vmatprep.subr.bf16.mxu0 %v13391_v42  ;;  %7510 = vmatprep.mubr.bf16.mxu0 %v14668_v10  ;;  %v14738_v60 = vcombine.high %v288_v1, %v304_v9  ;;  %v13419_v42 = vld [vmem:[#allocation5 + $0xcdc] ss:$12 sps:$4 sm:$0xff]  }
 0x244   :  { %9234 = vmatprep.mubr.bf16.mxu1 %v14724_v39 }
 0x245   :  { %v11671_v0 = vpop.f32.mrb[140].mxu1 }
 0x246   :  { %v11672_v25 = vpop.f32.mrb[141].mxu1  ;;  %7578 = vmatpush1.bf16.msra.mxu0 %v13389_v12  ;;  %v13442_v12 = vld [vmem:[#allocation5 + $0xd88] ss:$12 sps:$4 sm:$0xff]  }
 0x247   :  { %v11673_v24 = vadd.f32 %v11672_v25, %v11671_v0  ;;  %v11674_v36 = vpop.f32.mrb[142].mxu1  ;;  %7579 = vmatprep.subr.bf16.mxu0 %v13396_v50  ;;  %v13446_v0 = vld [vmem:[#allocation5 + $0xe60] ss:$12 sps:$4 sm:$0xff]  }
 0x248   :  { %v11675_v27 = vpop.f32.mrb[143].mxu1  ;;  %v145_v25 = vld [vmem:[#allocation2 + $0x2c0] sm:$0xff] }
 0x249   :  { %v14741_v47 = vadd.f32 %v11673_v24, %v14629_v16  ;;  %v11676_v10 = vadd.f32 %v11675_v27, %v11674_v36  ;;  %7511 = vmatmul.mubr.bf16.gmra.mrb[8].mxu0 %v14680_v15  ;;  %v81_v16 = vld [vmem:[#allocation2 + $0xc0] sm:$0xff]  ;;  %v14750_v15 = vcombine.low %v288_v1, %v304_v9 }
 0x24a   :  { %9235 = vmatmul.mubr.bf16.gmra.mrb[248].mxu1 %v14736_v21  ;;  %7580 = vmatpush1.bf16.msra.mxu0 %v13394_v33  ;;  %v13422_v33 = vld [vmem:[#allocation5 + $0xcf4] ss:$12 sps:$4 sm:$0xff]  }
 0x24b   :  { %v14746_v13 = vadd.f32 %v11676_v10, %v14634_v63  ;;  %7581 = vmatprep.subr.bf16.mxu0 %v13401_v57  ;;  %7520 = vmatprep.mubr.bf16.mxu0 %v14682_v34  ;;  %v14752_v63 = vcombine.high %v65_v4, %v81_v16  ;;  %v129_v9 = vld [vmem:[#allocation2 + $0x240] sm:$0xff]  ;;  %v13425_v10 = vld [vmem:[#allocation5 + $0xd0c] ss:$12 sps:$4 sm:$0xff]  }
 0x24c   :  { %9242 = vmatprep.mubr.bf16.mxu1 %v14738_v60  ;;  %v13447_v57 = vld [vmem:[#allocation5 + $0xda0] ss:$12 sps:$4 sm:$0xff]  }
 0x24d   :  { %v11677_v40 = vpop.f32.mrb[144].mxu1 }
 0x24e   :  { %v11678_v17 = vpop.f32.mrb[145].mxu1  ;;  %7582 = vmatpush1.bf16.msra.mxu0 %v13399_v29 }
 0x24f   :  { %v11679_v7 = vadd.f32 %v11678_v17, %v11677_v40  ;;  %v11680_v6 = vpop.f32.mrb[146].mxu1  ;;  %7583 = vmatprep.subr.bf16.mxu0 %v13406_v51  ;;  %v14780_v40 = vcombine.high %v129_v9, %v145_v25 }
 0x250   :  { %v11681_v45 = vpop.f32.mrb[147].mxu1 }
 0x251   :  { %v14755_v35 = vadd.f32 %v11679_v7, %v14643_v44  ;;  %v11682_v34 = vadd.f32 %v11681_v45, %v11680_v6  ;;  %7521 = vmatmul.mubr.bf16.gmra.mrb[12].mxu0 %v14694_v2  ;;  %v97_v44 = vld [vmem:[#allocation2 + $0x140] sm:$0xff]  ;;  %v14764_v2 = vcombine.low %v65_v4, %v81_v16 }
 0x252   :  { %9243 = vmatmul.mubr.bf16.gmra.mrb[252].mxu1 %v14750_v15  ;;  %7584 = vmatpush1.bf16.msra.mxu0 %v13404_v30  ;;  %v14766_v37 = vcombine.high %v97_v44, %v113_v58  ;;  %v14778_v27 = vcombine.low %v97_v44, %v113_v58  ;;  %v13452_v4 = vld [vmem:[#allocation5 + $0xdb8] ss:$12 sps:$4 sm:$0xff]  }
 0x253   :  { %v14760_v18 = vadd.f32 %v11682_v34, %v14648_v19  ;;  %7585 = vmatprep.subr.bf16.mxu0 %v13411_v56  ;;  %7530 = vmatprep.mubr.bf16.mxu0 %v14696_v38  ;;  %v13417_v19 = vld [vmem:[#allocation5 + $0xcd8] ss:$12 sps:$4 sm:$0xff]   ;;  %v13456_v56 = vld [vmem:[#allocation5 + $0xe90] ss:$12 sps:$4 sm:$0xff]  }
 0x254   :  { %9283 = vmatprep.mubr.bf16.mxu1 %v14752_v63  ;;  %v13428_v30 = vld [vmem:[#allocation5 + $0xd24] ss:$12 sps:$4 sm:$0xff]  }
 0x255   :  { %v11683_v62 = vpop.f32.mrb[148].mxu1  ;;  %v161_v6 = vld [vmem:[#allocation2 + $0x340] sm:$0xff]  ;;  %v13457_v34 = vld [vmem:[#allocation5 + $0xdd0] ss:$12 sps:$4 sm:$0xff]  }
 0x256   :  { %v11684_v49 = vpop.f32.mrb[149].mxu1  ;;  %7586 = vmatpush1.bf16.msra.mxu0 %v13409_v46  ;;  %v177_v45 = vld [vmem:[#allocation2 + $0x3c0] sm:$0xff]  ;;  %v13461_v46 = vld [vmem:[#allocation5 + $0xea8] ss:$12 sps:$4 sm:$0xff]  }
 0x257   :  { %v11685_v54 = vadd.f32 %v11684_v49, %v11683_v62  ;;  %v11686_v59 = vpop.f32.mrb[150].mxu1  ;;  %7587 = vmatprep.subr.bf16.mxu0 %v13416_v32  ;;  %v13431_v62 = vld [vmem:[#allocation5 + $0xd3c] ss:$12 sps:$4 sm:$0xff]   ;;  %v14794_v49 = vcombine.high %v161_v6, %v177_v45 }
 0x258   :  { %v11687_v43 = vpop.f32.mrb[151].mxu1 }
 0x259   :  { %v14769_v38 = vadd.f32 %v11685_v54, %v14657_v61  ;;  %v11688_v50 = vadd.f32 %v11687_v43, %v11686_v59  ;;  %7531 = vmatmul.mubr.bf16.gmra.mrb[16].mxu0 %v14708_v55  ;;  %v13420_v61 = vld [vmem:[#allocation5 + $0xcf0] ss:$12 sps:$4 sm:$0xff]   ;;  %v13451_v55 = vld [vmem:[#allocation5 + $0xe78] ss:$12 sps:$4 sm:$0xff]   ;;  %v13466_v43 = vld [vmem:[#allocation5 + $0xec0] ss:$12 sps:$4 sm:$0xff]  }
 0x25a   :  { %9284 = vmatmul.mubr.bf16.vlgmr.msra.gmra.mrb[0].mxu1 %v14764_v2  ;;  %7588 = vmatpush1.bf16.msra.mxu0 %v13414_v26  ;;  %v14792_v26 = vcombine.low %v129_v9, %v145_v25  ;;  %v14806_v25 = vcombine.low %v161_v6, %v177_v45 }
 0x25b   :  { %v14774_v1 = vadd.f32 %v11688_v50, %v14662_v14  ;;  %7589 = vmatprep.subr.bf16.mxu0 %v13419_v42  ;;  %7540 = vmatprep.mubr.bf16.mxu0 %v14710_v41  ;;  %v13423_v41 = vld [vmem:[#allocation5 + $0xd08] ss:$12 sps:$4 sm:$0xff]  }
 0x25c   :  { %9291 = vmatprep.mubr.bf16.mxu1 %v14766_v37  ;;  %11958 = vmatpush3.bf16.msra.mxu1 %v13442_v12  ;;  %v13462_v42 = vld [vmem:[#allocation5 + $0xde8] ss:$12 sps:$4 sm:$0xff]  }
 0x25d   :  { %v11689_v24 = vpop.f32.mrb[152].mxu1  ;;  %11959 = vmatprep.subr.bf16.mxu1 %v13446_v0  ;;  %v13434_v12 = vld [vmem:[#allocation5 + $0xd54] ss:$12 sps:$4 sm:$0xff]  }
 0x25e   :  { %v11690_v36 = vpop.f32.mrb[153].mxu1  ;;  %7590 = vmatpush1.bf16.msra.mxu0 %v13417_v19  ;;  %v209_v0 = vld [vmem:[#allocation2 + $0x4c0] sm:$0xff] }
 0x25f   :  { %v11691_v14 = vadd.f32 %v11690_v36, %v11689_v24  ;;  %v11692_v29 = vpop.f32.mrb[154].mxu1  ;;  %7591 = vmatprep.subr.bf16.mxu0 %v13422_v33  ;;  %v193_v33 = vld [vmem:[#allocation2 + $0x440] sm:$0xff]  ;;  %v13437_v24 = vld [vmem:[#allocation5 + $0xd6c] ss:$12 sps:$4 sm:$0xff]  }
 0x260   :  { %v11693_v51 = vpop.f32.mrb[155].mxu1  ;;  %11960 = vmatpush3.bf16.msra.mxu1 %v13447_v57  ;;  %v13472_v36 = vld [vmem:[#allocation5 + $0xe18] ss:$12 sps:$4 sm:$0xff]   ;;  %v14820_v45 = vcombine.low %v193_v33, %v209_v0 }
 0x261   :  { %v14783_v16 = vadd.f32 %v11691_v14, %v14671_v8  ;;  %v11694_v17 = vadd.f32 %v11693_v51, %v11692_v29  ;;  %7541 = vmatmul.mubr.bf16.gmra.mrb[20].mxu0 %v14722_v11  ;;  %11961 = vmatprep.subr.bf16.mxu1 %v13451_v55  ;;  %v13426_v8 = vld [vmem:[#allocation5 + $0xd20] ss:$12 sps:$4 sm:$0xff]   ;;  %v14808_v55 = vcombine.high %v193_v33, %v209_v0  ;;  %v13476_v29 = vld [vmem:[#allocation5 + $0xef0] ss:$12 sps:$4 sm:$0xff]   ;;  %v13435_v51 = vld [vmem:[#allocation5 + $0xd68] ss:$12 sps:$4 sm:$0xff]  }
 0x262   :  { %9292 = vmatmul.mubr.bf16.gmra.mrb[4].mxu1 %v14778_v27  ;;  %7592 = vmatpush1.bf16.msra.mxu0 %v13420_v61  ;;  %v13432_v61 = vld [vmem:[#allocation5 + $0xd50] ss:$12 sps:$4 sm:$0xff]  }
 0x263   :  { %v14788_v7 = vadd.f32 %v11694_v17, %v14676_v3  ;;  %7593 = vmatprep.subr.bf16.mxu0 %v13425_v10  ;;  %7550 = vmatprep.mubr.bf16.mxu0 %v14724_v39  ;;  %v13429_v39 = vld [vmem:[#allocation5 + $0xd38] ss:$12 sps:$4 sm:$0xff]  }
 0x264   :  { %9299 = vmatprep.mubr.bf16.mxu1 %v14780_v40  ;;  %11962 = vmatpush3.bf16.msra.mxu1 %v13452_v4  ;;  %v13440_v4 = vld [vmem:[#allocation5 + $0xd84] ss:$12 sps:$4 sm:$0xff]  }
 0x265   :  { %v11695_v11 = vpop.f32.mrb[156].mxu1  ;;  %11963 = vmatprep.subr.bf16.mxu1 %v13456_v56  ;;  %v13505_v56 = vld [vmem:[#allocation5 + $0xfc8] ss:$12 sps:$4 sm:$0xff]  }
 0x266   :  { %v11696_v32 = vpop.f32.mrb[157].mxu1  ;;  %7594 = vmatpush1.bf16.msra.mxu0 %v13423_v41 }
 0x267   :  { %v11697_v3 = vadd.f32 %v11696_v32, %v11695_v11  ;;  %v11698_v44 = vpop.f32.mrb[158].mxu1  ;;  %7595 = vmatprep.subr.bf16.mxu0 %v13428_v30  ;;  %v225_v30 = vld [vmem:[#allocation2 + $0x540] sm:$0xff]  ;;  %v13445_v11 = vld [vmem:[#allocation5 + $0xd9c] ss:$12 sps:$4 sm:$0xff]  }
 0x268   :  { %v11699_v58 = vpop.f32.mrb[159].mxu1  ;;  %11964 = vmatpush3.bf16.msra.mxu1 %v13457_v34 }
 0x269   :  { %v14797_v54 = vadd.f32 %v11697_v3, %v14685_v31  ;;  %v11700_v59 = vadd.f32 %v11699_v58, %v11698_v44  ;;  %7551 = vmatmul.mubr.bf16.gmra.mrb[24].mxu0 %v14736_v21  ;;  %11965 = vmatprep.subr.bf16.mxu1 %v13461_v46  ;;  %v13467_v31 = vld [vmem:[#allocation5 + $0xe00] ss:$12 sps:$4 sm:$0xff]   ;;  %v13471_v21 = vld [vmem:[#allocation5 + $0xed8] ss:$12 sps:$4 sm:$0xff]  }
 0x26a   :  { %9300 = vmatmul.mubr.bf16.gmra.mrb[8].mxu1 %v14792_v26  ;;  %7596 = vmatpush1.bf16.msra.mxu0 %v13426_v8  ;;  %v13438_v8 = vld [vmem:[#allocation5 + $0xd80] ss:$12 sps:$4 sm:$0xff]   ;;  %v13443_v3 = vld [vmem:[#allocation5 + $0xd98] ss:$12 sps:$4 sm:$0xff]  }
 0x26b   :  { %v14802_v19 = vadd.f32 %v11700_v59, %v14690_v48  ;;  %7597 = vmatprep.subr.bf16.mxu0 %v13431_v62  ;;  %7560 = vmatprep.mubr.bf16.mxu0 %v14738_v60  ;;  %v13450_v58 = vld [vmem:[#allocation5 + $0xdb4] ss:$12 sps:$4 sm:$0xff]  }
 0x26c   :  { %9307 = vmatprep.mubr.bf16.mxu1 %v14794_v49  ;;  %11966 = vmatpush3.bf16.msra.mxu1 %v13462_v42  ;;  %v273_v42 = vld [vmem:[#allocation2 + $0x6c0] sm:$0xff] }
 0x26d   :  { %v11717_v50 = vpop.f32.mrb[160].mxu1  ;;  %11967 = vmatprep.subr.bf16.mxu1 %v13466_v43  ;;  %v13448_v43 = vld [vmem:[#allocation5 + $0xdb0] ss:$12 sps:$4 sm:$0xff]  }
 0x26e   :  { %v11718_v9 = vpop.f32.mrb[161].mxu1  ;;  %7598 = vmatpush1.bf16.msra.mxu0 %v13429_v39 }
 0x26f   :  { %v11719_v48 = vadd.f32 %v11718_v9, %v11717_v50  ;;  %v11720_v57 = vpop.f32.mrb[162].mxu1  ;;  %7599 = vmatprep.subr.bf16.mxu0 %v13434_v12  ;;  %v13455_v50 = vld [vmem:[#allocation5 + $0xdcc] ss:$12 sps:$4 sm:$0xff]  }
 0x270   :  { %v11721_v60 = vpop.f32.mrb[163].mxu1  ;;  %11968 = vmatpush3.bf16.msra.mxu1 %v13467_v31 }
 0x271   :  { %v14811_v10 = vadd.f32 %v11719_v48, %v14699_v23  ;;  %v11722_v14 = vadd.f32 %v11721_v60, %v11720_v57  ;;  %7561 = vmatmul.mubr.bf16.gmra.mrb[28].mxu0 %v14750_v15  ;;  %11969 = vmatprep.subr.bf16.mxu1 %v13471_v21  ;;  %v13477_v23 = vld [vmem:[#allocation5 + $0xe30] ss:$12 sps:$4 sm:$0xff]   ;;  %v241_v15 = vld [vmem:[#allocation2 + $0x5c0] sm:$0xff]  ;;  %v13453_v21 = vld [vmem:[#allocation5 + $0xdc8] ss:$12 sps:$4 sm:$0xff]  }
 0x272   :  { %9308 = vmatmul.mubr.bf16.gmra.mrb[12].mxu1 %v14806_v25  ;;  %7600 = vmatpush1.bf16.msra.mxu0 %v13432_v61  ;;  %v14822_v46 = vcombine.high %v225_v30, %v241_v15  ;;  %v13460_v61 = vld [vmem:[#allocation5 + $0xde4] ss:$12 sps:$4 sm:$0xff]  }
 0x273   :  { %v14816_v41 = vadd.f32 %v11722_v14, %v14704_v28  ;;  %7601 = vmatprep.subr.bf16.mxu0 %v13437_v24  ;;  %7603 = vmatprep.mubr.bf16.mxu0 %v14752_v63  ;;  %v289_v57 = vld [vmem:[#allocation2 + $0x740] sm:$0xff] }
 0x274   :  { %9315 = vmatprep.mubr.bf16.mxu1 %v14808_v55  ;;  %11970 = vmatpush3.bf16.msra.mxu1 %v13472_v36 }
 0x275   :  { %v11723_v17 = vpop.f32.mrb[164].mxu1  ;;  %11971 = vmatprep.subr.bf16.mxu1 %v13476_v29  ;;  %v13465_v29 = vld [vmem:[#allocation5 + $0xdfc] ss:$12 sps:$4 sm:$0xff]  }
 0x276   :  { %v11724_v6 = vpop.f32.mrb[165].mxu1  ;;  %7602 = vmatpush1.bf16.msra.mxu0 %v13435_v51 }
 0x277   :  { %v11725_v28 = vadd.f32 %v11724_v6, %v11723_v17  ;;  %v11726_v34 = vpop.f32.mrb[166].mxu1  ;;  %7684 = vmatprep.subr.bf16.mxu0 %v13440_v4 }
 0x278   :  { %v11727_v63 = vpop.f32.mrb[167].mxu1  ;;  %11972 = vmatpush3.bf16.msra.mxu1 %v13477_v23  ;;  %v13463_v23 = vld [vmem:[#allocation5 + $0xdf8] ss:$12 sps:$4 sm:$0xff]  }
 0x279   :  { %v14825_v32 = vadd.f32 %v11725_v28, %v14713_v20  ;;  %v11728_v62 = vadd.f32 %v11727_v63, %v11726_v34  ;;  %7604 = vmatmul.mubr.bf16.vlgmr.msra.gmra.mrb[0].mxu0 %v14764_v2  ;;  %12021 = vmatprep.subr.bf16.mxu1 %v13505_v56  ;;  %v257_v20 = vld [vmem:[#allocation2 + $0x640] sm:$0xff]  ;;  %v14834_v2 = vcombine.low %v225_v30, %v241_v15  ;;  %v66_v56 = vld [vmem:[#allocation2 + $0x48] sm:$0xff] }
 0x27a   :  { %9316 = vmatmul.mubr.bf16.gmra.mrb[16].mxu1 %v14820_v45  ;;  %7685 = vmatpush1.bf16.msra.mxu0 %v13438_v8  ;;  %v14836_v33 = vcombine.high %v257_v20, %v273_v42  ;;  %v14848_v60 = vcombine.low %v257_v20, %v273_v42  ;;  %v13470_v30 = vld [vmem:[#allocation5 + $0xe14] ss:$12 sps:$4 sm:$0xff]   ;;  %v98_v42 = vld [vmem:[#allocation2 + $0x148] sm:$0xff] }
 0x27b   :  { %v14830_v44 = vadd.f32 %v11728_v62, %v14718_v22  ;;  %7686 = vmatprep.subr.bf16.mxu0 %v13445_v11  ;;  %7613 = vmatprep.mubr.bf16.mxu0 %v14766_v37  ;;  %v13475_v11 = vld [vmem:[#allocation5 + $0xe2c] ss:$12 sps:$4 sm:$0xff]  }
 0x27c   :  { %9323 = vmatprep.mubr.bf16.mxu1 %v14822_v46 }
 0x27d   :  { %v11729_v39 = vpop.f32.mrb[168].mxu1 }
 0x27e   :  { %v11730_v59 = vpop.f32.mrb[169].mxu1  ;;  %7687 = vmatpush1.bf16.msra.mxu0 %v13443_v3  ;;  %v13473_v3 = vld [vmem:[#allocation5 + $0xe28] ss:$12 sps:$4 sm:$0xff]  }
 0x27f   :  { %v11731_v12 = vadd.f32 %v11730_v59, %v11729_v39  ;;  %v11732_v31 = vpop.f32.mrb[170].mxu1  ;;  %7688 = vmatprep.subr.bf16.mxu0 %v13450_v58  ;;  %v13480_v39 = vld [vmem:[#allocation5 + $0xe44] ss:$12 sps:$4 sm:$0xff]  }
 0x280   :  { %v11733_v22 = vpop.f32.mrb[171].mxu1 }
 0x281   :  { %v14839_v37 = vadd.f32 %v11731_v12, %v14727_v53  ;;  %v11734_v0 = vadd.f32 %v11733_v22, %v11732_v31  ;;  %7614 = vmatmul.mubr.bf16.gmra.mrb[4].mxu0 %v14778_v27  ;;  %v305_v53 = vld [vmem:[#allocation2 + $0x7c0] sm:$0xff] }
 0x282   :  { %9324 = vmatmul.mubr.bf16.gmra.mrb[20].mxu1 %v14834_v2  ;;  %7689 = vmatpush1.bf16.msra.mxu0 %v13448_v43  ;;  %v13458_v27 = vld [vmem:[#allocation5 + $0xde0] ss:$12 sps:$4 sm:$0xff]   ;;  %v14850_v51 = vcombine.high %v289_v57, %v305_v53  ;;  %v14862_v8 = vcombine.low %v289_v57, %v305_v53 }
 0x283   :  { %v14844_v9 = vadd.f32 %v11734_v0, %v14732_v5  ;;  %7690 = vmatprep.subr.bf16.mxu0 %v13455_v50  ;;  %7623 = vmatprep.mubr.bf16.mxu0 %v14780_v40  ;;  %v13483_v50 = vld [vmem:[#allocation5 + $0xe5c] ss:$12 sps:$4 sm:$0xff]   ;;  %v13486_v53 = vld [vmem:[#allocation5 + $0xe74] ss:$12 sps:$4 sm:$0xff]  }
 0x284   :  { %9331 = vmatprep.mubr.bf16.mxu1 %v14836_v33  ;;  %v13506_v0 = vld [vmem:[#allocation5 + $0xf08] ss:$12 sps:$4 sm:$0xff]  }
 0x285   :  { %v11735_v48 = vpop.f32.mrb[172].mxu1 }
 0x286   :  { %v11736_v24 = vpop.f32.mrb[173].mxu1  ;;  %7691 = vmatpush1.bf16.msra.mxu0 %v13453_v21 }
 0x287   :  { %v11737_v36 = vadd.f32 %v11736_v24, %v11735_v48  ;;  %v11738_v14 = vpop.f32.mrb[174].mxu1  ;;  %7692 = vmatprep.subr.bf16.mxu0 %v13460_v61  ;;  %v13510_v61 = vld [vmem:[#allocation5 + $0xfe0] ss:$12 sps:$4 sm:$0xff]   ;;  %v13481_v48 = vld [vmem:[#allocation5 + $0xe58] ss:$12 sps:$4 sm:$0xff]  }
 0x288   :  { %v11739_v5 = vpop.f32.mrb[175].mxu1 }
 0x289   :  { %v14853_v40 = vadd.f32 %v11737_v36, %v14741_v47  ;;  %v11740_v4 = vadd.f32 %v11739_v5, %v11738_v14  ;;  %7624 = vmatmul.mubr.bf16.gmra.mrb[8].mxu0 %v14792_v26  ;;  %v82_v47 = vld [vmem:[#allocation2 + $0xc8] sm:$0xff]  ;;  %v13468_v26 = vld [vmem:[#allocation5 + $0xe10] ss:$12 sps:$4 sm:$0xff]  }
 0x28a   :  { %9332 = vmatmul.mubr.bf16.gmra.mrb[24].mxu1 %v14848_v60  ;;  %7693 = vmatpush1.bf16.msra.mxu0 %v13458_v27  ;;  %v14864_v63 = vcombine.high %v66_v56, %v82_v47  ;;  %v14876_v43 = vcombine.low %v66_v56, %v82_v47  ;;  %v130_v27 = vld [vmem:[#allocation2 + $0x248] sm:$0xff]  ;;  %v13484_v5 = vld [vmem:[#allocation5 + $0xe70] ss:$12 sps:$4 sm:$0xff]  }
 0x28b   :  { %v14858_v17 = vadd.f32 %v11740_v4, %v14746_v13  ;;  %7694 = vmatprep.subr.bf16.mxu0 %v13465_v29  ;;  %7633 = vmatprep.mubr.bf16.mxu0 %v14794_v49  ;;  %v146_v36 = vld [vmem:[#allocation2 + $0x2c8] sm:$0xff] }
 0x28c   :  { %9339 = vmatprep.mubr.bf16.mxu1 %v14850_v51 }
 0x28d   :  { %v11741_v15 = vpop.f32.mrb[176].mxu1 }
 0x28e   :  { %v11742_v6 = vpop.f32.mrb[177].mxu1  ;;  %7695 = vmatpush1.bf16.msra.mxu0 %v13463_v23  ;;  %v13489_v23 = vld [vmem:[#allocation5 + $0xe8c] ss:$12 sps:$4 sm:$0xff]  }
 0x28f   :  { %v11743_v28 = vadd.f32 %v11742_v6, %v11741_v15  ;;  %v11744_v34 = vpop.f32.mrb[178].mxu1  ;;  %7696 = vmatprep.subr.bf16.mxu0 %v13470_v30  ;;  %v14892_v30 = vcombine.high %v130_v27, %v146_v36  ;;  %v13516_v15 = vld [vmem:[#allocation5 + $0xf38] ss:$12 sps:$4 sm:$0xff]   ;;  %v13520_v6 = vld [vmem:[#allocation5 + $0x1010] ss:$12 sps:$4 sm:$0xff]  }
 0x290   :  { %v11745_v13 = vpop.f32.mrb[179].mxu1 }
 0x291   :  { %v14867_v49 = vadd.f32 %v11743_v28, %v14755_v35  ;;  %v11746_v62 = vadd.f32 %v11745_v13, %v11744_v34  ;;  %7634 = vmatmul.mubr.bf16.gmra.mrb[12].mxu0 %v14806_v25  ;;  %v114_v35 = vld [vmem:[#allocation2 + $0x1c8] sm:$0xff]  ;;  %v13492_v34 = vld [vmem:[#allocation5 + $0xea4] ss:$12 sps:$4 sm:$0xff]  }
 0x292   :  { %9340 = vmatmul.mubr.bf16.gmra.mrb[28].mxu1 %v14862_v8  ;;  %7697 = vmatpush1.bf16.msra.mxu0 %v13468_v26  ;;  %v13478_v25 = vld [vmem:[#allocation5 + $0xe40] ss:$12 sps:$4 sm:$0xff]   ;;  %v14878_v22 = vcombine.high %v98_v42, %v114_v35  ;;  %v14890_v29 = vcombine.low %v98_v42, %v114_v35  ;;  %v13487_v26 = vld [vmem:[#allocation5 + $0xe88] ss:$12 sps:$4 sm:$0xff]  }
 0x293   :  { %v14872_v58 = vadd.f32 %v11746_v62, %v14760_v18  ;;  %7698 = vmatprep.subr.bf16.mxu0 %v13475_v11  ;;  %7643 = vmatprep.mubr.bf16.mxu0 %v14808_v55  ;;  %v162_v13 = vld [vmem:[#allocation2 + $0x348] sm:$0xff] }
 0x294   :  { %9380 = vmatprep.mubr.bf16.mxu1 %v14864_v63  ;;  %v13525_v62 = vld [vmem:[#allocation5 + $0x1028] ss:$12 sps:$4 sm:$0xff]  }
 0x295   :  { %v11747_v20 = vpop.f32.mrb[180].mxu1  ;;  %v13495_v35 = vld [vmem:[#allocation5 + $0xebc] ss:$12 sps:$4 sm:$0xff]  }
 0x296   :  { %v11748_v59 = vpop.f32.mrb[181].mxu1  ;;  %7699 = vmatpush1.bf16.msra.mxu0 %v13473_v3 }
 0x297   :  { %v11749_v12 = vadd.f32 %v11748_v59, %v11747_v20  ;;  %v11750_v31 = vpop.f32.mrb[182].mxu1  ;;  %7700 = vmatprep.subr.bf16.mxu0 %v13480_v39  ;;  %v14904_v39 = vcombine.low %v130_v27, %v146_v36  ;;  %v13490_v20 = vld [vmem:[#allocation5 + $0xea0] ss:$12 sps:$4 sm:$0xff]   ;;  %v13496_v27 = vld [vmem:[#allocation5 + $0xed0] ss:$12 sps:$4 sm:$0xff]  }
 0x298   :  { %v11751_v18 = vpop.f32.mrb[183].mxu1 }
 0x299   :  { %v14881_v55 = vadd.f32 %v11749_v12, %v14769_v38  ;;  %v11752_v21 = vadd.f32 %v11751_v18, %v11750_v31  ;;  %7644 = vmatmul.mubr.bf16.gmra.mrb[16].mxu0 %v14820_v45  ;;  %v13511_v38 = vld [vmem:[#allocation5 + $0xf20] ss:$12 sps:$4 sm:$0xff]   ;;  %v13515_v45 = vld [vmem:[#allocation5 + $0xff8] ss:$12 sps:$4 sm:$0xff]  }
 0x29a   :  { %9381 = vmatmul.mubr.bf16.vlgmr.msra.gmra.mrb[32].mxu1 %v14876_v43  ;;  %7701 = vmatpush1.bf16.msra.mxu0 %v13478_v25  ;;  %v13526_v25 = vld [vmem:[#allocation5 + $0xf68] ss:$12 sps:$4 sm:$0xff]   ;;  %v13493_v18 = vld [vmem:[#allocation5 + $0xeb8] ss:$12 sps:$4 sm:$0xff]  }
 0x29b   :  { %v14886_v57 = vadd.f32 %v11752_v21, %v14774_v1  ;;  %7702 = vmatprep.subr.bf16.mxu0 %v13483_v50  ;;  %7653 = vmatprep.mubr.bf16.mxu0 %v14822_v46  ;;  %v13530_v50 = vld [vmem:[#allocation5 + $0x1040] ss:$12 sps:$4 sm:$0xff]  }
 0x29c   :  { %9388 = vmatprep.mubr.bf16.mxu1 %v14878_v22  ;;  %12022 = vmatpush3.bf16.msra.mxu1 %v13506_v0  ;;  %v13498_v21 = vld [vmem:[#allocation5 + $0xed4] ss:$12 sps:$4 sm:$0xff]  }
 0x29d   :  { %v11753_v24 = vpop.f32.mrb[184].mxu1  ;;  %12023 = vmatprep.subr.bf16.mxu1 %v13510_v61 }
 0x29e   :  { %v11754_v14 = vpop.f32.mrb[185].mxu1  ;;  %7703 = vmatpush1.bf16.msra.mxu0 %v13481_v48  ;;  %v194_v48 = vld [vmem:[#allocation2 + $0x448] sm:$0xff] }
 0x29f   :  { %v11755_v1 = vadd.f32 %v11754_v14, %v11753_v24  ;;  %v11756_v4 = vpop.f32.mrb[186].mxu1  ;;  %7704 = vmatprep.subr.bf16.mxu0 %v13486_v53  ;;  %v13535_v53 = vld [vmem:[#allocation5 + $0x1058] ss:$12 sps:$4 sm:$0xff]  }
 0x2a0   :  { %v11757_v46 = vpop.f32.mrb[187].mxu1  ;;  %12024 = vmatpush3.bf16.msra.mxu1 %v13511_v38 }
 0x2a1   :  { %v14895_v56 = vadd.f32 %v11755_v1, %v14783_v16  ;;  %v11758_v47 = vadd.f32 %v11757_v46, %v11756_v4  ;;  %7654 = vmatmul.mubr.bf16.gmra.mrb[20].mxu0 %v14834_v2  ;;  %12025 = vmatprep.subr.bf16.mxu1 %v13515_v45  ;;  %v13521_v16 = vld [vmem:[#allocation5 + $0xf50] ss:$12 sps:$4 sm:$0xff]   ;;  %v178_v2 = vld [vmem:[#allocation2 + $0x3c8] sm:$0xff] }
 0x2a2   :  { %9389 = vmatmul.mubr.bf16.gmra.mrb[36].mxu1 %v14890_v29  ;;  %7705 = vmatpush1.bf16.msra.mxu0 %v13484_v5  ;;  %v14906_v59 = vcombine.high %v162_v13, %v178_v2  ;;  %v14918_v24 = vcombine.low %v162_v13, %v178_v2  ;;  %v13501_v45 = vld [vmem:[#allocation5 + $0xeec] ss:$12 sps:$4 sm:$0xff]   ;;  %v13499_v46 = vld [vmem:[#allocation5 + $0xee8] ss:$12 sps:$4 sm:$0xff]  }
 0x2a3   :  { %v14900_v28 = vadd.f32 %v11758_v47, %v14788_v7  ;;  %7706 = vmatprep.subr.bf16.mxu0 %v13489_v23  ;;  %7663 = vmatprep.mubr.bf16.mxu0 %v14836_v33  ;;  %v13536_v5 = vld [vmem:[#allocation5 + $0xf98] ss:$12 sps:$4 sm:$0xff]   ;;  %v13540_v23 = vld [vmem:[#allocation5 + $0x1070] ss:$12 sps:$4 sm:$0xff]   ;;  %v13502_v13 = vld [vmem:[#allocation5 + $0xf00] ss:$12 sps:$4 sm:$0xff]  }
 0x2a4   :  { %9396 = vmatprep.mubr.bf16.mxu1 %v14892_v30  ;;  %12026 = vmatpush3.bf16.msra.mxu1 %v13516_v15  ;;  %v13504_v47 = vld [vmem:[#allocation5 + $0xf04] ss:$12 sps:$4 sm:$0xff]  }
 0x2a5   :  { %v11759_v11 = vpop.f32.mrb[188].mxu1  ;;  %12027 = vmatprep.subr.bf16.mxu1 %v13520_v6 }
 0x2a6   :  { %v11760_v3 = vpop.f32.mrb[189].mxu1  ;;  %7707 = vmatpush1.bf16.msra.mxu0 %v13487_v26  ;;  %v226_v26 = vld [vmem:[#allocation2 + $0x548] sm:$0xff] }
 0x2a7   :  { %v11761_v7 = vadd.f32 %v11760_v3, %v11759_v11  ;;  %v11762_v42 = vpop.f32.mrb[190].mxu1  ;;  %7708 = vmatprep.subr.bf16.mxu0 %v13492_v34  ;;  %v13569_v34 = vld [vmem:[#allocation5 + $0x1148] ss:$12 sps:$4 sm:$0xff]  }
 0x2a8   :  { %v11763_v33 = vpop.f32.mrb[191].mxu1  ;;  %12028 = vmatpush3.bf16.msra.mxu1 %v13521_v16 }
 0x2a9   :  { %v14909_v12 = vadd.f32 %v11761_v7, %v14797_v54  ;;  %v11764_v31 = vadd.f32 %v11763_v33, %v11762_v42  ;;  %7664 = vmatmul.mubr.bf16.gmra.mrb[24].mxu0 %v14848_v60  ;;  %12029 = vmatprep.subr.bf16.mxu1 %v13525_v62  ;;  %v13531_v54 = vld [vmem:[#allocation5 + $0xf80] ss:$12 sps:$4 sm:$0xff]   ;;  %v13509_v62 = vld [vmem:[#allocation5 + $0xf1c] ss:$12 sps:$4 sm:$0xff]   ;;  %v13507_v42 = vld [vmem:[#allocation5 + $0xf18] ss:$12 sps:$4 sm:$0xff]  }
 0x2aa   :  { %9397 = vmatmul.mubr.bf16.gmra.mrb[40].mxu1 %v14904_v39  ;;  %7709 = vmatpush1.bf16.msra.mxu0 %v13490_v20  ;;  %v210_v60 = vld [vmem:[#allocation2 + $0x4c8] sm:$0xff]  ;;  %v13514_v33 = vld [vmem:[#allocation5 + $0xf34] ss:$12 sps:$4 sm:$0xff]  }
 0x2ab   :  { %v14914_v0 = vadd.f32 %v11764_v31, %v14802_v19  ;;  %7710 = vmatprep.subr.bf16.mxu0 %v13495_v35  ;;  %7673 = vmatprep.mubr.bf16.mxu0 %v14850_v51  ;;  %v14920_v14 = vcombine.high %v194_v48, %v210_v60  ;;  %v14932_v11 = vcombine.low %v194_v48, %v210_v60  ;;  %v274_v31 = vld [vmem:[#allocation2 + $0x6c8] sm:$0xff] }
 0x2ac   :  { %9404 = vmatprep.mubr.bf16.mxu1 %v14906_v59  ;;  %12030 = vmatpush3.bf16.msra.mxu1 %v13526_v25 }
 0x2ad   :  { %v11781_v61 = vpop.f32.mrb[192].mxu1  ;;  %12031 = vmatprep.subr.bf16.mxu1 %v13530_v50 }
 0x2ae   :  { %v11782_v38 = vpop.f32.mrb[193].mxu1  ;;  %7711 = vmatpush1.bf16.msra.mxu0 %v13493_v18  ;;  %v13512_v18 = vld [vmem:[#allocation5 + $0xf30] ss:$12 sps:$4 sm:$0xff]  }
 0x2af   :  { %v11783_v19 = vadd.f32 %v11782_v38, %v11781_v61  ;;  %v11784_v36 = vpop.f32.mrb[194].mxu1  ;;  %7712 = vmatprep.subr.bf16.mxu0 %v13498_v21  ;;  %v13519_v61 = vld [vmem:[#allocation5 + $0xf4c] ss:$12 sps:$4 sm:$0xff]  }
 0x2b0   :  { %v11785_v51 = vpop.f32.mrb[195].mxu1  ;;  %12032 = vmatpush3.bf16.msra.mxu1 %v13531_v54 }
 0x2b1   :  { %v14923_v1 = vadd.f32 %v11783_v19, %v14811_v10  ;;  %v11786_v4 = vadd.f32 %v11785_v51, %v11784_v36  ;;  %7674 = vmatmul.mubr.bf16.gmra.mrb[28].mxu0 %v14862_v8  ;;  %12033 = vmatprep.subr.bf16.mxu1 %v13535_v53  ;;  %v13541_v10 = vld [vmem:[#allocation5 + $0xfb0] ss:$12 sps:$4 sm:$0xff]   ;;  %v242_v8 = vld [vmem:[#allocation2 + $0x5c8] sm:$0xff] }
 0x2b2   :  { %9405 = vmatmul.mubr.bf16.gmra.mrb[44].mxu1 %v14918_v24  ;;  %7713 = vmatpush1.bf16.msra.mxu0 %v13496_v27  ;;  %v14934_v3 = vcombine.high %v226_v26, %v242_v8  ;;  %v13517_v53 = vld [vmem:[#allocation5 + $0xf48] ss:$12 sps:$4 sm:$0xff]   ;;  %v13524_v27 = vld [vmem:[#allocation5 + $0xf64] ss:$12 sps:$4 sm:$0xff]  }
 0x2b3   :  { %v14928_v15 = vadd.f32 %v11786_v4, %v14816_v41  ;;  %7714 = vmatprep.subr.bf16.mxu0 %v13501_v45  ;;  %7716 = vmatprep.mubr.bf16.mxu0 %v14864_v63  ;;  %v290_v36 = vld [vmem:[#allocation2 + $0x748] sm:$0xff] }
 0x2b4   :  { %9412 = vmatprep.mubr.bf16.mxu1 %v14920_v14  ;;  %12034 = vmatpush3.bf16.msra.mxu1 %v13536_v5 }
 0x2b5   :  { %v11787_v6 = vpop.f32.mrb[196].mxu1  ;;  %12035 = vmatprep.subr.bf16.mxu1 %v13540_v23  ;;  %v13529_v23 = vld [vmem:[#allocation5 + $0xf7c] ss:$12 sps:$4 sm:$0xff]  }
 0x2b6   :  { %v11788_v16 = vpop.f32.mrb[197].mxu1  ;;  %7715 = vmatpush1.bf16.msra.mxu0 %v13499_v46 }
 0x2b7   :  { %v11789_v41 = vadd.f32 %v11788_v16, %v11787_v6  ;;  %v11790_v2 = vpop.f32.mrb[198].mxu1  ;;  %7797 = vmatprep.subr.bf16.mxu0 %v13504_v47 }
 0x2b8   :  { %v11791_v63 = vpop.f32.mrb[199].mxu1  ;;  %12036 = vmatpush3.bf16.msra.mxu1 %v13541_v10  ;;  %v13527_v10 = vld [vmem:[#allocation5 + $0xf78] ss:$12 sps:$4 sm:$0xff]  }
 0x2b9   :  { %v14937_v20 = vadd.f32 %v11789_v41, %v14825_v32  ;;  %v11792_v7 = vadd.f32 %v11791_v63, %v11790_v2  ;;  %7717 = vmatmul.mubr.bf16.vlgmr.msra.gmra.mrb[0].mxu0 %v14876_v43  ;;  %12085 = vmatprep.subr.bf16.mxu1 %v13569_v34  ;;  %v258_v32 = vld [vmem:[#allocation2 + $0x648] sm:$0xff]  ;;  %v14946_v43 = vcombine.low %v226_v26, %v242_v8  ;;  %v13534_v26 = vld [vmem:[#allocation5 + $0xf94] ss:$12 sps:$4 sm:$0xff]  }
 0x2ba   :  { %9413 = vmatmul.mubr.bf16.gmra.mrb[48].mxu1 %v14932_v11  ;;  %7798 = vmatpush1.bf16.msra.mxu0 %v13502_v13  ;;  %v14948_v48 = vcombine.high %v258_v32, %v274_v31  ;;  %v14960_v51 = vcombine.low %v258_v32, %v274_v31  ;;  %v67_v34 = vld [vmem:[#allocation2 + $0x50] sm:$0xff] }
 0x2bb   :  { %v14942_v35 = vadd.f32 %v11792_v7, %v14830_v44  ;;  %7799 = vmatprep.subr.bf16.mxu0 %v13509_v62  ;;  %7726 = vmatprep.mubr.bf16.mxu0 %v14878_v22  ;;  %v13539_v62 = vld [vmem:[#allocation5 + $0xfac] ss:$12 sps:$4 sm:$0xff]   ;;  %v99_v31 = vld [vmem:[#allocation2 + $0x150] sm:$0xff] }
 0x2bc   :  { %9420 = vmatprep.mubr.bf16.mxu1 %v14934_v3 }
 0x2bd   :  { %v11793_v25 = vpop.f32.mrb[200].mxu1 }
 0x2be   :  { %v11794_v50 = vpop.f32.mrb[201].mxu1  ;;  %7800 = vmatpush1.bf16.msra.mxu0 %v13507_v42  ;;  %v13537_v42 = vld [vmem:[#allocation5 + $0xfa8] ss:$12 sps:$4 sm:$0xff]  }
 0x2bf   :  { %v11795_v21 = vadd.f32 %v11794_v50, %v11793_v25  ;;  %v11796_v54 = vpop.f32.mrb[202].mxu1  ;;  %7801 = vmatprep.subr.bf16.mxu0 %v13514_v33  ;;  %v13544_v25 = vld [vmem:[#allocation5 + $0xfc4] ss:$12 sps:$4 sm:$0xff]  }
 0x2c0   :  { %v11797_v44 = vpop.f32.mrb[203].mxu1 }
 0x2c1   :  { %v14951_v22 = vadd.f32 %v11795_v21, %v14839_v37  ;;  %v11798_v60 = vadd.f32 %v11797_v44, %v11796_v54  ;;  %7727 = vmatmul.mubr.bf16.gmra.mrb[4].mxu0 %v14890_v29  ;;  %v306_v37 = vld [vmem:[#allocation2 + $0x7c8] sm:$0xff] }
 0x2c2   :  { %9421 = vmatmul.mubr.bf16.gmra.mrb[52].mxu1 %v14946_v43  ;;  %7802 = vmatpush1.bf16.msra.mxu0 %v13512_v18  ;;  %v13522_v29 = vld [vmem:[#allocation5 + $0xf60] ss:$12 sps:$4 sm:$0xff]   ;;  %v14962_v46 = vcombine.high %v290_v36, %v306_v37  ;;  %v14974_v13 = vcombine.low %v290_v36, %v306_v37 }
 0x2c3   :  { %v14956_v38 = vadd.f32 %v11798_v60, %v14844_v9  ;;  %7803 = vmatprep.subr.bf16.mxu0 %v13519_v61  ;;  %7736 = vmatprep.mubr.bf16.mxu0 %v14892_v30  ;;  %v13547_v61 = vld [vmem:[#allocation5 + $0xfdc] ss:$12 sps:$4 sm:$0xff]   ;;  %v13550_v37 = vld [vmem:[#allocation5 + $0xff4] ss:$12 sps:$4 sm:$0xff]  }
 0x2c4   :  { %9428 = vmatprep.mubr.bf16.mxu1 %v14948_v48  ;;  %v13570_v60 = vld [vmem:[#allocation5 + $0x1088] ss:$12 sps:$4 sm:$0xff]  }
 0x2c5   :  { %v11799_v19 = vpop.f32.mrb[204].mxu1 }
 0x2c6   :  { %v11800_v45 = vpop.f32.mrb[205].mxu1  ;;  %7804 = vmatpush1.bf16.msra.mxu0 %v13517_v53 }
 0x2c7   :  { %v11801_v5 = vadd.f32 %v11800_v45, %v11799_v19  ;;  %v11802_v4 = vpop.f32.mrb[206].mxu1  ;;  %7805 = vmatprep.subr.bf16.mxu0 %v13524_v27  ;;  %v13574_v27 = vld [vmem:[#allocation5 + $0x1160] ss:$12 sps:$4 sm:$0xff]   ;;  %v13545_v19 = vld [vmem:[#allocation5 + $0xfd8] ss:$12 sps:$4 sm:$0xff]  }
 0x2c8   :  { %v11803_v9 = vpop.f32.mrb[207].mxu1 }
 0x2c9   :  { %v14965_v30 = vadd.f32 %v11801_v5, %v14853_v40  ;;  %v11804_v47 = vadd.f32 %v11803_v9, %v11802_v4  ;;  %7737 = vmatmul.mubr.bf16.gmra.mrb[8].mxu0 %v14904_v39  ;;  %v83_v40 = vld [vmem:[#allocation2 + $0xd0] sm:$0xff] }
 0x2ca   :  { %9429 = vmatmul.mubr.bf16.gmra.mrb[56].mxu1 %v14960_v51  ;;  %7806 = vmatpush1.bf16.msra.mxu0 %v13522_v29  ;;  %v13532_v39 = vld [vmem:[#allocation5 + $0xf90] ss:$12 sps:$4 sm:$0xff]   ;;  %v14976_v63 = vcombine.high %v67_v34, %v83_v40  ;;  %v14988_v18 = vcombine.low %v67_v34, %v83_v40 }
 0x2cb   :  { %v14970_v6 = vadd.f32 %v11804_v47, %v14858_v17  ;;  %7807 = vmatprep.subr.bf16.mxu0 %v13529_v23  ;;  %7746 = vmatprep.mubr.bf16.mxu0 %v14906_v59  ;;  %v131_v29 = vld [vmem:[#allocation2 + $0x250] sm:$0xff] }
 0x2cc   :  { %9436 = vmatprep.mubr.bf16.mxu1 %v14962_v46  ;;  %v147_v5 = vld [vmem:[#allocation2 + $0x2d0] sm:$0xff] }
 0x2cd   :  { %v11805_v8 = vpop.f32.mrb[208].mxu1  ;;  %v13548_v9 = vld [vmem:[#allocation5 + $0xff0] ss:$12 sps:$4 sm:$0xff]  }
 0x2ce   :  { %v11806_v16 = vpop.f32.mrb[209].mxu1  ;;  %7808 = vmatpush1.bf16.msra.mxu0 %v13527_v10  ;;  %v13553_v10 = vld [vmem:[#allocation5 + $0x100c] ss:$12 sps:$4 sm:$0xff]  }
 0x2cf   :  { %v11807_v41 = vadd.f32 %v11806_v16, %v11805_v8  ;;  %v11808_v2 = vpop.f32.mrb[210].mxu1  ;;  %7809 = vmatprep.subr.bf16.mxu0 %v13534_v26  ;;  %v15004_v26 = vcombine.high %v131_v29, %v147_v5  ;;  %v13580_v8 = vld [vmem:[#allocation5 + $0x10b8] ss:$12 sps:$4 sm:$0xff]   ;;  %v13584_v16 = vld [vmem:[#allocation5 + $0x1190] ss:$12 sps:$4 sm:$0xff]  }
 0x2d0   :  { %v11809_v17 = vpop.f32.mrb[211].mxu1 }
 0x2d1   :  { %v14979_v59 = vadd.f32 %v11807_v41, %v14867_v49  ;;  %v11810_v7 = vadd.f32 %v11809_v17, %v11808_v2  ;;  %7747 = vmatmul.mubr.bf16.gmra.mrb[12].mxu0 %v14918_v24  ;;  %v115_v49 = vld [vmem:[#allocation2 + $0x1d0] sm:$0xff]  ;;  %v13542_v24 = vld [vmem:[#allocation5 + $0xfc0] ss:$12 sps:$4 sm:$0xff]  }
 0x2d2   :  { %9437 = vmatmul.mubr.bf16.gmra.mrb[60].mxu1 %v14974_v13  ;;  %7810 = vmatpush1.bf16.msra.mxu0 %v13532_v39  ;;  %v14990_v44 = vcombine.high %v99_v31, %v115_v49  ;;  %v15002_v23 = vcombine.low %v99_v31, %v115_v49  ;;  %v13551_v39 = vld [vmem:[#allocation5 + $0x1008] ss:$12 sps:$4 sm:$0xff]   ;;  %v13556_v2 = vld [vmem:[#allocation5 + $0x1024] ss:$12 sps:$4 sm:$0xff]  }
 0x2d3   :  { %v14984_v33 = vadd.f32 %v11810_v7, %v14872_v58  ;;  %7811 = vmatprep.subr.bf16.mxu0 %v13539_v62  ;;  %7756 = vmatprep.mubr.bf16.mxu0 %v14920_v14  ;;  %v163_v17 = vld [vmem:[#allocation2 + $0x350] sm:$0xff]  ;;  %v13559_v49 = vld [vmem:[#allocation5 + $0x103c] ss:$12 sps:$4 sm:$0xff]  }
 0x2d4   :  { %9477 = vmatprep.mubr.bf16.mxu1 %v14976_v63  ;;  %v13589_v7 = vld [vmem:[#allocation5 + $0x11a8] ss:$12 sps:$4 sm:$0xff]  }
 0x2d5   :  { %v11811_v32 = vpop.f32.mrb[212].mxu1 }
 0x2d6   :  { %v11812_v50 = vpop.f32.mrb[213].mxu1  ;;  %7812 = vmatpush1.bf16.msra.mxu0 %v13537_v42 }
 0x2d7   :  { %v11813_v21 = vadd.f32 %v11812_v50, %v11811_v32  ;;  %v11814_v54 = vpop.f32.mrb[214].mxu1  ;;  %7813 = vmatprep.subr.bf16.mxu0 %v13544_v25  ;;  %v15016_v25 = vcombine.low %v131_v29, %v147_v5  ;;  %v13554_v32 = vld [vmem:[#allocation5 + $0x1020] ss:$12 sps:$4 sm:$0xff]   ;;  %v13560_v29 = vld [vmem:[#allocation5 + $0x1050] ss:$12 sps:$4 sm:$0xff]  }
 0x2d8   :  { %v11815_v58 = vpop.f32.mrb[215].mxu1 }
 0x2d9   :  { %v14993_v14 = vadd.f32 %v11813_v21, %v14881_v55  ;;  %v11816_v53 = vadd.f32 %v11815_v58, %v11814_v54  ;;  %7757 = vmatmul.mubr.bf16.gmra.mrb[16].mxu0 %v14932_v11  ;;  %v13575_v55 = vld [vmem:[#allocation5 + $0x10a0] ss:$12 sps:$4 sm:$0xff]   ;;  %v13579_v11 = vld [vmem:[#allocation5 + $0x1178] ss:$12 sps:$4 sm:$0xff]  }
 0x2da   :  { %9478 = vmatmul.mubr.bf16.vlgmr.msra.gmra.mrb[64].mxu1 %v14988_v18  ;;  %7814 = vmatpush1.bf16.msra.mxu0 %v13542_v24  ;;  %v13590_v24 = vld [vmem:[#allocation5 + $0x10e8] ss:$12 sps:$4 sm:$0xff]   ;;  %v13557_v58 = vld [vmem:[#allocation5 + $0x1038] ss:$12 sps:$4 sm:$0xff]  }
 0x2db   :  { %v14998_v36 = vadd.f32 %v11816_v53, %v14886_v57  ;;  %7815 = vmatprep.subr.bf16.mxu0 %v13547_v61  ;;  %7766 = vmatprep.mubr.bf16.mxu0 %v14934_v3  ;;  %v13594_v61 = vld [vmem:[#allocation5 + $0x11c0] ss:$12 sps:$4 sm:$0xff]  }
 0x2dc   :  { %9485 = vmatprep.mubr.bf16.mxu1 %v14990_v44  ;;  %12086 = vmatpush3.bf16.msra.mxu1 %v13570_v60  ;;  %v13562_v53 = vld [vmem:[#allocation5 + $0x1054] ss:$12 sps:$4 sm:$0xff]  }
 0x2dd   :  { %v11817_v45 = vpop.f32.mrb[216].mxu1  ;;  %12087 = vmatprep.subr.bf16.mxu1 %v13574_v27 }
 0x2de   :  { %v11818_v4 = vpop.f32.mrb[217].mxu1  ;;  %7816 = vmatpush1.bf16.msra.mxu0 %v13545_v19  ;;  %v195_v19 = vld [vmem:[#allocation2 + $0x450] sm:$0xff] }
 0x2df   :  { %v11819_v57 = vadd.f32 %v11818_v4, %v11817_v45  ;;  %v11820_v47 = vpop.f32.mrb[218].mxu1  ;;  %7817 = vmatprep.subr.bf16.mxu0 %v13550_v37  ;;  %v13599_v37 = vld [vmem:[#allocation5 + $0x11d8] ss:$12 sps:$4 sm:$0xff]  }
 0x2e0   :  { %v11821_v3 = vpop.f32.mrb[219].mxu1  ;;  %12088 = vmatpush3.bf16.msra.mxu1 %v13575_v55 }
 0x2e1   :  { %v15007_v34 = vadd.f32 %v11819_v57, %v14895_v56  ;;  %v11822_v40 = vadd.f32 %v11821_v3, %v11820_v47  ;;  %7767 = vmatmul.mubr.bf16.gmra.mrb[20].mxu0 %v14946_v43  ;;  %12089 = vmatprep.subr.bf16.mxu1 %v13579_v11  ;;  %v13585_v56 = vld [vmem:[#allocation5 + $0x10d0] ss:$12 sps:$4 sm:$0xff]   ;;  %v13565_v11 = vld [vmem:[#allocation5 + $0x106c] ss:$12 sps:$4 sm:$0xff]   ;;  %v13563_v3 = vld [vmem:[#allocation5 + $0x1068] ss:$12 sps:$4 sm:$0xff]  }
 0x2e2   :  { %9486 = vmatmul.mubr.bf16.gmra.mrb[68].mxu1 %v15002_v23  ;;  %7818 = vmatpush1.bf16.msra.mxu0 %v13548_v9  ;;  %v179_v43 = vld [vmem:[#allocation2 + $0x3d0] sm:$0xff]  ;;  %v13600_v9 = vld [vmem:[#allocation5 + $0x1118] ss:$12 sps:$4 sm:$0xff]  }
 0x2e3   :  { %v15012_v41 = vadd.f32 %v11822_v40, %v14900_v28  ;;  %7819 = vmatprep.subr.bf16.mxu0 %v13553_v10  ;;  %7776 = vmatprep.mubr.bf16.mxu0 %v14948_v48  ;;  %v15018_v50 = vcombine.high %v163_v17, %v179_v43  ;;  %v15030_v45 = vcombine.low %v163_v17, %v179_v43  ;;  %v13604_v47 = vld [vmem:[#allocation5 + $0x11f0] ss:$12 sps:$4 sm:$0xff]   ;;  %v13566_v17 = vld [vmem:[#allocation5 + $0x1080] ss:$12 sps:$4 sm:$0xff]  }
 0x2e4   :  { %9493 = vmatprep.mubr.bf16.mxu1 %v15004_v26  ;;  %12090 = vmatpush3.bf16.msra.mxu1 %v13580_v8  ;;  %v13568_v8 = vld [vmem:[#allocation5 + $0x1084] ss:$12 sps:$4 sm:$0xff]  }
 0x2e5   :  { %v11823_v62 = vpop.f32.mrb[220].mxu1  ;;  %12091 = vmatprep.subr.bf16.mxu1 %v13584_v16 }
 0x2e6   :  { %v11824_v42 = vpop.f32.mrb[221].mxu1  ;;  %7820 = vmatpush1.bf16.msra.mxu0 %v13551_v39  ;;  %v227_v39 = vld [vmem:[#allocation2 + $0x550] sm:$0xff] }
 0x2e7   :  { %v11825_v28 = vadd.f32 %v11824_v42, %v11823_v62  ;;  %v11826_v31 = vpop.f32.mrb[222].mxu1  ;;  %7821 = vmatprep.subr.bf16.mxu0 %v13556_v2  ;;  %v243_v2 = vld [vmem:[#allocation2 + $0x5d0] sm:$0xff] }
 0x2e8   :  { %v11827_v48 = vpop.f32.mrb[223].mxu1  ;;  %12092 = vmatpush3.bf16.msra.mxu1 %v13585_v56  ;;  %v15046_v42 = vcombine.high %v227_v39, %v243_v2 }
 0x2e9   :  { %v15021_v21 = vadd.f32 %v11825_v28, %v14909_v12  ;;  %v11828_v54 = vadd.f32 %v11827_v48, %v11826_v31  ;;  %7777 = vmatmul.mubr.bf16.gmra.mrb[24].mxu0 %v14960_v51  ;;  %12093 = vmatprep.subr.bf16.mxu1 %v13589_v7  ;;  %v13595_v12 = vld [vmem:[#allocation5 + $0x1100] ss:$12 sps:$4 sm:$0xff]   ;;  %v211_v51 = vld [vmem:[#allocation2 + $0x4d0] sm:$0xff]  ;;  %v13573_v7 = vld [vmem:[#allocation5 + $0x109c] ss:$12 sps:$4 sm:$0xff]  }
 0x2ea   :  { %9494 = vmatmul.mubr.bf16.gmra.mrb[72].mxu1 %v15016_v25  ;;  %7822 = vmatpush1.bf16.msra.mxu0 %v13554_v32  ;;  %v15032_v4 = vcombine.high %v195_v19, %v211_v51  ;;  %v15044_v62 = vcombine.low %v195_v19, %v211_v51  ;;  %v13571_v31 = vld [vmem:[#allocation5 + $0x1098] ss:$12 sps:$4 sm:$0xff]  }
 0x2eb   :  { %v15026_v60 = vadd.f32 %v11828_v54, %v14914_v0  ;;  %7823 = vmatprep.subr.bf16.mxu0 %v13559_v49  ;;  %7786 = vmatprep.mubr.bf16.mxu0 %v14962_v46  ;;  %v13578_v49 = vld [vmem:[#allocation5 + $0x10b4] ss:$12 sps:$4 sm:$0xff]  }
 0x2ec   :  { %9501 = vmatprep.mubr.bf16.mxu1 %v15018_v50  ;;  %12094 = vmatpush3.bf16.msra.mxu1 %v13590_v24  ;;  %v259_v54 = vld [vmem:[#allocation2 + $0x650] sm:$0xff] }
 0x2ed   :  { %v11845_v27 = vpop.f32.mrb[224].mxu1  ;;  %12095 = vmatprep.subr.bf16.mxu1 %v13594_v61 }
 0x2ee   :  { %v11846_v55 = vpop.f32.mrb[225].mxu1  ;;  %7824 = vmatpush1.bf16.msra.mxu0 %v13557_v58  ;;  %v13576_v58 = vld [vmem:[#allocation5 + $0x10b0] ss:$12 sps:$4 sm:$0xff]  }
 0x2ef   :  { %v11847_v0 = vadd.f32 %v11846_v55, %v11845_v27  ;;  %v11848_v5 = vpop.f32.mrb[226].mxu1  ;;  %7825 = vmatprep.subr.bf16.mxu0 %v13562_v53  ;;  %v13583_v27 = vld [vmem:[#allocation5 + $0x10cc] ss:$12 sps:$4 sm:$0xff]   ;;  %v13588_v55 = vld [vmem:[#allocation5 + $0x10e4] ss:$12 sps:$4 sm:$0xff]  }
 0x2f0   :  { %v11849_v46 = vpop.f32.mrb[227].mxu1  ;;  %12096 = vmatpush3.bf16.msra.mxu1 %v13595_v12 }
 0x2f1   :  { %v11850_v57 = vadd.f32 %v11849_v46, %v11848_v5  ;;  %7787 = vmatmul.mubr.bf16.gmra.mrb[28].mxu0 %v14974_v13  ;;  %12097 = vmatprep.subr.bf16.mxu1 %v13599_v37  ;;  %v15036_v10 = vadd.f32 %v11847_v0, %v14923_v1  ;;  %v13605_v13 = vld [vmem:[#allocation5 + $0x1130] ss:$12 sps:$4 sm:$0xff]   ;;  %v13633_v1 = vld [vmem:[#allocation5 + $0x12c8] ss:$12 sps:$4 sm:$0xff]   ;;  %v13586_v46 = vld [vmem:[#allocation5 + $0x10e0] ss:$12 sps:$4 sm:$0xff]  }
 0x2f2   :  { %9502 = vmatmul.mubr.bf16.gmra.mrb[76].mxu1 %v15030_v45  ;;  %7826 = vmatpush1.bf16.msra.mxu0 %v13560_v29  ;;  %v13581_v37 = vld [vmem:[#allocation5 + $0x10c8] ss:$12 sps:$4 sm:$0xff]  }
 0x2f3   :  { %7827 = vmatprep.subr.bf16.mxu0 %v13565_v11  ;;  %7829 = vmatprep.mubr.bf16.mxu0 %v14976_v63  ;;  %v15041_v40 = vadd.f32 %v11850_v57, %v14928_v15  ;;  %v291_v5 = vld [vmem:[#allocation2 + $0x750] sm:$0xff] }
 0x2f4   :  { %9509 = vmatprep.mubr.bf16.mxu1 %v15032_v4  ;;  %12098 = vmatpush3.bf16.msra.mxu1 %v13600_v9  ;;  %v307_v11 = vld [vmem:[#allocation2 + $0x7d0] sm:$0xff] }
 0x2f5   :  { %v11851_v16 = vpop.f32.mrb[228].mxu1  ;;  %12099 = vmatprep.subr.bf16.mxu1 %v13604_v47  ;;  %v13593_v47 = vld [vmem:[#allocation5 + $0x10fc] ss:$12 sps:$4 sm:$0xff]  }
 0x2f6   :  { %v11852_v56 = vpop.f32.mrb[229].mxu1  ;;  %7828 = vmatpush1.bf16.msra.mxu0 %v13563_v3 }
 0x2f7   :  { %v11853_v43 = vadd.f32 %v11852_v56, %v11851_v16  ;;  %v11854_v63 = vpop.f32.mrb[230].mxu1  ;;  %7910 = vmatprep.subr.bf16.mxu0 %v13568_v8  ;;  %v13598_v16 = vld [vmem:[#allocation5 + $0x1114] ss:$12 sps:$4 sm:$0xff]   ;;  %v84_v56 = vld [vmem:[#allocation2 + $0xd8] sm:$0xff] }
 0x2f8   :  { %v11855_v15 = vpop.f32.mrb[231].mxu1  ;;  %12100 = vmatpush3.bf16.msra.mxu1 %v13605_v13  ;;  %v13591_v13 = vld [vmem:[#allocation5 + $0x10f8] ss:$12 sps:$4 sm:$0xff]  }
 0x2f9   :  { %v11856_v32 = vadd.f32 %v11855_v15, %v11854_v63  ;;  %7830 = vmatmul.mubr.bf16.vlgmr.msra.gmra.mrb[0].mxu0 %v14988_v18  ;;  %v15050_v28 = vadd.f32 %v11853_v43, %v14937_v20  ;;  %12149 = vmatprep.subr.bf16.mxu1 %v13633_v1  ;;  %v275_v18 = vld [vmem:[#allocation2 + $0x6d0] sm:$0xff]  ;;  %v15058_v20 = vcombine.low %v227_v39, %v243_v2  ;;  %v68_v1 = vld [vmem:[#allocation2 + $0x58] sm:$0xff] }
 0x2fa   :  { %9510 = vmatmul.mubr.bf16.gmra.mrb[80].mxu1 %v15044_v62  ;;  %7911 = vmatpush1.bf16.msra.mxu0 %v13566_v17  ;;  %v13596_v17 = vld [vmem:[#allocation5 + $0x1110] ss:$12 sps:$4 sm:$0xff]  }
 0x2fb   :  { %7912 = vmatprep.subr.bf16.mxu0 %v13573_v7  ;;  %7839 = vmatprep.mubr.bf16.mxu0 %v14990_v44  ;;  %v15055_v48 = vadd.f32 %v11856_v32, %v14942_v35  ;;  %v15060_v44 = vcombine.high %v259_v54, %v275_v18  ;;  %v13603_v7 = vld [vmem:[#allocation5 + $0x112c] ss:$12 sps:$4 sm:$0xff]  }
 0x2fc   :  { %9517 = vmatprep.mubr.bf16.mxu1 %v15046_v42 }
 0x2fd   :  { %v11857_v24 = vpop.f32.mrb[232].mxu1 }
 0x2fe   :  { %v11858_v61 = vpop.f32.mrb[233].mxu1  ;;  %7913 = vmatpush1.bf16.msra.mxu0 %v13571_v31  ;;  %v13601_v31 = vld [vmem:[#allocation5 + $0x1128] ss:$12 sps:$4 sm:$0xff]  }
 0x2ff   :  { %v11859_v53 = vadd.f32 %v11858_v61, %v11857_v24  ;;  %v11860_v12 = vpop.f32.mrb[234].mxu1  ;;  %7914 = vmatprep.subr.bf16.mxu0 %v13578_v49  ;;  %v13608_v49 = vld [vmem:[#allocation5 + $0x1144] ss:$12 sps:$4 sm:$0xff]   ;;  %v116_v61 = vld [vmem:[#allocation2 + $0x1d8] sm:$0xff] }
 0x300   :  { %v11861_v19 = vpop.f32.mrb[235].mxu1 }
 0x301   :  { %v11862_v51 = vadd.f32 %v11861_v19, %v11860_v12  ;;  %7840 = vmatmul.mubr.bf16.gmra.mrb[4].mxu0 %v15002_v23  ;;  %v15064_v35 = vadd.f32 %v11859_v53, %v14951_v22  ;;  %v15072_v22 = vcombine.low %v259_v54, %v275_v18  ;;  %v100_v18 = vld [vmem:[#allocation2 + $0x158] sm:$0xff] }
 0x302   :  { %9518 = vmatmul.mubr.bf16.gmra.mrb[84].mxu1 %v15058_v20  ;;  %7915 = vmatpush1.bf16.msra.mxu0 %v13576_v58  ;;  %v13606_v58 = vld [vmem:[#allocation5 + $0x1140] ss:$12 sps:$4 sm:$0xff]  }
 0x303   :  { %7916 = vmatprep.subr.bf16.mxu0 %v13583_v27  ;;  %7849 = vmatprep.mubr.bf16.mxu0 %v15004_v26  ;;  %v15069_v29 = vadd.f32 %v11862_v51, %v14956_v38  ;;  %v15074_v26 = vcombine.high %v291_v5, %v307_v11  ;;  %v13611_v27 = vld [vmem:[#allocation5 + $0x115c] ss:$12 sps:$4 sm:$0xff]  }
 0x304   :  { %9525 = vmatprep.mubr.bf16.mxu1 %v15060_v44  ;;  %v13634_v51 = vld [vmem:[#allocation5 + $0x1208] ss:$12 sps:$4 sm:$0xff]  }
 0x305   :  { %v11863_v0 = vpop.f32.mrb[236].mxu1 }
 0x306   :  { %v11864_v23 = vpop.f32.mrb[237].mxu1  ;;  %7917 = vmatpush1.bf16.msra.mxu0 %v13581_v37  ;;  %v13638_v37 = vld [vmem:[#allocation5 + $0x12e0] ss:$12 sps:$4 sm:$0xff]  }
 0x307   :  { %v11865_v9 = vadd.f32 %v11864_v23, %v11863_v0  ;;  %v11866_v57 = vpop.f32.mrb[238].mxu1  ;;  %7918 = vmatprep.subr.bf16.mxu0 %v13588_v55  ;;  %v13609_v0 = vld [vmem:[#allocation5 + $0x1158] ss:$12 sps:$4 sm:$0xff]   ;;  %v13639_v23 = vld [vmem:[#allocation5 + $0x1220] ss:$12 sps:$4 sm:$0xff]  }
 0x308   :  { %v11867_v3 = vpop.f32.mrb[239].mxu1 }
 0x309   :  { %v11868_v8 = vadd.f32 %v11867_v3, %v11866_v57  ;;  %7850 = vmatmul.mubr.bf16.gmra.mrb[8].mxu0 %v15016_v25  ;;  %v15078_v38 = vadd.f32 %v11865_v9, %v14965_v30  ;;  %v15086_v30 = vcombine.low %v291_v5, %v307_v11  ;;  %v13614_v5 = vld [vmem:[#allocation5 + $0x1174] ss:$12 sps:$4 sm:$0xff]   ;;  %v148_v9 = vld [vmem:[#allocation2 + $0x2d8] sm:$0xff] }
 0x30a   :  { %9526 = vmatmul.mubr.bf16.gmra.mrb[88].mxu1 %v15072_v22  ;;  %7919 = vmatpush1.bf16.msra.mxu0 %v13586_v46  ;;  %v132_v46 = vld [vmem:[#allocation2 + $0x258] sm:$0xff] }
 0x30b   :  { %7920 = vmatprep.subr.bf16.mxu0 %v13593_v47  ;;  %7859 = vmatprep.mubr.bf16.mxu0 %v15018_v50  ;;  %v15083_v39 = vadd.f32 %v11868_v8, %v14970_v6  ;;  %v15088_v50 = vcombine.high %v68_v1, %v84_v56  ;;  %v15114_v47 = vcombine.low %v100_v18, %v116_v61  ;;  %v13612_v3 = vld [vmem:[#allocation5 + $0x1170] ss:$12 sps:$4 sm:$0xff]  }
 0x30c   :  { %9533 = vmatprep.mubr.bf16.mxu1 %v15074_v26 }
 0x30d   :  { %v11869_v2 = vpop.f32.mrb[240].mxu1 }
 0x30e   :  { %v11870_v25 = vpop.f32.mrb[241].mxu1  ;;  %7921 = vmatpush1.bf16.msra.mxu0 %v13591_v13  ;;  %v13617_v13 = vld [vmem:[#allocation5 + $0x118c] ss:$12 sps:$4 sm:$0xff]  }
 0x30f   :  { %v11871_v43 = vadd.f32 %v11870_v25, %v11869_v2  ;;  %v11872_v63 = vpop.f32.mrb[242].mxu1  ;;  %7922 = vmatprep.subr.bf16.mxu0 %v13598_v16  ;;  %v15116_v16 = vcombine.high %v132_v46, %v148_v9  ;;  %v13644_v2 = vld [vmem:[#allocation5 + $0x1238] ss:$12 sps:$4 sm:$0xff]  }
 0x310   :  { %v11873_v15 = vpop.f32.mrb[243].mxu1 }
 0x311   :  { %v11874_v32 = vadd.f32 %v11873_v15, %v11872_v63  ;;  %7860 = vmatmul.mubr.bf16.gmra.mrb[12].mxu0 %v15030_v45  ;;  %v15092_v6 = vadd.f32 %v11871_v43, %v14979_v59  ;;  %v15100_v59 = vcombine.low %v68_v1, %v84_v56  ;;  %v13648_v56 = vld [vmem:[#allocation5 + $0x1310] ss:$12 sps:$4 sm:$0xff]  }
 0x312   :  { %9534 = vmatmul.mubr.bf16.gmra.mrb[92].mxu1 %v15086_v30  ;;  %7923 = vmatpush1.bf16.msra.mxu0 %v13596_v17  ;;  %v13615_v17 = vld [vmem:[#allocation5 + $0x1188] ss:$12 sps:$4 sm:$0xff]   ;;  %v13620_v43 = vld [vmem:[#allocation5 + $0x11a4] ss:$12 sps:$4 sm:$0xff]   ;;  %v164_v15 = vld [vmem:[#allocation2 + $0x358] sm:$0xff] }
 0x313   :  { %7924 = vmatprep.subr.bf16.mxu0 %v13603_v7  ;;  %7869 = vmatprep.mubr.bf16.mxu0 %v15032_v4  ;;  %v15097_v24 = vadd.f32 %v11874_v32, %v14984_v33  ;;  %v15102_v4 = vcombine.high %v100_v18, %v116_v61  ;;  %v180_v32 = vld [vmem:[#allocation2 + $0x3d8] sm:$0xff] }
 0x314   :  { %9574 = vmatprep.mubr.bf16.mxu1 %v15088_v50  ;;  %v13623_v61 = vld [vmem:[#allocation5 + $0x11bc] ss:$12 sps:$4 sm:$0xff]  }
 0x315   :  { %v11875_v54 = vpop.f32.mrb[244].mxu1 }
 0x316   :  { %v11876_v45 = vpop.f32.mrb[245].mxu1  ;;  %7925 = vmatpush1.bf16.msra.mxu0 %v13601_v31 }
 0x317   :  { %v11877_v53 = vadd.f32 %v11876_v45, %v11875_v54  ;;  %v11878_v12 = vpop.f32.mrb[246].mxu1  ;;  %7926 = vmatprep.subr.bf16.mxu0 %v13608_v49  ;;  %v15128_v49 = vcombine.low %v132_v46, %v148_v9  ;;  %v13618_v54 = vld [vmem:[#allocation5 + $0x11a0] ss:$12 sps:$4 sm:$0xff]   ;;  %v15130_v45 = vcombine.high %v164_v15, %v180_v32  ;;  %v13624_v46 = vld [vmem:[#allocation5 + $0x11d0] ss:$12 sps:$4 sm:$0xff]  }
 0x318   :  { %v11879_v19 = vpop.f32.mrb[247].mxu1 }
 0x319   :  { %v11880_v33 = vadd.f32 %v11879_v19, %v11878_v12  ;;  %7870 = vmatmul.mubr.bf16.gmra.mrb[16].mxu0 %v15044_v62  ;;  %v15106_v55 = vadd.f32 %v11877_v53, %v14993_v14  ;;  %v13643_v14 = vld [vmem:[#allocation5 + $0x12f8] ss:$12 sps:$4 sm:$0xff]   ;;  %v13658_v12 = vld [vmem:[#allocation5 + $0x1340] ss:$12 sps:$4 sm:$0xff]  }
 0x31a   :  { %9575 = vmatmul.mubr.bf16.vlgmr.msra.gmra.mrb[96].mxu1 %v15100_v59  ;;  %7927 = vmatpush1.bf16.msra.mxu0 %v13606_v58  ;;  %v13654_v58 = vld [vmem:[#allocation5 + $0x1268] ss:$12 sps:$4 sm:$0xff]   ;;  %v13621_v19 = vld [vmem:[#allocation5 + $0x11b8] ss:$12 sps:$4 sm:$0xff]  }
 0x31b   :  { %7928 = vmatprep.subr.bf16.mxu0 %v13611_v27  ;;  %7879 = vmatprep.mubr.bf16.mxu0 %v15046_v42  ;;  %v15111_v11 = vadd.f32 %v11880_v33, %v14998_v36 }
 0x31c   :  { %9582 = vmatprep.mubr.bf16.mxu1 %v15102_v4  ;;  %12150 = vmatpush3.bf16.msra.mxu1 %v13634_v51  ;;  %v13626_v51 = vld [vmem:[#allocation5 + $0x11d4] ss:$12 sps:$4 sm:$0xff]  }
 0x31d   :  { %v11881_v62 = vpop.f32.mrb[248].mxu1  ;;  %12151 = vmatprep.subr.bf16.mxu1 %v13638_v37 }
 0x31e   :  { %v11882_v57 = vpop.f32.mrb[249].mxu1  ;;  %7929 = vmatpush1.bf16.msra.mxu0 %v13609_v0  ;;  %v196_v0 = vld [vmem:[#allocation2 + $0x458] sm:$0xff] }
 0x31f   :  { %v11883_v8 = vadd.f32 %v11882_v57, %v11881_v62  ;;  %v11884_v42 = vpop.f32.mrb[250].mxu1  ;;  %7930 = vmatprep.subr.bf16.mxu0 %v13614_v5  ;;  %v212_v5 = vld [vmem:[#allocation2 + $0x4d8] sm:$0xff]  ;;  %v15142_v62 = vcombine.low %v164_v15, %v180_v32  ;;  %v13630_v15 = vld [vmem:[#allocation5 + $0x1200] ss:$12 sps:$4 sm:$0xff]  }
 0x320   :  { %v11885_v36 = vpop.f32.mrb[251].mxu1  ;;  %12152 = vmatpush3.bf16.msra.mxu1 %v13639_v23  ;;  %v15144_v57 = vcombine.high %v196_v0, %v212_v5 }
 0x321   :  { %v11886_v1 = vadd.f32 %v11885_v36, %v11884_v42  ;;  %7880 = vmatmul.mubr.bf16.gmra.mrb[20].mxu0 %v15058_v20  ;;  %12153 = vmatprep.subr.bf16.mxu1 %v13643_v14  ;;  %v15120_v25 = vadd.f32 %v11883_v8, %v15007_v34  ;;  %v13649_v20 = vld [vmem:[#allocation5 + $0x1250] ss:$12 sps:$4 sm:$0xff]   ;;  %v13653_v34 = vld [vmem:[#allocation5 + $0x1328] ss:$12 sps:$4 sm:$0xff]   ;;  %v13629_v14 = vld [vmem:[#allocation5 + $0x11ec] ss:$12 sps:$4 sm:$0xff]  }
 0x322   :  { %9583 = vmatmul.mubr.bf16.gmra.mrb[100].mxu1 %v15114_v47  ;;  %7931 = vmatpush1.bf16.msra.mxu0 %v13612_v3  ;;  %v13664_v3 = vld [vmem:[#allocation5 + $0x1298] ss:$12 sps:$4 sm:$0xff]   ;;  %v13627_v36 = vld [vmem:[#allocation5 + $0x11e8] ss:$12 sps:$4 sm:$0xff]  }
 0x323   :  { %7932 = vmatprep.subr.bf16.mxu0 %v13617_v13  ;;  %7889 = vmatprep.mubr.bf16.mxu0 %v15060_v44  ;;  %v15125_v63 = vadd.f32 %v11886_v1, %v15012_v41  ;;  %v13668_v13 = vld [vmem:[#allocation5 + $0x1370] ss:$12 sps:$4 sm:$0xff]  }
 0x324   :  { %9590 = vmatprep.mubr.bf16.mxu1 %v15116_v16  ;;  %12154 = vmatpush3.bf16.msra.mxu1 %v13644_v2  ;;  %v13632_v1 = vld [vmem:[#allocation5 + $0x1204] ss:$12 sps:$4 sm:$0xff]  }
 0x325   :  { %v11887_v7 = vpop.f32.mrb[252].mxu1  ;;  %12155 = vmatprep.subr.bf16.mxu1 %v13648_v56 }
 0x326   :  { %v11888_v31 = vpop.f32.mrb[253].mxu1  ;;  %7933 = vmatpush1.bf16.msra.mxu0 %v13615_v17  ;;  %v228_v17 = vld [vmem:[#allocation2 + $0x558] sm:$0xff] }
 0x327   :  { %v11889_v18 = vadd.f32 %v11888_v31, %v11887_v7  ;;  %v11890_v44 = vpop.f32.mrb[254].mxu1  ;;  %7934 = vmatprep.subr.bf16.mxu0 %v13620_v43  ;;  %v13697_v43 = vld [vmem:[#allocation5 + $0x1448] ss:$12 sps:$4 sm:$0xff]   ;;  %v15156_v7 = vcombine.low %v196_v0, %v212_v5 }
 0x328   :  { %v11891_v41 = vpop.f32.mrb[255].mxu1  ;;  %12156 = vmatpush3.bf16.msra.mxu1 %v13649_v20 }
 0x329   :  { %v11892_v53 = vadd.f32 %v11891_v41, %v11890_v44  ;;  %7890 = vmatmul.mubr.bf16.gmra.mrb[24].mxu0 %v15072_v22  ;;  %12157 = vmatprep.subr.bf16.mxu1 %v13653_v34  ;;  %v15134_v27 = vadd.f32 %v11889_v18, %v15021_v21  ;;  %v13659_v22 = vld [vmem:[#allocation5 + $0x1280] ss:$12 sps:$4 sm:$0xff]   ;;  %v13663_v21 = vld [vmem:[#allocation5 + $0x1358] ss:$12 sps:$4 sm:$0xff]   ;;  %v13637_v34 = vld [vmem:[#allocation5 + $0x121c] ss:$12 sps:$4 sm:$0xff]  }
 0x32a   :  { %9591 = vmatmul.mubr.bf16.gmra.mrb[104].mxu1 %v15128_v49  ;;  %7935 = vmatpush1.bf16.msra.mxu0 %v13618_v54  ;;  %v13635_v44 = vld [vmem:[#allocation5 + $0x1218] ss:$12 sps:$4 sm:$0xff]   ;;  %v13642_v41 = vld [vmem:[#allocation5 + $0x1234] ss:$12 sps:$4 sm:$0xff]  }
 0x32b   :  { %7936 = vmatprep.subr.bf16.mxu0 %v13623_v61  ;;  %7899 = vmatprep.mubr.bf16.mxu0 %v15074_v26  ;;  %v15139_v33 = vadd.f32 %v11892_v53, %v15026_v60  ;;  %v276_v53 = vld [vmem:[#allocation2 + $0x6d8] sm:$0xff] }
 0x32c   :  { %9598 = vmatprep.mubr.bf16.mxu1 %v15130_v45  ;;  %12158 = vmatpush3.bf16.msra.mxu1 %v13654_v58 }
 0x32d   :  { %v11909_v37 = vpop.f32.mrb[0].mxu1  ;;  %12159 = vmatprep.subr.bf16.mxu1 %v13658_v12 }
 0x32e   :  { %v11910_v23 = vpop.f32.mrb[1].mxu1  ;;  %7937 = vmatpush1.bf16.msra.mxu0 %v13621_v19  ;;  %v13640_v19 = vld [vmem:[#allocation5 + $0x1230] ss:$12 sps:$4 sm:$0xff]  }
 0x32f   :  { %v11911_v9 = vadd.f32 %v11910_v23, %v11909_v37  ;;  %v11912_v26 = vpop.f32.mrb[2].mxu1  ;;  %7938 = vmatprep.subr.bf16.mxu0 %v13626_v51  ;;  %v13647_v37 = vld [vmem:[#allocation5 + $0x124c] ss:$12 sps:$4 sm:$0xff]  }
 0x330   :  { %v11913_v60 = vpop.f32.mrb[3].mxu1  ;;  %12160 = vmatpush3.bf16.msra.mxu1 %v13659_v22 }
 0x331   :  { %v15147_v8 = vadd.f32 %v11911_v9, %v15036_v10  ;;  %v11914_v42 = vadd.f32 %v11913_v60, %v11912_v26  ;;  %7900 = vmatmul.mubr.bf16.gmra.mrb[28].mxu0 %v15086_v30  ;;  %12161 = vmatprep.subr.bf16.mxu1 %v13663_v21  ;;  %v13669_v10 = vld [vmem:[#allocation5 + $0x12b0] ss:$12 sps:$4 sm:$0xff]   ;;  %v13645_v21 = vld [vmem:[#allocation5 + $0x1248] ss:$12 sps:$4 sm:$0xff]  }
 0x332   :  { %9599 = vmatmul.mubr.bf16.gmra.mrb[108].mxu1 %v15142_v62  ;;  %7939 = vmatpush1.bf16.msra.mxu0 %v13624_v46  ;;  %v244_v30 = vld [vmem:[#allocation2 + $0x5d8] sm:$0xff]  ;;  %v13652_v46 = vld [vmem:[#allocation5 + $0x1264] ss:$12 sps:$4 sm:$0xff]  }
 0x333   :  { %v15152_v2 = vadd.f32 %v11914_v42, %v15041_v40  ;;  %7940 = vmatprep.subr.bf16.mxu0 %v13629_v14  ;;  %7942 = vmatprep.mubr.bf16.mxu0 %v15088_v50  ;;  %v15158_v31 = vcombine.high %v228_v17, %v244_v30  ;;  %v292_v26 = vld [vmem:[#allocation2 + $0x758] sm:$0xff] }
 0x334   :  { %9606 = vmatprep.mubr.bf16.mxu1 %v15144_v57  ;;  %12162 = vmatpush3.bf16.msra.mxu1 %v13664_v3 }
 0x335   :  { %v11915_v56 = vpop.f32.mrb[4].mxu1  ;;  %12163 = vmatprep.subr.bf16.mxu1 %v13668_v13  ;;  %v13657_v13 = vld [vmem:[#allocation5 + $0x127c] ss:$12 sps:$4 sm:$0xff]  }
 0x336   :  { %v11916_v20 = vpop.f32.mrb[5].mxu1  ;;  %7941 = vmatpush1.bf16.msra.mxu0 %v13627_v36 }
 0x337   :  { %v11917_v40 = vadd.f32 %v11916_v20, %v11915_v56  ;;  %v11918_v32 = vpop.f32.mrb[6].mxu1  ;;  %8023 = vmatprep.subr.bf16.mxu0 %v13632_v1 }
 0x338   :  { %v11919_v50 = vpop.f32.mrb[7].mxu1  ;;  %12164 = vmatpush3.bf16.msra.mxu1 %v13669_v10  ;;  %v13655_v10 = vld [vmem:[#allocation5 + $0x1278] ss:$12 sps:$4 sm:$0xff]  }
 0x339   :  { %v15161_v54 = vadd.f32 %v11917_v40, %v15050_v28  ;;  %v11920_v18 = vadd.f32 %v11919_v50, %v11918_v32  ;;  %7943 = vmatmul.mubr.bf16.vlgmr.msra.gmra.mrb[0].mxu0 %v15100_v59  ;;  %12213 = vmatprep.subr.bf16.mxu1 %v13697_v43  ;;  %v260_v28 = vld [vmem:[#allocation2 + $0x658] sm:$0xff]  ;;  %v15170_v59 = vcombine.low %v228_v17, %v244_v30  ;;  %v13662_v17 = vld [vmem:[#allocation5 + $0x1294] ss:$12 sps:$4 sm:$0xff]  }
 0x33a   :  { %9607 = vmatmul.mubr.bf16.gmra.mrb[112].mxu1 %v15156_v7  ;;  %8024 = vmatpush1.bf16.msra.mxu0 %v13630_v15  ;;  %v15172_v0 = vcombine.high %v260_v28, %v276_v53  ;;  %v15184_v60 = vcombine.low %v260_v28, %v276_v53  ;;  %v69_v43 = vld [vmem:[#allocation2 + $0x60] sm:$0xff] }
 0x33b   :  { %v15166_v61 = vadd.f32 %v11920_v18, %v15055_v48  ;;  %8025 = vmatprep.subr.bf16.mxu0 %v13637_v34  ;;  %7952 = vmatprep.mubr.bf16.mxu0 %v15102_v4  ;;  %v13667_v34 = vld [vmem:[#allocation5 + $0x12ac] ss:$12 sps:$4 sm:$0xff]   ;;  %v101_v53 = vld [vmem:[#allocation2 + $0x160] sm:$0xff] }
 0x33c   :  { %9614 = vmatprep.mubr.bf16.mxu1 %v15158_v31 }
 0x33d   :  { %v11921_v58 = vpop.f32.mrb[8].mxu1 }
 0x33e   :  { %v11922_v12 = vpop.f32.mrb[9].mxu1  ;;  %8026 = vmatpush1.bf16.msra.mxu0 %v13635_v44  ;;  %v13665_v44 = vld [vmem:[#allocation5 + $0x12a8] ss:$12 sps:$4 sm:$0xff]  }
 0x33f   :  { %v11923_v51 = vadd.f32 %v11922_v12, %v11921_v58  ;;  %v11924_v22 = vpop.f32.mrb[10].mxu1  ;;  %8027 = vmatprep.subr.bf16.mxu0 %v13642_v41  ;;  %v13672_v58 = vld [vmem:[#allocation5 + $0x12c4] ss:$12 sps:$4 sm:$0xff]  }
 0x340   :  { %v11925_v48 = vpop.f32.mrb[11].mxu1 }
 0x341   :  { %v15175_v4 = vadd.f32 %v11923_v51, %v15064_v35  ;;  %v11926_v5 = vadd.f32 %v11925_v48, %v11924_v22  ;;  %7953 = vmatmul.mubr.bf16.gmra.mrb[4].mxu0 %v15114_v47  ;;  %v308_v35 = vld [vmem:[#allocation2 + $0x7d8] sm:$0xff]  ;;  %v13650_v47 = vld [vmem:[#allocation5 + $0x1260] ss:$12 sps:$4 sm:$0xff]  }
 0x342   :  { %9615 = vmatmul.mubr.bf16.gmra.mrb[116].mxu1 %v15170_v59  ;;  %8028 = vmatpush1.bf16.msra.mxu0 %v13640_v19  ;;  %v15186_v36 = vcombine.high %v292_v26, %v308_v35  ;;  %v15198_v15 = vcombine.low %v292_v26, %v308_v35  ;;  %v13678_v35 = vld [vmem:[#allocation5 + $0x12f4] ss:$12 sps:$4 sm:$0xff]  }
 0x343   :  { %v15180_v23 = vadd.f32 %v11926_v5, %v15069_v29  ;;  %8029 = vmatprep.subr.bf16.mxu0 %v13647_v37  ;;  %7962 = vmatprep.mubr.bf16.mxu0 %v15116_v16  ;;  %v13675_v37 = vld [vmem:[#allocation5 + $0x12dc] ss:$12 sps:$4 sm:$0xff]  }
 0x344   :  { %9622 = vmatprep.mubr.bf16.mxu1 %v15172_v0  ;;  %v13698_v5 = vld [vmem:[#allocation5 + $0x1388] ss:$12 sps:$4 sm:$0xff]  }
 0x345   :  { %v11927_v9 = vpop.f32.mrb[12].mxu1 }
 0x346   :  { %v11928_v14 = vpop.f32.mrb[13].mxu1  ;;  %8030 = vmatpush1.bf16.msra.mxu0 %v13645_v21 }
 0x347   :  { %v11929_v3 = vadd.f32 %v11928_v14, %v11927_v9  ;;  %v11930_v42 = vpop.f32.mrb[14].mxu1  ;;  %8031 = vmatprep.subr.bf16.mxu0 %v13652_v46  ;;  %v13702_v46 = vld [vmem:[#allocation5 + $0x1460] ss:$12 sps:$4 sm:$0xff]   ;;  %v13673_v9 = vld [vmem:[#allocation5 + $0x12d8] ss:$12 sps:$4 sm:$0xff]  }
 0x348   :  { %v11931_v29 = vpop.f32.mrb[15].mxu1 }
 0x349   :  { %v15189_v16 = vadd.f32 %v11929_v3, %v15078_v38  ;;  %v11932_v1 = vadd.f32 %v11931_v29, %v11930_v42  ;;  %7963 = vmatmul.mubr.bf16.gmra.mrb[8].mxu0 %v15128_v49  ;;  %v85_v38 = vld [vmem:[#allocation2 + $0xe0] sm:$0xff]  ;;  %v13660_v49 = vld [vmem:[#allocation5 + $0x1290] ss:$12 sps:$4 sm:$0xff]  }
 0x34a   :  { %9623 = vmatmul.mubr.bf16.gmra.mrb[120].mxu1 %v15184_v60  ;;  %8032 = vmatpush1.bf16.msra.mxu0 %v13650_v47  ;;  %v15200_v50 = vcombine.high %v69_v43, %v85_v38  ;;  %v15212_v19 = vcombine.low %v69_v43, %v85_v38  ;;  %v133_v47 = vld [vmem:[#allocation2 + $0x260] sm:$0xff]  ;;  %v13676_v29 = vld [vmem:[#allocation5 + $0x12f0] ss:$12 sps:$4 sm:$0xff]  }
 0x34b   :  { %v15194_v56 = vadd.f32 %v11932_v1, %v15083_v39  ;;  %8033 = vmatprep.subr.bf16.mxu0 %v13657_v13  ;;  %7972 = vmatprep.mubr.bf16.mxu0 %v15130_v45  ;;  %v149_v3 = vld [vmem:[#allocation2 + $0x2e0] sm:$0xff] }
 0x34c   :  { %9630 = vmatprep.mubr.bf16.mxu1 %v15186_v36 }
 0x34d   :  { %v11933_v30 = vpop.f32.mrb[16].mxu1 }
 0x34e   :  { %v11934_v20 = vpop.f32.mrb[17].mxu1  ;;  %8034 = vmatpush1.bf16.msra.mxu0 %v13655_v10  ;;  %v13681_v10 = vld [vmem:[#allocation5 + $0x130c] ss:$12 sps:$4 sm:$0xff]  }
 0x34f   :  { %v11935_v40 = vadd.f32 %v11934_v20, %v11933_v30  ;;  %v11936_v32 = vpop.f32.mrb[18].mxu1  ;;  %8035 = vmatprep.subr.bf16.mxu0 %v13662_v17  ;;  %v15228_v17 = vcombine.high %v133_v47, %v149_v3  ;;  %v13708_v30 = vld [vmem:[#allocation5 + $0x13b8] ss:$12 sps:$4 sm:$0xff]   ;;  %v13712_v20 = vld [vmem:[#allocation5 + $0x1490] ss:$12 sps:$4 sm:$0xff]  }
 0x350   :  { %v11937_v39 = vpop.f32.mrb[19].mxu1 }
 0x351   :  { %v15203_v45 = vadd.f32 %v11935_v40, %v15092_v6  ;;  %v11938_v18 = vadd.f32 %v11937_v39, %v11936_v32  ;;  %7973 = vmatmul.mubr.bf16.gmra.mrb[12].mxu0 %v15142_v62  ;;  %v117_v6 = vld [vmem:[#allocation2 + $0x1e0] sm:$0xff] }
 0x352   :  { %9631 = vmatmul.mubr.bf16.gmra.mrb[124].mxu1 %v15198_v15  ;;  %8036 = vmatpush1.bf16.msra.mxu0 %v13660_v49  ;;  %v13670_v62 = vld [vmem:[#allocation5 + $0x12c0] ss:$12 sps:$4 sm:$0xff]   ;;  %v15214_v48 = vcombine.high %v101_v53, %v117_v6  ;;  %v15226_v13 = vcombine.low %v101_v53, %v117_v6  ;;  %v13679_v49 = vld [vmem:[#allocation5 + $0x1308] ss:$12 sps:$4 sm:$0xff]   ;;  %v13684_v32 = vld [vmem:[#allocation5 + $0x1324] ss:$12 sps:$4 sm:$0xff]  }
 0x353   :  { %v15208_v41 = vadd.f32 %v11938_v18, %v15097_v24  ;;  %8037 = vmatprep.subr.bf16.mxu0 %v13667_v34  ;;  %7982 = vmatprep.mubr.bf16.mxu0 %v15144_v57  ;;  %v165_v39 = vld [vmem:[#allocation2 + $0x360] sm:$0xff]  ;;  %v13717_v18 = vld [vmem:[#allocation5 + $0x14a8] ss:$12 sps:$4 sm:$0xff]  }
 0x354   :  { %9671 = vmatprep.mubr.bf16.mxu1 %v15200_v50  ;;  %v13687_v6 = vld [vmem:[#allocation5 + $0x133c] ss:$12 sps:$4 sm:$0xff]  }
 0x355   :  { %v11939_v28 = vpop.f32.mrb[20].mxu1 }
 0x356   :  { %v11940_v12 = vpop.f32.mrb[21].mxu1  ;;  %8038 = vmatpush1.bf16.msra.mxu0 %v13665_v44 }
 0x357   :  { %v11941_v51 = vadd.f32 %v11940_v12, %v11939_v28  ;;  %v11942_v22 = vpop.f32.mrb[22].mxu1  ;;  %8039 = vmatprep.subr.bf16.mxu0 %v13672_v58  ;;  %v15240_v58 = vcombine.low %v133_v47, %v149_v3  ;;  %v13682_v28 = vld [vmem:[#allocation5 + $0x1320] ss:$12 sps:$4 sm:$0xff]   ;;  %v13688_v47 = vld [vmem:[#allocation5 + $0x1350] ss:$12 sps:$4 sm:$0xff]  }
 0x358   :  { %v11943_v24 = vpop.f32.mrb[23].mxu1 }
 0x359   :  { %v15217_v57 = vadd.f32 %v11941_v51, %v15106_v55  ;;  %v11944_v21 = vadd.f32 %v11943_v24, %v11942_v22  ;;  %7983 = vmatmul.mubr.bf16.gmra.mrb[16].mxu0 %v15156_v7  ;;  %v13703_v55 = vld [vmem:[#allocation5 + $0x13a0] ss:$12 sps:$4 sm:$0xff]   ;;  %v13707_v7 = vld [vmem:[#allocation5 + $0x1478] ss:$12 sps:$4 sm:$0xff]  }
 0x35a   :  { %9672 = vmatmul.mubr.bf16.vlgmr.msra.gmra.mrb[128].mxu1 %v15212_v19  ;;  %8040 = vmatpush1.bf16.msra.mxu0 %v13670_v62  ;;  %v13718_v62 = vld [vmem:[#allocation5 + $0x13e8] ss:$12 sps:$4 sm:$0xff]   ;;  %v13685_v24 = vld [vmem:[#allocation5 + $0x1338] ss:$12 sps:$4 sm:$0xff]  }
 0x35b   :  { %v15222_v26 = vadd.f32 %v11944_v21, %v15111_v11  ;;  %8041 = vmatprep.subr.bf16.mxu0 %v13675_v37  ;;  %7992 = vmatprep.mubr.bf16.mxu0 %v15158_v31  ;;  %v13722_v37 = vld [vmem:[#allocation5 + $0x14c0] ss:$12 sps:$4 sm:$0xff]  }
 0x35c   :  { %9679 = vmatprep.mubr.bf16.mxu1 %v15214_v48  ;;  %12214 = vmatpush3.bf16.msra.mxu1 %v13698_v5  ;;  %v13690_v21 = vld [vmem:[#allocation5 + $0x1354] ss:$12 sps:$4 sm:$0xff]  }
 0x35d   :  { %v11945_v14 = vpop.f32.mrb[24].mxu1  ;;  %12215 = vmatprep.subr.bf16.mxu1 %v13702_v46 }
 0x35e   :  { %v11946_v42 = vpop.f32.mrb[25].mxu1  ;;  %8042 = vmatpush1.bf16.msra.mxu0 %v13673_v9  ;;  %v197_v9 = vld [vmem:[#allocation2 + $0x460] sm:$0xff] }
 0x35f   :  { %v11947_v11 = vadd.f32 %v11946_v42, %v11945_v14  ;;  %v11948_v1 = vpop.f32.mrb[26].mxu1  ;;  %8043 = vmatprep.subr.bf16.mxu0 %v13678_v35  ;;  %v13727_v35 = vld [vmem:[#allocation5 + $0x14d8] ss:$12 sps:$4 sm:$0xff]  }
 0x360   :  { %v11949_v31 = vpop.f32.mrb[27].mxu1  ;;  %12216 = vmatpush3.bf16.msra.mxu1 %v13703_v55 }
 0x361   :  { %v15231_v43 = vadd.f32 %v11947_v11, %v15120_v25  ;;  %v11950_v38 = vadd.f32 %v11949_v31, %v11948_v1  ;;  %7993 = vmatmul.mubr.bf16.gmra.mrb[20].mxu0 %v15170_v59  ;;  %12217 = vmatprep.subr.bf16.mxu1 %v13707_v7  ;;  %v13713_v25 = vld [vmem:[#allocation5 + $0x13d0] ss:$12 sps:$4 sm:$0xff]   ;;  %v181_v59 = vld [vmem:[#allocation2 + $0x3e0] sm:$0xff]  ;;  %v13693_v7 = vld [vmem:[#allocation5 + $0x136c] ss:$12 sps:$4 sm:$0xff]  }
 0x362   :  { %9680 = vmatmul.mubr.bf16.gmra.mrb[132].mxu1 %v15226_v13  ;;  %8044 = vmatpush1.bf16.msra.mxu0 %v13676_v29  ;;  %v15242_v12 = vcombine.high %v165_v39, %v181_v59  ;;  %v15254_v14 = vcombine.low %v165_v39, %v181_v59  ;;  %v13728_v29 = vld [vmem:[#allocation5 + $0x1418] ss:$12 sps:$4 sm:$0xff]   ;;  %v13691_v31 = vld [vmem:[#allocation5 + $0x1368] ss:$12 sps:$4 sm:$0xff]   ;;  %v13694_v39 = vld [vmem:[#allocation5 + $0x1380] ss:$12 sps:$4 sm:$0xff]  }
 0x363   :  { %v15236_v40 = vadd.f32 %v11950_v38, %v15125_v63  ;;  %8045 = vmatprep.subr.bf16.mxu0 %v13681_v10  ;;  %8002 = vmatprep.mubr.bf16.mxu0 %v15172_v0  ;;  %v13732_v10 = vld [vmem:[#allocation5 + $0x14f0] ss:$12 sps:$4 sm:$0xff]  }
 0x364   :  { %9687 = vmatprep.mubr.bf16.mxu1 %v15228_v17  ;;  %12218 = vmatpush3.bf16.msra.mxu1 %v13708_v30  ;;  %v13696_v38 = vld [vmem:[#allocation5 + $0x1384] ss:$12 sps:$4 sm:$0xff]  }
 0x365   :  { %v11951_v34 = vpop.f32.mrb[28].mxu1  ;;  %12219 = vmatprep.subr.bf16.mxu1 %v13712_v20 }
 0x366   :  { %v11952_v44 = vpop.f32.mrb[29].mxu1  ;;  %8046 = vmatpush1.bf16.msra.mxu0 %v13679_v49  ;;  %v229_v49 = vld [vmem:[#allocation2 + $0x560] sm:$0xff] }
 0x367   :  { %v11953_v63 = vadd.f32 %v11952_v44, %v11951_v34  ;;  %v11954_v53 = vpop.f32.mrb[30].mxu1  ;;  %8047 = vmatprep.subr.bf16.mxu0 %v13684_v32  ;;  %v13761_v32 = vld [vmem:[#allocation5 + $0x15c8] ss:$12 sps:$4 sm:$0xff]  }
 0x368   :  { %v11955_v0 = vpop.f32.mrb[31].mxu1  ;;  %12220 = vmatpush3.bf16.msra.mxu1 %v13713_v25 }
 0x369   :  { %v15245_v51 = vadd.f32 %v11953_v63, %v15134_v27  ;;  %v11956_v22 = vadd.f32 %v11955_v0, %v11954_v53  ;;  %8003 = vmatmul.mubr.bf16.gmra.mrb[24].mxu0 %v15184_v60  ;;  %12221 = vmatprep.subr.bf16.mxu1 %v13717_v18  ;;  %v13723_v27 = vld [vmem:[#allocation5 + $0x1400] ss:$12 sps:$4 sm:$0xff]   ;;  %v13701_v18 = vld [vmem:[#allocation5 + $0x139c] ss:$12 sps:$4 sm:$0xff]   ;;  %v13699_v53 = vld [vmem:[#allocation5 + $0x1398] ss:$12 sps:$4 sm:$0xff]  }
 0x36a   :  { %9688 = vmatmul.mubr.bf16.gmra.mrb[136].mxu1 %v15240_v58  ;;  %8048 = vmatpush1.bf16.msra.mxu0 %v13682_v28  ;;  %v213_v60 = vld [vmem:[#allocation2 + $0x4e0] sm:$0xff] }
 0x36b   :  { %v15250_v5 = vadd.f32 %v11956_v22, %v15139_v33  ;;  %8049 = vmatprep.subr.bf16.mxu0 %v13687_v6  ;;  %8012 = vmatprep.mubr.bf16.mxu0 %v15186_v36  ;;  %v15256_v42 = vcombine.high %v197_v9, %v213_v60  ;;  %v15268_v34 = vcombine.low %v197_v9, %v213_v60  ;;  %v13706_v0 = vld [vmem:[#allocation5 + $0x13b4] ss:$12 sps:$4 sm:$0xff]  }
 0x36c   :  { %9695 = vmatprep.mubr.bf16.mxu1 %v15242_v12  ;;  %12222 = vmatpush3.bf16.msra.mxu1 %v13718_v62  ;;  %v277_v22 = vld [vmem:[#allocation2 + $0x6e0] sm:$0xff] }
 0x36d   :  { %v11973_v46 = vpop.f32.mrb[32].mxu1  ;;  %12223 = vmatprep.subr.bf16.mxu1 %v13722_v37 }
 0x36e   :  { %v11974_v55 = vpop.f32.mrb[33].mxu1  ;;  %8050 = vmatpush1.bf16.msra.mxu0 %v13685_v24  ;;  %v13704_v24 = vld [vmem:[#allocation5 + $0x13b0] ss:$12 sps:$4 sm:$0xff]  }
 0x36f   :  { %v11975_v33 = vadd.f32 %v11974_v55, %v11973_v46  ;;  %v11976_v3 = vpop.f32.mrb[34].mxu1  ;;  %8051 = vmatprep.subr.bf16.mxu0 %v13690_v21  ;;  %v13711_v46 = vld [vmem:[#allocation5 + $0x13cc] ss:$12 sps:$4 sm:$0xff]  }
 0x370   :  { %v11977_v36 = vpop.f32.mrb[35].mxu1  ;;  %12224 = vmatpush3.bf16.msra.mxu1 %v13723_v27 }
 0x371   :  { %v15259_v11 = vadd.f32 %v11975_v33, %v15147_v8  ;;  %v11978_v1 = vadd.f32 %v11977_v36, %v11976_v3  ;;  %8013 = vmatmul.mubr.bf16.gmra.mrb[28].mxu0 %v15198_v15  ;;  %12225 = vmatprep.subr.bf16.mxu1 %v13727_v35  ;;  %v13733_v8 = vld [vmem:[#allocation5 + $0x1430] ss:$12 sps:$4 sm:$0xff]   ;;  %v245_v15 = vld [vmem:[#allocation2 + $0x5e0] sm:$0xff]  ;;  %v13709_v35 = vld [vmem:[#allocation5 + $0x13c8] ss:$12 sps:$4 sm:$0xff]  }
 0x372   :  { %9696 = vmatmul.mubr.bf16.gmra.mrb[140].mxu1 %v15254_v14  ;;  %8052 = vmatpush1.bf16.msra.mxu0 %v13688_v47  ;;  %v15270_v44 = vcombine.high %v229_v49, %v245_v15  ;;  %v13716_v47 = vld [vmem:[#allocation5 + $0x13e4] ss:$12 sps:$4 sm:$0xff]  }
 0x373   :  { %v15264_v30 = vadd.f32 %v11978_v1, %v15152_v2  ;;  %8053 = vmatprep.subr.bf16.mxu0 %v13693_v7  ;;  %8055 = vmatprep.mubr.bf16.mxu0 %v15200_v50  ;;  %v293_v3 = vld [vmem:[#allocation2 + $0x760] sm:$0xff] }
 0x374   :  { %9703 = vmatprep.mubr.bf16.mxu1 %v15256_v42  ;;  %12226 = vmatpush3.bf16.msra.mxu1 %v13728_v29 }
 0x375   :  { %v11979_v20 = vpop.f32.mrb[36].mxu1  ;;  %12227 = vmatprep.subr.bf16.mxu1 %v13732_v10  ;;  %v13721_v10 = vld [vmem:[#allocation5 + $0x13fc] ss:$12 sps:$4 sm:$0xff]  }
 0x376   :  { %v11980_v25 = vpop.f32.mrb[37].mxu1  ;;  %8054 = vmatpush1.bf16.msra.mxu0 %v13691_v31 }
 0x377   :  { %v11981_v2 = vadd.f32 %v11980_v25, %v11979_v20  ;;  %v11982_v59 = vpop.f32.mrb[38].mxu1  ;;  %8136 = vmatprep.subr.bf16.mxu0 %v13696_v38 }
 0x378   :  { %v11983_v50 = vpop.f32.mrb[39].mxu1  ;;  %12228 = vmatpush3.bf16.msra.mxu1 %v13733_v8  ;;  %v13719_v8 = vld [vmem:[#allocation5 + $0x13f8] ss:$12 sps:$4 sm:$0xff]  }
 0x379   :  { %v15273_v28 = vadd.f32 %v11981_v2, %v15161_v54  ;;  %v11984_v63 = vadd.f32 %v11983_v50, %v11982_v59  ;;  %8056 = vmatmul.mubr.bf16.vlgmr.msra.gmra.mrb[0].mxu0 %v15212_v19  ;;  %12277 = vmatprep.subr.bf16.mxu1 %v13761_v32  ;;  %v261_v54 = vld [vmem:[#allocation2 + $0x660] sm:$0xff]  ;;  %v15282_v19 = vcombine.low %v229_v49, %v245_v15  ;;  %v70_v32 = vld [vmem:[#allocation2 + $0x68] sm:$0xff] }
 0x37a   :  { %9704 = vmatmul.mubr.bf16.gmra.mrb[144].mxu1 %v15268_v34  ;;  %8137 = vmatpush1.bf16.msra.mxu0 %v13694_v39  ;;  %v15284_v9 = vcombine.high %v261_v54, %v277_v22  ;;  %v15296_v36 = vcombine.low %v261_v54, %v277_v22  ;;  %v13726_v49 = vld [vmem:[#allocation5 + $0x1414] ss:$12 sps:$4 sm:$0xff]   ;;  %v102_v22 = vld [vmem:[#allocation2 + $0x168] sm:$0xff] }
 0x37b   :  { %v15278_v6 = vadd.f32 %v11984_v63, %v15166_v61  ;;  %8138 = vmatprep.subr.bf16.mxu0 %v13701_v18  ;;  %8065 = vmatprep.mubr.bf16.mxu0 %v15214_v48  ;;  %v13731_v18 = vld [vmem:[#allocation5 + $0x142c] ss:$12 sps:$4 sm:$0xff]  }
 0x37c   :  { %9711 = vmatprep.mubr.bf16.mxu1 %v15270_v44 }
 0x37d   :  { %v11985_v62 = vpop.f32.mrb[40].mxu1 }
 0x37e   :  { %v11986_v37 = vpop.f32.mrb[41].mxu1  ;;  %8139 = vmatpush1.bf16.msra.mxu0 %v13699_v53  ;;  %v13729_v53 = vld [vmem:[#allocation5 + $0x1428] ss:$12 sps:$4 sm:$0xff]  }
 0x37f   :  { %v11987_v21 = vadd.f32 %v11986_v37, %v11985_v62  ;;  %v11988_v27 = vpop.f32.mrb[42].mxu1  ;;  %8140 = vmatprep.subr.bf16.mxu0 %v13706_v0  ;;  %v13736_v62 = vld [vmem:[#allocation5 + $0x1444] ss:$12 sps:$4 sm:$0xff]  }
 0x380   :  { %v11989_v61 = vpop.f32.mrb[43].mxu1 }
 0x381   :  { %v15287_v48 = vadd.f32 %v11987_v21, %v15175_v4  ;;  %v11990_v60 = vadd.f32 %v11989_v61, %v11988_v27  ;;  %8066 = vmatmul.mubr.bf16.gmra.mrb[4].mxu0 %v15226_v13  ;;  %v309_v4 = vld [vmem:[#allocation2 + $0x7e0] sm:$0xff] }
 0x382   :  { %9712 = vmatmul.mubr.bf16.gmra.mrb[148].mxu1 %v15282_v19  ;;  %8141 = vmatpush1.bf16.msra.mxu0 %v13704_v24  ;;  %v13714_v13 = vld [vmem:[#allocation5 + $0x13e0] ss:$12 sps:$4 sm:$0xff]   ;;  %v15298_v31 = vcombine.high %v293_v3, %v309_v4  ;;  %v15310_v39 = vcombine.low %v293_v3, %v309_v4 }
 0x383   :  { %v15292_v55 = vadd.f32 %v11990_v60, %v15180_v23  ;;  %8142 = vmatprep.subr.bf16.mxu0 %v13711_v46  ;;  %8075 = vmatprep.mubr.bf16.mxu0 %v15228_v17  ;;  %v13739_v46 = vld [vmem:[#allocation5 + $0x145c] ss:$12 sps:$4 sm:$0xff]   ;;  %v13742_v4 = vld [vmem:[#allocation5 + $0x1474] ss:$12 sps:$4 sm:$0xff]  }
 0x384   :  { %9719 = vmatprep.mubr.bf16.mxu1 %v15284_v9  ;;  %v13762_v60 = vld [vmem:[#allocation5 + $0x1508] ss:$12 sps:$4 sm:$0xff]  }
 0x385   :  { %v11991_v33 = vpop.f32.mrb[44].mxu1 }
 0x386   :  { %v11992_v7 = vpop.f32.mrb[45].mxu1  ;;  %8143 = vmatpush1.bf16.msra.mxu0 %v13709_v35 }
 0x387   :  { %v11993_v29 = vadd.f32 %v11992_v7, %v11991_v33  ;;  %v11994_v1 = vpop.f32.mrb[46].mxu1  ;;  %8144 = vmatprep.subr.bf16.mxu0 %v13716_v47  ;;  %v13766_v47 = vld [vmem:[#allocation5 + $0x15e0] ss:$12 sps:$4 sm:$0xff]   ;;  %v13737_v33 = vld [vmem:[#allocation5 + $0x1458] ss:$12 sps:$4 sm:$0xff]  }
 0x388   :  { %v11995_v23 = vpop.f32.mrb[47].mxu1 }
 0x389   :  { %v15301_v17 = vadd.f32 %v11993_v29, %v15189_v16  ;;  %v11996_v38 = vadd.f32 %v11995_v23, %v11994_v1  ;;  %8076 = vmatmul.mubr.bf16.gmra.mrb[8].mxu0 %v15240_v58  ;;  %v86_v16 = vld [vmem:[#allocation2 + $0xe8] sm:$0xff]  ;;  %v13724_v58 = vld [vmem:[#allocation5 + $0x1410] ss:$12 sps:$4 sm:$0xff]  }
 0x38a   :  { %9720 = vmatmul.mubr.bf16.gmra.mrb[152].mxu1 %v15296_v36  ;;  %8145 = vmatpush1.bf16.msra.mxu0 %v13714_v13  ;;  %v15312_v50 = vcombine.high %v70_v32, %v86_v16  ;;  %v15324_v24 = vcombine.low %v70_v32, %v86_v16  ;;  %v134_v13 = vld [vmem:[#allocation2 + $0x268] sm:$0xff]  ;;  %v13740_v23 = vld [vmem:[#allocation5 + $0x1470] ss:$12 sps:$4 sm:$0xff]  }
 0x38b   :  { %v15306_v20 = vadd.f32 %v11996_v38, %v15194_v56  ;;  %8146 = vmatprep.subr.bf16.mxu0 %v13721_v10  ;;  %8085 = vmatprep.mubr.bf16.mxu0 %v15242_v12  ;;  %v150_v29 = vld [vmem:[#allocation2 + $0x2e8] sm:$0xff] }
 0x38c   :  { %9727 = vmatprep.mubr.bf16.mxu1 %v15298_v31 }
 0x38d   :  { %v11997_v15 = vpop.f32.mrb[48].mxu1 }
 0x38e   :  { %v11998_v25 = vpop.f32.mrb[49].mxu1  ;;  %8147 = vmatpush1.bf16.msra.mxu0 %v13719_v8  ;;  %v13745_v8 = vld [vmem:[#allocation5 + $0x148c] ss:$12 sps:$4 sm:$0xff]  }
 0x38f   :  { %v11999_v2 = vadd.f32 %v11998_v25, %v11997_v15  ;;  %v12000_v59 = vpop.f32.mrb[50].mxu1  ;;  %8148 = vmatprep.subr.bf16.mxu0 %v13726_v49  ;;  %v15340_v49 = vcombine.high %v134_v13, %v150_v29  ;;  %v13772_v15 = vld [vmem:[#allocation5 + $0x1538] ss:$12 sps:$4 sm:$0xff]   ;;  %v13776_v25 = vld [vmem:[#allocation5 + $0x1610] ss:$12 sps:$4 sm:$0xff]  }
 0x390   :  { %v12001_v56 = vpop.f32.mrb[51].mxu1 }
 0x391   :  { %v15315_v12 = vadd.f32 %v11999_v2, %v15203_v45  ;;  %v12002_v63 = vadd.f32 %v12001_v56, %v12000_v59  ;;  %8086 = vmatmul.mubr.bf16.gmra.mrb[12].mxu0 %v15254_v14  ;;  %v118_v45 = vld [vmem:[#allocation2 + $0x1e8] sm:$0xff]  ;;  %v13748_v59 = vld [vmem:[#allocation5 + $0x14a4] ss:$12 sps:$4 sm:$0xff]  }
 0x392   :  { %9728 = vmatmul.mubr.bf16.gmra.mrb[156].mxu1 %v15310_v39  ;;  %8149 = vmatpush1.bf16.msra.mxu0 %v13724_v58  ;;  %v13734_v14 = vld [vmem:[#allocation5 + $0x1440] ss:$12 sps:$4 sm:$0xff]   ;;  %v15326_v61 = vcombine.high %v102_v22, %v118_v45  ;;  %v15338_v10 = vcombine.low %v102_v22, %v118_v45  ;;  %v13743_v58 = vld [vmem:[#allocation5 + $0x1488] ss:$12 sps:$4 sm:$0xff]  }
 0x393   :  { %v15320_v0 = vadd.f32 %v12002_v63, %v15208_v41  ;;  %8150 = vmatprep.subr.bf16.mxu0 %v13731_v18  ;;  %8095 = vmatprep.mubr.bf16.mxu0 %v15256_v42  ;;  %v166_v56 = vld [vmem:[#allocation2 + $0x368] sm:$0xff] }
 0x394   :  { %9768 = vmatprep.mubr.bf16.mxu1 %v15312_v50  ;;  %v13781_v63 = vld [vmem:[#allocation5 + $0x1628] ss:$12 sps:$4 sm:$0xff]  }
 0x395   :  { %v12003_v54 = vpop.f32.mrb[52].mxu1  ;;  %v13751_v45 = vld [vmem:[#allocation5 + $0x14bc] ss:$12 sps:$4 sm:$0xff]  }
 0x396   :  { %v12004_v37 = vpop.f32.mrb[53].mxu1  ;;  %8151 = vmatpush1.bf16.msra.mxu0 %v13729_v53 }
 0x397   :  { %v12005_v21 = vadd.f32 %v12004_v37, %v12003_v54  ;;  %v12006_v27 = vpop.f32.mrb[54].mxu1  ;;  %8152 = vmatprep.subr.bf16.mxu0 %v13736_v62  ;;  %v15352_v62 = vcombine.low %v134_v13, %v150_v29  ;;  %v13746_v54 = vld [vmem:[#allocation5 + $0x14a0] ss:$12 sps:$4 sm:$0xff]   ;;  %v13752_v13 = vld [vmem:[#allocation5 + $0x14d0] ss:$12 sps:$4 sm:$0xff]  }
 0x398   :  { %v12007_v41 = vpop.f32.mrb[55].mxu1 }
 0x399   :  { %v15329_v42 = vadd.f32 %v12005_v21, %v15217_v57  ;;  %v12008_v35 = vadd.f32 %v12007_v41, %v12006_v27  ;;  %8096 = vmatmul.mubr.bf16.gmra.mrb[16].mxu0 %v15268_v34  ;;  %v13767_v57 = vld [vmem:[#allocation5 + $0x1520] ss:$12 sps:$4 sm:$0xff]   ;;  %v13771_v34 = vld [vmem:[#allocation5 + $0x15f8] ss:$12 sps:$4 sm:$0xff]  }
 0x39a   :  { %9769 = vmatmul.mubr.bf16.vlgmr.msra.gmra.mrb[160].mxu1 %v15324_v24  ;;  %8153 = vmatpush1.bf16.msra.mxu0 %v13734_v14  ;;  %v13782_v14 = vld [vmem:[#allocation5 + $0x1568] ss:$12 sps:$4 sm:$0xff]   ;;  %v13749_v41 = vld [vmem:[#allocation5 + $0x14b8] ss:$12 sps:$4 sm:$0xff]  }
 0x39b   :  { %v15334_v3 = vadd.f32 %v12008_v35, %v15222_v26  ;;  %8154 = vmatprep.subr.bf16.mxu0 %v13739_v46  ;;  %8105 = vmatprep.mubr.bf16.mxu0 %v15270_v44  ;;  %v13786_v46 = vld [vmem:[#allocation5 + $0x1640] ss:$12 sps:$4 sm:$0xff]  }
 0x39c   :  { %9776 = vmatprep.mubr.bf16.mxu1 %v15326_v61  ;;  %12278 = vmatpush3.bf16.msra.mxu1 %v13762_v60  ;;  %v13754_v35 = vld [vmem:[#allocation5 + $0x14d4] ss:$12 sps:$4 sm:$0xff]  }
 0x39d   :  { %v12009_v7 = vpop.f32.mrb[56].mxu1  ;;  %12279 = vmatprep.subr.bf16.mxu1 %v13766_v47 }
 0x39e   :  { %v12010_v1 = vpop.f32.mrb[57].mxu1  ;;  %8155 = vmatpush1.bf16.msra.mxu0 %v13737_v33  ;;  %v198_v33 = vld [vmem:[#allocation2 + $0x468] sm:$0xff] }
 0x39f   :  { %v12011_v26 = vadd.f32 %v12010_v1, %v12009_v7  ;;  %v12012_v38 = vpop.f32.mrb[58].mxu1  ;;  %8156 = vmatprep.subr.bf16.mxu0 %v13742_v4  ;;  %v13791_v4 = vld [vmem:[#allocation5 + $0x1658] ss:$12 sps:$4 sm:$0xff]  }
 0x3a0   :  { %v12013_v44 = vpop.f32.mrb[59].mxu1  ;;  %12280 = vmatpush3.bf16.msra.mxu1 %v13767_v57 }
 0x3a1   :  { %v15343_v32 = vadd.f32 %v12011_v26, %v15231_v43  ;;  %v12014_v16 = vadd.f32 %v12013_v44, %v12012_v38  ;;  %8106 = vmatmul.mubr.bf16.gmra.mrb[20].mxu0 %v15282_v19  ;;  %12281 = vmatprep.subr.bf16.mxu1 %v13771_v34  ;;  %v13777_v43 = vld [vmem:[#allocation5 + $0x1550] ss:$12 sps:$4 sm:$0xff]   ;;  %v182_v19 = vld [vmem:[#allocation2 + $0x3e8] sm:$0xff] }
 0x3a2   :  { %9777 = vmatmul.mubr.bf16.gmra.mrb[164].mxu1 %v15338_v10  ;;  %8157 = vmatpush1.bf16.msra.mxu0 %v13740_v23  ;;  %v15354_v37 = vcombine.high %v166_v56, %v182_v19  ;;  %v15366_v7 = vcombine.low %v166_v56, %v182_v19  ;;  %v13757_v34 = vld [vmem:[#allocation5 + $0x14ec] ss:$12 sps:$4 sm:$0xff]   ;;  %v13755_v44 = vld [vmem:[#allocation5 + $0x14e8] ss:$12 sps:$4 sm:$0xff]  }
 0x3a3   :  { %v15348_v2 = vadd.f32 %v12014_v16, %v15236_v40  ;;  %8158 = vmatprep.subr.bf16.mxu0 %v13745_v8  ;;  %8115 = vmatprep.mubr.bf16.mxu0 %v15284_v9  ;;  %v13792_v23 = vld [vmem:[#allocation5 + $0x1598] ss:$12 sps:$4 sm:$0xff]   ;;  %v13796_v8 = vld [vmem:[#allocation5 + $0x1670] ss:$12 sps:$4 sm:$0xff]  }
 0x3a4   :  { %9784 = vmatprep.mubr.bf16.mxu1 %v15340_v49  ;;  %12282 = vmatpush3.bf16.msra.mxu1 %v13772_v15  ;;  %v13760_v16 = vld [vmem:[#allocation5 + $0x1504] ss:$12 sps:$4 sm:$0xff]   ;;  %v13765_v19 = vld [vmem:[#allocation5 + $0x151c] ss:$12 sps:$4 sm:$0xff]  }
 0x3a5   :  { %v12015_v18 = vpop.f32.mrb[60].mxu1  ;;  %12283 = vmatprep.subr.bf16.mxu1 %v13776_v25 }
 0x3a6   :  { %v12016_v53 = vpop.f32.mrb[61].mxu1  ;;  %8159 = vmatpush1.bf16.msra.mxu0 %v13743_v58  ;;  %v230_v58 = vld [vmem:[#allocation2 + $0x568] sm:$0xff] }
 0x3a7   :  { %v12017_v40 = vadd.f32 %v12016_v53, %v12015_v18  ;;  %v12018_v22 = vpop.f32.mrb[62].mxu1  ;;  %8160 = vmatprep.subr.bf16.mxu0 %v13748_v59  ;;  %v13758_v18 = vld [vmem:[#allocation5 + $0x1500] ss:$12 sps:$4 sm:$0xff]  }
 0x3a8   :  { %v12019_v9 = vpop.f32.mrb[63].mxu1  ;;  %12284 = vmatpush3.bf16.msra.mxu1 %v13777_v43 }
 0x3a9   :  { %v15357_v21 = vadd.f32 %v12017_v40, %v15245_v51  ;;  %v12020_v27 = vadd.f32 %v12019_v9, %v12018_v22  ;;  %8116 = vmatmul.mubr.bf16.gmra.mrb[24].mxu0 %v15296_v36  ;;  %12285 = vmatprep.subr.bf16.mxu1 %v13781_v63  ;;  %v13787_v51 = vld [vmem:[#allocation5 + $0x1580] ss:$12 sps:$4 sm:$0xff]   ;;  %v13972_v40 = vmov 0   ;;  %v13763_v22 = vld [vmem:[#allocation5 + $0x1518] ss:$12 sps:$4 sm:$0xff]  }
 0x3aa   :  { %9785 = vmatmul.mubr.bf16.gmra.mrb[168].mxu1 %v15352_v62  ;;  %8161 = vmatpush1.bf16.msra.mxu0 %v13746_v54  ;;  %v214_v36 = vld [vmem:[#allocation2 + $0x4e8] sm:$0xff]  ;;  %v13770_v9 = vld [vmem:[#allocation5 + $0x1534] ss:$12 sps:$4 sm:$0xff]  }
 0x3ab   :  { %v15362_v60 = vadd.f32 %v12020_v27, %v15250_v5  ;;  %8162 = vmatprep.subr.bf16.mxu0 %v13751_v45  ;;  %8125 = vmatprep.mubr.bf16.mxu0 %v15298_v31  ;;  %v15368_v1 = vcombine.high %v198_v33, %v214_v36  ;;  %v15380_v43 = vcombine.low %v198_v33, %v214_v36  ;;  %v278_v27 = vld [vmem:[#allocation2 + $0x6e8] sm:$0xff] }
 0x3ac   :  { %9792 = vmatprep.mubr.bf16.mxu1 %v15354_v37  ;;  %12286 = vmatpush3.bf16.msra.mxu1 %v13782_v14  ;;  %v262_v14 = vld [vmem:[#allocation2 + $0x668] sm:$0xff] }
 0x3ad   :  { %v12037_v47 = vpop.f32.mrb[64].mxu1  ;;  %12287 = vmatprep.subr.bf16.mxu1 %v13786_v46  ;;  %v15397_v33 = vcombine.high %v262_v14, %v278_v27 }
 0x3ae   :  { %v12038_v57 = vpop.f32.mrb[65].mxu1  ;;  %8163 = vmatpush1.bf16.msra.mxu0 %v13749_v41  ;;  %v13768_v41 = vld [vmem:[#allocation5 + $0x1530] ss:$12 sps:$4 sm:$0xff]  }
 0x3af   :  { %v12039_v5 = vadd.f32 %v12038_v57, %v12037_v47  ;;  %v12040_v29 = vpop.f32.mrb[66].mxu1  ;;  %8164 = vmatprep.subr.bf16.mxu0 %v13754_v35  ;;  %v13775_v47 = vld [vmem:[#allocation5 + $0x154c] ss:$12 sps:$4 sm:$0xff]  }
 0x3b0   :  { %v12041_v31 = vpop.f32.mrb[67].mxu1  ;;  %12288 = vmatpush3.bf16.msra.mxu1 %v13787_v51 }
 0x3b1   :  { %v15371_v26 = vadd.f32 %v12039_v5, %v15259_v11  ;;  %v12042_v38 = vadd.f32 %v12041_v31, %v12040_v29  ;;  %8126 = vmatmul.mubr.bf16.gmra.mrb[28].mxu0 %v15310_v39  ;;  %12289 = vmatprep.subr.bf16.mxu1 %v13791_v4  ;;  %v13797_v11 = vld [vmem:[#allocation5 + $0x15b0] ss:$12 sps:$4 sm:$0xff]   ;;  %v246_v39 = vld [vmem:[#allocation2 + $0x5e8] sm:$0xff]  ;;  %v15409_v31 = vcombine.low %v262_v14, %v278_v27 }
 0x3b2   :  { %9793 = vmatmul.mubr.bf16.gmra.mrb[172].mxu1 %v15366_v7  ;;  %8165 = vmatpush1.bf16.msra.mxu0 %v13752_v13  ;;  %v15395_v46 = vcombine.low %v230_v58, %v246_v39  ;;  %v13773_v4 = vld [vmem:[#allocation5 + $0x1548] ss:$12 sps:$4 sm:$0xff]   ;;  %v13780_v13 = vld [vmem:[#allocation5 + $0x1564] ss:$12 sps:$4 sm:$0xff]  }
 0x3b3   :  { %v15376_v15 = vadd.f32 %v12042_v38, %v15264_v30  ;;  %8166 = vmatprep.subr.bf16.mxu0 %v13757_v34  ;;  %8168 = vmatprep.mubr.bf16.mxu0 %v15312_v50  ;;  %v15382_v50 = vcombine.high %v230_v58, %v246_v39  ;;  %v294_v29 = vld [vmem:[#allocation2 + $0x768] sm:$0xff]  ;;  %v13790_v58 = vld [vmem:[#allocation5 + $0x1594] ss:$12 sps:$4 sm:$0xff]   ;;  %v13800_v14 = vld [vmem:[#allocation5 + $0x15c4] ss:$12 sps:$4 sm:$0xff]  }
 0x3b4   :  { %9800 = vmatprep.mubr.bf16.mxu1 %v15368_v1  ;;  %12290 = vmatpush3.bf16.msra.mxu1 %v13792_v23 }
 0x3b5   :  { %v12043_v25 = vpop.f32.mrb[68].mxu1  ;;  %12291 = vmatprep.subr.bf16.mxu1 %v13796_v8  ;;  %v13785_v8 = vld [vmem:[#allocation5 + $0x157c] ss:$12 sps:$4 sm:$0xff]  }
 0x3b6   :  { %v12044_v59 = vpop.f32.mrb[69].mxu1  ;;  %8167 = vmatpush1.bf16.msra.mxu0 %v13755_v44 }
 0x3b7   :  { %v12045_v56 = vadd.f32 %v12044_v59, %v12043_v25  ;;  %v12046_v30 = vpop.f32.mrb[70].mxu1  ;;  %8249 = vmatprep.subr.bf16.mxu0 %v13760_v16  ;;  %v71_v59 = vld [vmem:[#allocation2 + $0x70] sm:$0xff] }
 0x3b8   :  { %v12047_v63 = vpop.f32.mrb[71].mxu1  ;;  %12292 = vmatpush3.bf16.msra.mxu1 %v13797_v11  ;;  %v13783_v11 = vld [vmem:[#allocation5 + $0x1578] ss:$12 sps:$4 sm:$0xff]  }
 0x3b9   :  { %v15385_v53 = vadd.f32 %v12045_v56, %v15273_v28  ;;  %v12048_v54 = vadd.f32 %v12047_v63, %v12046_v30  ;;  %8169 = vmatmul.mubr.bf16.vlgmr.msra.gmra.mrb[0].mxu0 %v15324_v24  ;;  %9930 = vmatprep.subr.bf16.mxu1 %v13972_v40  ;;  %v13795_v63 = vld [vmem:[#allocation5 + $0x15ac] ss:$12 sps:$4 sm:$0xff]  }
 0x3ba   :  { %9801 = vmatmul.mubr.bf16.gmra.mrb[176].mxu1 %v15380_v43  ;;  %8250 = vmatpush1.bf16.msra.mxu0 %v13758_v18 }
 0x3bb   :  { %v15391_v45 = vadd.f32 %v12048_v54, %v15278_v6  ;;  %8251 = vmatprep.subr.bf16.mxu0 %v13765_v19  ;;  %8178 = vmatprep.mubr.bf16.mxu0 %v15326_v61 }
 0x3bc   :  { %9808 = vmatprep.mubr.bf16.mxu1 %v15382_v50 }
 0x3bd   :  { %v12049_v28 = vpop.f32.mrb[72].mxu1 }
 0x3be   :  { %v12050_v24 = vpop.f32.mrb[73].mxu1  ;;  %8252 = vmatpush1.bf16.msra.mxu0 %v13763_v22 }
 0x3bf   :  { %v12051_v35 = vadd.f32 %v12050_v24, %v12049_v28  ;;  %v12052_v51 = vpop.f32.mrb[74].mxu1  ;;  %8253 = vmatprep.subr.bf16.mxu0 %v13770_v9  ;;  %v13793_v9 = vld [vmem:[#allocation5 + $0x15a8] ss:$12 sps:$4 sm:$0xff]  }
 0x3c0   :  { %v12053_v6 = vpop.f32.mrb[75].mxu1  ;;  %v103_v24 = vld [vmem:[#allocation2 + $0x170] sm:$0xff] }
 0x3c1   :  { %v15400_v61 = vadd.f32 %v12051_v35, %v15287_v48  ;;  %v12054_v36 = vadd.f32 %v12053_v6, %v12052_v51  ;;  %8179 = vmatmul.mubr.bf16.gmra.mrb[4].mxu0 %v15338_v10  ;;  %v310_v48 = vld [vmem:[#allocation2 + $0x7e8] sm:$0xff] }
 0x3c2   :  { %9809 = vmatmul.mubr.bf16.gmra.mrb[180].mxu1 %v15395_v46  ;;  %8254 = vmatpush1.bf16.msra.mxu0 %v13768_v41  ;;  %v13778_v10 = vld [vmem:[#allocation5 + $0x1560] ss:$12 sps:$4 sm:$0xff]   ;;  %v15411_v44 = vcombine.high %v294_v29, %v310_v48  ;;  %v15423_v56 = vcombine.low %v294_v29, %v310_v48  ;;  %v13803_v6 = vld [vmem:[#allocation5 + $0x15dc] ss:$12 sps:$4 sm:$0xff]  }
 0x3c3   :  { %v15405_v57 = vadd.f32 %v12054_v36, %v15292_v55  ;;  %8255 = vmatprep.subr.bf16.mxu0 %v13775_v47  ;;  %8188 = vmatprep.mubr.bf16.mxu0 %v15340_v49  ;;  %v13806_v48 = vld [vmem:[#allocation5 + $0x15f4] ss:$12 sps:$4 sm:$0xff]  }
 0x3c4   :  { %9816 = vmatprep.mubr.bf16.mxu1 %v15397_v33 }
 0x3c5   :  { %v12055_v5 = vpop.f32.mrb[76].mxu1 }
 0x3c6   :  { %v12056_v34 = vpop.f32.mrb[77].mxu1  ;;  %8256 = vmatpush1.bf16.msra.mxu0 %v13773_v4  ;;  %v13813_v4 = vld [vmem:[#allocation5 + $0x1688] ss:$12 sps:$4 sm:$0xff]  }
 0x3c7   :  { %v12057_v23 = vadd.f32 %v12056_v34, %v12055_v5  ;;  %v12058_v38 = vpop.f32.mrb[78].mxu1  ;;  %8257 = vmatprep.subr.bf16.mxu0 %v13780_v13  ;;  %v13801_v5 = vld [vmem:[#allocation5 + $0x15d8] ss:$12 sps:$4 sm:$0xff]   ;;  %v13817_v34 = vld [vmem:[#allocation5 + $0x16a0] ss:$12 sps:$4 sm:$0xff]  }
 0x3c8   :  { %v12059_v55 = vpop.f32.mrb[79].mxu1 }
 0x3c9   :  { %v15414_v49 = vadd.f32 %v12057_v23, %v15301_v17  ;;  %v12060_v16 = vadd.f32 %v12059_v55, %v12058_v38  ;;  %8189 = vmatmul.mubr.bf16.gmra.mrb[8].mxu0 %v15352_v62  ;;  %v87_v17 = vld [vmem:[#allocation2 + $0xf0] sm:$0xff] }
 0x3ca   :  { %9817 = vmatmul.mubr.bf16.gmra.mrb[184].mxu1 %v15409_v31  ;;  %8258 = vmatpush1.bf16.msra.mxu0 %v13778_v10  ;;  %v13788_v62 = vld [vmem:[#allocation5 + $0x1590] ss:$12 sps:$4 sm:$0xff]   ;;  %v15425_v54 = vcombine.high %v71_v59, %v87_v17  ;;  %v15437_v35 = vcombine.low %v71_v59, %v87_v17  ;;  %v13807_v17 = vld [vmem:[#allocation5 + $0x1608] ss:$12 sps:$4 sm:$0xff]  }
 0x3cb   :  { %v15419_v25 = vadd.f32 %v12060_v16, %v15306_v20  ;;  %8259 = vmatprep.subr.bf16.mxu0 %v13785_v8  ;;  %8198 = vmatprep.mubr.bf16.mxu0 %v15354_v37  ;;  %v135_v10 = vld [vmem:[#allocation2 + $0x270] sm:$0xff]  ;;  %v13809_v16 = vld [vmem:[#allocation5 + $0x160c] ss:$12 sps:$4 sm:$0xff]  }
 0x3cc   :  { %9824 = vmatprep.mubr.bf16.mxu1 %v15411_v44  ;;  %v151_v23 = vld [vmem:[#allocation2 + $0x2f0] sm:$0xff] }
 0x3cd   :  { %v12061_v39 = vpop.f32.mrb[80].mxu1  ;;  %v13804_v8 = vld [vmem:[#allocation5 + $0x15f0] ss:$12 sps:$4 sm:$0xff]  }
 0x3ce   :  { %v12062_v18 = vpop.f32.mrb[81].mxu1  ;;  %8260 = vmatpush1.bf16.msra.mxu0 %v13783_v11  ;;  %v15454_v11 = vcombine.high %v135_v10, %v151_v23 }
 0x3cf   :  { %v12063_v30 = vadd.f32 %v12062_v18, %v12061_v39  ;;  %v12064_v19 = vpop.f32.mrb[82].mxu1  ;;  %8261 = vmatprep.subr.bf16.mxu0 %v13790_v58  ;;  %v13821_v58 = vld [vmem:[#allocation5 + $0x16b8] ss:$12 sps:$4 sm:$0xff]  }
 0x3d0   :  { %v12065_v20 = vpop.f32.mrb[83].mxu1 }
 0x3d1   :  { %v15428_v37 = vadd.f32 %v12063_v30, %v15315_v12  ;;  %v12066_v22 = vadd.f32 %v12065_v20, %v12064_v19  ;;  %8199 = vmatmul.mubr.bf16.gmra.mrb[12].mxu0 %v15366_v7  ;;  %v119_v12 = vld [vmem:[#allocation2 + $0x1f0] sm:$0xff]  ;;  %v13798_v7 = vld [vmem:[#allocation5 + $0x15c0] ss:$12 sps:$4 sm:$0xff]   ;;  %v15468_v20 = vcombine.low %v135_v10, %v151_v23  ;;  %v13834_v10 = vld [vmem:[#allocation5 + $0x1718] ss:$12 sps:$4 sm:$0xff]  }
 0x3d2   :  { %9825 = vmatmul.mubr.bf16.gmra.mrb[188].mxu1 %v15423_v56  ;;  %8262 = vmatpush1.bf16.msra.mxu0 %v13788_v62  ;;  %v15439_v36 = vcombine.high %v103_v24, %v119_v12  ;;  %v15452_v38 = vcombine.low %v103_v24, %v119_v12  ;;  %v13812_v62 = vld [vmem:[#allocation5 + $0x1624] ss:$12 sps:$4 sm:$0xff]   ;;  %v13829_v24 = vld [vmem:[#allocation5 + $0x16e8] ss:$12 sps:$4 sm:$0xff]  }
 0x3d3   :  { %v15433_v28 = vadd.f32 %v12066_v22, %v15320_v0  ;;  %8263 = vmatprep.subr.bf16.mxu0 %v13795_v63  ;;  %8208 = vmatprep.mubr.bf16.mxu0 %v15368_v1  ;;  %v167_v19 = vld [vmem:[#allocation2 + $0x370] sm:$0xff]  ;;  %v13810_v22 = vld [vmem:[#allocation5 + $0x1620] ss:$12 sps:$4 sm:$0xff]  }
 0x3d4   :  { %9865 = vmatprep.mubr.bf16.mxu1 %v15425_v54 }
 0x3d5   :  { %v12067_v27 = vpop.f32.mrb[84].mxu1 }
 0x3d6   :  { %v12068_v41 = vpop.f32.mrb[85].mxu1  ;;  %8264 = vmatpush1.bf16.msra.mxu0 %v13793_v9 }
 0x3d7   :  { %v12069_v51 = vadd.f32 %v12068_v41, %v12067_v27  ;;  %v12070_v47 = vpop.f32.mrb[86].mxu1  ;;  %8265 = vmatprep.subr.bf16.mxu0 %v13800_v14  ;;  %v13816_v14 = vld [vmem:[#allocation5 + $0x163c] ss:$12 sps:$4 sm:$0xff]  }
 0x3d8   :  { %v12071_v0 = vpop.f32.mrb[87].mxu1 }
 0x3d9   :  { %v15442_v1 = vadd.f32 %v12069_v51, %v15329_v42  ;;  %v12072_v13 = vadd.f32 %v12071_v0, %v12070_v47  ;;  %8209 = vmatmul.mubr.bf16.gmra.mrb[16].mxu0 %v15380_v43  ;;  %v13820_v47 = vld [vmem:[#allocation5 + $0x1654] ss:$12 sps:$4 sm:$0xff]  }
 0x3da   :  { %9866 = vmatmul.mubr.bf16.vlgmr.msra.gmra.mrb[192].mxu1 %v15437_v35  ;;  %8266 = vmatpush1.bf16.msra.mxu0 %v13798_v7  ;;  %v13814_v7 = vld [vmem:[#allocation5 + $0x1638] ss:$12 sps:$4 sm:$0xff]   ;;  %v199_v0 = vld [vmem:[#allocation2 + $0x470] sm:$0xff] }
 0x3db   :  { %v15447_v29 = vadd.f32 %v12072_v13, %v15334_v3  ;;  %8267 = vmatprep.subr.bf16.mxu0 %v13803_v6  ;;  %8218 = vmatprep.mubr.bf16.mxu0 %v15382_v50 }
 0x3dc   :  { %9873 = vmatprep.mubr.bf16.mxu1 %v15439_v36  ;;  %9931 = vmatpush1.bf16.msra.mxu1 %v13813_v4 }
 0x3dd   :  { %v12073_v42 = vpop.f32.mrb[88].mxu1  ;;  %9932 = vmatprep.subr.bf16.mxu1 %v13972_v40 }
 0x3de   :  { %v12074_v43 = vpop.f32.mrb[89].mxu1  ;;  %8268 = vmatpush1.bf16.msra.mxu0 %v13801_v5  ;;  %v13818_v5 = vld [vmem:[#allocation5 + $0x1650] ss:$12 sps:$4 sm:$0xff]  }
 0x3df   :  { %v12075_v3 = vadd.f32 %v12074_v43, %v12073_v42  ;;  %v12076_v55 = vpop.f32.mrb[90].mxu1  ;;  %8269 = vmatprep.subr.bf16.mxu0 %v13806_v48 }
 0x3e0   :  { %v12077_v50 = vpop.f32.mrb[91].mxu1  ;;  %9933 = vmatpush1.bf16.msra.mxu1 %v13817_v34  ;;  %v13824_v34 = vld [vmem:[#allocation5 + $0x166c] ss:$12 sps:$4 sm:$0xff]  }
 0x3e1   :  { %v15457_v39 = vadd.f32 %v12075_v3, %v15343_v32  ;;  %v12078_v59 = vadd.f32 %v12077_v50, %v12076_v55  ;;  %8219 = vmatmul.mubr.bf16.gmra.mrb[20].mxu0 %v15395_v46  ;;  %9934 = vmatprep.subr.bf16.mxu1 %v13972_v40  ;;  %v13825_v32 = vld [vmem:[#allocation5 + $0x16d0] ss:$12 sps:$4 sm:$0xff]  }
 0x3e2   :  { %9874 = vmatmul.mubr.bf16.gmra.mrb[196].mxu1 %v15452_v38  ;;  %8270 = vmatpush1.bf16.msra.mxu0 %v13804_v8  ;;  %v183_v46 = vld [vmem:[#allocation2 + $0x3f0] sm:$0xff] }
 0x3e3   :  { %v15463_v18 = vadd.f32 %v12078_v59, %v15348_v2  ;;  %8271 = vmatprep.subr.bf16.mxu0 %v13809_v16  ;;  %8228 = vmatprep.mubr.bf16.mxu0 %v15397_v33  ;;  %v15470_v27 = vcombine.high %v167_v19, %v183_v46  ;;  %v15484_v13 = vcombine.low %v167_v19, %v183_v46  ;;  %v13822_v8 = vld [vmem:[#allocation5 + $0x1668] ss:$12 sps:$4 sm:$0xff]   ;;  %v13828_v55 = vld [vmem:[#allocation5 + $0x1684] ss:$12 sps:$4 sm:$0xff]  }
 0x3e4   :  { %9881 = vmatprep.mubr.bf16.mxu1 %v15454_v11  ;;  %9935 = vmatpush1.bf16.msra.mxu1 %v13821_v58  ;;  %v231_v50 = vld [vmem:[#allocation2 + $0x570] sm:$0xff] }
 0x3e5   :  { %v12079_v30 = vpop.f32.mrb[92].mxu1  ;;  %9936 = vmatprep.subr.bf16.mxu1 %v13972_v40  ;;  %v13842_v19 = vld [vmem:[#allocation5 + $0x1748] ss:$12 sps:$4 sm:$0xff]  }
 0x3e6   :  { %v12080_v63 = vpop.f32.mrb[93].mxu1  ;;  %8272 = vmatpush1.bf16.msra.mxu0 %v13807_v17  ;;  %v13826_v17 = vld [vmem:[#allocation5 + $0x1680] ss:$12 sps:$4 sm:$0xff]  }
 0x3e7   :  { %v12081_v2 = vadd.f32 %v12080_v63, %v12079_v30  ;;  %v12082_v9 = vpop.f32.mrb[94].mxu1  ;;  %8273 = vmatprep.subr.bf16.mxu0 %v13812_v62 }
 0x3e8   :  { %v12083_v33 = vpop.f32.mrb[95].mxu1  ;;  %9937 = vmatpush1.bf16.msra.mxu1 %v13825_v32  ;;  %v13833_v32 = vld [vmem:[#allocation5 + $0x169c] ss:$12 sps:$4 sm:$0xff]  }
 0x3e9   :  { %v15473_v12 = vadd.f32 %v12081_v2, %v15357_v21  ;;  %v12084_v41 = vadd.f32 %v12083_v33, %v12082_v9  ;;  %8229 = vmatmul.mubr.bf16.gmra.mrb[24].mxu0 %v15409_v31  ;;  %9938 = vmatprep.subr.bf16.mxu1 %v13972_v40  ;;  %v13830_v21 = vld [vmem:[#allocation5 + $0x1700] ss:$12 sps:$4 sm:$0xff]   ;;  %v215_v31 = vld [vmem:[#allocation2 + $0x4f0] sm:$0xff] }
 0x3ea   :  { %9882 = vmatmul.mubr.bf16.gmra.mrb[200].mxu1 %v15468_v20  ;;  %8274 = vmatpush1.bf16.msra.mxu0 %v13810_v22  ;;  %v15486_v42 = vcombine.high %v199_v0, %v215_v31  ;;  %v15500_v59 = vcombine.low %v199_v0, %v215_v31  ;;  %v13831_v22 = vld [vmem:[#allocation5 + $0x1698] ss:$12 sps:$4 sm:$0xff]   ;;  %v13837_v9 = vld [vmem:[#allocation5 + $0x16b4] ss:$12 sps:$4 sm:$0xff]  }
 0x3eb   :  { %v15479_v51 = vadd.f32 %v12084_v41, %v15362_v60  ;;  %8275 = vmatprep.subr.bf16.mxu0 %v13816_v14  ;;  %8238 = vmatprep.mubr.bf16.mxu0 %v15411_v44  ;;  %v279_v14 = vld [vmem:[#allocation2 + $0x6f0] sm:$0xff]  ;;  %v13843_v33 = vld [vmem:[#allocation5 + $0x1760] ss:$12 sps:$4 sm:$0xff]   ;;  %v13847_v0 = vld [vmem:[#allocation5 + $0x1778] ss:$12 sps:$4 sm:$0xff]  }
 0x3ec   :  { %9889 = vmatprep.mubr.bf16.mxu1 %v15470_v27  ;;  %9939 = vmatpush1.bf16.msra.mxu1 %v13829_v24 }
 0x3ed   :  { %v12101_v6 = vpop.f32.mrb[96].mxu1  ;;  %9940 = vmatprep.subr.bf16.mxu1 %v13972_v40 }
 0x3ee   :  { %v12102_v4 = vpop.f32.mrb[97].mxu1  ;;  %8276 = vmatpush1.bf16.msra.mxu0 %v13814_v7  ;;  %v13835_v7 = vld [vmem:[#allocation5 + $0x16b0] ss:$12 sps:$4 sm:$0xff]  }
 0x3ef   :  { %v12103_v60 = vadd.f32 %v12102_v4, %v12101_v6  ;;  %v12104_v48 = vpop.f32.mrb[98].mxu1  ;;  %8277 = vmatprep.subr.bf16.mxu0 %v13820_v47  ;;  %v13841_v6 = vld [vmem:[#allocation5 + $0x16cc] ss:$12 sps:$4 sm:$0xff]  }
 0x3f0   :  { %v12105_v44 = vpop.f32.mrb[99].mxu1  ;;  %9941 = vmatpush1.bf16.msra.mxu1 %v13830_v21 }
 0x3f1   :  { %v15489_v23 = vadd.f32 %v12103_v60, %v15371_v26  ;;  %v12106_v43 = vadd.f32 %v12105_v44, %v12104_v48  ;;  %8239 = vmatmul.mubr.bf16.gmra.mrb[28].mxu0 %v15423_v56  ;;  %9942 = vmatprep.subr.bf16.mxu1 %v13972_v40  ;;  %v13838_v26 = vld [vmem:[#allocation5 + $0x1730] ss:$12 sps:$4 sm:$0xff]  }
 0x3f2   :  { %9890 = vmatmul.mubr.bf16.gmra.mrb[204].mxu1 %v15484_v13  ;;  %8278 = vmatpush1.bf16.msra.mxu0 %v13818_v5  ;;  %v247_v56 = vld [vmem:[#allocation2 + $0x5f0] sm:$0xff] }
 0x3f3   :  { %v15495_v3 = vadd.f32 %v12106_v43, %v15376_v15  ;;  %8279 = vmatprep.subr.bf16.mxu0 %v13824_v34  ;;  %8281 = vmatprep.mubr.bf16.mxu0 %v15425_v54  ;;  %v15502_v30 = vcombine.high %v231_v50, %v247_v56  ;;  %v15516_v41 = vcombine.low %v231_v50, %v247_v56  ;;  %v13839_v5 = vld [vmem:[#allocation5 + $0x16c8] ss:$12 sps:$4 sm:$0xff]   ;;  %v13846_v48 = vld [vmem:[#allocation5 + $0x16e4] ss:$12 sps:$4 sm:$0xff]  }
 0x3f4   :  { %9897 = vmatprep.mubr.bf16.mxu1 %v15486_v42  ;;  %9943 = vmatpush1.bf16.msra.mxu1 %v13834_v10  ;;  %v311_v34 = vld [vmem:[#allocation2 + $0x7f0] sm:$0xff] }
 0x3f5   :  { %v12107_v16 = vpop.f32.mrb[100].mxu1  ;;  %9944 = vmatprep.subr.bf16.mxu1 %v13972_v40  ;;  %v13851_v44 = vld [vmem:[#allocation5 + $0x1790] ss:$12 sps:$4 sm:$0xff]  }
 0x3f6   :  { %v12108_v58 = vpop.f32.mrb[101].mxu1  ;;  %8280 = vmatpush1.bf16.msra.mxu0 %v13822_v8 }
 0x3f7   :  { %v12109_v15 = vadd.f32 %v12108_v58, %v12107_v16  ;;  %v12110_v62 = vpop.f32.mrb[102].mxu1  ;;  %8362 = vmatprep.subr.bf16.mxu0 %v13828_v55  ;;  %v13844_v55 = vld [vmem:[#allocation5 + $0x16e0] ss:$12 sps:$4 sm:$0xff]   ;;  %v13850_v16 = vld [vmem:[#allocation5 + $0x16fc] ss:$12 sps:$4 sm:$0xff]  }
 0x3f8   :  { %v12111_v54 = vpop.f32.mrb[103].mxu1  ;;  %9945 = vmatpush1.bf16.msra.mxu1 %v13838_v26  ;;  %v13848_v58 = vld [vmem:[#allocation5 + $0x16f8] ss:$12 sps:$4 sm:$0xff]  }
 0x3f9   :  { %v15505_v46 = vadd.f32 %v12109_v15, %v15385_v53  ;;  %v12112_v63 = vadd.f32 %v12111_v54, %v12110_v62  ;;  %8282 = vmatmul.mubr.bf16.vlgmr.msra.gmra.mrb[0].mxu0 %v15437_v35  ;;  %9946 = vmatprep.subr.bf16.mxu1 %v13972_v40  ;;  %v263_v53 = vld [vmem:[#allocation2 + $0x670] sm:$0xff]  ;;  %v88_v15 = vld [vmem:[#allocation2 + $0xf8] sm:$0xff] }
 0x3fa   :  { %9898 = vmatmul.mubr.bf16.gmra.mrb[208].mxu1 %v15500_v59  ;;  %8363 = vmatpush1.bf16.msra.mxu0 %v13826_v17  ;;  %v15518_v21 = vcombine.high %v263_v53, %v279_v14  ;;  %v15532_v43 = vcombine.low %v263_v53, %v279_v14  ;;  %v72_v17 = vld [vmem:[#allocation2 + $0x78] sm:$0xff]  ;;  %v13854_v62 = vld [vmem:[#allocation5 + $0x1714] ss:$12 sps:$4 sm:$0xff]  }
 0x3fb   :  { %v15511_v2 = vadd.f32 %v12112_v63, %v15391_v45  ;;  %8364 = vmatprep.subr.bf16.mxu0 %v13833_v32  ;;  %8291 = vmatprep.mubr.bf16.mxu0 %v15439_v36  ;;  %v15548_v63 = vcombine.high %v72_v17, %v88_v15 }
 0x3fc   :  { %9905 = vmatprep.mubr.bf16.mxu1 %v15502_v30  ;;  %9947 = vmatpush1.bf16.msra.mxu1 %v13842_v19 }
 0x3fd   :  { %v12113_v35 = vpop.f32.mrb[104].mxu1  ;;  %9948 = vmatprep.subr.bf16.mxu1 %v13972_v40 }
 0x3fe   :  { %v12114_v24 = vpop.f32.mrb[105].mxu1  ;;  %8365 = vmatpush1.bf16.msra.mxu0 %v13831_v22  ;;  %v13857_v22 = vld [vmem:[#allocation5 + $0x172c] ss:$12 sps:$4 sm:$0xff]  }
 0x3ff   :  { %v12115_v45 = vadd.f32 %v12114_v24, %v12113_v35  ;;  %v12116_v47 = vpop.f32.mrb[106].mxu1  ;;  %8366 = vmatprep.subr.bf16.mxu0 %v13837_v9  ;;  %v104_v35 = vld [vmem:[#allocation2 + $0x178] sm:$0xff] }
 0x400   :  { %v12117_v36 = vpop.f32.mrb[107].mxu1  ;;  %9949 = vmatpush1.bf16.msra.mxu1 %v13843_v33  ;;  %v13855_v33 = vld [vmem:[#allocation5 + $0x1728] ss:$12 sps:$4 sm:$0xff]   ;;  %v120_v24 = vld [vmem:[#allocation2 + $0x1f8] sm:$0xff] }
 0x401   :  { %v15521_v31 = vadd.f32 %v12115_v45, %v15400_v61  ;;  %v12118_v4 = vadd.f32 %v12117_v36, %v12116_v47  ;;  %8292 = vmatmul.mubr.bf16.gmra.mrb[4].mxu0 %v15452_v38  ;;  %9950 = vmatprep.subr.bf16.mxu1 %v13972_v40  ;;  %v295_v61 = vld [vmem:[#allocation2 + $0x770] sm:$0xff]  ;;  %v15561_v47 = vcombine.low %v72_v17, %v88_v15  ;;  %v168_v15 = vld [vmem:[#allocation2 + $0x378] sm:$0xff] }
 0x402   :  { %9906 = vmatmul.mubr.bf16.gmra.mrb[212].mxu1 %v15516_v41  ;;  %8367 = vmatpush1.bf16.msra.mxu0 %v13835_v7  ;;  %v15546_v54 = vcombine.low %v295_v61, %v311_v34  ;;  %v13867_v17 = vld [vmem:[#allocation5 + $0x1788] ss:$12 sps:$4 sm:$0xff]  }
 0x403   :  { %v15527_v60 = vadd.f32 %v12118_v4, %v15405_v57  ;;  %8301 = vmatprep.mubr.bf16.mxu0 %v15454_v11  ;;  %9913 = vmatprep.mubr.bf16.mxu1 %v15518_v21  ;;  %v15534_v11 = vcombine.high %v295_v61, %v311_v34  ;;  %v13861_v61 = vld [vmem:[#allocation5 + $0x1758] ss:$12 sps:$4 sm:$0xff]  }
 0x404   :  { %8368 = vmatprep.subr.bf16.mxu0 %v13841_v6  ;;  %9951 = vmatpush1.bf16.msra.mxu1 %v13847_v0  ;;  %v13863_v0 = vld [vmem:[#allocation5 + $0x175c] ss:$12 sps:$4 sm:$0xff]  }
 0x405   :  { %v12119_v38 = vpop.f32.mrb[108].mxu1  ;;  %9952 = vmatprep.subr.bf16.mxu1 %v13972_v40  ;;  %v136_v34 = vld [vmem:[#allocation2 + $0x278] sm:$0xff] }
 0x406   :  { %v12120_v10 = vpop.f32.mrb[109].mxu1  ;;  %8369 = vmatpush1.bf16.msra.mxu0 %v13839_v5 }
 0x407   :  { %v12121_v8 = vadd.f32 %v12120_v10, %v12119_v38  ;;  %v12122_v57 = vpop.f32.mrb[110].mxu1  ;;  %8370 = vmatprep.subr.bf16.mxu0 %v13846_v48 }
 0x408   :  { %v12123_v26 = vpop.f32.mrb[111].mxu1  ;;  %9953 = vmatpush1.bf16.msra.mxu1 %v13851_v44  ;;  %v152_v44 = vld [vmem:[#allocation2 + $0x2f8] sm:$0xff] }
 0x409   :  { %v15537_v50 = vadd.f32 %v12121_v8, %v15414_v49  ;;  %v12124_v56 = vadd.f32 %v12123_v26, %v12122_v57  ;;  %8302 = vmatmul.mubr.bf16.gmra.mrb[8].mxu0 %v15468_v20  ;;  %v15576_v8 = vcombine.low %v104_v35, %v120_v24  ;;  %v13869_v26 = vld [vmem:[#allocation5 + $0x178c] ss:$12 sps:$4 sm:$0xff]  }
 0x40a   :  { %9914 = vmatmul.mubr.bf16.gmra.mrb[216].mxu1 %v15532_v43  ;;  %8311 = vmatprep.mubr.bf16.mxu0 %v15470_v27  ;;  %v13852_v27 = vld [vmem:[#allocation5 + $0x1710] ss:$12 sps:$4 sm:$0xff]  }
 0x40b   :  { %v15543_v40 = vadd.f32 %v12124_v56, %v15419_v25  ;;  %8371 = vmatpush1.bf16.msra.mxu0 %v13844_v55  ;;  %9921 = vmatprep.mubr.bf16.mxu1 %v15534_v11  ;;  %v15578_v55 = vcombine.high %v136_v34, %v152_v44 }
 0x40c   :  { %8372 = vmatprep.subr.bf16.mxu0 %v13850_v16 }
 0x40d   :  { %v12125_v49 = vpop.f32.mrb[112].mxu1 }
 0x40e   :  { %v12126_v32 = vpop.f32.mrb[113].mxu1 }
 0x40f   :  { %v12127_v20 = vadd.f32 %v12126_v32, %v12125_v49  ;;  %v12128_v19 = vpop.f32.mrb[114].mxu1  ;;  %8373 = vmatpush1.bf16.msra.mxu0 %v13848_v58  ;;  %v15591_v32 = vcombine.low %v136_v34, %v152_v44  ;;  %v264_v44 = vld [vmem:[#allocation2 + $0x678] sm:$0xff] }
 0x410   :  { %v12129_v25 = vpop.f32.mrb[115].mxu1  ;;  %8374 = vmatprep.subr.bf16.mxu0 %v13854_v62  ;;  %v184_v62 = vld [vmem:[#allocation2 + $0x3f8] sm:$0xff] }
 0x411   :  { %v15551_v9 = vadd.f32 %v12127_v20, %v15428_v37  ;;  %v12130_v53 = vadd.f32 %v12129_v25, %v12128_v19  ;;  %8312 = vmatmul.mubr.bf16.gmra.mrb[12].mxu0 %v15484_v13  ;;  %v13860_v37 = vld [vmem:[#allocation5 + $0x1744] ss:$12 sps:$4 sm:$0xff]   ;;  %v15593_v19 = vcombine.high %v168_v15, %v184_v62 }
 0x412   :  { %9922 = vmatmul.mubr.bf16.gmra.mrb[220].mxu1 %v15546_v54  ;;  %8321 = vmatprep.mubr.bf16.mxu0 %v15486_v42  ;;  %v15563_v42 = vcombine.high %v104_v35, %v120_v24  ;;  %v15606_v24 = vcombine.low %v168_v15, %v184_v62 }
 0x413   :  { %v15557_v14 = vadd.f32 %v12130_v53, %v15433_v28  ;;  %11309 = vmatprep.mubr.msk.bf16.mxu1 %vm6642_vm0, %v15548_v63  ;;  %8375 = vmatpush1.bf16.msra.mxu0 %v13852_v27  ;;  %v13858_v28 = vld [vmem:[#allocation5 + $0x1740] ss:$12 sps:$4 sm:$0xff]   ;;  %v216_v53 = vld [vmem:[#allocation2 + $0x4f8] sm:$0xff] }
 0x414   :  { %8376 = vmatprep.subr.bf16.mxu0 %v13857_v22  ;;  %v200_v22 = vld [vmem:[#allocation2 + $0x478] sm:$0xff] }
 0x415   :  { %v12131_v7 = vpop.f32.mrb[116].mxu1 }
 0x416   :  { %v12132_v45 = vpop.f32.mrb[117].mxu1 }
 0x417   :  { %v12133_v13 = vadd.f32 %v12132_v45, %v12131_v7  ;;  %v12134_v36 = vpop.f32.mrb[118].mxu1  ;;  %8377 = vmatpush1.bf16.msra.mxu0 %v13855_v33  ;;  %v15608_v7 = vcombine.high %v200_v22, %v216_v53 }
 0x418   :  { %v12135_v6 = vpop.f32.mrb[119].mxu1  ;;  %8378 = vmatprep.subr.bf16.mxu0 %v13860_v37 }
 0x419   :  { %v15566_v4 = vadd.f32 %v12133_v13, %v15442_v1  ;;  %v12136_v5 = vadd.f32 %v12135_v6, %v12134_v36  ;;  %8322 = vmatmul.mubr.bf16.gmra.mrb[16].mxu0 %v15500_v59  ;;  %v13866_v1 = vld [vmem:[#allocation5 + $0x1774] ss:$12 sps:$4 sm:$0xff]   ;;  %v232_v13 = vld [vmem:[#allocation2 + $0x578] sm:$0xff] }
 0x41a   :  { %9963 = vmatmul.mubr.bf16.vlgmr.msra.gmra.mrb[224].mxu1 %v15561_v47  ;;  %8331 = vmatprep.mubr.bf16.mxu0 %v15502_v30  ;;  %v248_v36 = vld [vmem:[#allocation2 + $0x5f8] sm:$0xff] }
 0x41b   :  { %v15572_v48 = vadd.f32 %v12136_v5, %v15447_v29  ;;  %11310 = vmatprep.mubr.msk.bf16.mxu1 %vm6642_vm0, %v15563_v42  ;;  %8379 = vmatpush1.bf16.msra.mxu0 %v13858_v28  ;;  %v13864_v29 = vld [vmem:[#allocation5 + $0x1770] ss:$12 sps:$4 sm:$0xff]  }
 0x41c   :  { %8380 = vmatprep.subr.bf16.mxu0 %v13863_v0 }
 0x41d   :  { %v12137_v38 = vpop.f32.mrb[120].mxu1 }
 0x41e   :  { %v12138_v10 = vpop.f32.mrb[121].mxu1 }
 0x41f   :  { %v12139_v59 = vadd.f32 %v12138_v10, %v12137_v38  ;;  %v12140_v57 = vpop.f32.mrb[122].mxu1  ;;  %8381 = vmatpush1.bf16.msra.mxu0 %v13861_v61 }
 0x420   :  { %v12141_v30 = vpop.f32.mrb[123].mxu1  ;;  %8382 = vmatprep.subr.bf16.mxu0 %v13866_v1  ;;  %v280_v1 = vld [vmem:[#allocation2 + $0x6f8] sm:$0xff] }
 0x421   :  { %v15581_v16 = vadd.f32 %v12139_v59, %v15457_v39  ;;  %v12142_v56 = vadd.f32 %v12141_v30, %v12140_v57  ;;  %8332 = vmatmul.mubr.bf16.gmra.mrb[20].mxu0 %v15516_v41  ;;  %v10479_v59 = vcombine.low %v232_v13, %v248_v36  ;;  %v10511_v62 = vcombine.low %v264_v44, %v280_v1 }
 0x422   :  { %9971 = vmatmul.mubr.bf16.gmra.mrb[228].mxu1 %v15576_v8  ;;  %8341 = vmatprep.mubr.bf16.mxu0 %v15518_v21 }
 0x423   :  { %v15587_v58 = vadd.f32 %v12142_v56, %v15463_v18  ;;  %11311 = vmatprep.mubr.msk.bf16.mxu1 %vm6642_vm0, %v15578_v55  ;;  %8383 = vmatpush1.bf16.msra.mxu0 %v13864_v29  ;;  %v10512_v29 = vcombine.high %v264_v44, %v280_v1  ;;  %v312_v56 = vld [vmem:[#allocation2 + $0x7f8] sm:$0xff] }
 0x424   :  { %8384 = vmatprep.subr.bf16.mxu0 %v13869_v26 }
 0x425   :  { %v12143_v39 = vpop.f32.mrb[124].mxu1 }
 0x426   :  { %v12144_v49 = vpop.f32.mrb[125].mxu1 }
 0x427   :  { %v12145_v41 = vadd.f32 %v12144_v49, %v12143_v39  ;;  %v12146_v20 = vpop.f32.mrb[126].mxu1  ;;  %8385 = vmatpush1.bf16.msra.mxu0 %v13867_v17 }
 0x428   :  { %v12147_v21 = vpop.f32.mrb[127].mxu1 }
 0x429   :  { %v15596_v18 = vadd.f32 %v12145_v41, %v15473_v12  ;;  %v12148_v27 = vadd.f32 %v12147_v21, %v12146_v20  ;;  %8342 = vmatmul.mubr.bf16.gmra.mrb[24].mxu0 %v15532_v43 }
 0x42a   :  { %9979 = vmatmul.mubr.bf16.gmra.mrb[232].mxu1 %v15591_v32  ;;  %8351 = vmatprep.mubr.bf16.mxu0 %v15534_v11 }
 0x42b   :  { %v15602_v25 = vadd.f32 %v12148_v27, %v15479_v51  ;;  %11312 = vmatprep.mubr.msk.bf16.mxu1 %vm6642_vm0, %v15593_v19 }
 0x42d   :  { %v12165_v33 = vpop.f32.mrb[128].mxu1 }
 0x42e   :  { %v12166_v35 = vpop.f32.mrb[129].mxu1 }
 0x42f   :  { %v12167_v12 = vadd.f32 %v12166_v35, %v12165_v33  ;;  %v12168_v37 = vpop.f32.mrb[130].mxu1 }
 0x430   :  { %v12169_v43 = vpop.f32.mrb[131].mxu1 }
 0x431   :  { %v15611_v45 = vadd.f32 %v12167_v12, %v15489_v23  ;;  %v12170_v11 = vadd.f32 %v12169_v43, %v12168_v37  ;;  %8352 = vmatmul.mubr.bf16.gmra.mrb[28].mxu0 %v15546_v54  ;;  %v15622_v23 = vcombine.low %v200_v22, %v216_v53  ;;  %v10480_v54 = vcombine.high %v232_v13, %v248_v36 }
 0x432   :  { %9987 = vmatmul.mubr.bf16.gmra.mrb[236].mxu1 %v15606_v24  ;;  %11301 = vmatprep.mubr.msk.bf16.mxu0 %vm6642_vm0, %v15548_v63 }
 0x433   :  { %v15618_v51 = vadd.f32 %v12170_v11, %v15495_v3  ;;  %11313 = vmatprep.mubr.msk.bf16.mxu1 %vm6642_vm0, %v15608_v7 }
 0x435   :  { %v12171_v28 = vpop.f32.mrb[132].mxu1 }
 0x436   :  { %v12172_v6 = vpop.f32.mrb[133].mxu1 }
 0x437   :  { %v12173_v0 = vadd.f32 %v12172_v6, %v12171_v28  ;;  %v12174_v5 = vpop.f32.mrb[134].mxu1 }
 0x438   :  { %v12175_v61 = vpop.f32.mrb[135].mxu1 }
 0x439   :  { %v15625_v34 = vadd.f32 %v12173_v0, %v15505_v46  ;;  %v12176_v63 = vadd.f32 %v12175_v61, %v12174_v5  ;;  %8395 = vmatmul.mubr.bf16.vlgmr.msra.gmra.mrb[0].mxu0 %v15561_v47 }
 0x43a   :  { %9995 = vmatmul.mubr.bf16.gmra.mrb[240].mxu1 %v15622_v23  ;;  %11302 = vmatprep.mubr.msk.bf16.mxu0 %vm6642_vm0, %v15563_v42  ;;  %v296_v42 = vld [vmem:[#allocation2 + $0x778] sm:$0xff] }
 0x43b   :  { %v15632_v3 = vadd.f32 %v12176_v63, %v15511_v2  ;;  %11314 = vmatprep.mubr.msk.bf16.mxu1 %vm6642_vm0, %v10480_v54  ;;  %v10544_v49 = vcombine.high %v296_v42, %v312_v56  ;;  %v10543_v27 = vcombine.low %v296_v42, %v312_v56 }
 0x43d   :  { %v12177_v38 = vpop.f32.mrb[136].mxu1 }
 0x43e   :  { %v12178_v10 = vpop.f32.mrb[137].mxu1 }
 0x43f   :  { %v12179_v46 = vadd.f32 %v12178_v10, %v12177_v38  ;;  %v12180_v57 = vpop.f32.mrb[138].mxu1 }
 0x440   :  { %v12181_v30 = vpop.f32.mrb[139].mxu1 }
 0x441   :  { %v15636_v47 = vadd.f32 %v12179_v46, %v15521_v31  ;;  %v12182_v26 = vadd.f32 %v12181_v30, %v12180_v57  ;;  %8405 = vmatmul.mubr.bf16.gmra.mrb[4].mxu0 %v15576_v8 }
 0x442   :  { %10003 = vmatmul.mubr.bf16.gmra.mrb[244].mxu1 %v10479_v59  ;;  %11303 = vmatprep.mubr.msk.bf16.mxu0 %vm6642_vm0, %v15578_v55 }
 0x443   :  { %v15642_v2 = vadd.f32 %v12182_v26, %v15527_v60  ;;  %11315 = vmatprep.mubr.msk.bf16.mxu1 %vm6642_vm0, %v10512_v29 }
 0x445   :  { %v12183_v17 = vpop.f32.mrb[140].mxu1 }
 0x446   :  { %v12184_v15 = vpop.f32.mrb[141].mxu1 }
 0x447   :  { %v12185_v39 = vadd.f32 %v12184_v15, %v12183_v17  ;;  %v12186_v31 = vpop.f32.mrb[142].mxu1 }
 0x448   :  { %v12187_v41 = vpop.f32.mrb[143].mxu1 }
 0x449   :  { %v15646_v8 = vadd.f32 %v12185_v39, %v15537_v50  ;;  %v12188_v20 = vadd.f32 %v12187_v41, %v12186_v31  ;;  %8415 = vmatmul.mubr.bf16.gmra.mrb[8].mxu0 %v15591_v32 }
 0x44a   :  { %10011 = vmatmul.mubr.bf16.gmra.mrb[248].mxu1 %v10511_v62  ;;  %11304 = vmatprep.mubr.msk.bf16.mxu0 %vm6642_vm0, %v15593_v19 }
 0x44b   :  { %v15652_v60 = vadd.f32 %v12188_v20, %v15543_v40  ;;  %11316 = vmatprep.mubr.msk.bf16.mxu1 %vm6642_vm0, %v10544_v49 }
 0x44d   :  { %v12189_v55 = vpop.f32.mrb[144].mxu1 }
 0x44e   :  { %v12190_v21 = vpop.f32.mrb[145].mxu1 }
 0x44f   :  { %v12191_v22 = vadd.f32 %v12190_v21, %v12189_v55  ;;  %v12192_v53 = vpop.f32.mrb[146].mxu1 }
 0x450   :  { %v12193_v33 = vpop.f32.mrb[147].mxu1 }
 0x451   :  { %v15656_v50 = vadd.f32 %v12191_v22, %v15551_v9  ;;  %v12194_v35 = vadd.f32 %v12193_v33, %v12192_v53  ;;  %8425 = vmatmul.mubr.bf16.gmra.mrb[12].mxu0 %v15606_v24 }
 0x452   :  { %10019 = vmatmul.mubr.bf16.gmra.mrb[252].mxu1 %v10543_v27  ;;  %11305 = vmatprep.mubr.msk.bf16.mxu0 %vm6642_vm0, %v15608_v7 }
 0x453   :  { %v15662_v40 = vadd.f32 %v12194_v35, %v15557_v14 }
 0x455   :  { %v12195_v32 = vpop.f32.mrb[148].mxu1 }
 0x456   :  { %v12196_v19 = vpop.f32.mrb[149].mxu1 }
 0x457   :  { %v12197_v12 = vadd.f32 %v12196_v19, %v12195_v32  ;;  %v12198_v37 = vpop.f32.mrb[150].mxu1 }
 0x458   :  { %v12199_v43 = vpop.f32.mrb[151].mxu1 }
 0x459   :  { %v15665_v11 = vadd.f32 %v12197_v12, %v15566_v4  ;;  %v12200_v9 = vadd.f32 %v12199_v43, %v12198_v37  ;;  %8435 = vmatmul.mubr.bf16.gmra.mrb[16].mxu0 %v15622_v23 }
 0x45a   :  { %11306 = vmatprep.mubr.msk.bf16.mxu0 %vm6642_vm0, %v10480_v54 }
 0x45b   :  { %v15670_v24 = vadd.f32 %v12200_v9, %v15572_v48 }
 0x45d   :  { %v12201_v7 = vpop.f32.mrb[152].mxu1 }
 0x45e   :  { %v12202_v13 = vpop.f32.mrb[153].mxu1 }
 0x45f   :  { %v12203_v14 = vadd.f32 %v12202_v13, %v12201_v7  ;;  %v12204_v36 = vpop.f32.mrb[154].mxu1 }
 0x460   :  { %v12205_v28 = vpop.f32.mrb[155].mxu1 }
 0x461   :  { %v15673_v6 = vadd.f32 %v12203_v14, %v15581_v16  ;;  %v12206_v0 = vadd.f32 %v12205_v28, %v12204_v36  ;;  %8445 = vmatmul.mubr.bf16.gmra.mrb[20].mxu0 %v10479_v59 }
 0x462   :  { %11307 = vmatprep.mubr.msk.bf16.mxu0 %vm6642_vm0, %v10512_v29 }
 0x463   :  { %v15677_v4 = vadd.f32 %v12206_v0, %v15587_v58 }
 0x465   :  { %v12207_v23 = vpop.f32.mrb[156].mxu1 }
 0x466   :  { %v12208_v5 = vpop.f32.mrb[157].mxu1 }
 0x467   :  { %v12209_v54 = vadd.f32 %v12208_v5, %v12207_v23  ;;  %v12210_v48 = vpop.f32.mrb[158].mxu1 }
 0x468   :  { %v12211_v61 = vpop.f32.mrb[159].mxu1 }
 0x469   :  { %v15680_v63 = vadd.f32 %v12209_v54, %v15596_v18  ;;  %v12212_v44 = vadd.f32 %v12211_v61, %v12210_v48  ;;  %8455 = vmatmul.mubr.bf16.gmra.mrb[24].mxu0 %v10511_v62 }
 0x46a   :  { %11308 = vmatprep.mubr.msk.bf16.mxu0 %vm6642_vm0, %v10544_v49 }
 0x46b   :  { %v15684_v16 = vadd.f32 %v12212_v44, %v15602_v25 }
 0x46d   :  { %v12229_v1 = vpop.f32.mrb[160].mxu1 }
 0x46e   :  { %v12230_v38 = vpop.f32.mrb[161].mxu1 }
 0x46f   :  { %v12231_v10 = vadd.f32 %v12230_v38, %v12229_v1  ;;  %v12232_v58 = vpop.f32.mrb[162].mxu1 }
 0x470   :  { %v12233_v59 = vpop.f32.mrb[163].mxu1 }
 0x471   :  { %v15687_v46 = vadd.f32 %v12231_v10, %v15611_v45  ;;  %v12234_v57 = vadd.f32 %v12233_v59, %v12232_v58  ;;  %8465 = vmatmul.mubr.bf16.gmra.mrb[28].mxu0 %v10543_v27 }
 0x473   :  { %v15690_v18 = vadd.f32 %v12234_v57, %v15618_v51 }
 0x475   :  { %v12235_v29 = vpop.f32.mrb[164].mxu1 }
 0x476   :  { %v12236_v30 = vpop.f32.mrb[165].mxu1 }
 0x477   :  { %v12237_v26 = vadd.f32 %v12236_v30, %v12235_v29  ;;  %v12238_v42 = vpop.f32.mrb[166].mxu1 }
 0x478   :  { %v12239_v56 = vpop.f32.mrb[167].mxu1 }
 0x479   :  { %v15693_v25 = vadd.f32 %v12237_v26, %v15625_v34  ;;  %v12240_v17 = vadd.f32 %v12239_v56, %v12238_v42 }
 0x47b   :  { %v15696_v15 = vadd.f32 %v12240_v17, %v15632_v3 }
 0x47d   :  { %v12241_v62 = vpop.f32.mrb[168].mxu1 }
 0x47e   :  { %v12242_v45 = vpop.f32.mrb[169].mxu1 }
 0x47f   :  { %v12243_v39 = vadd.f32 %v12242_v45, %v12241_v62  ;;  %v12244_v31 = vpop.f32.mrb[170].mxu1 }
 0x480   :  { %v12245_v49 = vpop.f32.mrb[171].mxu1 }
 0x481   :  { %v15699_v51 = vadd.f32 %v12243_v39, %v15636_v47  ;;  %v12246_v41 = vadd.f32 %v12245_v49, %v12244_v31 }
 0x483   :  { %v15702_v20 = vadd.f32 %v12246_v41, %v15642_v2 }
 0x485   :  { %v12247_v55 = vpop.f32.mrb[172].mxu1 }
 0x486   :  { %v12248_v21 = vpop.f32.mrb[173].mxu1 }
 0x487   :  { %v12249_v34 = vadd.f32 %v12248_v21, %v12247_v55  ;;  %v12250_v27 = vpop.f32.mrb[174].mxu1 }
 0x488   :  { %v12251_v22 = vpop.f32.mrb[175].mxu1 }
 0x489   :  { %v15705_v3 = vadd.f32 %v12249_v34, %v15646_v8  ;;  %v12252_v53 = vadd.f32 %v12251_v22, %v12250_v27 }
 0x48b   :  { %v15708_v33 = vadd.f32 %v12252_v53, %v15652_v60 }
 0x48d   :  { %v12253_v35 = vpop.f32.mrb[176].mxu1 }
 0x48e   :  { %v12254_v32 = vpop.f32.mrb[177].mxu1 }
 0x48f   :  { %v12255_v47 = vadd.f32 %v12254_v32, %v12253_v35  ;;  %v12256_v19 = vpop.f32.mrb[178].mxu1 }
 0x490   :  { %v12257_v12 = vpop.f32.mrb[179].mxu1 }
 0x491   :  { %v15711_v2 = vadd.f32 %v12255_v47, %v15656_v50  ;;  %v12258_v37 = vadd.f32 %v12257_v12, %v12256_v19 }
 0x493   :  { %v15714_v43 = vadd.f32 %v12258_v37, %v15662_v40 }
 0x495   :  { %v12259_v9 = vpop.f32.mrb[180].mxu1 }
 0x496   :  { %v12260_v7 = vpop.f32.mrb[181].mxu1 }
 0x497   :  { %v12261_v8 = vadd.f32 %v12260_v7, %v12259_v9  ;;  %v12262_v13 = vpop.f32.mrb[182].mxu1 }
 0x498   :  { %v12263_v14 = vpop.f32.mrb[183].mxu1 }
 0x499   :  { %v15717_v60 = vadd.f32 %v12261_v8, %v15665_v11  ;;  %v12264_v36 = vadd.f32 %v12263_v14, %v12262_v13 }
 0x49b   :  { %v15720_v28 = vadd.f32 %v12264_v36, %v15670_v24 }
 0x49d   :  { %v12265_v0 = vpop.f32.mrb[184].mxu1 }
 0x49e   :  { %v12266_v23 = vpop.f32.mrb[185].mxu1 }
 0x49f   :  { %v12267_v50 = vadd.f32 %v12266_v23, %v12265_v0  ;;  %v12268_v5 = vpop.f32.mrb[186].mxu1 }
 0x4a0   :  { %v12269_v54 = vpop.f32.mrb[187].mxu1 }
 0x4a1   :  { %v15723_v40 = vadd.f32 %v12267_v50, %v15673_v6  ;;  %v12270_v48 = vadd.f32 %v12269_v54, %v12268_v5 }
 0x4a3   :  { %v15726_v61 = vadd.f32 %v12270_v48, %v15677_v4 }
 0x4a5   :  { %v12271_v44 = vpop.f32.mrb[188].mxu1 }
 0x4a6   :  { %v12272_v1 = vpop.f32.mrb[189].mxu1 }
 0x4a7   :  { %v12273_v11 = vadd.f32 %v12272_v1, %v12271_v44  ;;  %v12274_v38 = vpop.f32.mrb[190].mxu1 }
 0x4a8   :  { %v12275_v10 = vpop.f32.mrb[191].mxu1 }
 0x4a9   :  { %v15729_v24 = vadd.f32 %v12273_v11, %v15680_v63  ;;  %v12276_v58 = vadd.f32 %v12275_v10, %v12274_v38 }
 0x4ab   :  { %v15732_v59 = vadd.f32 %v12276_v58, %v15684_v16 }
 0x4ad   :  { %v12293_v57 = vpop.f32.mrb[192].mxu1 }
 0x4ae   :  { %v12294_v29 = vpop.f32.mrb[193].mxu1 }
 0x4af   :  { %v12295_v6 = vadd.f32 %v12294_v29, %v12293_v57  ;;  %v12296_v30 = vpop.f32.mrb[194].mxu1 }
 0x4b0   :  { %v12297_v26 = vpop.f32.mrb[195].mxu1 }
 0x4b1   :  { %v12298_v42 = vadd.f32 %v12297_v26, %v12296_v30  ;;  %v9868_v4 = vadd.f32 %v12295_v6, %v15687_v46 }
 0x4b3   :  { %v9871_v56 = vadd.f32 %v12298_v42, %v15690_v18 }
 0x4b5   :  { %v12299_v17 = vpop.f32.mrb[196].mxu1 }
 0x4b6   :  { %v12300_v62 = vpop.f32.mrb[197].mxu1 }
 0x4b7   :  { %v12301_v45 = vadd.f32 %v12300_v62, %v12299_v17  ;;  %v12302_v39 = vpop.f32.mrb[198].mxu1 }
 0x4b8   :  { %v12303_v63 = vpop.f32.mrb[199].mxu1 }
 0x4b9   :  { %v12304_v31 = vadd.f32 %v12303_v63, %v12302_v39  ;;  %v15737_v49 = vadd.f32 %v12301_v45, %v15693_v25 }
 0x4bb   :  { %v15740_v16 = vadd.f32 %v12304_v31, %v15696_v15 }
 0x4bd   :  { %v12305_v41 = vpop.f32.mrb[200].mxu1 }
 0x4be   :  { %v12306_v55 = vpop.f32.mrb[201].mxu1 }
 0x4bf   :  { %v12307_v21 = vadd.f32 %v12306_v55, %v12305_v41  ;;  %v12308_v34 = vpop.f32.mrb[202].mxu1 }
 0x4c0   :  { %v12309_v27 = vpop.f32.mrb[203].mxu1 }
 0x4c1   :  { %v12310_v46 = vadd.f32 %v12309_v27, %v12308_v34  ;;  %v15743_v18 = vadd.f32 %v12307_v21, %v15699_v51 }
 0x4c3   :  { %v15746_v22 = vadd.f32 %v12310_v46, %v15702_v20 }
 0x4c5   :  { %v12311_v53 = vpop.f32.mrb[204].mxu1 }
 0x4c6   :  { %v12312_v35 = vpop.f32.mrb[205].mxu1 }
 0x4c7   :  { %v12313_v32 = vadd.f32 %v12312_v35, %v12311_v53  ;;  %v12314_v25 = vpop.f32.mrb[206].mxu1 }
 0x4c8   :  { %v12315_v47 = vpop.f32.mrb[207].mxu1 }
 0x4c9   :  { %v12316_v19 = vadd.f32 %v12315_v47, %v12314_v25  ;;  %v15749_v15 = vadd.f32 %v12313_v32, %v15705_v3 }
 0x4cb   :  { %v15752_v12 = vadd.f32 %v12316_v19, %v15708_v33 }
 0x4cd   :  { %v12317_v37 = vpop.f32.mrb[208].mxu1 }
 0x4ce   :  { %v12318_v9 = vpop.f32.mrb[209].mxu1 }
 0x4cf   :  { %v12319_v7 = vadd.f32 %v12318_v9, %v12317_v37  ;;  %v12320_v51 = vpop.f32.mrb[210].mxu1 }
 0x4d0   :  { %v12321_v8 = vpop.f32.mrb[211].mxu1 }
 0x4d1   :  { %v12322_v13 = vadd.f32 %v12321_v8, %v12320_v51  ;;  %v15755_v20 = vadd.f32 %v12319_v7, %v15711_v2  ;;  %v1325_v8 = vsub.s32 0, %v14322_v52 }
 0x4d3   :  { %v15758_v14 = vadd.f32 %v12322_v13, %v15714_v43 }
 0x4d5   :  { %v12323_v36 = vpop.f32.mrb[212].mxu1 }
 0x4d6   :  { %v12324_v0 = vpop.f32.mrb[213].mxu1 }
 0x4d7   :  { %v12325_v23 = vadd.f32 %v12324_v0, %v12323_v36  ;;  %v12326_v3 = vpop.f32.mrb[214].mxu1  ;;  %v1329_v0 = vsub.s32 1, %v14322_v52 }
 0x4d8   :  { %v12327_v50 = vpop.f32.mrb[215].mxu1 }
 0x4d9   :  { %v12328_v5 = vadd.f32 %v12327_v50, %v12326_v3  ;;  %v15761_v33 = vadd.f32 %v12325_v23, %v15717_v60 }
 0x4db   :  { %v15764_v54 = vadd.f32 %v12328_v5, %v15720_v28 }
 0x4dd   :  { %v12329_v48 = vpop.f32.mrb[216].mxu1 }
 0x4de   :  { %v12330_v44 = vpop.f32.mrb[217].mxu1 }
 0x4df   :  { %v12331_v1 = vadd.f32 %v12330_v44, %v12329_v48  ;;  %v12332_v2 = vpop.f32.mrb[218].mxu1 }
 0x4e0   :  { %v12333_v11 = vpop.f32.mrb[219].mxu1 }
 0x4e1   :  { %v12334_v38 = vadd.f32 %v12333_v11, %v12332_v2  ;;  %v15767_v43 = vadd.f32 %v12331_v1, %v15723_v40 }
 0x4e3   :  { %v15770_v10 = vadd.f32 %v12334_v38, %v15726_v61 }
 0x4e5   :  { %v12335_v58 = vpop.f32.mrb[220].mxu1 }
 0x4e6   :  { %v12336_v57 = vpop.f32.mrb[221].mxu1 }
 0x4e7   :  { %v12337_v29 = vadd.f32 %v12336_v57, %v12335_v58  ;;  %v12338_v60 = vpop.f32.mrb[222].mxu1 }
 0x4e8   :  { %v12339_v6 = vpop.f32.mrb[223].mxu1 }
 0x4e9   :  { %v12340_v30 = vadd.f32 %v12339_v6, %v12338_v60  ;;  %v15773_v28 = vadd.f32 %v12337_v29, %v15729_v24 }
 0x4eb   :  { %v15776_v26 = vadd.f32 %v12340_v30, %v15732_v59 }
 0x4ed   :  { %v9964_v42 = vpop.f32.mrb[224].mxu1 }
 0x4ee   :  { %v9965_v17 = vadd.f32 %v9964_v42, %v9868_v4  ;;  %v9966_v62 = vpop.f32.mrb[225].mxu1 }
 0x4ef   :  { %v9967_v40 = vpop.f32.mrb[226].mxu1 }
 0x4f0   :  { %v10029_v45 = vmax.f32 %v9965_v17, 0.0  ;;  %v9968_v39 = vadd.f32 %v9967_v40, %v9871_v56  ;;  %v9969_v61 = vpop.f32.mrb[227].mxu1 }
 0x4f2   :  { %v11350_v63 = vpack.c.bf16 %v10029_v45, %v10029_v45  ;;  %v10032_v31 = vmax.f32 %v9968_v39, 0.0 }
 0x4f4   :  { %10236 = vst [vmem:[#allocation8 + $0x8] sm:$0xf] %v11350_v63  ;;  %v11352_v41 = vpack.c.bf16 %v10032_v31, %v10032_v31 }
 0x4f5   :  { %v9972_v55 = vpop.f32.mrb[228].mxu1 }
 0x4f6   :  { %10238 = vst [vmem:[#allocation8 + $0x14] sm:$0xf] %v11352_v41  ;;  %v9973_v21 = vadd.f32 %v9972_v55, %v15737_v49  ;;  %v9974_v24 = vpop.f32.mrb[229].mxu1 }
 0x4f7   :  { %v9975_v34 = vpop.f32.mrb[230].mxu1 }
 0x4f8   :  { %v10035_v27 = vmax.f32 %v9973_v21, 0.0  ;;  %v9976_v59 = vadd.f32 %v9975_v34, %v15740_v16  ;;  %v9977_v46 = vpop.f32.mrb[231].mxu1 }
 0x4fa   :  { %v11354_v4 = vpack.c.bf16 %v10035_v27, %v10035_v27  ;;  %v10038_v53 = vmax.f32 %v9976_v59, 0.0 }
 0x4fc   :  { %10240 = vst [vmem:[#allocation8 + $0x20] sm:$0xf] %v11354_v4  ;;  %v11356_v35 = vpack.c.bf16 %v10038_v53, %v10038_v53 }
 0x4fd   :  { %v9980_v56 = vpop.f32.mrb[232].mxu1 }
 0x4fe   :  { %10242 = vst [vmem:[#allocation8 + $0x2c] sm:$0xf] %v11356_v35  ;;  %v9981_v32 = vadd.f32 %v9980_v56, %v15743_v18  ;;  %v9982_v25 = vpop.f32.mrb[233].mxu1 }
 0x4ff   :  { %v9983_v47 = vpop.f32.mrb[234].mxu1 }
 0x500   :  { %v10041_v19 = vmax.f32 %v9981_v32, 0.0  ;;  %v9984_v37 = vadd.f32 %v9983_v47, %v15746_v22  ;;  %v9985_v49 = vpop.f32.mrb[235].mxu1  ;;  %v13870_v22 = vld [vmem:[#allocation7] sm:$0x7] }
 0x501   :  { %v15786_v5 = vrot.slane %v13870_v22, %v1325_v8  ;;  %v15788_v1 = vrot.slane %v13870_v22, %v1329_v0 }
 0x502   :  { %v11358_v9 = vpack.c.bf16 %v10041_v19, %v10041_v19  ;;  %v10044_v7 = vmax.f32 %v9984_v37, 0.0 }
 0x504   :  { %10244 = vst [vmem:[#allocation8 + $0x38] sm:$0xf] %v11358_v9  ;;  %v11360_v51 = vpack.c.bf16 %v10044_v7, %v10044_v7 }
 0x505   :  { %v9988_v16 = vpop.f32.mrb[236].mxu1 }
 0x506   :  { %10246 = vst [vmem:[#allocation8 + $0x44] sm:$0xf] %v11360_v51  ;;  %v9989_v13 = vadd.f32 %v9988_v16, %v15749_v15  ;;  %v9990_v36 = vpop.f32.mrb[237].mxu1 }
 0x507   :  { %v9991_v18 = vpop.f32.mrb[238].mxu1 }
 0x508   :  { %v10047_v23 = vmax.f32 %v9989_v13, 0.0  ;;  %v9992_v3 = vadd.f32 %v9991_v18, %v15752_v12  ;;  %v9993_v50 = vpop.f32.mrb[239].mxu1 }
 0x50a   :  { %v11362_v48 = vpack.c.bf16 %v10047_v23, %v10047_v23  ;;  %v10050_v44 = vmax.f32 %v9992_v3, 0.0 }
 0x50c   :  { %10248 = vst [vmem:[#allocation8 + $0x50] sm:$0xf] %v11362_v48  ;;  %v11364_v2 = vpack.c.bf16 %v10050_v44, %v10050_v44  ;;  %v8396_v11 = vpop.f32.mrb[0].mxu0 }
 0x50d   :  { %v12341_v15 = vadd.f32 %v8396_v11, %v15786_v5  ;;  %v9996_v38 = vpop.f32.mrb[240].mxu1  ;;  %v8398_v58 = vpop.f32.mrb[1].mxu0 }
 0x50e   :  { %10250 = vst [vmem:[#allocation8 + $0x5c] sm:$0xf] %v11364_v2  ;;  %v9997_v52 = vadd.f32 %v9996_v38, %v15755_v20  ;;  %v12342_v12 = vadd.f32 %v8398_v58, %v15788_v1  ;;  %v9998_v57 = vpop.f32.mrb[241].mxu1  ;;  %v8400_v29 = vpop.f32.mrb[2].mxu0 }
 0x50f   :  { %v10027_v60 = vmax.f32 %v12341_v15, 0.0  ;;  %v12343_v6 = vadd.f32 %v8400_v29, %v15786_v5  ;;  %v9999_v30 = vpop.f32.mrb[242].mxu1  ;;  %v8402_v42 = vpop.f32.mrb[3].mxu0 }
 0x510   :  { %v10053_v17 = vmax.f32 %v9997_v52, 0.0  ;;  %v10028_v62 = vmax.f32 %v12342_v12, 0.0  ;;  %v10000_v40 = vadd.f32 %v9999_v30, %v15758_v14  ;;  %v12344_v45 = vadd.f32 %v8402_v42, %v15788_v1  ;;  %v10001_v39 = vpop.f32.mrb[243].mxu1 }
 0x511   :  { %v10030_v61 = vmax.f32 %v12343_v6, 0.0 }
 0x512   :  { %v11366_v63 = vpack.c.bf16 %v10053_v17, %v10053_v17  ;;  %v11349_v31 = vpack.c.bf16 %v10028_v62, %v10027_v60  ;;  %v10056_v20 = vmax.f32 %v10000_v40, 0.0  ;;  %v10031_v41 = vmax.f32 %v12344_v45, 0.0 }
 0x514   :  { %10252 = vst [vmem:[#allocation8 + $0x68] sm:$0xf] %v11366_v63  ;;  %10235 = vst [vmem:[#allocation8] sm:$0xff] %v11349_v31  ;;  %v11368_v55 = vpack.c.bf16 %v10056_v20, %v10056_v20  ;;  %v11351_v21 = vpack.c.bf16 %v10031_v41, %v10030_v61  ;;  %v8406_v24 = vpop.f32.mrb[4].mxu0 }
 0x515   :  { %v12345_v34 = vadd.f32 %v8406_v24, %v15786_v5  ;;  %v10004_v27 = vpop.f32.mrb[244].mxu1  ;;  %v8408_v59 = vpop.f32.mrb[5].mxu0 }
 0x516   :  { %10254 = vst [vmem:[#allocation8 + $0x74] sm:$0xf] %v11368_v55  ;;  %10237 = vst [vmem:[#allocation8 + $0xc] sm:$0xff] %v11351_v21  ;;  %v10005_v14 = vadd.f32 %v10004_v27, %v15761_v33  ;;  %v12346_v46 = vadd.f32 %v8408_v59, %v15788_v1  ;;  %v10006_v4 = vpop.f32.mrb[245].mxu1  ;;  %v8410_v53 = vpop.f32.mrb[6].mxu0 }
 0x517   :  { %v10033_v35 = vmax.f32 %v12345_v34, 0.0  ;;  %v12347_v56 = vadd.f32 %v8410_v53, %v15786_v5  ;;  %v10007_v32 = vpop.f32.mrb[246].mxu1  ;;  %v8412_v25 = vpop.f32.mrb[7].mxu0 }
 0x518   :  { %v10059_v47 = vmax.f32 %v10005_v14, 0.0  ;;  %v10034_v19 = vmax.f32 %v12346_v46, 0.0  ;;  %v10008_v37 = vadd.f32 %v10007_v32, %v15764_v54  ;;  %v12348_v49 = vadd.f32 %v8412_v25, %v15788_v1  ;;  %v10009_v9 = vpop.f32.mrb[247].mxu1 }
 0x519   :  { %v10036_v7 = vmax.f32 %v12347_v56, 0.0 }
 0x51a   :  { %v11370_v51 = vpack.c.bf16 %v10059_v47, %v10059_v47  ;;  %v11353_v16 = vpack.c.bf16 %v10034_v19, %v10033_v35  ;;  %v10062_v33 = vmax.f32 %v10008_v37, 0.0  ;;  %v10037_v8 = vmax.f32 %v12348_v49, 0.0 }
 0x51c   :  { %10256 = vst [vmem:[#allocation8 + $0x80] sm:$0xf] %v11370_v51  ;;  %10239 = vst [vmem:[#allocation8 + $0x18] sm:$0xff] %v11353_v16  ;;  %v11372_v13 = vpack.c.bf16 %v10062_v33, %v10062_v33  ;;  %v11355_v36 = vpack.c.bf16 %v10037_v8, %v10036_v7  ;;  %v8416_v0 = vpop.f32.mrb[8].mxu0 }
 0x51d   :  { %v12349_v18 = vadd.f32 %v8416_v0, %v15786_v5  ;;  %v10012_v23 = vpop.f32.mrb[248].mxu1  ;;  %v8418_v3 = vpop.f32.mrb[9].mxu0 }
 0x51e   :  { %10258 = vst [vmem:[#allocation8 + $0x8c] sm:$0xf] %v11372_v13  ;;  %10241 = vst [vmem:[#allocation8 + $0x24] sm:$0xff] %v11355_v36  ;;  %v10013_v54 = vadd.f32 %v10012_v23, %v15767_v43  ;;  %v12350_v50 = vadd.f32 %v8418_v3, %v15788_v1  ;;  %v10014_v22 = vpop.f32.mrb[249].mxu1  ;;  %v8420_v48 = vpop.f32.mrb[10].mxu0 }
 0x51f   :  { %v10039_v44 = vmax.f32 %v12349_v18, 0.0  ;;  %v12351_v2 = vadd.f32 %v8420_v48, %v15786_v5  ;;  %v10015_v11 = vpop.f32.mrb[250].mxu1  ;;  %v8422_v15 = vpop.f32.mrb[11].mxu0 }
 0x520   :  { %v10065_v38 = vmax.f32 %v10013_v54, 0.0  ;;  %v10040_v58 = vmax.f32 %v12350_v50, 0.0  ;;  %v10016_v52 = vadd.f32 %v10015_v11, %v15770_v10  ;;  %v12352_v12 = vadd.f32 %v8422_v15, %v15788_v1  ;;  %v10017_v57 = vpop.f32.mrb[251].mxu1 }
 0x521   :  { %v10042_v29 = vmax.f32 %v12351_v2, 0.0 }
 0x522   :  { %v11374_v60 = vpack.c.bf16 %v10065_v38, %v10065_v38  ;;  %v11357_v6 = vpack.c.bf16 %v10040_v58, %v10039_v44  ;;  %v10068_v43 = vmax.f32 %v10016_v52, 0.0  ;;  %v10043_v30 = vmax.f32 %v12352_v12, 0.0 }
 0x524   :  { %10260 = vst [vmem:[#allocation8 + $0x98] sm:$0xf] %v11374_v60  ;;  %10243 = vst [vmem:[#allocation8 + $0x30] sm:$0xff] %v11357_v6  ;;  %v11376_v42 = vpack.c.bf16 %v10068_v43, %v10068_v43  ;;  %v11359_v17 = vpack.c.bf16 %v10043_v30, %v10042_v29  ;;  %v8426_v62 = vpop.f32.mrb[12].mxu0 }
 0x525   :  { %v12353_v40 = vadd.f32 %v8426_v62, %v15786_v5  ;;  %v10020_v45 = vpop.f32.mrb[252].mxu1  ;;  %v8428_v39 = vpop.f32.mrb[13].mxu0 }
 0x526   :  { %10262 = vst [vmem:[#allocation8 + $0xa4] sm:$0xf] %v11376_v42  ;;  %10245 = vst [vmem:[#allocation8 + $0x3c] sm:$0xff] %v11359_v17  ;;  %v10021_v10 = vadd.f32 %v10020_v45, %v15773_v28  ;;  %v12354_v61 = vadd.f32 %v8428_v39, %v15788_v1  ;;  %v10022_v63 = vpop.f32.mrb[253].mxu1  ;;  %v8430_v31 = vpop.f32.mrb[14].mxu0 }
 0x527   :  { %v10045_v20 = vmax.f32 %v12353_v40, 0.0  ;;  %v12355_v41 = vadd.f32 %v8430_v31, %v15786_v5  ;;  %v10023_v55 = vpop.f32.mrb[254].mxu1  ;;  %v8432_v21 = vpop.f32.mrb[15].mxu0 }
 0x528   :  { %v10071_v24 = vmax.f32 %v10021_v10, 0.0  ;;  %v10046_v34 = vmax.f32 %v12354_v61, 0.0  ;;  %v10024_v27 = vadd.f32 %v10023_v55, %v15776_v26  ;;  %v12356_v59 = vadd.f32 %v8432_v21, %v15788_v1  ;;  %v10025_v14 = vpop.f32.mrb[255].mxu1 }
 0x529   :  { %v10048_v46 = vmax.f32 %v12355_v41, 0.0 }
 0x52a   :  { %v11378_v4 = vpack.c.bf16 %v10071_v24, %v10071_v24  ;;  %v11361_v53 = vpack.c.bf16 %v10046_v34, %v10045_v20  ;;  %v10074_v28 = vmax.f32 %v10024_v27, 0.0  ;;  %v10049_v35 = vmax.f32 %v12356_v59, 0.0 }
 0x52c   :  { %10264 = vst [vmem:[#allocation8 + $0xb0] sm:$0xf] %v11378_v4  ;;  %10247 = vst [vmem:[#allocation8 + $0x48] sm:$0xff] %v11361_v53  ;;  %v11380_v56 = vpack.c.bf16 %v10074_v28, %v10074_v28  ;;  %v11363_v32 = vpack.c.bf16 %v10049_v35, %v10048_v46  ;;  %v8436_v25 = vpop.f32.mrb[16].mxu0 }
 0x52d   :  { %v12357_v47 = vadd.f32 %v8436_v25, %v15786_v5  ;;  %v8438_v19 = vpop.f32.mrb[17].mxu0 }
 0x52e   :  { %10266 = vst [vmem:[#allocation8 + $0xbc] sm:$0xf] %v11380_v56  ;;  %10249 = vst [vmem:[#allocation8 + $0x54] sm:$0xff] %v11363_v32  ;;  %v12358_v26 = vadd.f32 %v8438_v19, %v15788_v1  ;;  %v8440_v37 = vpop.f32.mrb[18].mxu0 }
 0x52f   :  { %v10051_v49 = vmax.f32 %v12357_v47, 0.0  ;;  %v12359_v9 = vadd.f32 %v8440_v37, %v15786_v5  ;;  %v8442_v7 = vpop.f32.mrb[19].mxu0 }
 0x530   :  { %v10052_v51 = vmax.f32 %v12358_v26, 0.0  ;;  %v12360_v16 = vadd.f32 %v8442_v7, %v15788_v1 }
 0x531   :  { %v10054_v33 = vmax.f32 %v12359_v9, 0.0 }
 0x532   :  { %v11365_v8 = vpack.c.bf16 %v10052_v51, %v10051_v49  ;;  %v10055_v13 = vmax.f32 %v12360_v16, 0.0 }
 0x534   :  { %10251 = vst [vmem:[#allocation8 + $0x60] sm:$0xff] %v11365_v8  ;;  %v11367_v36 = vpack.c.bf16 %v10055_v13, %v10054_v33  ;;  %v8446_v0 = vpop.f32.mrb[20].mxu0 }
 0x535   :  { %v12361_v18 = vadd.f32 %v8446_v0, %v15786_v5  ;;  %v8448_v23 = vpop.f32.mrb[21].mxu0 }
 0x536   :  { %10253 = vst [vmem:[#allocation8 + $0x6c] sm:$0xff] %v11367_v36  ;;  %v12362_v3 = vadd.f32 %v8448_v23, %v15788_v1  ;;  %v8450_v54 = vpop.f32.mrb[22].mxu0 }
 0x537   :  { %v10057_v50 = vmax.f32 %v12361_v18, 0.0  ;;  %v12363_v22 = vadd.f32 %v8450_v54, %v15786_v5  ;;  %v8452_v48 = vpop.f32.mrb[23].mxu0 }
 0x538   :  { %v10058_v44 = vmax.f32 %v12362_v3, 0.0  ;;  %v12364_v2 = vadd.f32 %v8452_v48, %v15788_v1 }
 0x539   :  { %v10060_v11 = vmax.f32 %v12363_v22, 0.0 }
 0x53a   :  { %v11369_v15 = vpack.c.bf16 %v10058_v44, %v10057_v50  ;;  %v10061_v38 = vmax.f32 %v12364_v2, 0.0 }
 0x53c   :  { %10255 = vst [vmem:[#allocation8 + $0x78] sm:$0xff] %v11369_v15  ;;  %v11371_v58 = vpack.c.bf16 %v10061_v38, %v10060_v11  ;;  %v8456_v52 = vpop.f32.mrb[24].mxu0 }
 0x53d   :  { %v12365_v12 = vadd.f32 %v8456_v52, %v15786_v5  ;;  %v8458_v57 = vpop.f32.mrb[25].mxu0 }
 0x53e   :  { %10257 = vst [vmem:[#allocation8 + $0x84] sm:$0xff] %v11371_v58  ;;  %v12366_v29 = vadd.f32 %v8458_v57, %v15788_v1  ;;  %v8460_v60 = vpop.f32.mrb[26].mxu0 }
 0x53f   :  { %v10063_v6 = vmax.f32 %v12365_v12, 0.0  ;;  %v12367_v43 = vadd.f32 %v8460_v60, %v15786_v5  ;;  %v8462_v30 = vpop.f32.mrb[27].mxu0 }
 0x540   :  { %v10064_v42 = vmax.f32 %v12366_v29, 0.0  ;;  %v12368_v17 = vadd.f32 %v8462_v30, %v15788_v1 }
 0x541   :  { %v10066_v62 = vmax.f32 %v12367_v43, 0.0 }
 0x542   :  { %v11373_v40 = vpack.c.bf16 %v10064_v42, %v10063_v6  ;;  %v10067_v45 = vmax.f32 %v12368_v17, 0.0 }
 0x544   :  { %10259 = vst [vmem:[#allocation8 + $0x90] sm:$0xff] %v11373_v40  ;;  %v11375_v39 = vpack.c.bf16 %v10067_v45, %v10066_v62  ;;  %v8466_v10 = vpop.f32.mrb[28].mxu0 }
 0x545   :  { %v12369_v61 = vadd.f32 %v8466_v10, %v15786_v5  ;;  %v8468_v63 = vpop.f32.mrb[29].mxu0 }
 0x546   :  { %10261 = vst [vmem:[#allocation8 + $0x9c] sm:$0xff] %v11375_v39  ;;  %v12370_v31 = vadd.f32 %v8468_v63, %v15788_v1  ;;  %v8470_v20 = vpop.f32.mrb[30].mxu0 }
 0x547   :  { %v10069_v41 = vmax.f32 %v12369_v61, 0.0  ;;  %v12371_v55 = vadd.f32 %v8470_v20, %v15786_v5  ;;  %v8472_v21 = vpop.f32.mrb[31].mxu0 }
 0x548   :  { %v10070_v24 = vmax.f32 %v12370_v31, 0.0  ;;  %v12372_v34 = vadd.f32 %v8472_v21, %v15788_v1 }
 0x549   :  { %v10072_v27 = vmax.f32 %v12371_v55, 0.0 }
 0x54a   :  { %v11377_v59 = vpack.c.bf16 %v10070_v24, %v10069_v41  ;;  %v10073_v14 = vmax.f32 %v12372_v34, 0.0 }
 0x54c   :  { %10263 = vst [vmem:[#allocation8 + $0xa8] sm:$0xff] %v11377_v59  ;;  %v11379_v46 = vpack.c.bf16 %v10073_v14, %v10072_v27 }
 0x54e   :  { %10265 = vst [vmem:[#allocation8 + $0xb4] sm:$0xff] %v11379_v46 }
 0x54f   :  { %13948 = shalt.err (!%p13945_p0)
}
 0x550   :  { %s13949_s30 = scalar_lea.hbm %s15848_s3, 3072 }
 0x551   :  { %p13950_p1 = scmp.ne.s32.totalorder %s15848_s3, %s13949_s30  ;;  %p13953_p2 = scmp.lt.u32.totalorder %s13949_s30, %s15848_s3 }
 0x553   :  { %p13955_p3 = pnand %p13953_p2, %p13950_p1 }
 0x555   :  { %13958 = shalt.err (!%p13955_p3)
}
 0x556   :  { %10282 = dma.vmem_to_hbm [thread:$0]  %s10277_s26, 3072, %s15848_s3, [#allocation4], %s13966_s22, %s13966_s22, %s13967_s23  }
 0x557   :  { %13963 = dma.done.wait [#allocation4], 3072  }
 0x558   :  { %13964 = vsyncadd [#allocation4], 4294964224 }
 0x559   :  { %10286 = vsyncpa [#allocation3], 1 }
 0x55a   :  { %10287 = vsyncpa [#allocation6], 1 }
 0x55b   :  { %10288 = vsyncpa [#allocation4], 1 }

</bundles_post_ra>
